<compile_context>
chip_gen: v7x
topology: tpu7x:2x2x1
jax: 0.10.0
libtpu: 0.0.40
codegen_flags: <defaults>
</compile_context>

<pallas_src>
import functools

import numpy as np
import jax
import jax.numpy as jnp
from jax.experimental import pallas as pl
from jax.experimental.pallas import tpu as pltpu

N_ACTIONS = 4          # BreakoutDeterministic-v4 action space size
LANE = 128             # TPU lane width; channel dims padded to this
FC_HIDDEN = 512        # hidden width of each dueling stream
TAPS2 = 16             # conv2 4x4 kernel taps
TAPS3 = 9              # conv3 3x3 kernel taps


# ----------------------------------------------------------------------------
# Geometry helpers
# ----------------------------------------------------------------------------
def _conv_out(s, k, stride):
    return (s - k) // stride + 1


def _geometry(input_shape):
    _, H, W = input_shape
    oh1, ow1 = _conv_out(H, 8, 4), _conv_out(W, 8, 4)
    oh2, ow2 = _conv_out(oh1, 4, 2), _conv_out(ow1, 4, 2)
    oh3, ow3 = _conv_out(oh2, 3, 1), _conv_out(ow2, 3, 1)
    return (oh1, ow1), (oh2, ow2), (oh3, ow3)


def _im2col(x, kh, kw, stride):
    """(N, C, H, W) -> (N, OH*OW, C*kh*kw); column order (c, ki, kj) matches
    PyTorch's (OC, IC, KH, KW).reshape(OC, -1) weight flattening."""
    N, C, H, W = x.shape
    OH = (H - kh) // stride + 1
    OW = (W - kw) // stride + 1
    cols = []
    for i in range(kh):
        for j in range(kw):
            cols.append(x[:, :, i:i + stride * OH:stride, j:j + stride * OW:stride])
    p = jnp.stack(cols, axis=2)                     # (N, C, KH*KW, OH, OW)
    p = p.reshape(N, C * kh * kw, OH * OW)          # (N, K, OH*OW)
    return jnp.transpose(p, (0, 2, 1)), OH, OW      # (N, OH*OW, K)


def _conv2_slot_to_conv1_pos(oh1, ow1, oh2, ow2):
    """conv2-im2col slot (tap t2, output pos x2) -> conv1 output position index."""
    idx = np.zeros((TAPS2, oh2 * ow2), np.int32)
    for ki in range(4):
        for kj in range(4):
            t = ki * 4 + kj
            for oh in range(oh2):
                for ow in range(ow2):
                    idx[t, oh * ow2 + ow] = (2 * oh + ki) * ow1 + (2 * ow + kj)
    return idx.reshape(-1)


# ----------------------------------------------------------------------------
# Fused Pallas kernel: whole forward pass for TB samples per grid step
# ----------------------------------------------------------------------------
def _fused_dqn_kernel(p_ref, w1_ref, b1_ref, w2_ref, b2_ref, w3_ref, b3_ref,
                      wf1_ref, bf1_ref, wq_ref, bq_ref, q_ref,
                      *, tb, p2, oh2, ow2, oh3, ow3, compute_dtype):
    f32 = jnp.float32
    k1 = w1_ref.shape[0]

    # ---- conv1 at all (conv2-tap, batch, conv2-pos) slots: one big MXU matmul --
    x = p_ref[...].reshape(TAPS2 * tb * p2, k1)                      # bf16
    a1 = jnp.dot(x, w1_ref[...], preferred_element_type=f32) + b1_ref[...]
    a1 = jnp.maximum(a1, 0.0).astype(compute_dtype)                  # (16*tb*p2, 128)

    # ---- conv2: per-tap weight matmuls; windows are contiguous row-blocks of a1
    rows2 = tb * p2
    acc2 = jnp.zeros((rows2, LANE), f32)
    for t in range(TAPS2):
        win = a1[t * rows2:(t + 1) * rows2, :]                       # (tb*p2, 128)
        acc2 = acc2 + jnp.dot(win, w2_ref[t], preferred_element_type=f32)
    a2 = jnp.maximum(acc2 + b2_ref[...], 0.0).astype(compute_dtype)  # (tb*p2, 128)

    # ---- conv3 (stride 1): windows are static unit-stride slices of the grid ---
    a2g = a2.reshape(tb, oh2, ow2, LANE)
    rows3 = tb * oh3 * ow3
    acc3 = jnp.zeros((rows3, LANE), f32)
    for ki in range(3):
        for kj in range(3):
            win = a2g[:, ki:ki + oh3, kj:kj + ow3, :].reshape(rows3, LANE)
            acc3 = acc3 + jnp.dot(win, w3_ref[ki * 3 + kj],
                                  preferred_element_type=f32)
    a3 = jnp.maximum(acc3 + b3_ref[...], 0.0)                        # (tb*P3, 128)

    # ---- dueling head: single FC1 matmul (adv|val fused) + folded-FC2 epilogue --
    flat = a3.astype(compute_dtype).reshape(tb, oh3 * ow3 * LANE)    # (tb, P3*128)
    h = jnp.dot(flat, wf1_ref[...], preferred_element_type=f32) + bf1_ref[...]
    h = jnp.maximum(h, 0.0).astype(compute_dtype)                    # (tb, 1024)
    # wq/bq already encode q = val + adv - mean(adv); lane-dense (tb, 128) store.
    q_ref[...] = jnp.dot(h, wq_ref[...], preferred_element_type=f32) + bq_ref[...]


# ----------------------------------------------------------------------------
# One-time parameter preparation (reshape / fuse / fold / pad / cast)
# ----------------------------------------------------------------------------
def _pad_axis(a, target, axis):
    pad = target - a.shape[axis]
    if pad <= 0:
        return a
    widths = [(0, 0)] * a.ndim
    widths[axis] = (0, pad)
    return jnp.pad(a, widths)


def prepare_params(params, *, input_shape, n_actions=N_ACTIONS,
                   compute_dtype=jnp.bfloat16):
    (_, _), (_, _), (oh3, ow3) = _geometry(input_shape)
    P3 = oh3 * ow3
    f32 = jnp.float32

    # conv1: OIHW (32,4,8,8) -> (K1=256, 32), pad out-channels to 128
    w1 = params["conv1_w"].reshape(32, -1).T
    w1 = _pad_axis(w1, LANE, 1).astype(compute_dtype)
    b1 = _pad_axis(params["conv1_b"].reshape(1, -1), LANE, 1).astype(f32)

    # conv2: OIHW (64,32,4,4) -> per-tap (16, IC, OC), channel dims padded to 128
    w2 = jnp.transpose(params["conv2_w"], (2, 3, 1, 0)).reshape(TAPS2, 32, 64)
    w2 = _pad_axis(_pad_axis(w2, LANE, 1), LANE, 2).astype(compute_dtype)
    b2 = _pad_axis(params["conv2_b"].reshape(1, -1), LANE, 1).astype(f32)

    # conv3: OIHW (64,64,3,3) -> per-tap (9, IC, OC), padded
    w3 = jnp.transpose(params["conv3_w"], (2, 3, 1, 0)).reshape(TAPS3, 64, 64)
    w3 = _pad_axis(_pad_axis(w3, LANE, 1), LANE, 2).astype(compute_dtype)
    b3 = _pad_axis(params["conv3_b"].reshape(1, -1), LANE, 1).astype(f32)

    # fused FC1: cols [0:512) = advantage stream, [512:1024) = value stream.
    # PyTorch flatten index f = c*P3 + p  ->  reorder rows to lane layout p*128+c.
    wf1 = jnp.concatenate([params["adv_fc1_w"], params["val_fc1_w"]], axis=1)
    wf1 = wf1.reshape(64, P3, 2 * FC_HIDDEN).transpose(1, 0, 2)      # (P3, 64, 1024)
    wf1 = _pad_axis(wf1, LANE, 1).astype(compute_dtype)              # (P3, 128, 1024)
    wf1 = wf1.reshape(P3 * LANE, 2 * FC_HIDDEN)
    bf1 = jnp.concatenate([params["adv_fc1_b"],
                           params["val_fc1_b"]]).reshape(1, -1).astype(f32)

    # FC2 with the dueling combine folded in:
    #   q[a] = h_adv @ (Wadv[:,a] - mean_a' Wadv[:,a']) + h_val @ Wval
    #          + (badv[a] - mean(badv) + bval)
    wadv = params["adv_fc2_w"]                                       # (512, A)
    wval = params["val_fc2_w"]                                       # (512, 1)
    wq = jnp.zeros((2 * FC_HIDDEN, LANE), f32)
    wq = wq.at[:FC_HIDDEN, :n_actions].set(
        wadv - wadv.mean(axis=1, keepdims=True))
    wq = wq.at[FC_HIDDEN:, :n_actions].set(
        jnp.broadcast_to(wval, (FC_HIDDEN, n_actions)))
    wq = wq.astype(compute_dtype)
    bq = jnp.zeros((1, LANE), f32)
    badv = params["adv_fc2_b"]
    bq = bq.at[0, :n_actions].set(badv - badv.mean() + params["val_fc2_b"][0])

    # Padded-channel correctness relies on pad regions being exactly zero so the
    # padded activations stay zero through bias + ReLU (review correctness note).
    assert float(jnp.abs(w2[:, 32:, :]).sum()) == 0.0
    assert float(jnp.abs(w3[:, 64:, :]).sum()) == 0.0
    assert float(jnp.abs(b2[:, 64:]).sum()) == 0.0
    assert float(jnp.abs(b3[:, 64:]).sum()) == 0.0

    return {"w1": w1, "b1": b1, "w2": w2, "b2": b2, "w3": w3, "b3": b3,
            "wf1": wf1, "bf1": bf1, "wq": wq, "bq": bq}


# ----------------------------------------------------------------------------
# Forward pass (single fused pallas_call, TB samples per grid step)
# ----------------------------------------------------------------------------
def duelling_dqn_forward(prepared, x, *, input_shape, n_actions=N_ACTIONS,
                         tb=8, compute_dtype=jnp.bfloat16):
    (oh1, ow1), (oh2, ow2), (oh3, ow3) = _geometry(input_shape)
    B, C = x.shape[0], x.shape[1]
    P2, P3 = oh2 * ow2, oh3 * ow3
    K1 = C * 8 * 8

    # Choose the batch tile: either the whole batch (single grid step, block =
    # full array) or a sublane-aligned tile so the output block stays (8k, 128).
    if tb >= B:
        tb = B
    else:
        tb = max(8, (tb // 8) * 8)
    bp = ((B + tb - 1) // tb) * tb

    # ---- host-side glue (XLA): conv1 im2col in bf16, then reorder the rows into
    # conv2's im2col slot order (conv2-tap, batch, conv2-pos) so the kernel needs
    # no spatial gathers at all.
    # TODO(synk): this patch extraction stays outside the Pallas kernel.
    patches, _, _ = _im2col(x.astype(compute_dtype), 8, 8, 4)        # (B, P1, K1)
    slot_idx = jnp.asarray(_conv2_slot_to_conv1_pos(oh1, ow1, oh2, ow2))
    patches = jnp.take(patches, slot_idx, axis=1)                    # (B, 16*P2, K1)
    patches = patches.reshape(B, TAPS2, P2, K1).transpose(1, 0, 2, 3)
    if bp != B:
        patches = jnp.pad(patches, ((0, 0), (0, bp - B), (0, 0), (0, 0)))

    kernel = functools.partial(
        _fused_dqn_kernel, tb=tb, p2=P2, oh2=oh2, ow2=ow2, oh3=oh3, ow3=ow3,
        compute_dtype=compute_dtype)

    def const(shape):
        return pl.BlockSpec(shape, lambda i, _n=len(shape): (0,) * _n)

    q = pl.pallas_call(
        kernel,
        out_shape=jax.ShapeDtypeStruct((bp, LANE), jnp.float32),
        grid=(bp // tb,),
        in_specs=[
            pl.BlockSpec((TAPS2, tb, P2, K1), lambda i: (0, i, 0, 0)),  # patches
            const((K1, LANE)),                  # w1
            const((1, LANE)),                   # b1
            const((TAPS2, LANE, LANE)),         # w2 (per-tap)
            const((1, LANE)),                   # b2
            const((TAPS3, LANE, LANE)),         # w3 (per-tap)
            const((1, LANE)),                   # b3
            const((P3 * LANE, 2 * FC_HIDDEN)),  # wf1 (adv|val fused, reordered)
            const((1, 2 * FC_HIDDEN)),          # bf1
            const((2 * FC_HIDDEN, LANE)),       # wq (dueling combine folded)
            const((1, LANE)),                   # bq
        ],
        out_specs=pl.BlockSpec((tb, LANE), lambda i: (i, 0)),
        compiler_params=pltpu.CompilerParams(
            dimension_semantics=("parallel",),
            vmem_limit_bytes=32 * 1024 * 1024),
    )(patches, prepared["w1"], prepared["b1"], prepared["w2"], prepared["b2"],
      prepared["w3"], prepared["b3"], prepared["wf1"], prepared["bf1"],
      prepared["wq"], prepared["bq"])
    return q[:B, :n_actions]


# ----------------------------------------------------------------------------
# Parameter init (matches the PyTorch module's layer shapes)
# ----------------------------------------------------------------------------
def init_params(key, input_shape=(4, 44, 44), n_actions=N_ACTIONS):
    (_, _), (_, _), (oh3, ow3) = _geometry(input_shape)
    flat = 64 * oh3 * ow3

    keys = jax.random.split(key, 14)

    def uni(k, shape, fan_in):
        bound = 1.0 / jnp.sqrt(fan_in)
        return jax.random.uniform(k, shape, jnp.float32, -bound, bound)

    return {
        "conv1_w": uni(keys[0], (32, 4, 8, 8), 4 * 8 * 8),
        "conv1_b": uni(keys[1], (32,), 4 * 8 * 8),
        "conv2_w": uni(keys[2], (64, 32, 4, 4), 32 * 4 * 4),
        "conv2_b": uni(keys[3], (64,), 32 * 4 * 4),
        "conv3_w": uni(keys[4], (64, 64, 3, 3), 64 * 3 * 3),
        "conv3_b": uni(keys[5], (64,), 64 * 3 * 3),
        "val_fc1_w": uni(keys[6], (flat, FC_HIDDEN), flat),
        "val_fc1_b": uni(keys[7], (FC_HIDDEN,), flat),
        "val_fc2_w": uni(keys[8], (FC_HIDDEN, 1), FC_HIDDEN),
        "val_fc2_b": uni(keys[9], (1,), FC_HIDDEN),
        "adv_fc1_w": uni(keys[10], (flat, FC_HIDDEN), flat),
        "adv_fc1_b": uni(keys[11], (FC_HIDDEN,), flat),
        "adv_fc2_w": uni(keys[12], (FC_HIDDEN, n_actions), FC_HIDDEN),
        "adv_fc2_b": uni(keys[13], (n_actions,), FC_HIDDEN),
    }


def reference_forward(params, x):
    """Pure-JAX f32 reference (lax.conv) used only for a correctness assert."""
    def conv(z, w, b, s):
        y = jax.lax.conv_general_dilated(
            z, w, (s, s), "VALID", dimension_numbers=("NCHW", "OIHW", "NCHW"))
        return jax.nn.relu(y + b[None, :, None, None])

    h = conv(x, params["conv1_w"], params["conv1_b"], 4)
    h = conv(h, params["conv2_w"], params["conv2_b"], 2)
    h = conv(h, params["conv3_w"], params["conv3_b"], 1)
    flat = h.reshape(h.shape[0], -1)
    adv = jax.nn.relu(flat @ params["adv_fc1_w"] + params["adv_fc1_b"])
    val = jax.nn.relu(flat @ params["val_fc1_w"] + params["val_fc1_b"])
    adv = adv @ params["adv_fc2_w"] + params["adv_fc2_b"]
    val = val @ params["val_fc2_w"] + params["val_fc2_b"]
    return val + adv - adv.mean(axis=1, keepdims=True)


if __name__ == "__main__":
    key = jax.random.PRNGKey(0)
    pkey, xkey = jax.random.split(key)

    input_shape = (4, 44, 44)   # smallest nice size feeding the 8/4, 4/2, 3/1 stack
    batch = 16                  # 2 grid steps of TB=8 (keeps both v7x TCs busy)
    params = init_params(pkey, input_shape=input_shape, n_actions=N_ACTIONS)
    prepared = prepare_params(params, input_shape=input_shape, n_actions=N_ACTIONS)
    x = jax.random.uniform(xkey, (batch,) + input_shape, jnp.float32)

    forward = jax.jit(functools.partial(
        duelling_dqn_forward, input_shape=input_shape, n_actions=N_ACTIONS, tb=8))
    q = jax.block_until_ready(forward(prepared, x))

    q_ref = jax.block_until_ready(reference_forward(params, x))
    assert q.shape == (batch, N_ACTIONS)
    # bf16 MXU operands (f32 accumulation) -> tolerance loosened vs f32 reference.
    assert jnp.allclose(q, q_ref, rtol=3e-2, atol=3e-2), "mismatch vs reference"

    print("KERNEL_OK")
</pallas_src>

<mosaic_0001>
module attributes {stable_mosaic.version = 11 : i64} {
  func.func @_fused_dqn_kernel(%arg0: i32, %arg1: memref<16x8x16x256xbf16, #tpu.memory_space<vmem>>, %arg2: memref<256x128xbf16, #tpu.memory_space<vmem>>, %arg3: memref<1x128xf32, #tpu.memory_space<vmem>>, %arg4: memref<16x128x128xbf16, #tpu.memory_space<vmem>>, %arg5: memref<1x128xf32, #tpu.memory_space<vmem>>, %arg6: memref<9x128x128xbf16, #tpu.memory_space<vmem>>, %arg7: memref<1x128xf32, #tpu.memory_space<vmem>>, %arg8: memref<512x1024xbf16, #tpu.memory_space<vmem>>, %arg9: memref<1x1024xf32, #tpu.memory_space<vmem>>, %arg10: memref<1024x128xbf16, #tpu.memory_space<vmem>>, %arg11: memref<1x128xf32, #tpu.memory_space<vmem>>, %arg12: memref<8x128xf32, #tpu.memory_space<vmem>>) attributes {dimension_semantics = [#tpu.dimension_semantics<parallel>], iteration_bounds = array<i64: 2>, scalar_prefetch = 0 : i64, scratch_operands = 0 : i64, tpu.core_type = #tpu.core_type<tc>, window_params = [{transform_indices = @transform_0, window_bounds = array<i64: 16, 8, 16, 256>}, {pipeline_mode = #tpu.pipeline_mode<synchronous>, transform_indices = @transform_1, window_bounds = array<i64: 256, 128>}, {pipeline_mode = #tpu.pipeline_mode<synchronous>, transform_indices = @transform_2, window_bounds = array<i64: 1, 128>}, {pipeline_mode = #tpu.pipeline_mode<synchronous>, transform_indices = @transform_3, window_bounds = array<i64: 16, 128, 128>}, {pipeline_mode = #tpu.pipeline_mode<synchronous>, transform_indices = @transform_4, window_bounds = array<i64: 1, 128>}, {pipeline_mode = #tpu.pipeline_mode<synchronous>, transform_indices = @transform_5, window_bounds = array<i64: 9, 128, 128>}, {pipeline_mode = #tpu.pipeline_mode<synchronous>, transform_indices = @transform_6, window_bounds = array<i64: 1, 128>}, {pipeline_mode = #tpu.pipeline_mode<synchronous>, transform_indices = @transform_7, window_bounds = array<i64: 512, 1024>}, {pipeline_mode = #tpu.pipeline_mode<synchronous>, transform_indices = @transform_8, window_bounds = array<i64: 1, 1024>}, {pipeline_mode = #tpu.pipeline_mode<synchronous>, transform_indices = @transform_9, window_bounds = array<i64: 1024, 128>}, {pipeline_mode = #tpu.pipeline_mode<synchronous>, transform_indices = @transform_10, window_bounds = array<i64: 1, 128>}, {transform_indices = @transform_11, window_bounds = array<i64: 8, 128>}]} {
    %c0 = arith.constant 0 : index
    %c0_0 = arith.constant 0 : index
    %c0_1 = arith.constant 0 : index
    %c0_2 = arith.constant 0 : index
    %0 = vector.load %arg1[%c0, %c0_0, %c0_1, %c0_2] : memref<16x8x16x256xbf16, #tpu.memory_space<vmem>>, vector<16x8x16x256xbf16>
    %1 = vector.shape_cast %0 : vector<16x8x16x256xbf16> to vector<2048x256xbf16>
    %c0_3 = arith.constant 0 : index
    %c0_4 = arith.constant 0 : index
    %2 = vector.load %arg2[%c0_3, %c0_4] : memref<256x128xbf16, #tpu.memory_space<vmem>>, vector<256x128xbf16>
    %cst = arith.constant dense<0.000000e+00> : vector<2048x128xf32>
    %3 = tpu.matmul %1, %2, %cst {dimension_numbers = #tpu.dot_dimension_numbers<[1], [0], [0], [1], [0, 0, 1, 1], [], []>} : vector<2048x256xbf16>, vector<256x128xbf16>, vector<2048x128xf32> -> vector<2048x128xf32>
    %c0_5 = arith.constant 0 : index
    %c0_6 = arith.constant 0 : index
    %4 = vector.load %arg3[%c0_5, %c0_6] : memref<1x128xf32, #tpu.memory_space<vmem>>, vector<1x128xf32>
    %5 = vector.broadcast %4 : vector<1x128xf32> to vector<2048x128xf32>
    %6 = arith.addf %3, %5 : vector<2048x128xf32>
    %cst_7 = arith.constant 0.000000e+00 : f32
    %7 = vector.broadcast %cst_7 : f32 to vector<2048x128xf32>
    %8 = arith.maximumf %6, %7 : vector<2048x128xf32>
    %9 = arith.truncf %8 : vector<2048x128xf32> to vector<2048x128xbf16>
    %cst_8 = arith.constant 0.000000e+00 : f32
    %10 = vector.broadcast %cst_8 : f32 to vector<128x128xf32>
    %11 = vector.extract_strided_slice %9 {offsets = [0, 0], sizes = [128, 128], strides = [1, 1]} : vector<2048x128xbf16> to vector<128x128xbf16>
    %c0_9 = arith.constant 0 : index
    %c0_10 = arith.constant 0 : index
    %c0_11 = arith.constant 0 : index
    %12 = vector.load %arg4[%c0_9, %c0_10, %c0_11] : memref<16x128x128xbf16, #tpu.memory_space<vmem>>, vector<1x128x128xbf16>
    %13 = vector.shape_cast %12 : vector<1x128x128xbf16> to vector<128x128xbf16>
    %cst_12 = arith.constant dense<0.000000e+00> : vector<128x128xf32>
    %14 = tpu.matmul %11, %13, %cst_12 {dimension_numbers = #tpu.dot_dimension_numbers<[1], [0], [0], [1], [0, 0, 1, 1], [], []>} : vector<128x128xbf16>, vector<128x128xbf16>, vector<128x128xf32> -> vector<128x128xf32>
    %15 = arith.addf %10, %14 : vector<128x128xf32>
    %16 = vector.extract_strided_slice %9 {offsets = [128, 0], sizes = [128, 128], strides = [1, 1]} : vector<2048x128xbf16> to vector<128x128xbf16>
    %c1 = arith.constant 1 : index
    %c0_13 = arith.constant 0 : index
    %c0_14 = arith.constant 0 : index
    %17 = vector.load %arg4[%c1, %c0_13, %c0_14] : memref<16x128x128xbf16, #tpu.memory_space<vmem>>, vector<1x128x128xbf16>
    %18 = vector.shape_cast %17 : vector<1x128x128xbf16> to vector<128x128xbf16>
    %cst_15 = arith.constant dense<0.000000e+00> : vector<128x128xf32>
    %19 = tpu.matmul %16, %18, %cst_15 {dimension_numbers = #tpu.dot_dimension_numbers<[1], [0], [0], [1], [0, 0, 1, 1], [], []>} : vector<128x128xbf16>, vector<128x128xbf16>, vector<128x128xf32> -> vector<128x128xf32>
    %20 = arith.addf %15, %19 : vector<128x128xf32>
    %21 = vector.extract_strided_slice %9 {offsets = [256, 0], sizes = [128, 128], strides = [1, 1]} : vector<2048x128xbf16> to vector<128x128xbf16>
    %c2 = arith.constant 2 : index
    %c0_16 = arith.constant 0 : index
    %c0_17 = arith.constant 0 : index
    %22 = vector.load %arg4[%c2, %c0_16, %c0_17] : memref<16x128x128xbf16, #tpu.memory_space<vmem>>, vector<1x128x128xbf16>
    %23 = vector.shape_cast %22 : vector<1x128x128xbf16> to vector<128x128xbf16>
    %cst_18 = arith.constant dense<0.000000e+00> : vector<128x128xf32>
    %24 = tpu.matmul %21, %23, %cst_18 {dimension_numbers = #tpu.dot_dimension_numbers<[1], [0], [0], [1], [0, 0, 1, 1], [], []>} : vector<128x128xbf16>, vector<128x128xbf16>, vector<128x128xf32> -> vector<128x128xf32>
    %25 = arith.addf %20, %24 : vector<128x128xf32>
    %26 = vector.extract_strided_slice %9 {offsets = [384, 0], sizes = [128, 128], strides = [1, 1]} : vector<2048x128xbf16> to vector<128x128xbf16>
    %c3 = arith.constant 3 : index
    %c0_19 = arith.constant 0 : index
    %c0_20 = arith.constant 0 : index
    %27 = vector.load %arg4[%c3, %c0_19, %c0_20] : memref<16x128x128xbf16, #tpu.memory_space<vmem>>, vector<1x128x128xbf16>
    %28 = vector.shape_cast %27 : vector<1x128x128xbf16> to vector<128x128xbf16>
    %cst_21 = arith.constant dense<0.000000e+00> : vector<128x128xf32>
    %29 = tpu.matmul %26, %28, %cst_21 {dimension_numbers = #tpu.dot_dimension_numbers<[1], [0], [0], [1], [0, 0, 1, 1], [], []>} : vector<128x128xbf16>, vector<128x128xbf16>, vector<128x128xf32> -> vector<128x128xf32>
    %30 = arith.addf %25, %29 : vector<128x128xf32>
    %31 = vector.extract_strided_slice %9 {offsets = [512, 0], sizes = [128, 128], strides = [1, 1]} : vector<2048x128xbf16> to vector<128x128xbf16>
    %c4 = arith.constant 4 : index
    %c0_22 = arith.constant 0 : index
    %c0_23 = arith.constant 0 : index
    %32 = vector.load %arg4[%c4, %c0_22, %c0_23] : memref<16x128x128xbf16, #tpu.memory_space<vmem>>, vector<1x128x128xbf16>
    %33 = vector.shape_cast %32 : vector<1x128x128xbf16> to vector<128x128xbf16>
    %cst_24 = arith.constant dense<0.000000e+00> : vector<128x128xf32>
    %34 = tpu.matmul %31, %33, %cst_24 {dimension_numbers = #tpu.dot_dimension_numbers<[1], [0], [0], [1], [0, 0, 1, 1], [], []>} : vector<128x128xbf16>, vector<128x128xbf16>, vector<128x128xf32> -> vector<128x128xf32>
    %35 = arith.addf %30, %34 : vector<128x128xf32>
    %36 = vector.extract_strided_slice %9 {offsets = [640, 0], sizes = [128, 128], strides = [1, 1]} : vector<2048x128xbf16> to vector<128x128xbf16>
    %c5 = arith.constant 5 : index
    %c0_25 = arith.constant 0 : index
    %c0_26 = arith.constant 0 : index
    %37 = vector.load %arg4[%c5, %c0_25, %c0_26] : memref<16x128x128xbf16, #tpu.memory_space<vmem>>, vector<1x128x128xbf16>
    %38 = vector.shape_cast %37 : vector<1x128x128xbf16> to vector<128x128xbf16>
    %cst_27 = arith.constant dense<0.000000e+00> : vector<128x128xf32>
    %39 = tpu.matmul %36, %38, %cst_27 {dimension_numbers = #tpu.dot_dimension_numbers<[1], [0], [0], [1], [0, 0, 1, 1], [], []>} : vector<128x128xbf16>, vector<128x128xbf16>, vector<128x128xf32> -> vector<128x128xf32>
    %40 = arith.addf %35, %39 : vector<128x128xf32>
    %41 = vector.extract_strided_slice %9 {offsets = [768, 0], sizes = [128, 128], strides = [1, 1]} : vector<2048x128xbf16> to vector<128x128xbf16>
    %c6 = arith.constant 6 : index
    %c0_28 = arith.constant 0 : index
    %c0_29 = arith.constant 0 : index
    %42 = vector.load %arg4[%c6, %c0_28, %c0_29] : memref<16x128x128xbf16, #tpu.memory_space<vmem>>, vector<1x128x128xbf16>
    %43 = vector.shape_cast %42 : vector<1x128x128xbf16> to vector<128x128xbf16>
    %cst_30 = arith.constant dense<0.000000e+00> : vector<128x128xf32>
    %44 = tpu.matmul %41, %43, %cst_30 {dimension_numbers = #tpu.dot_dimension_numbers<[1], [0], [0], [1], [0, 0, 1, 1], [], []>} : vector<128x128xbf16>, vector<128x128xbf16>, vector<128x128xf32> -> vector<128x128xf32>
    %45 = arith.addf %40, %44 : vector<128x128xf32>
    %46 = vector.extract_strided_slice %9 {offsets = [896, 0], sizes = [128, 128], strides = [1, 1]} : vector<2048x128xbf16> to vector<128x128xbf16>
    %c7 = arith.constant 7 : index
    %c0_31 = arith.constant 0 : index
    %c0_32 = arith.constant 0 : index
    %47 = vector.load %arg4[%c7, %c0_31, %c0_32] : memref<16x128x128xbf16, #tpu.memory_space<vmem>>, vector<1x128x128xbf16>
    %48 = vector.shape_cast %47 : vector<1x128x128xbf16> to vector<128x128xbf16>
    %cst_33 = arith.constant dense<0.000000e+00> : vector<128x128xf32>
    %49 = tpu.matmul %46, %48, %cst_33 {dimension_numbers = #tpu.dot_dimension_numbers<[1], [0], [0], [1], [0, 0, 1, 1], [], []>} : vector<128x128xbf16>, vector<128x128xbf16>, vector<128x128xf32> -> vector<128x128xf32>
    %50 = arith.addf %45, %49 : vector<128x128xf32>
    %51 = vector.extract_strided_slice %9 {offsets = [1024, 0], sizes = [128, 128], strides = [1, 1]} : vector<2048x128xbf16> to vector<128x128xbf16>
    %c8 = arith.constant 8 : index
    %c0_34 = arith.constant 0 : index
    %c0_35 = arith.constant 0 : index
    %52 = vector.load %arg4[%c8, %c0_34, %c0_35] : memref<16x128x128xbf16, #tpu.memory_space<vmem>>, vector<1x128x128xbf16>
    %53 = vector.shape_cast %52 : vector<1x128x128xbf16> to vector<128x128xbf16>
    %cst_36 = arith.constant dense<0.000000e+00> : vector<128x128xf32>
    %54 = tpu.matmul %51, %53, %cst_36 {dimension_numbers = #tpu.dot_dimension_numbers<[1], [0], [0], [1], [0, 0, 1, 1], [], []>} : vector<128x128xbf16>, vector<128x128xbf16>, vector<128x128xf32> -> vector<128x128xf32>
    %55 = arith.addf %50, %54 : vector<128x128xf32>
    %56 = vector.extract_strided_slice %9 {offsets = [1152, 0], sizes = [128, 128], strides = [1, 1]} : vector<2048x128xbf16> to vector<128x128xbf16>
    %c9 = arith.constant 9 : index
    %c0_37 = arith.constant 0 : index
    %c0_38 = arith.constant 0 : index
    %57 = vector.load %arg4[%c9, %c0_37, %c0_38] : memref<16x128x128xbf16, #tpu.memory_space<vmem>>, vector<1x128x128xbf16>
    %58 = vector.shape_cast %57 : vector<1x128x128xbf16> to vector<128x128xbf16>
    %cst_39 = arith.constant dense<0.000000e+00> : vector<128x128xf32>
    %59 = tpu.matmul %56, %58, %cst_39 {dimension_numbers = #tpu.dot_dimension_numbers<[1], [0], [0], [1], [0, 0, 1, 1], [], []>} : vector<128x128xbf16>, vector<128x128xbf16>, vector<128x128xf32> -> vector<128x128xf32>
    %60 = arith.addf %55, %59 : vector<128x128xf32>
    %61 = vector.extract_strided_slice %9 {offsets = [1280, 0], sizes = [128, 128], strides = [1, 1]} : vector<2048x128xbf16> to vector<128x128xbf16>
    %c10 = arith.constant 10 : index
    %c0_40 = arith.constant 0 : index
    %c0_41 = arith.constant 0 : index
    %62 = vector.load %arg4[%c10, %c0_40, %c0_41] : memref<16x128x128xbf16, #tpu.memory_space<vmem>>, vector<1x128x128xbf16>
    %63 = vector.shape_cast %62 : vector<1x128x128xbf16> to vector<128x128xbf16>
    %cst_42 = arith.constant dense<0.000000e+00> : vector<128x128xf32>
    %64 = tpu.matmul %61, %63, %cst_42 {dimension_numbers = #tpu.dot_dimension_numbers<[1], [0], [0], [1], [0, 0, 1, 1], [], []>} : vector<128x128xbf16>, vector<128x128xbf16>, vector<128x128xf32> -> vector<128x128xf32>
    %65 = arith.addf %60, %64 : vector<128x128xf32>
    %66 = vector.extract_strided_slice %9 {offsets = [1408, 0], sizes = [128, 128], strides = [1, 1]} : vector<2048x128xbf16> to vector<128x128xbf16>
    %c11 = arith.constant 11 : index
    %c0_43 = arith.constant 0 : index
    %c0_44 = arith.constant 0 : index
    %67 = vector.load %arg4[%c11, %c0_43, %c0_44] : memref<16x128x128xbf16, #tpu.memory_space<vmem>>, vector<1x128x128xbf16>
    %68 = vector.shape_cast %67 : vector<1x128x128xbf16> to vector<128x128xbf16>
    %cst_45 = arith.constant dense<0.000000e+00> : vector<128x128xf32>
    %69 = tpu.matmul %66, %68, %cst_45 {dimension_numbers = #tpu.dot_dimension_numbers<[1], [0], [0], [1], [0, 0, 1, 1], [], []>} : vector<128x128xbf16>, vector<128x128xbf16>, vector<128x128xf32> -> vector<128x128xf32>
    %70 = arith.addf %65, %69 : vector<128x128xf32>
    %71 = vector.extract_strided_slice %9 {offsets = [1536, 0], sizes = [128, 128], strides = [1, 1]} : vector<2048x128xbf16> to vector<128x128xbf16>
    %c12 = arith.constant 12 : index
    %c0_46 = arith.constant 0 : index
    %c0_47 = arith.constant 0 : index
    %72 = vector.load %arg4[%c12, %c0_46, %c0_47] : memref<16x128x128xbf16, #tpu.memory_space<vmem>>, vector<1x128x128xbf16>
    %73 = vector.shape_cast %72 : vector<1x128x128xbf16> to vector<128x128xbf16>
    %cst_48 = arith.constant dense<0.000000e+00> : vector<128x128xf32>
    %74 = tpu.matmul %71, %73, %cst_48 {dimension_numbers = #tpu.dot_dimension_numbers<[1], [0], [0], [1], [0, 0, 1, 1], [], []>} : vector<128x128xbf16>, vector<128x128xbf16>, vector<128x128xf32> -> vector<128x128xf32>
    %75 = arith.addf %70, %74 : vector<128x128xf32>
    %76 = vector.extract_strided_slice %9 {offsets = [1664, 0], sizes = [128, 128], strides = [1, 1]} : vector<2048x128xbf16> to vector<128x128xbf16>
    %c13 = arith.constant 13 : index
    %c0_49 = arith.constant 0 : index
    %c0_50 = arith.constant 0 : index
    %77 = vector.load %arg4[%c13, %c0_49, %c0_50] : memref<16x128x128xbf16, #tpu.memory_space<vmem>>, vector<1x128x128xbf16>
    %78 = vector.shape_cast %77 : vector<1x128x128xbf16> to vector<128x128xbf16>
    %cst_51 = arith.constant dense<0.000000e+00> : vector<128x128xf32>
    %79 = tpu.matmul %76, %78, %cst_51 {dimension_numbers = #tpu.dot_dimension_numbers<[1], [0], [0], [1], [0, 0, 1, 1], [], []>} : vector<128x128xbf16>, vector<128x128xbf16>, vector<128x128xf32> -> vector<128x128xf32>
    %80 = arith.addf %75, %79 : vector<128x128xf32>
    %81 = vector.extract_strided_slice %9 {offsets = [1792, 0], sizes = [128, 128], strides = [1, 1]} : vector<2048x128xbf16> to vector<128x128xbf16>
    %c14 = arith.constant 14 : index
    %c0_52 = arith.constant 0 : index
    %c0_53 = arith.constant 0 : index
    %82 = vector.load %arg4[%c14, %c0_52, %c0_53] : memref<16x128x128xbf16, #tpu.memory_space<vmem>>, vector<1x128x128xbf16>
    %83 = vector.shape_cast %82 : vector<1x128x128xbf16> to vector<128x128xbf16>
    %cst_54 = arith.constant dense<0.000000e+00> : vector<128x128xf32>
    %84 = tpu.matmul %81, %83, %cst_54 {dimension_numbers = #tpu.dot_dimension_numbers<[1], [0], [0], [1], [0, 0, 1, 1], [], []>} : vector<128x128xbf16>, vector<128x128xbf16>, vector<128x128xf32> -> vector<128x128xf32>
    %85 = arith.addf %80, %84 : vector<128x128xf32>
    %86 = vector.extract_strided_slice %9 {offsets = [1920, 0], sizes = [128, 128], strides = [1, 1]} : vector<2048x128xbf16> to vector<128x128xbf16>
    %c15 = arith.constant 15 : index
    %c0_55 = arith.constant 0 : index
    %c0_56 = arith.constant 0 : index
    %87 = vector.load %arg4[%c15, %c0_55, %c0_56] : memref<16x128x128xbf16, #tpu.memory_space<vmem>>, vector<1x128x128xbf16>
    %88 = vector.shape_cast %87 : vector<1x128x128xbf16> to vector<128x128xbf16>
    %cst_57 = arith.constant dense<0.000000e+00> : vector<128x128xf32>
    %89 = tpu.matmul %86, %88, %cst_57 {dimension_numbers = #tpu.dot_dimension_numbers<[1], [0], [0], [1], [0, 0, 1, 1], [], []>} : vector<128x128xbf16>, vector<128x128xbf16>, vector<128x128xf32> -> vector<128x128xf32>
    %90 = arith.addf %85, %89 : vector<128x128xf32>
    %c0_58 = arith.constant 0 : index
    %c0_59 = arith.constant 0 : index
    %91 = vector.load %arg5[%c0_58, %c0_59] : memref<1x128xf32, #tpu.memory_space<vmem>>, vector<1x128xf32>
    %92 = vector.broadcast %91 : vector<1x128xf32> to vector<128x128xf32>
    %93 = arith.addf %90, %92 : vector<128x128xf32>
    %cst_60 = arith.constant 0.000000e+00 : f32
    %94 = vector.broadcast %cst_60 : f32 to vector<128x128xf32>
    %95 = arith.maximumf %93, %94 : vector<128x128xf32>
    %96 = arith.truncf %95 : vector<128x128xf32> to vector<128x128xbf16>
    %97 = vector.shape_cast %96 : vector<128x128xbf16> to vector<8x4x4x128xbf16>
    %cst_61 = arith.constant 0.000000e+00 : f32
    %98 = vector.broadcast %cst_61 : f32 to vector<32x128xf32>
    %99 = vector.extract_strided_slice %97 {offsets = [0, 0, 0, 0], sizes = [8, 2, 2, 128], strides = [1, 1, 1, 1]} : vector<8x4x4x128xbf16> to vector<8x2x2x128xbf16>
    %100 = vector.shape_cast %99 : vector<8x2x2x128xbf16> to vector<32x128xbf16>
    %c0_62 = arith.constant 0 : index
    %c0_63 = arith.constant 0 : index
    %c0_64 = arith.constant 0 : index
    %101 = vector.load %arg6[%c0_62, %c0_63, %c0_64] : memref<9x128x128xbf16, #tpu.memory_space<vmem>>, vector<1x128x128xbf16>
    %102 = vector.shape_cast %101 : vector<1x128x128xbf16> to vector<128x128xbf16>
    %cst_65 = arith.constant dense<0.000000e+00> : vector<32x128xf32>
    %103 = tpu.matmul %100, %102, %cst_65 {dimension_numbers = #tpu.dot_dimension_numbers<[1], [0], [0], [1], [0, 0, 1, 1], [], []>} : vector<32x128xbf16>, vector<128x128xbf16>, vector<32x128xf32> -> vector<32x128xf32>
    %104 = arith.addf %98, %103 : vector<32x128xf32>
    %105 = vector.extract_strided_slice %97 {offsets = [0, 0, 1, 0], sizes = [8, 2, 2, 128], strides = [1, 1, 1, 1]} : vector<8x4x4x128xbf16> to vector<8x2x2x128xbf16>
    %106 = vector.shape_cast %105 : vector<8x2x2x128xbf16> to vector<32x128xbf16>
    %c1_66 = arith.constant 1 : index
    %c0_67 = arith.constant 0 : index
    %c0_68 = arith.constant 0 : index
    %107 = vector.load %arg6[%c1_66, %c0_67, %c0_68] : memref<9x128x128xbf16, #tpu.memory_space<vmem>>, vector<1x128x128xbf16>
    %108 = vector.shape_cast %107 : vector<1x128x128xbf16> to vector<128x128xbf16>
    %cst_69 = arith.constant dense<0.000000e+00> : vector<32x128xf32>
    %109 = tpu.matmul %106, %108, %cst_69 {dimension_numbers = #tpu.dot_dimension_numbers<[1], [0], [0], [1], [0, 0, 1, 1], [], []>} : vector<32x128xbf16>, vector<128x128xbf16>, vector<32x128xf32> -> vector<32x128xf32>
    %110 = arith.addf %104, %109 : vector<32x128xf32>
    %111 = vector.extract_strided_slice %97 {offsets = [0, 0, 2, 0], sizes = [8, 2, 2, 128], strides = [1, 1, 1, 1]} : vector<8x4x4x128xbf16> to vector<8x2x2x128xbf16>
    %112 = vector.shape_cast %111 : vector<8x2x2x128xbf16> to vector<32x128xbf16>
    %c2_70 = arith.constant 2 : index
    %c0_71 = arith.constant 0 : index
    %c0_72 = arith.constant 0 : index
    %113 = vector.load %arg6[%c2_70, %c0_71, %c0_72] : memref<9x128x128xbf16, #tpu.memory_space<vmem>>, vector<1x128x128xbf16>
    %114 = vector.shape_cast %113 : vector<1x128x128xbf16> to vector<128x128xbf16>
    %cst_73 = arith.constant dense<0.000000e+00> : vector<32x128xf32>
    %115 = tpu.matmul %112, %114, %cst_73 {dimension_numbers = #tpu.dot_dimension_numbers<[1], [0], [0], [1], [0, 0, 1, 1], [], []>} : vector<32x128xbf16>, vector<128x128xbf16>, vector<32x128xf32> -> vector<32x128xf32>
    %116 = arith.addf %110, %115 : vector<32x128xf32>
    %117 = vector.extract_strided_slice %97 {offsets = [0, 1, 0, 0], sizes = [8, 2, 2, 128], strides = [1, 1, 1, 1]} : vector<8x4x4x128xbf16> to vector<8x2x2x128xbf16>
    %118 = vector.shape_cast %117 : vector<8x2x2x128xbf16> to vector<32x128xbf16>
    %c3_74 = arith.constant 3 : index
    %c0_75 = arith.constant 0 : index
    %c0_76 = arith.constant 0 : index
    %119 = vector.load %arg6[%c3_74, %c0_75, %c0_76] : memref<9x128x128xbf16, #tpu.memory_space<vmem>>, vector<1x128x128xbf16>
    %120 = vector.shape_cast %119 : vector<1x128x128xbf16> to vector<128x128xbf16>
    %cst_77 = arith.constant dense<0.000000e+00> : vector<32x128xf32>
    %121 = tpu.matmul %118, %120, %cst_77 {dimension_numbers = #tpu.dot_dimension_numbers<[1], [0], [0], [1], [0, 0, 1, 1], [], []>} : vector<32x128xbf16>, vector<128x128xbf16>, vector<32x128xf32> -> vector<32x128xf32>
    %122 = arith.addf %116, %121 : vector<32x128xf32>
    %123 = vector.extract_strided_slice %97 {offsets = [0, 1, 1, 0], sizes = [8, 2, 2, 128], strides = [1, 1, 1, 1]} : vector<8x4x4x128xbf16> to vector<8x2x2x128xbf16>
    %124 = vector.shape_cast %123 : vector<8x2x2x128xbf16> to vector<32x128xbf16>
    %c4_78 = arith.constant 4 : index
    %c0_79 = arith.constant 0 : index
    %c0_80 = arith.constant 0 : index
    %125 = vector.load %arg6[%c4_78, %c0_79, %c0_80] : memref<9x128x128xbf16, #tpu.memory_space<vmem>>, vector<1x128x128xbf16>
    %126 = vector.shape_cast %125 : vector<1x128x128xbf16> to vector<128x128xbf16>
    %cst_81 = arith.constant dense<0.000000e+00> : vector<32x128xf32>
    %127 = tpu.matmul %124, %126, %cst_81 {dimension_numbers = #tpu.dot_dimension_numbers<[1], [0], [0], [1], [0, 0, 1, 1], [], []>} : vector<32x128xbf16>, vector<128x128xbf16>, vector<32x128xf32> -> vector<32x128xf32>
    %128 = arith.addf %122, %127 : vector<32x128xf32>
    %129 = vector.extract_strided_slice %97 {offsets = [0, 1, 2, 0], sizes = [8, 2, 2, 128], strides = [1, 1, 1, 1]} : vector<8x4x4x128xbf16> to vector<8x2x2x128xbf16>
    %130 = vector.shape_cast %129 : vector<8x2x2x128xbf16> to vector<32x128xbf16>
    %c5_82 = arith.constant 5 : index
    %c0_83 = arith.constant 0 : index
    %c0_84 = arith.constant 0 : index
    %131 = vector.load %arg6[%c5_82, %c0_83, %c0_84] : memref<9x128x128xbf16, #tpu.memory_space<vmem>>, vector<1x128x128xbf16>
    %132 = vector.shape_cast %131 : vector<1x128x128xbf16> to vector<128x128xbf16>
    %cst_85 = arith.constant dense<0.000000e+00> : vector<32x128xf32>
    %133 = tpu.matmul %130, %132, %cst_85 {dimension_numbers = #tpu.dot_dimension_numbers<[1], [0], [0], [1], [0, 0, 1, 1], [], []>} : vector<32x128xbf16>, vector<128x128xbf16>, vector<32x128xf32> -> vector<32x128xf32>
    %134 = arith.addf %128, %133 : vector<32x128xf32>
    %135 = vector.extract_strided_slice %97 {offsets = [0, 2, 0, 0], sizes = [8, 2, 2, 128], strides = [1, 1, 1, 1]} : vector<8x4x4x128xbf16> to vector<8x2x2x128xbf16>
    %136 = vector.shape_cast %135 : vector<8x2x2x128xbf16> to vector<32x128xbf16>
    %c6_86 = arith.constant 6 : index
    %c0_87 = arith.constant 0 : index
    %c0_88 = arith.constant 0 : index
    %137 = vector.load %arg6[%c6_86, %c0_87, %c0_88] : memref<9x128x128xbf16, #tpu.memory_space<vmem>>, vector<1x128x128xbf16>
    %138 = vector.shape_cast %137 : vector<1x128x128xbf16> to vector<128x128xbf16>
    %cst_89 = arith.constant dense<0.000000e+00> : vector<32x128xf32>
    %139 = tpu.matmul %136, %138, %cst_89 {dimension_numbers = #tpu.dot_dimension_numbers<[1], [0], [0], [1], [0, 0, 1, 1], [], []>} : vector<32x128xbf16>, vector<128x128xbf16>, vector<32x128xf32> -> vector<32x128xf32>
    %140 = arith.addf %134, %139 : vector<32x128xf32>
    %141 = vector.extract_strided_slice %97 {offsets = [0, 2, 1, 0], sizes = [8, 2, 2, 128], strides = [1, 1, 1, 1]} : vector<8x4x4x128xbf16> to vector<8x2x2x128xbf16>
    %142 = vector.shape_cast %141 : vector<8x2x2x128xbf16> to vector<32x128xbf16>
    %c7_90 = arith.constant 7 : index
    %c0_91 = arith.constant 0 : index
    %c0_92 = arith.constant 0 : index
    %143 = vector.load %arg6[%c7_90, %c0_91, %c0_92] : memref<9x128x128xbf16, #tpu.memory_space<vmem>>, vector<1x128x128xbf16>
    %144 = vector.shape_cast %143 : vector<1x128x128xbf16> to vector<128x128xbf16>
    %cst_93 = arith.constant dense<0.000000e+00> : vector<32x128xf32>
    %145 = tpu.matmul %142, %144, %cst_93 {dimension_numbers = #tpu.dot_dimension_numbers<[1], [0], [0], [1], [0, 0, 1, 1], [], []>} : vector<32x128xbf16>, vector<128x128xbf16>, vector<32x128xf32> -> vector<32x128xf32>
    %146 = arith.addf %140, %145 : vector<32x128xf32>
    %147 = vector.extract_strided_slice %97 {offsets = [0, 2, 2, 0], sizes = [8, 2, 2, 128], strides = [1, 1, 1, 1]} : vector<8x4x4x128xbf16> to vector<8x2x2x128xbf16>
    %148 = vector.shape_cast %147 : vector<8x2x2x128xbf16> to vector<32x128xbf16>
    %c8_94 = arith.constant 8 : index
    %c0_95 = arith.constant 0 : index
    %c0_96 = arith.constant 0 : index
    %149 = vector.load %arg6[%c8_94, %c0_95, %c0_96] : memref<9x128x128xbf16, #tpu.memory_space<vmem>>, vector<1x128x128xbf16>
    %150 = vector.shape_cast %149 : vector<1x128x128xbf16> to vector<128x128xbf16>
    %cst_97 = arith.constant dense<0.000000e+00> : vector<32x128xf32>
    %151 = tpu.matmul %148, %150, %cst_97 {dimension_numbers = #tpu.dot_dimension_numbers<[1], [0], [0], [1], [0, 0, 1, 1], [], []>} : vector<32x128xbf16>, vector<128x128xbf16>, vector<32x128xf32> -> vector<32x128xf32>
    %152 = arith.addf %146, %151 : vector<32x128xf32>
    %c0_98 = arith.constant 0 : index
    %c0_99 = arith.constant 0 : index
    %153 = vector.load %arg7[%c0_98, %c0_99] : memref<1x128xf32, #tpu.memory_space<vmem>>, vector<1x128xf32>
    %154 = vector.broadcast %153 : vector<1x128xf32> to vector<32x128xf32>
    %155 = arith.addf %152, %154 : vector<32x128xf32>
    %cst_100 = arith.constant 0.000000e+00 : f32
    %156 = vector.broadcast %cst_100 : f32 to vector<32x128xf32>
    %157 = arith.maximumf %155, %156 : vector<32x128xf32>
    %158 = arith.truncf %157 : vector<32x128xf32> to vector<32x128xbf16>
    %159 = vector.shape_cast %158 : vector<32x128xbf16> to vector<8x512xbf16>
    %c0_101 = arith.constant 0 : index
    %c0_102 = arith.constant 0 : index
    %160 = vector.load %arg8[%c0_101, %c0_102] : memref<512x1024xbf16, #tpu.memory_space<vmem>>, vector<512x1024xbf16>
    %cst_103 = arith.constant dense<0.000000e+00> : vector<8x1024xf32>
    %161 = tpu.matmul %159, %160, %cst_103 {dimension_numbers = #tpu.dot_dimension_numbers<[1], [0], [0], [1], [0, 0, 1, 1], [], []>} : vector<8x512xbf16>, vector<512x1024xbf16>, vector<8x1024xf32> -> vector<8x1024xf32>
    %c0_104 = arith.constant 0 : index
    %c0_105 = arith.constant 0 : index
    %162 = vector.load %arg9[%c0_104, %c0_105] : memref<1x1024xf32, #tpu.memory_space<vmem>>, vector<1x1024xf32>
    %163 = vector.broadcast %162 : vector<1x1024xf32> to vector<8x1024xf32>
    %164 = arith.addf %161, %163 : vector<8x1024xf32>
    %cst_106 = arith.constant 0.000000e+00 : f32
    %165 = vector.broadcast %cst_106 : f32 to vector<8x1024xf32>
    %166 = arith.maximumf %164, %165 : vector<8x1024xf32>
    %167 = arith.truncf %166 : vector<8x1024xf32> to vector<8x1024xbf16>
    %c0_107 = arith.constant 0 : index
    %c0_108 = arith.constant 0 : index
    %168 = vector.load %arg10[%c0_107, %c0_108] : memref<1024x128xbf16, #tpu.memory_space<vmem>>, vector<1024x128xbf16>
    %cst_109 = arith.constant dense<0.000000e+00> : vector<8x128xf32>
    %169 = tpu.matmul %167, %168, %cst_109 {dimension_numbers = #tpu.dot_dimension_numbers<[1], [0], [0], [1], [0, 0, 1, 1], [], []>} : vector<8x1024xbf16>, vector<1024x128xbf16>, vector<8x128xf32> -> vector<8x128xf32>
    %c0_110 = arith.constant 0 : index
    %c0_111 = arith.constant 0 : index
    %170 = vector.load %arg11[%c0_110, %c0_111] : memref<1x128xf32, #tpu.memory_space<vmem>>, vector<1x128xf32>
    %171 = vector.broadcast %170 : vector<1x128xf32> to vector<8x128xf32>
    %172 = arith.addf %169, %171 : vector<8x128xf32>
    %c0_112 = arith.constant 0 : index
    %c0_113 = arith.constant 0 : index
    %173 = vector.load %arg12[%c0_112, %c0_113] : memref<8x128xf32, #tpu.memory_space<vmem>>, vector<8x128xf32>
    tpu.vector_store %arg12[%c0_112, %c0_113], %172 {strides = array<i32>} : memref<8x128xf32, #tpu.memory_space<vmem>>, vector<8x128xf32>,
    return
  }
  func.func @transform_0(%arg0: i32) -> (i32, i32, i32, i32) {
    %c0_i32 = arith.constant 0 : i32
    %c0_i32_0 = arith.constant 0 : i32
    %c0_i32_1 = arith.constant 0 : i32
    %c0_i32_2 = arith.constant 0 : i32
    return %c0_i32, %arg0, %c0_i32_0, %c0_i32_1 : i32, i32, i32, i32
  }
  func.func @transform_1(%arg0: i32) -> (i32, i32) {
    %c0_i32 = arith.constant 0 : i32
    %c0_i32_0 = arith.constant 0 : i32
    %c0_i32_1 = arith.constant 0 : i32
    return %c0_i32, %c0_i32_0 : i32, i32
  }
  func.func @transform_2(%arg0: i32) -> (i32, i32) {
    %c0_i32 = arith.constant 0 : i32
    %c0_i32_0 = arith.constant 0 : i32
    %c0_i32_1 = arith.constant 0 : i32
    return %c0_i32, %c0_i32_0 : i32, i32
  }
  func.func @transform_3(%arg0: i32) -> (i32, i32, i32) {
    %c0_i32 = arith.constant 0 : i32
    %c0_i32_0 = arith.constant 0 : i32
    %c0_i32_1 = arith.constant 0 : i32
    %c0_i32_2 = arith.constant 0 : i32
    return %c0_i32, %c0_i32_0, %c0_i32_1 : i32, i32, i32
  }
  func.func @transform_4(%arg0: i32) -> (i32, i32) {
    %c0_i32 = arith.constant 0 : i32
    %c0_i32_0 = arith.constant 0 : i32
    %c0_i32_1 = arith.constant 0 : i32
    return %c0_i32, %c0_i32_0 : i32, i32
  }
  func.func @transform_5(%arg0: i32) -> (i32, i32, i32) {
    %c0_i32 = arith.constant 0 : i32
    %c0_i32_0 = arith.constant 0 : i32
    %c0_i32_1 = arith.constant 0 : i32
    %c0_i32_2 = arith.constant 0 : i32
    return %c0_i32, %c0_i32_0, %c0_i32_1 : i32, i32, i32
  }
  func.func @transform_6(%arg0: i32) -> (i32, i32) {
    %c0_i32 = arith.constant 0 : i32
    %c0_i32_0 = arith.constant 0 : i32
    %c0_i32_1 = arith.constant 0 : i32
    return %c0_i32, %c0_i32_0 : i32, i32
  }
  func.func @transform_7(%arg0: i32) -> (i32, i32) {
    %c0_i32 = arith.constant 0 : i32
    %c0_i32_0 = arith.constant 0 : i32
    %c0_i32_1 = arith.constant 0 : i32
    return %c0_i32, %c0_i32_0 : i32, i32
  }
  func.func @transform_8(%arg0: i32) -> (i32, i32) {
    %c0_i32 = arith.constant 0 : i32
    %c0_i32_0 = arith.constant 0 : i32
    %c0_i32_1 = arith.constant 0 : i32
    return %c0_i32, %c0_i32_0 : i32, i32
  }
  func.func @transform_9(%arg0: i32) -> (i32, i32) {
    %c0_i32 = arith.constant 0 : i32
    %c0_i32_0 = arith.constant 0 : i32
    %c0_i32_1 = arith.constant 0 : i32
    return %c0_i32, %c0_i32_0 : i32, i32
  }
  func.func @transform_10(%arg0: i32) -> (i32, i32) {
    %c0_i32 = arith.constant 0 : i32
    %c0_i32_0 = arith.constant 0 : i32
    %c0_i32_1 = arith.constant 0 : i32
    return %c0_i32, %c0_i32_0 : i32, i32
  }
  func.func @transform_11(%arg0: i32) -> (i32, i32) {
    %c0_i32 = arith.constant 0 : i32
    %c0_i32_0 = arith.constant 0 : i32
    return %arg0, %c0_i32 : i32, i32
  }
}

</mosaic_0001>

<bundles_post_ra>
// kernel: duelling_dqn_forward.1
= control target key start
LH: loop header
LB: loop body
LE: loop exit
PB: predicated region body
PF: predicated region fallthrough
CT: control target
= control target key end

     0   :  { %s16240_s17 = smov 0   ;;  %s16242_s18 = smov 0   ;;  %s19964_s0 = inlined_call_operand.vmem [shape: bf16[16,16,16,256], index: 0, kind: input, shape index: {}]   ;;  %s19965_s1 = inlined_call_operand.vmem [shape: bf16[256,128], index: 1, kind: input, shape index: {}]   ;;  %s19966_s2 = inlined_call_operand.vmem [shape: f32[1,128], index: 2, kind: input, shape index: {}]   ;;  %s19967_s3 = inlined_call_operand.vmem [shape: bf16[16,128,128], index: 3, kind: input, shape index: {}]   ;;  %s19968_s4 = inlined_call_operand.vmem [shape: f32[1,128], index: 4, kind: input, shape index: {}]   ;;  %s19969_s5 = inlined_call_operand.vmem [shape: bf16[9,128,128], index: 5, kind: input, shape index: {}]   ;;  %s19970_s6 = inlined_call_operand.vmem [shape: f32[1,128], index: 6, kind: input, shape index: {}]   ;;  %s19971_s7 = inlined_call_operand.vmem [shape: bf16[512,1024], index: 7, kind: input, shape index: {}]   ;;  %s19972_s8 = inlined_call_operand.vmem [shape: f32[1,1024], index: 8, kind: input, shape index: {}]   ;;  %s19973_s9 = inlined_call_operand.vmem [shape: bf16[1024,128], index: 9, kind: input, shape index: {}]   ;;  %s19974_s10 = inlined_call_operand.vmem [shape: f32[1,128], index: 10, kind: input, shape index: {}]   ;;  %s19975_s11 = inlined_call_operand.vmem [shape: f32[16,128], index: 11, kind: output, shape index: {}]  }
   0x1   :  { %s16244_s19 = smov 0  }
   0x2 LB: > { %s12787_s20 = sadd.s32 4294967295, %s16175_s19   ;;  %s16257_s21 = sadd.s32 1, %s16175_s19   ;;  %s16175_s19 = sphi %s16244_s19, %s20071_s19   ;;  %s16171_s18 = sphi %s16242_s18, %s20070_s18   ;;  %s16167_s17 = sphi %s16240_s17, %s20069_s17  }
   0x3   : > { %s25_s22 = ssub.s32 %s16175_s19, %s16257_s21  ;;  %s28_s23 = sadd.s32 1, %s16171_s18 }
   0x4   : > { %p26_p0 = scmp.eq.s32.totalorder %s25_s22, 0  ;;  %p35_p1 = scmp.ne.s32.totalorder %s16171_s18, %s16167_s17 }
   0x5   : > { %p36_p2 = scmp.eq.s32.totalorder %s16175_s19, 0  ;;  %p12790_p4 = scmp.ge.s32.totalorder %s16175_s19, 2 }
   0x6   : > { %s16266_s24 = scalar_select %p26_p0, %s16171_s18, %s28_s23  }
   0x7   : > { %p37_p3 = por %p36_p2, %p35_p1  ;;  %327 = sbr.rel (%p12790_p4) target bundleno = 146 (0x92), region = 56 }
   0xe   : > { %330 = sbr.rel (!%p37_p3) target bundleno = 146 (0x92), region = 60  ;;  %s332_s25 = sand.u32 (%p37_p3), 1, %s16171_s18  }
   0xf   : > { %s14035_s26 = sshll.u32 (%p37_p3), %s16175_s19, 7  ;;  %s12791_s27 = sshll.u32 (%p37_p3), %s332_s25, 11 }
  0x10   : > { %s16274_s30 = scalar_lea.vmem (%p37_p3), %s19964_s0, %s14035_s26  ;;  %s16279_s12 = scalar_lea.vmem (%p37_p3), [#allocation2], %s12791_s27 }
  0x11   : > { %v876_v0 = vld [vmem:[%s16274_s30] sm:$0xff] (%p37_p3)  ;;  %v878_v1 = vld [vmem:[%s16274_s30 + $0x8] sm:$0xff] (%p37_p3)  ;;  %v880_v2 = vld [vmem:[%s16274_s30 + $0x10] sm:$0xff] (%p37_p3) }
  0x12   : > { %877 = vst [vmem:[%s16279_s12] sm:$0xff] (%p37_p3), %v876_v0  ;;  %879 = vst [vmem:[%s16279_s12 + $0x8] sm:$0xff] (%p37_p3), %v878_v1  ;;  %v882_v3 = vld [vmem:[%s16274_s30 + $0x18] sm:$0xff] (%p37_p3)  ;;  %v884_v4 = vld [vmem:[%s16274_s30 + $0x20] sm:$0xff] (%p37_p3) }
  0x13   : > { %881 = vst [vmem:[%s16279_s12 + $0x10] sm:$0xff] (%p37_p3), %v880_v2  ;;  %v886_v5 = vld [vmem:[%s16274_s30 + $0x28] sm:$0xff] (%p37_p3)  ;;  %883 = vst [vmem:[%s16279_s12 + $0x18] sm:$0xff] (%p37_p3), %v882_v3  ;;  %v888_v6 = vld [vmem:[%s16274_s30 + $0x30] sm:$0xff] (%p37_p3) }
  0x14   : > { %885 = vst [vmem:[%s16279_s12 + $0x20] sm:$0xff] (%p37_p3), %v884_v4  ;;  %887 = vst [vmem:[%s16279_s12 + $0x28] sm:$0xff] (%p37_p3), %v886_v5  ;;  %v890_v7 = vld [vmem:[%s16274_s30 + $0x38] sm:$0xff] (%p37_p3)  ;;  %v892_v8 = vld [vmem:[%s16274_s30 + $0x40] sm:$0xff] (%p37_p3) }
  0x15   : > { %889 = vst [vmem:[%s16279_s12 + $0x30] sm:$0xff] %v888_v6  ;;  %891 = vst [vmem:[%s16279_s12 + $0x38] sm:$0xff] %v890_v7  ;;  %v894_v9 = vld [vmem:[%s16274_s30 + $0x48] sm:$0xff]  ;;  %v896_v10 = vld [vmem:[%s16274_s30 + $0x50] sm:$0xff] }
  0x16   : > { %893 = vst [vmem:[%s16279_s12 + $0x40] sm:$0xff] %v892_v8  ;;  %v898_v11 = vld [vmem:[%s16274_s30 + $0x58] sm:$0xff]  ;;  %895 = vst [vmem:[%s16279_s12 + $0x48] sm:$0xff] %v894_v9  ;;  %v900_v12 = vld [vmem:[%s16274_s30 + $0x60] sm:$0xff] }
  0x17   : > { %897 = vst [vmem:[%s16279_s12 + $0x50] sm:$0xff] %v896_v10  ;;  %899 = vst [vmem:[%s16279_s12 + $0x58] sm:$0xff] %v898_v11  ;;  %v902_v13 = vld [vmem:[%s16274_s30 + $0x68] sm:$0xff]  ;;  %v904_v14 = vld [vmem:[%s16274_s30 + $0x70] sm:$0xff] }
  0x18   : > { %901 = vst [vmem:[%s16279_s12 + $0x60] sm:$0xff] %v900_v12  ;;  %903 = vst [vmem:[%s16279_s12 + $0x68] sm:$0xff] %v902_v13  ;;  %v906_v15 = vld [vmem:[%s16274_s30 + $0x78] sm:$0xff]  ;;  %v908_v16 = vld [vmem:[%s16274_s30 + $0x100] sm:$0xff] }
  0x19   : > { %905 = vst [vmem:[%s16279_s12 + $0x70] sm:$0xff] %v904_v14  ;;  %v910_v17 = vld [vmem:[%s16274_s30 + $0x108] sm:$0xff]  ;;  %907 = vst [vmem:[%s16279_s12 + $0x78] sm:$0xff] %v906_v15  ;;  %v912_v18 = vld [vmem:[%s16274_s30 + $0x110] sm:$0xff] }
  0x1a   : > { %909 = vst [vmem:[%s16279_s12 + $0x80] sm:$0xff] %v908_v16  ;;  %911 = vst [vmem:[%s16279_s12 + $0x88] sm:$0xff] %v910_v17  ;;  %v914_v19 = vld [vmem:[%s16274_s30 + $0x118] sm:$0xff]  ;;  %v916_v20 = vld [vmem:[%s16274_s30 + $0x120] sm:$0xff] }
  0x1b   : > { %913 = vst [vmem:[%s16279_s12 + $0x90] sm:$0xff] %v912_v18  ;;  %915 = vst [vmem:[%s16279_s12 + $0x98] sm:$0xff] %v914_v19  ;;  %v918_v21 = vld [vmem:[%s16274_s30 + $0x128] sm:$0xff]  ;;  %v920_v22 = vld [vmem:[%s16274_s30 + $0x130] sm:$0xff] }
  0x1c   : > { %917 = vst [vmem:[%s16279_s12 + $0xa0] sm:$0xff] %v916_v20  ;;  %v922_v23 = vld [vmem:[%s16274_s30 + $0x138] sm:$0xff]  ;;  %919 = vst [vmem:[%s16279_s12 + $0xa8] sm:$0xff] %v918_v21  ;;  %v924_v24 = vld [vmem:[%s16274_s30 + $0x140] sm:$0xff] }
  0x1d   : > { %921 = vst [vmem:[%s16279_s12 + $0xb0] sm:$0xff] %v920_v22  ;;  %923 = vst [vmem:[%s16279_s12 + $0xb8] sm:$0xff] %v922_v23  ;;  %v926_v25 = vld [vmem:[%s16274_s30 + $0x148] sm:$0xff]  ;;  %v928_v26 = vld [vmem:[%s16274_s30 + $0x150] sm:$0xff] }
  0x1e   : > { %925 = vst [vmem:[%s16279_s12 + $0xc0] sm:$0xff] %v924_v24  ;;  %927 = vst [vmem:[%s16279_s12 + $0xc8] sm:$0xff] %v926_v25  ;;  %v930_v27 = vld [vmem:[%s16274_s30 + $0x158] sm:$0xff]  ;;  %v932_v28 = vld [vmem:[%s16274_s30 + $0x160] sm:$0xff] }
  0x1f   : > { %929 = vst [vmem:[%s16279_s12 + $0xd0] sm:$0xff] %v928_v26  ;;  %v934_v29 = vld [vmem:[%s16274_s30 + $0x168] sm:$0xff]  ;;  %931 = vst [vmem:[%s16279_s12 + $0xd8] sm:$0xff] %v930_v27  ;;  %v936_v30 = vld [vmem:[%s16274_s30 + $0x170] sm:$0xff] }
  0x20   : > { %933 = vst [vmem:[%s16279_s12 + $0xe0] sm:$0xff] %v932_v28  ;;  %935 = vst [vmem:[%s16279_s12 + $0xe8] sm:$0xff] %v934_v29  ;;  %v938_v31 = vld [vmem:[%s16274_s30 + $0x178] sm:$0xff]  ;;  %v940_v32 = vld [vmem:[%s16274_s30 + $0x200] sm:$0xff] }
  0x21   : > { %937 = vst [vmem:[%s16279_s12 + $0xf0] sm:$0xff] %v936_v30  ;;  %939 = vst [vmem:[%s16279_s12 + $0xf8] sm:$0xff] %v938_v31  ;;  %v942_v33 = vld [vmem:[%s16274_s30 + $0x208] sm:$0xff]  ;;  %v944_v34 = vld [vmem:[%s16274_s30 + $0x210] sm:$0xff] }
  0x22   : > { %941 = vst [vmem:[%s16279_s12 + $0x100] sm:$0xff] %v940_v32  ;;  %v946_v35 = vld [vmem:[%s16274_s30 + $0x218] sm:$0xff]  ;;  %943 = vst [vmem:[%s16279_s12 + $0x108] sm:$0xff] %v942_v33  ;;  %v948_v36 = vld [vmem:[%s16274_s30 + $0x220] sm:$0xff] }
  0x23   : > { %945 = vst [vmem:[%s16279_s12 + $0x110] sm:$0xff] %v944_v34  ;;  %947 = vst [vmem:[%s16279_s12 + $0x118] sm:$0xff] %v946_v35  ;;  %v950_v37 = vld [vmem:[%s16274_s30 + $0x228] sm:$0xff]  ;;  %v952_v38 = vld [vmem:[%s16274_s30 + $0x230] sm:$0xff] }
  0x24   : > { %949 = vst [vmem:[%s16279_s12 + $0x120] sm:$0xff] %v948_v36  ;;  %951 = vst [vmem:[%s16279_s12 + $0x128] sm:$0xff] %v950_v37  ;;  %v954_v39 = vld [vmem:[%s16274_s30 + $0x238] sm:$0xff]  ;;  %v956_v40 = vld [vmem:[%s16274_s30 + $0x240] sm:$0xff] }
  0x25   : > { %953 = vst [vmem:[%s16279_s12 + $0x130] sm:$0xff] %v952_v38  ;;  %v958_v41 = vld [vmem:[%s16274_s30 + $0x248] sm:$0xff]  ;;  %955 = vst [vmem:[%s16279_s12 + $0x138] sm:$0xff] %v954_v39  ;;  %v960_v42 = vld [vmem:[%s16274_s30 + $0x250] sm:$0xff] }
  0x26   : > { %957 = vst [vmem:[%s16279_s12 + $0x140] sm:$0xff] %v956_v40  ;;  %959 = vst [vmem:[%s16279_s12 + $0x148] sm:$0xff] %v958_v41  ;;  %v962_v43 = vld [vmem:[%s16274_s30 + $0x258] sm:$0xff]  ;;  %v964_v44 = vld [vmem:[%s16274_s30 + $0x260] sm:$0xff] }
  0x27   : > { %961 = vst [vmem:[%s16279_s12 + $0x150] sm:$0xff] %v960_v42  ;;  %963 = vst [vmem:[%s16279_s12 + $0x158] sm:$0xff] %v962_v43  ;;  %v966_v45 = vld [vmem:[%s16274_s30 + $0x268] sm:$0xff]  ;;  %v968_v46 = vld [vmem:[%s16274_s30 + $0x270] sm:$0xff] }
  0x28   : > { %965 = vst [vmem:[%s16279_s12 + $0x160] sm:$0xff] %v964_v44  ;;  %v970_v47 = vld [vmem:[%s16274_s30 + $0x278] sm:$0xff]  ;;  %967 = vst [vmem:[%s16279_s12 + $0x168] sm:$0xff] %v966_v45  ;;  %v972_v48 = vld [vmem:[%s16274_s30 + $0x300] sm:$0xff] }
  0x29   : > { %969 = vst [vmem:[%s16279_s12 + $0x170] sm:$0xff] %v968_v46  ;;  %971 = vst [vmem:[%s16279_s12 + $0x178] sm:$0xff] %v970_v47  ;;  %v974_v49 = vld [vmem:[%s16274_s30 + $0x308] sm:$0xff]  ;;  %v976_v50 = vld [vmem:[%s16274_s30 + $0x310] sm:$0xff] }
  0x2a   : > { %973 = vst [vmem:[%s16279_s12 + $0x180] sm:$0xff] %v972_v48  ;;  %975 = vst [vmem:[%s16279_s12 + $0x188] sm:$0xff] %v974_v49  ;;  %v978_v51 = vld [vmem:[%s16274_s30 + $0x318] sm:$0xff]  ;;  %v980_v52 = vld [vmem:[%s16274_s30 + $0x320] sm:$0xff] }
  0x2b   : > { %977 = vst [vmem:[%s16279_s12 + $0x190] sm:$0xff] %v976_v50  ;;  %v982_v53 = vld [vmem:[%s16274_s30 + $0x328] sm:$0xff]  ;;  %979 = vst [vmem:[%s16279_s12 + $0x198] sm:$0xff] %v978_v51  ;;  %v984_v54 = vld [vmem:[%s16274_s30 + $0x330] sm:$0xff] }
  0x2c   : > { %981 = vst [vmem:[%s16279_s12 + $0x1a0] sm:$0xff] %v980_v52  ;;  %983 = vst [vmem:[%s16279_s12 + $0x1a8] sm:$0xff] %v982_v53  ;;  %v986_v55 = vld [vmem:[%s16274_s30 + $0x338] sm:$0xff]  ;;  %v988_v56 = vld [vmem:[%s16274_s30 + $0x340] sm:$0xff] }
  0x2d   : > { %985 = vst [vmem:[%s16279_s12 + $0x1b0] sm:$0xff] %v984_v54  ;;  %987 = vst [vmem:[%s16279_s12 + $0x1b8] sm:$0xff] %v986_v55  ;;  %v990_v57 = vld [vmem:[%s16274_s30 + $0x348] sm:$0xff]  ;;  %v992_v58 = vld [vmem:[%s16274_s30 + $0x350] sm:$0xff] }
  0x2e   : > { %989 = vst [vmem:[%s16279_s12 + $0x1c0] sm:$0xff] %v988_v56  ;;  %v994_v59 = vld [vmem:[%s16274_s30 + $0x358] sm:$0xff]  ;;  %991 = vst [vmem:[%s16279_s12 + $0x1c8] sm:$0xff] %v990_v57  ;;  %v996_v60 = vld [vmem:[%s16274_s30 + $0x360] sm:$0xff] }
  0x2f   : > { %993 = vst [vmem:[%s16279_s12 + $0x1d0] sm:$0xff] %v992_v58  ;;  %995 = vst [vmem:[%s16279_s12 + $0x1d8] sm:$0xff] %v994_v59  ;;  %v998_v61 = vld [vmem:[%s16274_s30 + $0x368] sm:$0xff]  ;;  %v1000_v62 = vld [vmem:[%s16274_s30 + $0x370] sm:$0xff] }
  0x30   : > { %997 = vst [vmem:[%s16279_s12 + $0x1e0] sm:$0xff] %v996_v60  ;;  %999 = vst [vmem:[%s16279_s12 + $0x1e8] sm:$0xff] %v998_v61  ;;  %v1002_v63 = vld [vmem:[%s16274_s30 + $0x378] sm:$0xff]  ;;  %v1004_v0 = vld [vmem:[%s16274_s30 + $0x400] sm:$0xff] }
  0x31   : > { %1001 = vst [vmem:[%s16279_s12 + $0x1f0] sm:$0xff] %v1000_v62  ;;  %v1006_v1 = vld [vmem:[%s16274_s30 + $0x408] sm:$0xff]  ;;  %1003 = vst [vmem:[%s16279_s12 + $0x1f8] sm:$0xff] %v1002_v63  ;;  %v1008_v2 = vld [vmem:[%s16274_s30 + $0x410] sm:$0xff] }
  0x32   : > { %1005 = vst [vmem:[%s16279_s12 + $0x200] sm:$0xff] %v1004_v0  ;;  %1007 = vst [vmem:[%s16279_s12 + $0x208] sm:$0xff] %v1006_v1  ;;  %v1010_v3 = vld [vmem:[%s16274_s30 + $0x418] sm:$0xff]  ;;  %v1012_v4 = vld [vmem:[%s16274_s30 + $0x420] sm:$0xff] }
  0x33   : > { %1009 = vst [vmem:[%s16279_s12 + $0x210] sm:$0xff] %v1008_v2  ;;  %1011 = vst [vmem:[%s16279_s12 + $0x218] sm:$0xff] %v1010_v3  ;;  %v1014_v5 = vld [vmem:[%s16274_s30 + $0x428] sm:$0xff]  ;;  %v1016_v6 = vld [vmem:[%s16274_s30 + $0x430] sm:$0xff] }
  0x34   : > { %1013 = vst [vmem:[%s16279_s12 + $0x220] sm:$0xff] %v1012_v4  ;;  %v1018_v7 = vld [vmem:[%s16274_s30 + $0x438] sm:$0xff]  ;;  %1015 = vst [vmem:[%s16279_s12 + $0x228] sm:$0xff] %v1014_v5  ;;  %v1020_v8 = vld [vmem:[%s16274_s30 + $0x440] sm:$0xff] }
  0x35   : > { %1017 = vst [vmem:[%s16279_s12 + $0x230] sm:$0xff] %v1016_v6  ;;  %1019 = vst [vmem:[%s16279_s12 + $0x238] sm:$0xff] %v1018_v7  ;;  %v1022_v9 = vld [vmem:[%s16274_s30 + $0x448] sm:$0xff]  ;;  %v1024_v10 = vld [vmem:[%s16274_s30 + $0x450] sm:$0xff] }
  0x36   : > { %1021 = vst [vmem:[%s16279_s12 + $0x240] sm:$0xff] %v1020_v8  ;;  %1023 = vst [vmem:[%s16279_s12 + $0x248] sm:$0xff] %v1022_v9  ;;  %v1026_v11 = vld [vmem:[%s16274_s30 + $0x458] sm:$0xff]  ;;  %v1028_v12 = vld [vmem:[%s16274_s30 + $0x460] sm:$0xff] }
  0x37   : > { %1025 = vst [vmem:[%s16279_s12 + $0x250] sm:$0xff] %v1024_v10  ;;  %v1030_v13 = vld [vmem:[%s16274_s30 + $0x468] sm:$0xff]  ;;  %1027 = vst [vmem:[%s16279_s12 + $0x258] sm:$0xff] %v1026_v11  ;;  %v1032_v14 = vld [vmem:[%s16274_s30 + $0x470] sm:$0xff] }
  0x38   : > { %1029 = vst [vmem:[%s16279_s12 + $0x260] sm:$0xff] %v1028_v12  ;;  %1031 = vst [vmem:[%s16279_s12 + $0x268] sm:$0xff] %v1030_v13  ;;  %v1034_v15 = vld [vmem:[%s16274_s30 + $0x478] sm:$0xff]  ;;  %v1036_v16 = vld [vmem:[%s16274_s30 + $0x500] sm:$0xff] }
  0x39   : > { %1033 = vst [vmem:[%s16279_s12 + $0x270] sm:$0xff] %v1032_v14  ;;  %1035 = vst [vmem:[%s16279_s12 + $0x278] sm:$0xff] %v1034_v15  ;;  %v1038_v17 = vld [vmem:[%s16274_s30 + $0x508] sm:$0xff]  ;;  %v1040_v18 = vld [vmem:[%s16274_s30 + $0x510] sm:$0xff] }
  0x3a   : > { %1037 = vst [vmem:[%s16279_s12 + $0x280] sm:$0xff] %v1036_v16  ;;  %v1042_v19 = vld [vmem:[%s16274_s30 + $0x518] sm:$0xff]  ;;  %1039 = vst [vmem:[%s16279_s12 + $0x288] sm:$0xff] %v1038_v17  ;;  %v1044_v20 = vld [vmem:[%s16274_s30 + $0x520] sm:$0xff] }
  0x3b   : > { %1041 = vst [vmem:[%s16279_s12 + $0x290] sm:$0xff] %v1040_v18  ;;  %1043 = vst [vmem:[%s16279_s12 + $0x298] sm:$0xff] %v1042_v19  ;;  %v1046_v21 = vld [vmem:[%s16274_s30 + $0x528] sm:$0xff]  ;;  %v1048_v22 = vld [vmem:[%s16274_s30 + $0x530] sm:$0xff] }
  0x3c   : > { %1045 = vst [vmem:[%s16279_s12 + $0x2a0] sm:$0xff] %v1044_v20  ;;  %1047 = vst [vmem:[%s16279_s12 + $0x2a8] sm:$0xff] %v1046_v21  ;;  %v1050_v23 = vld [vmem:[%s16274_s30 + $0x538] sm:$0xff]  ;;  %v1052_v24 = vld [vmem:[%s16274_s30 + $0x540] sm:$0xff] }
  0x3d   : > { %1049 = vst [vmem:[%s16279_s12 + $0x2b0] sm:$0xff] %v1048_v22  ;;  %v1054_v25 = vld [vmem:[%s16274_s30 + $0x548] sm:$0xff]  ;;  %1051 = vst [vmem:[%s16279_s12 + $0x2b8] sm:$0xff] %v1050_v23  ;;  %v1056_v26 = vld [vmem:[%s16274_s30 + $0x550] sm:$0xff] }
  0x3e   : > { %1053 = vst [vmem:[%s16279_s12 + $0x2c0] sm:$0xff] %v1052_v24  ;;  %1055 = vst [vmem:[%s16279_s12 + $0x2c8] sm:$0xff] %v1054_v25  ;;  %v1058_v27 = vld [vmem:[%s16274_s30 + $0x558] sm:$0xff]  ;;  %v1060_v28 = vld [vmem:[%s16274_s30 + $0x560] sm:$0xff] }
  0x3f   : > { %1057 = vst [vmem:[%s16279_s12 + $0x2d0] sm:$0xff] %v1056_v26  ;;  %1059 = vst [vmem:[%s16279_s12 + $0x2d8] sm:$0xff] %v1058_v27  ;;  %v1062_v29 = vld [vmem:[%s16274_s30 + $0x568] sm:$0xff]  ;;  %v1064_v30 = vld [vmem:[%s16274_s30 + $0x570] sm:$0xff] }
  0x40   : > { %1061 = vst [vmem:[%s16279_s12 + $0x2e0] sm:$0xff] %v1060_v28  ;;  %v1066_v31 = vld [vmem:[%s16274_s30 + $0x578] sm:$0xff]  ;;  %1063 = vst [vmem:[%s16279_s12 + $0x2e8] sm:$0xff] %v1062_v29  ;;  %v1068_v32 = vld [vmem:[%s16274_s30 + $0x600] sm:$0xff] }
  0x41   : > { %1065 = vst [vmem:[%s16279_s12 + $0x2f0] sm:$0xff] %v1064_v30  ;;  %1067 = vst [vmem:[%s16279_s12 + $0x2f8] sm:$0xff] %v1066_v31  ;;  %v1070_v33 = vld [vmem:[%s16274_s30 + $0x608] sm:$0xff]  ;;  %v1072_v34 = vld [vmem:[%s16274_s30 + $0x610] sm:$0xff] }
  0x42   : > { %1069 = vst [vmem:[%s16279_s12 + $0x300] sm:$0xff] %v1068_v32  ;;  %1071 = vst [vmem:[%s16279_s12 + $0x308] sm:$0xff] %v1070_v33  ;;  %v1074_v35 = vld [vmem:[%s16274_s30 + $0x618] sm:$0xff]  ;;  %v1076_v36 = vld [vmem:[%s16274_s30 + $0x620] sm:$0xff] }
  0x43   : > { %1073 = vst [vmem:[%s16279_s12 + $0x310] sm:$0xff] %v1072_v34  ;;  %v1078_v37 = vld [vmem:[%s16274_s30 + $0x628] sm:$0xff]  ;;  %1075 = vst [vmem:[%s16279_s12 + $0x318] sm:$0xff] %v1074_v35  ;;  %v1080_v38 = vld [vmem:[%s16274_s30 + $0x630] sm:$0xff] }
  0x44   : > { %1077 = vst [vmem:[%s16279_s12 + $0x320] sm:$0xff] %v1076_v36  ;;  %1079 = vst [vmem:[%s16279_s12 + $0x328] sm:$0xff] %v1078_v37  ;;  %v1082_v39 = vld [vmem:[%s16274_s30 + $0x638] sm:$0xff]  ;;  %v1084_v40 = vld [vmem:[%s16274_s30 + $0x640] sm:$0xff] }
  0x45   : > { %1081 = vst [vmem:[%s16279_s12 + $0x330] sm:$0xff] %v1080_v38  ;;  %1083 = vst [vmem:[%s16279_s12 + $0x338] sm:$0xff] %v1082_v39  ;;  %v1086_v41 = vld [vmem:[%s16274_s30 + $0x648] sm:$0xff]  ;;  %v1088_v42 = vld [vmem:[%s16274_s30 + $0x650] sm:$0xff] }
  0x46   : > { %1085 = vst [vmem:[%s16279_s12 + $0x340] sm:$0xff] %v1084_v40  ;;  %v1090_v43 = vld [vmem:[%s16274_s30 + $0x658] sm:$0xff]  ;;  %1087 = vst [vmem:[%s16279_s12 + $0x348] sm:$0xff] %v1086_v41  ;;  %v1092_v44 = vld [vmem:[%s16274_s30 + $0x660] sm:$0xff] }
  0x47   : > { %1089 = vst [vmem:[%s16279_s12 + $0x350] sm:$0xff] %v1088_v42  ;;  %1091 = vst [vmem:[%s16279_s12 + $0x358] sm:$0xff] %v1090_v43  ;;  %v1094_v45 = vld [vmem:[%s16274_s30 + $0x668] sm:$0xff]  ;;  %v1096_v46 = vld [vmem:[%s16274_s30 + $0x670] sm:$0xff] }
  0x48   : > { %1093 = vst [vmem:[%s16279_s12 + $0x360] sm:$0xff] %v1092_v44  ;;  %1095 = vst [vmem:[%s16279_s12 + $0x368] sm:$0xff] %v1094_v45  ;;  %v1098_v47 = vld [vmem:[%s16274_s30 + $0x678] sm:$0xff]  ;;  %v1100_v48 = vld [vmem:[%s16274_s30 + $0x700] sm:$0xff] }
  0x49   : > { %1097 = vst [vmem:[%s16279_s12 + $0x370] sm:$0xff] %v1096_v46  ;;  %v1102_v49 = vld [vmem:[%s16274_s30 + $0x708] sm:$0xff]  ;;  %1099 = vst [vmem:[%s16279_s12 + $0x378] sm:$0xff] %v1098_v47  ;;  %v1104_v50 = vld [vmem:[%s16274_s30 + $0x710] sm:$0xff] }
  0x4a   : > { %1101 = vst [vmem:[%s16279_s12 + $0x380] sm:$0xff] %v1100_v48  ;;  %1103 = vst [vmem:[%s16279_s12 + $0x388] sm:$0xff] %v1102_v49  ;;  %v1106_v51 = vld [vmem:[%s16274_s30 + $0x718] sm:$0xff]  ;;  %v1108_v52 = vld [vmem:[%s16274_s30 + $0x720] sm:$0xff] }
  0x4b   : > { %1105 = vst [vmem:[%s16279_s12 + $0x390] sm:$0xff] %v1104_v50  ;;  %1107 = vst [vmem:[%s16279_s12 + $0x398] sm:$0xff] %v1106_v51  ;;  %v1110_v53 = vld [vmem:[%s16274_s30 + $0x728] sm:$0xff]  ;;  %v1112_v54 = vld [vmem:[%s16274_s30 + $0x730] sm:$0xff] }
  0x4c   : > { %1109 = vst [vmem:[%s16279_s12 + $0x3a0] sm:$0xff] %v1108_v52  ;;  %v1114_v55 = vld [vmem:[%s16274_s30 + $0x738] sm:$0xff]  ;;  %1111 = vst [vmem:[%s16279_s12 + $0x3a8] sm:$0xff] %v1110_v53  ;;  %v1116_v56 = vld [vmem:[%s16274_s30 + $0x740] sm:$0xff] }
  0x4d   : > { %1113 = vst [vmem:[%s16279_s12 + $0x3b0] sm:$0xff] %v1112_v54  ;;  %1115 = vst [vmem:[%s16279_s12 + $0x3b8] sm:$0xff] %v1114_v55  ;;  %v1118_v57 = vld [vmem:[%s16274_s30 + $0x748] sm:$0xff]  ;;  %v1120_v58 = vld [vmem:[%s16274_s30 + $0x750] sm:$0xff] }
  0x4e   : > { %1117 = vst [vmem:[%s16279_s12 + $0x3c0] sm:$0xff] %v1116_v56  ;;  %1119 = vst [vmem:[%s16279_s12 + $0x3c8] sm:$0xff] %v1118_v57  ;;  %v1122_v59 = vld [vmem:[%s16274_s30 + $0x758] sm:$0xff]  ;;  %v1124_v60 = vld [vmem:[%s16274_s30 + $0x760] sm:$0xff] }
  0x4f   : > { %1121 = vst [vmem:[%s16279_s12 + $0x3d0] sm:$0xff] %v1120_v58  ;;  %v1126_v61 = vld [vmem:[%s16274_s30 + $0x768] sm:$0xff]  ;;  %1123 = vst [vmem:[%s16279_s12 + $0x3d8] sm:$0xff] %v1122_v59  ;;  %v1128_v62 = vld [vmem:[%s16274_s30 + $0x770] sm:$0xff] }
  0x50   : > { %1125 = vst [vmem:[%s16279_s12 + $0x3e0] sm:$0xff] %v1124_v60  ;;  %1127 = vst [vmem:[%s16279_s12 + $0x3e8] sm:$0xff] %v1126_v61  ;;  %v1130_v63 = vld [vmem:[%s16274_s30 + $0x778] sm:$0xff]  ;;  %v1132_v0 = vld [vmem:[%s16274_s30 + $0x800] sm:$0xff] }
  0x51   : > { %1129 = vst [vmem:[%s16279_s12 + $0x3f0] sm:$0xff] %v1128_v62  ;;  %1131 = vst [vmem:[%s16279_s12 + $0x3f8] sm:$0xff] %v1130_v63  ;;  %v1134_v1 = vld [vmem:[%s16274_s30 + $0x808] sm:$0xff]  ;;  %v1136_v2 = vld [vmem:[%s16274_s30 + $0x810] sm:$0xff] }
  0x52   : > { %1133 = vst [vmem:[%s16279_s12 + $0x400] sm:$0xff] %v1132_v0  ;;  %v1138_v3 = vld [vmem:[%s16274_s30 + $0x818] sm:$0xff]  ;;  %1135 = vst [vmem:[%s16279_s12 + $0x408] sm:$0xff] %v1134_v1  ;;  %v1140_v4 = vld [vmem:[%s16274_s30 + $0x820] sm:$0xff] }
  0x53   : > { %1137 = vst [vmem:[%s16279_s12 + $0x410] sm:$0xff] %v1136_v2  ;;  %1139 = vst [vmem:[%s16279_s12 + $0x418] sm:$0xff] %v1138_v3  ;;  %v1142_v5 = vld [vmem:[%s16274_s30 + $0x828] sm:$0xff]  ;;  %v1144_v6 = vld [vmem:[%s16274_s30 + $0x830] sm:$0xff] }
  0x54   : > { %1141 = vst [vmem:[%s16279_s12 + $0x420] sm:$0xff] %v1140_v4  ;;  %1143 = vst [vmem:[%s16279_s12 + $0x428] sm:$0xff] %v1142_v5  ;;  %v1146_v7 = vld [vmem:[%s16274_s30 + $0x838] sm:$0xff]  ;;  %v1148_v8 = vld [vmem:[%s16274_s30 + $0x840] sm:$0xff] }
  0x55   : > { %1145 = vst [vmem:[%s16279_s12 + $0x430] sm:$0xff] %v1144_v6  ;;  %v1150_v9 = vld [vmem:[%s16274_s30 + $0x848] sm:$0xff]  ;;  %1147 = vst [vmem:[%s16279_s12 + $0x438] sm:$0xff] %v1146_v7  ;;  %v1152_v10 = vld [vmem:[%s16274_s30 + $0x850] sm:$0xff] }
  0x56   : > { %1149 = vst [vmem:[%s16279_s12 + $0x440] sm:$0xff] %v1148_v8  ;;  %1151 = vst [vmem:[%s16279_s12 + $0x448] sm:$0xff] %v1150_v9  ;;  %v1154_v11 = vld [vmem:[%s16274_s30 + $0x858] sm:$0xff]  ;;  %v1156_v12 = vld [vmem:[%s16274_s30 + $0x860] sm:$0xff] }
  0x57   : > { %1153 = vst [vmem:[%s16279_s12 + $0x450] sm:$0xff] %v1152_v10  ;;  %1155 = vst [vmem:[%s16279_s12 + $0x458] sm:$0xff] %v1154_v11  ;;  %v1158_v13 = vld [vmem:[%s16274_s30 + $0x868] sm:$0xff]  ;;  %v1160_v14 = vld [vmem:[%s16274_s30 + $0x870] sm:$0xff] }
  0x58   : > { %1157 = vst [vmem:[%s16279_s12 + $0x460] sm:$0xff] %v1156_v12  ;;  %v1162_v15 = vld [vmem:[%s16274_s30 + $0x878] sm:$0xff]  ;;  %1159 = vst [vmem:[%s16279_s12 + $0x468] sm:$0xff] %v1158_v13  ;;  %v1164_v16 = vld [vmem:[%s16274_s30 + $0x900] sm:$0xff] }
  0x59   : > { %1161 = vst [vmem:[%s16279_s12 + $0x470] sm:$0xff] %v1160_v14  ;;  %1163 = vst [vmem:[%s16279_s12 + $0x478] sm:$0xff] %v1162_v15  ;;  %v1166_v17 = vld [vmem:[%s16274_s30 + $0x908] sm:$0xff]  ;;  %v1168_v18 = vld [vmem:[%s16274_s30 + $0x910] sm:$0xff] }
  0x5a   : > { %1165 = vst [vmem:[%s16279_s12 + $0x480] sm:$0xff] %v1164_v16  ;;  %1167 = vst [vmem:[%s16279_s12 + $0x488] sm:$0xff] %v1166_v17  ;;  %v1170_v19 = vld [vmem:[%s16274_s30 + $0x918] sm:$0xff]  ;;  %v1172_v20 = vld [vmem:[%s16274_s30 + $0x920] sm:$0xff] }
  0x5b   : > { %1169 = vst [vmem:[%s16279_s12 + $0x490] sm:$0xff] %v1168_v18  ;;  %v1174_v21 = vld [vmem:[%s16274_s30 + $0x928] sm:$0xff]  ;;  %1171 = vst [vmem:[%s16279_s12 + $0x498] sm:$0xff] %v1170_v19  ;;  %v1176_v22 = vld [vmem:[%s16274_s30 + $0x930] sm:$0xff] }
  0x5c   : > { %1173 = vst [vmem:[%s16279_s12 + $0x4a0] sm:$0xff] %v1172_v20  ;;  %1175 = vst [vmem:[%s16279_s12 + $0x4a8] sm:$0xff] %v1174_v21  ;;  %v1178_v23 = vld [vmem:[%s16274_s30 + $0x938] sm:$0xff]  ;;  %v1180_v24 = vld [vmem:[%s16274_s30 + $0x940] sm:$0xff] }
  0x5d   : > { %1177 = vst [vmem:[%s16279_s12 + $0x4b0] sm:$0xff] %v1176_v22  ;;  %1179 = vst [vmem:[%s16279_s12 + $0x4b8] sm:$0xff] %v1178_v23  ;;  %v1182_v25 = vld [vmem:[%s16274_s30 + $0x948] sm:$0xff]  ;;  %v1184_v26 = vld [vmem:[%s16274_s30 + $0x950] sm:$0xff] }
  0x5e   : > { %1181 = vst [vmem:[%s16279_s12 + $0x4c0] sm:$0xff] %v1180_v24  ;;  %v1186_v27 = vld [vmem:[%s16274_s30 + $0x958] sm:$0xff]  ;;  %1183 = vst [vmem:[%s16279_s12 + $0x4c8] sm:$0xff] %v1182_v25  ;;  %v1188_v28 = vld [vmem:[%s16274_s30 + $0x960] sm:$0xff] }
  0x5f   : > { %1185 = vst [vmem:[%s16279_s12 + $0x4d0] sm:$0xff] %v1184_v26  ;;  %1187 = vst [vmem:[%s16279_s12 + $0x4d8] sm:$0xff] %v1186_v27  ;;  %v1190_v29 = vld [vmem:[%s16274_s30 + $0x968] sm:$0xff]  ;;  %v1192_v30 = vld [vmem:[%s16274_s30 + $0x970] sm:$0xff] }
  0x60   : > { %1189 = vst [vmem:[%s16279_s12 + $0x4e0] sm:$0xff] %v1188_v28  ;;  %1191 = vst [vmem:[%s16279_s12 + $0x4e8] sm:$0xff] %v1190_v29  ;;  %v1194_v31 = vld [vmem:[%s16274_s30 + $0x978] sm:$0xff]  ;;  %v1196_v32 = vld [vmem:[%s16274_s30 + $0xa00] sm:$0xff] }
  0x61   : > { %1193 = vst [vmem:[%s16279_s12 + $0x4f0] sm:$0xff] %v1192_v30  ;;  %v1198_v33 = vld [vmem:[%s16274_s30 + $0xa08] sm:$0xff]  ;;  %1195 = vst [vmem:[%s16279_s12 + $0x4f8] sm:$0xff] %v1194_v31  ;;  %v1200_v34 = vld [vmem:[%s16274_s30 + $0xa10] sm:$0xff] }
  0x62   : > { %1197 = vst [vmem:[%s16279_s12 + $0x500] sm:$0xff] %v1196_v32  ;;  %1199 = vst [vmem:[%s16279_s12 + $0x508] sm:$0xff] %v1198_v33  ;;  %v1202_v35 = vld [vmem:[%s16274_s30 + $0xa18] sm:$0xff]  ;;  %v1204_v36 = vld [vmem:[%s16274_s30 + $0xa20] sm:$0xff] }
  0x63   : > { %1201 = vst [vmem:[%s16279_s12 + $0x510] sm:$0xff] %v1200_v34  ;;  %1203 = vst [vmem:[%s16279_s12 + $0x518] sm:$0xff] %v1202_v35  ;;  %v1206_v37 = vld [vmem:[%s16274_s30 + $0xa28] sm:$0xff]  ;;  %v1208_v38 = vld [vmem:[%s16274_s30 + $0xa30] sm:$0xff] }
  0x64   : > { %1205 = vst [vmem:[%s16279_s12 + $0x520] sm:$0xff] %v1204_v36  ;;  %v1210_v39 = vld [vmem:[%s16274_s30 + $0xa38] sm:$0xff]  ;;  %1207 = vst [vmem:[%s16279_s12 + $0x528] sm:$0xff] %v1206_v37  ;;  %v1212_v40 = vld [vmem:[%s16274_s30 + $0xa40] sm:$0xff] }
  0x65   : > { %1209 = vst [vmem:[%s16279_s12 + $0x530] sm:$0xff] %v1208_v38  ;;  %1211 = vst [vmem:[%s16279_s12 + $0x538] sm:$0xff] %v1210_v39  ;;  %v1214_v41 = vld [vmem:[%s16274_s30 + $0xa48] sm:$0xff]  ;;  %v1216_v42 = vld [vmem:[%s16274_s30 + $0xa50] sm:$0xff] }
  0x66   : > { %1213 = vst [vmem:[%s16279_s12 + $0x540] sm:$0xff] %v1212_v40  ;;  %1215 = vst [vmem:[%s16279_s12 + $0x548] sm:$0xff] %v1214_v41  ;;  %v1218_v43 = vld [vmem:[%s16274_s30 + $0xa58] sm:$0xff]  ;;  %v1220_v44 = vld [vmem:[%s16274_s30 + $0xa60] sm:$0xff] }
  0x67   : > { %1217 = vst [vmem:[%s16279_s12 + $0x550] sm:$0xff] %v1216_v42  ;;  %v1222_v45 = vld [vmem:[%s16274_s30 + $0xa68] sm:$0xff]  ;;  %1219 = vst [vmem:[%s16279_s12 + $0x558] sm:$0xff] %v1218_v43  ;;  %v1224_v46 = vld [vmem:[%s16274_s30 + $0xa70] sm:$0xff] }
  0x68   : > { %1221 = vst [vmem:[%s16279_s12 + $0x560] sm:$0xff] %v1220_v44  ;;  %1223 = vst [vmem:[%s16279_s12 + $0x568] sm:$0xff] %v1222_v45  ;;  %v1226_v47 = vld [vmem:[%s16274_s30 + $0xa78] sm:$0xff]  ;;  %v1228_v48 = vld [vmem:[%s16274_s30 + $0xb00] sm:$0xff] }
  0x69   : > { %1225 = vst [vmem:[%s16279_s12 + $0x570] sm:$0xff] %v1224_v46  ;;  %1227 = vst [vmem:[%s16279_s12 + $0x578] sm:$0xff] %v1226_v47  ;;  %v1230_v49 = vld [vmem:[%s16274_s30 + $0xb08] sm:$0xff]  ;;  %v1232_v50 = vld [vmem:[%s16274_s30 + $0xb10] sm:$0xff] }
  0x6a   : > { %1229 = vst [vmem:[%s16279_s12 + $0x580] sm:$0xff] %v1228_v48  ;;  %v1234_v51 = vld [vmem:[%s16274_s30 + $0xb18] sm:$0xff]  ;;  %1231 = vst [vmem:[%s16279_s12 + $0x588] sm:$0xff] %v1230_v49  ;;  %v1236_v52 = vld [vmem:[%s16274_s30 + $0xb20] sm:$0xff] }
  0x6b   : > { %1233 = vst [vmem:[%s16279_s12 + $0x590] sm:$0xff] %v1232_v50  ;;  %1235 = vst [vmem:[%s16279_s12 + $0x598] sm:$0xff] %v1234_v51  ;;  %v1238_v53 = vld [vmem:[%s16274_s30 + $0xb28] sm:$0xff]  ;;  %v1240_v54 = vld [vmem:[%s16274_s30 + $0xb30] sm:$0xff] }
  0x6c   : > { %1237 = vst [vmem:[%s16279_s12 + $0x5a0] sm:$0xff] %v1236_v52  ;;  %1239 = vst [vmem:[%s16279_s12 + $0x5a8] sm:$0xff] %v1238_v53  ;;  %v1242_v55 = vld [vmem:[%s16274_s30 + $0xb38] sm:$0xff]  ;;  %v1244_v56 = vld [vmem:[%s16274_s30 + $0xb40] sm:$0xff] }
  0x6d   : > { %1241 = vst [vmem:[%s16279_s12 + $0x5b0] sm:$0xff] %v1240_v54  ;;  %v1246_v57 = vld [vmem:[%s16274_s30 + $0xb48] sm:$0xff]  ;;  %1243 = vst [vmem:[%s16279_s12 + $0x5b8] sm:$0xff] %v1242_v55  ;;  %v1248_v58 = vld [vmem:[%s16274_s30 + $0xb50] sm:$0xff] }
  0x6e   : > { %1245 = vst [vmem:[%s16279_s12 + $0x5c0] sm:$0xff] %v1244_v56  ;;  %1247 = vst [vmem:[%s16279_s12 + $0x5c8] sm:$0xff] %v1246_v57  ;;  %v1250_v59 = vld [vmem:[%s16274_s30 + $0xb58] sm:$0xff]  ;;  %v1252_v60 = vld [vmem:[%s16274_s30 + $0xb60] sm:$0xff] }
  0x6f   : > { %1249 = vst [vmem:[%s16279_s12 + $0x5d0] sm:$0xff] %v1248_v58  ;;  %1251 = vst [vmem:[%s16279_s12 + $0x5d8] sm:$0xff] %v1250_v59  ;;  %v1254_v61 = vld [vmem:[%s16274_s30 + $0xb68] sm:$0xff]  ;;  %v1256_v62 = vld [vmem:[%s16274_s30 + $0xb70] sm:$0xff] }
  0x70   : > { %1253 = vst [vmem:[%s16279_s12 + $0x5e0] sm:$0xff] %v1252_v60  ;;  %v1258_v63 = vld [vmem:[%s16274_s30 + $0xb78] sm:$0xff]  ;;  %1255 = vst [vmem:[%s16279_s12 + $0x5e8] sm:$0xff] %v1254_v61  ;;  %v1260_v0 = vld [vmem:[%s16274_s30 + $0xc00] sm:$0xff] }
  0x71   : > { %1257 = vst [vmem:[%s16279_s12 + $0x5f0] sm:$0xff] %v1256_v62  ;;  %1259 = vst [vmem:[%s16279_s12 + $0x5f8] sm:$0xff] %v1258_v63  ;;  %v1262_v1 = vld [vmem:[%s16274_s30 + $0xc08] sm:$0xff]  ;;  %v1264_v2 = vld [vmem:[%s16274_s30 + $0xc10] sm:$0xff] }
  0x72   : > { %1261 = vst [vmem:[%s16279_s12 + $0x600] sm:$0xff] %v1260_v0  ;;  %1263 = vst [vmem:[%s16279_s12 + $0x608] sm:$0xff] %v1262_v1  ;;  %v1266_v3 = vld [vmem:[%s16274_s30 + $0xc18] sm:$0xff]  ;;  %v1268_v4 = vld [vmem:[%s16274_s30 + $0xc20] sm:$0xff] }
  0x73   : > { %1265 = vst [vmem:[%s16279_s12 + $0x610] sm:$0xff] %v1264_v2  ;;  %v1270_v5 = vld [vmem:[%s16274_s30 + $0xc28] sm:$0xff]  ;;  %1267 = vst [vmem:[%s16279_s12 + $0x618] sm:$0xff] %v1266_v3  ;;  %v1272_v6 = vld [vmem:[%s16274_s30 + $0xc30] sm:$0xff] }
  0x74   : > { %1269 = vst [vmem:[%s16279_s12 + $0x620] sm:$0xff] %v1268_v4  ;;  %1271 = vst [vmem:[%s16279_s12 + $0x628] sm:$0xff] %v1270_v5  ;;  %v1274_v7 = vld [vmem:[%s16274_s30 + $0xc38] sm:$0xff]  ;;  %v1276_v8 = vld [vmem:[%s16274_s30 + $0xc40] sm:$0xff] }
  0x75   : > { %1273 = vst [vmem:[%s16279_s12 + $0x630] sm:$0xff] %v1272_v6  ;;  %1275 = vst [vmem:[%s16279_s12 + $0x638] sm:$0xff] %v1274_v7  ;;  %v1278_v9 = vld [vmem:[%s16274_s30 + $0xc48] sm:$0xff]  ;;  %v1280_v10 = vld [vmem:[%s16274_s30 + $0xc50] sm:$0xff] }
  0x76   : > { %1277 = vst [vmem:[%s16279_s12 + $0x640] sm:$0xff] %v1276_v8  ;;  %v1282_v11 = vld [vmem:[%s16274_s30 + $0xc58] sm:$0xff]  ;;  %1279 = vst [vmem:[%s16279_s12 + $0x648] sm:$0xff] %v1278_v9  ;;  %v1284_v12 = vld [vmem:[%s16274_s30 + $0xc60] sm:$0xff] }
  0x77   : > { %1281 = vst [vmem:[%s16279_s12 + $0x650] sm:$0xff] %v1280_v10  ;;  %1283 = vst [vmem:[%s16279_s12 + $0x658] sm:$0xff] %v1282_v11  ;;  %v1286_v13 = vld [vmem:[%s16274_s30 + $0xc68] sm:$0xff]  ;;  %v1288_v14 = vld [vmem:[%s16274_s30 + $0xc70] sm:$0xff] }
  0x78   : > { %1285 = vst [vmem:[%s16279_s12 + $0x660] sm:$0xff] %v1284_v12  ;;  %1287 = vst [vmem:[%s16279_s12 + $0x668] sm:$0xff] %v1286_v13  ;;  %v1290_v15 = vld [vmem:[%s16274_s30 + $0xc78] sm:$0xff]  ;;  %v1292_v16 = vld [vmem:[%s16274_s30 + $0xd00] sm:$0xff] }
  0x79   : > { %1289 = vst [vmem:[%s16279_s12 + $0x670] sm:$0xff] %v1288_v14  ;;  %v1294_v17 = vld [vmem:[%s16274_s30 + $0xd08] sm:$0xff]  ;;  %1291 = vst [vmem:[%s16279_s12 + $0x678] sm:$0xff] %v1290_v15  ;;  %v1296_v18 = vld [vmem:[%s16274_s30 + $0xd10] sm:$0xff] }
  0x7a   : > { %1293 = vst [vmem:[%s16279_s12 + $0x680] sm:$0xff] %v1292_v16  ;;  %1295 = vst [vmem:[%s16279_s12 + $0x688] sm:$0xff] %v1294_v17  ;;  %v1298_v19 = vld [vmem:[%s16274_s30 + $0xd18] sm:$0xff]  ;;  %v1300_v20 = vld [vmem:[%s16274_s30 + $0xd20] sm:$0xff] }
  0x7b   : > { %1297 = vst [vmem:[%s16279_s12 + $0x690] sm:$0xff] %v1296_v18  ;;  %1299 = vst [vmem:[%s16279_s12 + $0x698] sm:$0xff] %v1298_v19  ;;  %v1302_v21 = vld [vmem:[%s16274_s30 + $0xd28] sm:$0xff]  ;;  %v1304_v22 = vld [vmem:[%s16274_s30 + $0xd30] sm:$0xff] }
  0x7c   : > { %1301 = vst [vmem:[%s16279_s12 + $0x6a0] sm:$0xff] %v1300_v20  ;;  %v1306_v23 = vld [vmem:[%s16274_s30 + $0xd38] sm:$0xff]  ;;  %1303 = vst [vmem:[%s16279_s12 + $0x6a8] sm:$0xff] %v1302_v21  ;;  %v1308_v24 = vld [vmem:[%s16274_s30 + $0xd40] sm:$0xff] }
  0x7d   : > { %1305 = vst [vmem:[%s16279_s12 + $0x6b0] sm:$0xff] %v1304_v22  ;;  %1307 = vst [vmem:[%s16279_s12 + $0x6b8] sm:$0xff] %v1306_v23  ;;  %v1310_v25 = vld [vmem:[%s16274_s30 + $0xd48] sm:$0xff]  ;;  %v1312_v26 = vld [vmem:[%s16274_s30 + $0xd50] sm:$0xff] }
  0x7e   : > { %1309 = vst [vmem:[%s16279_s12 + $0x6c0] sm:$0xff] %v1308_v24  ;;  %1311 = vst [vmem:[%s16279_s12 + $0x6c8] sm:$0xff] %v1310_v25  ;;  %v1314_v27 = vld [vmem:[%s16274_s30 + $0xd58] sm:$0xff]  ;;  %v1316_v28 = vld [vmem:[%s16274_s30 + $0xd60] sm:$0xff] }
  0x7f   : > { %1313 = vst [vmem:[%s16279_s12 + $0x6d0] sm:$0xff] %v1312_v26  ;;  %v1318_v29 = vld [vmem:[%s16274_s30 + $0xd68] sm:$0xff]  ;;  %1315 = vst [vmem:[%s16279_s12 + $0x6d8] sm:$0xff] %v1314_v27  ;;  %v1320_v30 = vld [vmem:[%s16274_s30 + $0xd70] sm:$0xff] }
  0x80   : > { %1317 = vst [vmem:[%s16279_s12 + $0x6e0] sm:$0xff] %v1316_v28  ;;  %1319 = vst [vmem:[%s16279_s12 + $0x6e8] sm:$0xff] %v1318_v29  ;;  %v1322_v31 = vld [vmem:[%s16274_s30 + $0xd78] sm:$0xff]  ;;  %v1324_v32 = vld [vmem:[%s16274_s30 + $0xe00] sm:$0xff] }
  0x81   : > { %1321 = vst [vmem:[%s16279_s12 + $0x6f0] sm:$0xff] %v1320_v30  ;;  %1323 = vst [vmem:[%s16279_s12 + $0x6f8] sm:$0xff] %v1322_v31  ;;  %v1326_v33 = vld [vmem:[%s16274_s30 + $0xe08] sm:$0xff]  ;;  %v1328_v34 = vld [vmem:[%s16274_s30 + $0xe10] sm:$0xff] }
  0x82   : > { %1325 = vst [vmem:[%s16279_s12 + $0x700] sm:$0xff] %v1324_v32  ;;  %v1330_v35 = vld [vmem:[%s16274_s30 + $0xe18] sm:$0xff]  ;;  %1327 = vst [vmem:[%s16279_s12 + $0x708] sm:$0xff] %v1326_v33  ;;  %v1332_v36 = vld [vmem:[%s16274_s30 + $0xe20] sm:$0xff] }
  0x83   : > { %1329 = vst [vmem:[%s16279_s12 + $0x710] sm:$0xff] %v1328_v34  ;;  %1331 = vst [vmem:[%s16279_s12 + $0x718] sm:$0xff] %v1330_v35  ;;  %v1334_v37 = vld [vmem:[%s16274_s30 + $0xe28] sm:$0xff]  ;;  %v1336_v38 = vld [vmem:[%s16274_s30 + $0xe30] sm:$0xff] }
  0x84   : > { %1333 = vst [vmem:[%s16279_s12 + $0x720] sm:$0xff] %v1332_v36  ;;  %1335 = vst [vmem:[%s16279_s12 + $0x728] sm:$0xff] %v1334_v37  ;;  %v1338_v39 = vld [vmem:[%s16274_s30 + $0xe38] sm:$0xff]  ;;  %v1340_v40 = vld [vmem:[%s16274_s30 + $0xe40] sm:$0xff] }
  0x85   : > { %1337 = vst [vmem:[%s16279_s12 + $0x730] sm:$0xff] %v1336_v38  ;;  %v1342_v41 = vld [vmem:[%s16274_s30 + $0xe48] sm:$0xff]  ;;  %1339 = vst [vmem:[%s16279_s12 + $0x738] sm:$0xff] %v1338_v39  ;;  %v1344_v42 = vld [vmem:[%s16274_s30 + $0xe50] sm:$0xff] }
  0x86   : > { %1341 = vst [vmem:[%s16279_s12 + $0x740] sm:$0xff] %v1340_v40  ;;  %1343 = vst [vmem:[%s16279_s12 + $0x748] sm:$0xff] %v1342_v41  ;;  %v1346_v43 = vld [vmem:[%s16274_s30 + $0xe58] sm:$0xff]  ;;  %v1348_v44 = vld [vmem:[%s16274_s30 + $0xe60] sm:$0xff] }
  0x87   : > { %1345 = vst [vmem:[%s16279_s12 + $0x750] sm:$0xff] %v1344_v42  ;;  %1347 = vst [vmem:[%s16279_s12 + $0x758] sm:$0xff] %v1346_v43  ;;  %v1350_v45 = vld [vmem:[%s16274_s30 + $0xe68] sm:$0xff]  ;;  %v1352_v46 = vld [vmem:[%s16274_s30 + $0xe70] sm:$0xff] }
  0x88   : > { %1349 = vst [vmem:[%s16279_s12 + $0x760] sm:$0xff] %v1348_v44  ;;  %v1354_v47 = vld [vmem:[%s16274_s30 + $0xe78] sm:$0xff]  ;;  %1351 = vst [vmem:[%s16279_s12 + $0x768] sm:$0xff] %v1350_v45  ;;  %v1356_v48 = vld [vmem:[%s16274_s30 + $0xf00] sm:$0xff] }
  0x89   : > { %1353 = vst [vmem:[%s16279_s12 + $0x770] sm:$0xff] %v1352_v46  ;;  %1355 = vst [vmem:[%s16279_s12 + $0x778] sm:$0xff] %v1354_v47  ;;  %v1358_v49 = vld [vmem:[%s16274_s30 + $0xf08] sm:$0xff]  ;;  %v1360_v50 = vld [vmem:[%s16274_s30 + $0xf10] sm:$0xff] }
  0x8a   : > { %1357 = vst [vmem:[%s16279_s12 + $0x780] sm:$0xff] %v1356_v48  ;;  %1359 = vst [vmem:[%s16279_s12 + $0x788] sm:$0xff] %v1358_v49  ;;  %v1362_v51 = vld [vmem:[%s16274_s30 + $0xf18] sm:$0xff]  ;;  %v1364_v52 = vld [vmem:[%s16274_s30 + $0xf20] sm:$0xff] }
  0x8b   : > { %1361 = vst [vmem:[%s16279_s12 + $0x790] sm:$0xff] %v1360_v50  ;;  %v1366_v53 = vld [vmem:[%s16274_s30 + $0xf28] sm:$0xff]  ;;  %1363 = vst [vmem:[%s16279_s12 + $0x798] sm:$0xff] %v1362_v51  ;;  %v1368_v54 = vld [vmem:[%s16274_s30 + $0xf30] sm:$0xff] }
  0x8c   : > { %1365 = vst [vmem:[%s16279_s12 + $0x7a0] sm:$0xff] %v1364_v52  ;;  %1367 = vst [vmem:[%s16279_s12 + $0x7a8] sm:$0xff] %v1366_v53  ;;  %v1370_v55 = vld [vmem:[%s16274_s30 + $0xf38] sm:$0xff]  ;;  %v1372_v56 = vld [vmem:[%s16274_s30 + $0xf40] sm:$0xff] }
  0x8d   : > { %1369 = vst [vmem:[%s16279_s12 + $0x7b0] sm:$0xff] %v1368_v54  ;;  %1371 = vst [vmem:[%s16279_s12 + $0x7b8] sm:$0xff] %v1370_v55  ;;  %v1374_v57 = vld [vmem:[%s16274_s30 + $0xf48] sm:$0xff]  ;;  %v1376_v58 = vld [vmem:[%s16274_s30 + $0xf50] sm:$0xff] }
  0x8e   : > { %1373 = vst [vmem:[%s16279_s12 + $0x7c0] sm:$0xff] %v1372_v56  ;;  %v1378_v59 = vld [vmem:[%s16274_s30 + $0xf58] sm:$0xff]  ;;  %1375 = vst [vmem:[%s16279_s12 + $0x7c8] sm:$0xff] %v1374_v57  ;;  %v1380_v60 = vld [vmem:[%s16274_s30 + $0xf60] sm:$0xff] }
  0x8f   : > { %1377 = vst [vmem:[%s16279_s12 + $0x7d0] sm:$0xff] %v1376_v58  ;;  %1379 = vst [vmem:[%s16279_s12 + $0x7d8] sm:$0xff] %v1378_v59  ;;  %v1382_v61 = vld [vmem:[%s16274_s30 + $0xf68] sm:$0xff]  ;;  %v1384_v62 = vld [vmem:[%s16274_s30 + $0xf70] sm:$0xff] }
  0x90   : > { %1381 = vst [vmem:[%s16279_s12 + $0x7e0] sm:$0xff] %v1380_v60  ;;  %1383 = vst [vmem:[%s16279_s12 + $0x7e8] sm:$0xff] %v1382_v61  ;;  %v1386_v63 = vld [vmem:[%s16274_s30 + $0xf78] sm:$0xff] }
  0x91   : > { %1385 = vst [vmem:[%s16279_s12 + $0x7f0] sm:$0xff] %v1384_v62  ;;  %1387 = vst [vmem:[%s16279_s12 + $0x7f8] sm:$0xff] %v1386_v63 }
  0x92 PF: > { %p12795_p5 = scmp.ge.s32.totalorder %s16175_s19, 1  ;;  %p1392_p6 = scmp.lt.s32.totalorder %s16175_s19, 3 }
  0x94   : > { %p1393_p7 = pnand %p12795_p5, %p1392_p6 }
  0x96   : > { %1396 = sbr.rel (%p1393_p7) target bundleno = 2951 (0xb87), region = 98 }
  0x9d   : > { %v15485_v0 = vld [vmem:[%s19965_s1] sm:$0xff]   ;;  %v16177_v1 = vmov 0   ;;  %v15486_v2 = vld [vmem:[%s19965_s1 + $0x8] sm:$0xff]   ;;  %v15487_v3 = vld [vmem:[%s19965_s1 + $0x10] sm:$0xff]   ;;  %s1399_s25 = sand.u32 1, %s16167_s17   ;;  %p1438_p8 = scmp.lt.s32.totalorder %s12787_s20, 1 }
  0x9e   : > { %3114 = vmatprep.subr.bf16.mxu0 %v16177_v1  ;;  %v15488_v4 = vld [vmem:[%s19965_s1 + $0x18] sm:$0xff]   ;;  %s12796_s28 = sshll.u32 %s1399_s25, 11  ;;  %v15489_v5 = vld [vmem:[%s19965_s1 + $0x20] sm:$0xff]   ;;  %v15490_v7 = vld [vmem:[%s19965_s1 + $0x28] sm:$0xff]   ;;  %vm7705_vm0 = vsmask.f32 256 }
  0x9f   : > { %3115 = vmatpush1.bf16.msra.mxu0 %v15485_v0  ;;  %s16808_s12 = scalar_lea.vmem [#allocation2], %s12796_s28  ;;  %v15491_v8 = vld [vmem:[%s19965_s1 + $0x30] sm:$0xff]   ;;  %v15492_v9 = vld [vmem:[%s19965_s1 + $0x38] sm:$0xff]   ;;  %v15493_v10 = vld [vmem:[%s19965_s1 + $0x40] sm:$0xff]   ;;  %vm7706_vm1 = vsmask.f32 1284 }
  0xa0   : > { %3116 = vmatprep.subr.bf16.mxu0 %v16177_v1  ;;  %v15503_v6 = vld [vmem:[%s16808_s12 + $0x4] ss:$8 sps:$4 sm:$0xff]   ;;  %v15495_v12 = vld [vmem:[%s19965_s1 + $0x50] sm:$0xff]   ;;  %v15496_v13 = vld [vmem:[%s19965_s1 + $0x58] sm:$0xff]   ;;  %vm7708_vm3 = vsmask.f32 2312 }
  0xa1   : > { %3146 = vmatprep.mubr.bf16.mxu0 %v15503_v6  ;;  %v15494_v11 = vld [vmem:[%s19965_s1 + $0x48] sm:$0xff]   ;;  %v15497_v14 = vld [vmem:[%s19965_s1 + $0x60] sm:$0xff]   ;;  %v15499_v16 = vld [vmem:[%s19965_s1 + $0x70] sm:$0xff]   ;;  %vm7710_vm5 = vsmask.f32 3340  ;;  %s20073_s20 = smov (!%p1438_p8, %s12787_s20), 1 }
  0xa2   : > { %v15498_v15 = vld [vmem:[%s19965_s1 + $0x68] sm:$0xff]   ;;  %v15500_v17 = vld [vmem:[%s19965_s1 + $0x78] sm:$0xff]   ;;  %v15600_v53 = vld [vmem:[%s19967_s3 + $0x40] sm:$0xff]   ;;  %vm7712_vm7 = vsmask.f32 4368 }
  0xa3   : > { %3117 = vmatpush1.bf16.msra.mxu0 %v15486_v2  ;;  %v15501_v18 = vld [vmem:[%s16808_s12] ss:$8 sps:$4 sm:$0xff]   ;;  %v15504_v19 = vld [vmem:[%s16808_s12 + $0x14] ss:$8 sps:$4 sm:$0xff]   ;;  %v15506_v20 = vld [vmem:[%s16808_s12 + $0x10] ss:$8 sps:$4 sm:$0xff]   ;;  %14470 = vmatprep.subr.bf16.mxu1 %v15600_v53 }
  0xa4   : > { %3118 = vmatprep.subr.bf16.mxu0 %v16177_v1  ;;  %v15507_v21 = vld [vmem:[%s16808_s12 + $0x24] ss:$8 sps:$4 sm:$0xff]   ;;  %v15509_v22 = vld [vmem:[%s16808_s12 + $0x20] ss:$8 sps:$4 sm:$0xff]   ;;  %v15510_v23 = vld [vmem:[%s16808_s12 + $0x34] ss:$8 sps:$4 sm:$0xff]   ;;  %14471 = vmatpush3.bf16.msra.mxu1 %v15600_v53 }
  0xa5   : > { %v15512_v24 = vld [vmem:[%s16808_s12 + $0x30] ss:$8 sps:$4 sm:$0xff]   ;;  %v15513_v25 = vld [vmem:[%s16808_s12 + $0x44] ss:$8 sps:$4 sm:$0xff]   ;;  %v15515_v26 = vld [vmem:[%s16808_s12 + $0x40] ss:$8 sps:$4 sm:$0xff]  }
  0xa6   : > { %v15516_v27 = vld [vmem:[%s16808_s12 + $0x54] ss:$8 sps:$4 sm:$0xff]   ;;  %v15518_v28 = vld [vmem:[%s16808_s12 + $0x50] ss:$8 sps:$4 sm:$0xff]   ;;  %v15519_v29 = vld [vmem:[%s16808_s12 + $0x64] ss:$8 sps:$4 sm:$0xff]  }
  0xa7   : > { %3119 = vmatpush1.bf16.msra.mxu0 %v15487_v3  ;;  %v15521_v30 = vld [vmem:[%s16808_s12 + $0x60] ss:$8 sps:$4 sm:$0xff]   ;;  %v15522_v31 = vld [vmem:[%s16808_s12 + $0x74] ss:$8 sps:$4 sm:$0xff]   ;;  %v15524_v32 = vld [vmem:[%s16808_s12 + $0x70] ss:$8 sps:$4 sm:$0xff]  }
  0xa8   : > { %3120 = vmatprep.subr.bf16.mxu0 %v16177_v1  ;;  %v15525_v33 = vld [vmem:[%s16808_s12 + $0x84] ss:$8 sps:$4 sm:$0xff]   ;;  %v15527_v34 = vld [vmem:[%s16808_s12 + $0x80] ss:$8 sps:$4 sm:$0xff]   ;;  %v15528_v35 = vld [vmem:[%s16808_s12 + $0x94] ss:$8 sps:$4 sm:$0xff]  }
  0xa9   : > { %v15530_v36 = vld [vmem:[%s16808_s12 + $0x90] ss:$8 sps:$4 sm:$0xff]   ;;  %v15531_v37 = vld [vmem:[%s16808_s12 + $0xa4] ss:$8 sps:$4 sm:$0xff]   ;;  %v15533_v38 = vld [vmem:[%s16808_s12 + $0xa0] ss:$8 sps:$4 sm:$0xff]  }
  0xaa   : > { %v15534_v39 = vld [vmem:[%s16808_s12 + $0xb4] ss:$8 sps:$4 sm:$0xff]   ;;  %v15536_v40 = vld [vmem:[%s16808_s12 + $0xb0] ss:$8 sps:$4 sm:$0xff]   ;;  %v15537_v41 = vld [vmem:[%s16808_s12 + $0xc4] ss:$8 sps:$4 sm:$0xff]  }
  0xab   : > { %3121 = vmatpush1.bf16.msra.mxu0 %v15488_v4  ;;  %v15539_v42 = vld [vmem:[%s16808_s12 + $0xc0] ss:$8 sps:$4 sm:$0xff]   ;;  %v15540_v43 = vld [vmem:[%s16808_s12 + $0xd4] ss:$8 sps:$4 sm:$0xff]   ;;  %v15542_v44 = vld [vmem:[%s16808_s12 + $0xd0] ss:$8 sps:$4 sm:$0xff]  }
  0xac   : > { %3122 = vmatprep.subr.bf16.mxu0 %v16177_v1  ;;  %v15543_v45 = vld [vmem:[%s16808_s12 + $0xe4] ss:$8 sps:$4 sm:$0xff]   ;;  %v15545_v46 = vld [vmem:[%s16808_s12 + $0xe0] ss:$8 sps:$4 sm:$0xff]   ;;  %v15546_v47 = vld [vmem:[%s16808_s12 + $0xf4] ss:$8 sps:$4 sm:$0xff]  }
  0xad   : > { %v15548_v48 = vld [vmem:[%s16808_s12 + $0xf0] ss:$8 sps:$4 sm:$0xff]   ;;  %v15549_v49 = vld [vmem:[%s16808_s12 + $0x104] ss:$8 sps:$4 sm:$0xff]   ;;  %v15551_v50 = vld [vmem:[%s16808_s12 + $0x100] ss:$8 sps:$4 sm:$0xff]  }
  0xae   : > { %v15552_v51 = vld [vmem:[%s16808_s12 + $0x114] ss:$8 sps:$4 sm:$0xff]   ;;  %v15554_v52 = vld [vmem:[%s16808_s12 + $0x110] ss:$8 sps:$4 sm:$0xff]   ;;  %v15555_v54 = vld [vmem:[%s16808_s12 + $0x124] ss:$8 sps:$4 sm:$0xff]  }
  0xaf   : > { %3123 = vmatpush1.bf16.msra.mxu0 %v15489_v5  ;;  %v15604_v55 = vld [vmem:[%s19967_s3 + $0x48] sm:$0xff]   ;;  %v15605_v57 = vld [vmem:[%s19967_s3 + $0x50] sm:$0xff]   ;;  %v15609_v59 = vld [vmem:[%s19967_s3 + $0x58] sm:$0xff]   ;;  %vm7714_vm9 = vsmask.f32 5396 }
  0xb0   : > { %3124 = vmatprep.subr.bf16.mxu0 %v16177_v1  ;;  %14472 = vmatprep.subr.bf16.mxu1 %v15604_v55  ;;  %v15557_v56 = vld [vmem:[%s16808_s12 + $0x120] ss:$8 sps:$4 sm:$0xff]   ;;  %v15558_v58 = vld [vmem:[%s16808_s12 + $0x134] ss:$8 sps:$4 sm:$0xff]   ;;  %v15560_v60 = vld [vmem:[%s16808_s12 + $0x130] ss:$8 sps:$4 sm:$0xff]  }
  0xb1   : > { %14473 = vmatpush3.bf16.msra.mxu1 %v15604_v55  ;;  %v15610_v61 = vld [vmem:[%s19967_s3 + $0x60] sm:$0xff]   ;;  %v15614_v63 = vld [vmem:[%s19967_s3 + $0x68] sm:$0xff]   ;;  %v15564_v2 = vld [vmem:[%s16808_s12 + $0x154] ss:$8 sps:$4 sm:$0xff]   ;;  %vm7716_vm11 = vsmask.f32 6424 }
  0xb2   : > { %14474 = vmatprep.subr.bf16.mxu1 %v15605_v57  ;;  %v15561_v62 = vld [vmem:[%s16808_s12 + $0x144] ss:$8 sps:$4 sm:$0xff]   ;;  %v15563_v0 = vld [vmem:[%s16808_s12 + $0x140] ss:$8 sps:$4 sm:$0xff]   ;;  %v15619_v3 = vld [vmem:[%s19967_s3 + $0x78] sm:$0xff]  }
  0xb3   : > { %3125 = vmatpush1.bf16.msra.mxu0 %v15490_v7  ;;  %v15566_v4 = vld [vmem:[%s16808_s12 + $0x150] ss:$8 sps:$4 sm:$0xff]   ;;  %v15567_v5 = vld [vmem:[%s16808_s12 + $0x164] ss:$8 sps:$4 sm:$0xff]   ;;  %v15569_v6 = vld [vmem:[%s16808_s12 + $0x160] ss:$8 sps:$4 sm:$0xff]  }
  0xb4   : > { %3126 = vmatprep.subr.bf16.mxu0 %v16177_v1  ;;  %v15570_v7 = vld [vmem:[%s16808_s12 + $0x174] ss:$8 sps:$4 sm:$0xff]   ;;  %vm7707_vm2 = vmor %vm7705_vm0, %vm7706_vm1  ;;  %vm7718_vm13 = vsmask.f32 7452 }
  0xb5   : > { %14475 = vmatpush3.bf16.msra.mxu1 %v15605_v57  ;;  %vm7709_vm4 = vmor %vm7707_vm2, %vm7708_vm3 }
  0xb6   : > { %14476 = vmatprep.subr.bf16.mxu1 %v15609_v59  ;;  %vm7711_vm6 = vmor %vm7709_vm4, %vm7710_vm5 }
  0xb7   : > { %3127 = vmatpush1.bf16.msra.mxu0 %v15491_v8  ;;  %v15572_v8 = vld [vmem:[%s16808_s12 + $0x170] ss:$8 sps:$4 sm:$0xff]   ;;  %vm7713_vm8 = vmor %vm7711_vm6, %vm7712_vm7 }
  0xb8   : > { %3128 = vmatprep.subr.bf16.mxu0 %v16177_v1  ;;  %vm7715_vm10 = vmor %vm7713_vm8, %vm7714_vm9 }
  0xb9   : > { %14477 = vmatpush3.bf16.msra.mxu1 %v15609_v59  ;;  %vm7717_vm12 = vmor %vm7715_vm10, %vm7716_vm11 }
  0xba   : > { %14478 = vmatprep.subr.bf16.mxu1 %v15610_v61  ;;  %vm17949_vm14 = vmor %vm7717_vm12, %vm7718_vm13 }
  0xbb   : > { %3129 = vmatpush1.bf16.msra.mxu0 %v15492_v9  ;;  %v15573_v9 = vld [vmem:[%s16808_s12 + $0x184] ss:$8 sps:$4 sm:$0xff]  }
  0xbc   : > { %3130 = vmatprep.subr.bf16.mxu0 %v16177_v1 }
  0xbd   : > { %14479 = vmatpush3.bf16.msra.mxu1 %v15610_v61  ;;  %v15596_v61 = vld [vmem:[%s16808_s12 + $0x1f0] ss:$8 sps:$4 sm:$0xff]  }
  0xbe   : > { %14480 = vmatprep.subr.bf16.mxu1 %v15614_v63 }
  0xbf   : > { %3131 = vmatpush1.bf16.msra.mxu0 %v15493_v10  ;;  %v15575_v10 = vld [vmem:[%s16808_s12 + $0x180] ss:$8 sps:$4 sm:$0xff]  }
  0xc0   : > { %3132 = vmatprep.subr.bf16.mxu0 %v16177_v1 }
  0xc1   : > { %14481 = vmatpush3.bf16.msra.mxu1 %v15614_v63 }
  0xc3   : > { %3133 = vmatpush1.bf16.msra.mxu0 %v15494_v11  ;;  %v16920_v11 = vld [vmem:[%s19967_s3] sm:$0xff]  }
  0xc4   : > { %3134 = vmatprep.subr.bf16.mxu0 %v16177_v1 }
  0xc7   : > { %3135 = vmatpush1.bf16.msra.mxu0 %v15495_v12  ;;  %v15576_v12 = vld [vmem:[%s16808_s12 + $0x194] ss:$8 sps:$4 sm:$0xff]  }
  0xc8   : > { %3136 = vmatprep.subr.bf16.mxu0 %v16177_v1 }
  0xcb   : > { %3137 = vmatpush1.bf16.msra.mxu0 %v15496_v13  ;;  %v15578_v13 = vld [vmem:[%s16808_s12 + $0x190] ss:$8 sps:$4 sm:$0xff]  }
  0xcc   : > { %3138 = vmatprep.subr.bf16.mxu0 %v16177_v1 }
  0xcf   : > { %3139 = vmatpush1.bf16.msra.mxu0 %v15497_v14  ;;  %v15579_v14 = vld [vmem:[%s16808_s12 + $0x1a4] ss:$8 sps:$4 sm:$0xff]  }
  0xd0   : > { %3140 = vmatprep.subr.bf16.mxu0 %v16177_v1 }
  0xd3   : > { %3141 = vmatpush1.bf16.msra.mxu0 %v15498_v15  ;;  %v15581_v15 = vld [vmem:[%s16808_s12 + $0x1a0] ss:$8 sps:$4 sm:$0xff]  }
  0xd4   : > { %3142 = vmatprep.subr.bf16.mxu0 %v16177_v1 }
  0xd7   : > { %3143 = vmatpush1.bf16.msra.mxu0 %v15499_v16  ;;  %v15582_v16 = vld [vmem:[%s16808_s12 + $0x1b4] ss:$8 sps:$4 sm:$0xff]  }
  0xd8   : > { %3144 = vmatprep.subr.bf16.mxu0 %v16177_v1  ;;  %v15615_v1 = vld [vmem:[%s19967_s3 + $0x70] sm:$0xff]  }
  0xd9   : > { %14482 = vmatprep.subr.bf16.mxu1 %v15615_v1 }
  0xda   : > { %14483 = vmatpush3.bf16.msra.mxu1 %v15615_v1 }
  0xdb   : > { %3145 = vmatpush1.bf16.msra.mxu0 %v15500_v17  ;;  %14484 = vmatprep.subr.bf16.mxu1 %v15619_v3  ;;  %v16931_v17 = vld [vmem:[%s19966_s2] ss:$0 sm:$0xff] }
  0xde   : > { %3147 = vmatmul.mubr.bf16.vlgmr.msra.gmra.mrb[0].mxu0 %v15501_v18  ;;  %14485 = vmatpush3.bf16.msra.mxu1 %v15619_v3  ;;  %v15584_v18 = vld [vmem:[%s16808_s12 + $0x1b0] ss:$8 sps:$4 sm:$0xff]   ;;  %v15597_v3 = vld [vmem:[%s16808_s12 + $0x204] ss:$8 sps:$4 sm:$0xff]  }
  0xdf   : > { %3154 = vmatprep.mubr.bf16.mxu0 %v15504_v19  ;;  %14502 = vmatprep.subr.bf16.mxu1 %v16920_v11 }
  0xe6   : > { %3155 = vmatmul.mubr.bf16.gmra.mrb[4].mxu0 %v15506_v20 }
  0xe7   : > { %3162 = vmatprep.mubr.bf16.mxu0 %v15507_v21 }
  0xee   : > { %3163 = vmatmul.mubr.bf16.gmra.mrb[8].mxu0 %v15509_v22 }
  0xef   : > { %3170 = vmatprep.mubr.bf16.mxu0 %v15510_v23  ;;  %v15585_v23 = vld [vmem:[%s16808_s12 + $0x1c4] ss:$8 sps:$4 sm:$0xff]  }
  0xf6   : > { %3171 = vmatmul.mubr.bf16.gmra.mrb[12].mxu0 %v15512_v24 }
  0xf7   : > { %3178 = vmatprep.mubr.bf16.mxu0 %v15513_v25 }
  0xfe   : > { %3179 = vmatmul.mubr.bf16.gmra.mrb[16].mxu0 %v15515_v26 }
  0xff   : > { %3186 = vmatprep.mubr.bf16.mxu0 %v15516_v27 }
 0x106   : > { %3187 = vmatmul.mubr.bf16.gmra.mrb[20].mxu0 %v15518_v28  ;;  %v15587_v28 = vld [vmem:[%s16808_s12 + $0x1c0] ss:$8 sps:$4 sm:$0xff]  }
 0x107   : > { %3194 = vmatprep.mubr.bf16.mxu0 %v15519_v29 }
 0x10e   : > { %3195 = vmatmul.mubr.bf16.gmra.mrb[24].mxu0 %v15521_v30 }
 0x10f   : > { %3202 = vmatprep.mubr.bf16.mxu0 %v15522_v31 }
 0x116   : > { %3203 = vmatmul.mubr.bf16.gmra.mrb[28].mxu0 %v15524_v32 }
 0x117   : > { %3210 = vmatprep.mubr.bf16.mxu0 %v15525_v33 }
 0x11e   : > { %3211 = vmatmul.mubr.bf16.gmra.mrb[32].mxu0 %v15527_v34  ;;  %v15588_v34 = vld [vmem:[%s16808_s12 + $0x1d4] ss:$8 sps:$4 sm:$0xff]  }
 0x11f   : > { %3218 = vmatprep.mubr.bf16.mxu0 %v15528_v35 }
 0x126   : > { %3219 = vmatmul.mubr.bf16.gmra.mrb[36].mxu0 %v15530_v36 }
 0x127   : > { %3226 = vmatprep.mubr.bf16.mxu0 %v15531_v37 }
 0x12e   : > { %3227 = vmatmul.mubr.bf16.gmra.mrb[40].mxu0 %v15533_v38 }
 0x12f   : > { %3234 = vmatprep.mubr.bf16.mxu0 %v15534_v39 }
 0x136   : > { %3235 = vmatmul.mubr.bf16.gmra.mrb[44].mxu0 %v15536_v40  ;;  %v15590_v40 = vld [vmem:[%s16808_s12 + $0x1d0] ss:$8 sps:$4 sm:$0xff]  }
 0x137   : > { %3242 = vmatprep.mubr.bf16.mxu0 %v15537_v41 }
 0x13e   : > { %3243 = vmatmul.mubr.bf16.gmra.mrb[48].mxu0 %v15539_v42 }
 0x13f   : > { %3250 = vmatprep.mubr.bf16.mxu0 %v15540_v43 }
 0x146   : > { %3251 = vmatmul.mubr.bf16.gmra.mrb[52].mxu0 %v15542_v44 }
 0x147   : > { %3258 = vmatprep.mubr.bf16.mxu0 %v15543_v45  ;;  %v15591_v45 = vld [vmem:[%s16808_s12 + $0x1e4] ss:$8 sps:$4 sm:$0xff]  }
 0x14e   : > { %3259 = vmatmul.mubr.bf16.gmra.mrb[56].mxu0 %v15545_v46 }
 0x14f   : > { %3266 = vmatprep.mubr.bf16.mxu0 %v15546_v47 }
 0x156   : > { %3267 = vmatmul.mubr.bf16.gmra.mrb[60].mxu0 %v15548_v48 }
 0x157   : > { %3274 = vmatprep.mubr.bf16.mxu0 %v15549_v49 }
 0x15e   : > { %3275 = vmatmul.mubr.bf16.gmra.mrb[64].mxu0 %v15551_v50  ;;  %v15593_v50 = vld [vmem:[%s16808_s12 + $0x1e0] ss:$8 sps:$4 sm:$0xff]  }
 0x15f   : > { %3282 = vmatprep.mubr.bf16.mxu0 %v15552_v51 }
 0x166   : > { %3283 = vmatmul.mubr.bf16.gmra.mrb[68].mxu0 %v15554_v52 }
 0x167   : > { %3290 = vmatprep.mubr.bf16.mxu0 %v15555_v54 }
 0x16e   : > { %3291 = vmatmul.mubr.bf16.gmra.mrb[72].mxu0 %v15557_v56  ;;  %v15594_v56 = vld [vmem:[%s16808_s12 + $0x1f4] ss:$8 sps:$4 sm:$0xff]  }
 0x16f   : > { %3298 = vmatprep.mubr.bf16.mxu0 %v15558_v58 }
 0x176   : > { %3299 = vmatmul.mubr.bf16.gmra.mrb[76].mxu0 %v15560_v60 }
 0x177   : > { %3306 = vmatprep.mubr.bf16.mxu0 %v15561_v62 }
 0x17e   : > { %3307 = vmatmul.mubr.bf16.gmra.mrb[80].mxu0 %v15563_v0 }
 0x17f   : > { %3314 = vmatprep.mubr.bf16.mxu0 %v15564_v2 }
 0x186   : > { %3315 = vmatmul.mubr.bf16.gmra.mrb[84].mxu0 %v15566_v4 }
 0x187   : > { %3322 = vmatprep.mubr.bf16.mxu0 %v15567_v5 }
 0x18e   : > { %3323 = vmatmul.mubr.bf16.gmra.mrb[88].mxu0 %v15569_v6 }
 0x18f   : > { %3330 = vmatprep.mubr.bf16.mxu0 %v15570_v7 }
 0x196   : > { %3331 = vmatmul.mubr.bf16.gmra.mrb[92].mxu0 %v15572_v8  ;;  %v15599_v8 = vld [vmem:[%s16808_s12 + $0x200] ss:$8 sps:$4 sm:$0xff]  }
 0x197   : > { %3338 = vmatprep.mubr.bf16.mxu0 %v15573_v9 }
 0x19e   : > { %3339 = vmatmul.mubr.bf16.gmra.mrb[96].mxu0 %v15575_v10 }
 0x19f   : > { %3346 = vmatprep.mubr.bf16.mxu0 %v15576_v12 }
 0x1a6   : > { %3347 = vmatmul.mubr.bf16.gmra.mrb[100].mxu0 %v15578_v13 }
 0x1a7   : > { %3354 = vmatprep.mubr.bf16.mxu0 %v15579_v14 }
 0x1ae   : > { %3355 = vmatmul.mubr.bf16.gmra.mrb[104].mxu0 %v15581_v15  ;;  %v15601_v15 = vld [vmem:[%s16808_s12 + $0x214] ss:$8 sps:$4 sm:$0xff]  }
 0x1af   : > { %3362 = vmatprep.mubr.bf16.mxu0 %v15582_v16 }
 0x1b1   : > { %v3148_v19 = vpop.f32.mrb[0].mxu0 }
 0x1b2   : > { %v3149_v20 = vadd.f32 %v16931_v17, %v3148_v19  ;;  %v3150_v21 = vpop.f32.mrb[1].mxu0 }
 0x1b3   : > { %v3151_v22 = vpop.f32.mrb[2].mxu0  ;;  %v15603_v21 = vld [vmem:[%s16808_s12 + $0x210] ss:$8 sps:$4 sm:$0xff]  }
 0x1b4   : > { %v3152_v24 = vadd.f32 %v16931_v17, %v3151_v22  ;;  %v3153_v25 = vpop.f32.mrb[3].mxu0  ;;  %v4171_v26 = vmax.f32 %v3149_v20, 0.0 }
 0x1b6   : > { %v4172_v27 = vmax.f32 %v3152_v24, 0.0  ;;  %3363 = vmatmul.mubr.bf16.gmra.mrb[108].mxu0 %v15584_v18 }
 0x1b7   : > { %3370 = vmatprep.mubr.bf16.mxu0 %v15585_v23 }
 0x1b8   : > { %v16938_v29 = vpack.c.bf16 %v4172_v27, %v4171_v26  ;;  %v15606_v27 = vld [vmem:[%s16808_s12 + $0x224] ss:$8 sps:$4 sm:$0xff]  }
 0x1b9   : > { %v3156_v30 = vpop.f32.mrb[4].mxu0 }
 0x1ba   : > { %v3157_v31 = vadd.f32 %v16931_v17, %v3156_v30  ;;  %v3158_v32 = vpop.f32.mrb[5].mxu0 }
 0x1bb   : > { %v3159_v33 = vpop.f32.mrb[6].mxu0 }
 0x1bc   : > { %v3160_v35 = vadd.f32 %v16931_v17, %v3159_v33  ;;  %v3161_v36 = vpop.f32.mrb[7].mxu0  ;;  %v4173_v37 = vmax.f32 %v3157_v31, 0.0 }
 0x1be   : > { %v4174_v38 = vmax.f32 %v3160_v35, 0.0  ;;  %3371 = vmatmul.mubr.bf16.gmra.mrb[112].mxu0 %v15587_v28 }
 0x1bf   : > { %3378 = vmatprep.mubr.bf16.mxu0 %v15588_v34 }
 0x1c0   : > { %v16943_v39 = vpack.c.bf16 %v4174_v38, %v4173_v37  ;;  %v15608_v37 = vld [vmem:[%s16808_s12 + $0x220] ss:$8 sps:$4 sm:$0xff]  }
 0x1c1   : > { %v3164_v41 = vpop.f32.mrb[8].mxu0 }
 0x1c2   : > { %v3165_v42 = vadd.f32 %v16931_v17, %v3164_v41  ;;  %v3166_v43 = vpop.f32.mrb[9].mxu0 }
 0x1c3   : > { %v3167_v44 = vpop.f32.mrb[10].mxu0 }
 0x1c4   : > { %v3168_v46 = vadd.f32 %v16931_v17, %v3167_v44  ;;  %v3169_v47 = vpop.f32.mrb[11].mxu0  ;;  %v4175_v48 = vmax.f32 %v3165_v42, 0.0 }
 0x1c6   : > { %v4176_v49 = vmax.f32 %v3168_v46, 0.0  ;;  %3379 = vmatmul.mubr.bf16.gmra.mrb[116].mxu0 %v15590_v40  ;;  %v15611_v40 = vld [vmem:[%s16808_s12 + $0x234] ss:$8 sps:$4 sm:$0xff]  }
 0x1c7   : > { %3386 = vmatprep.mubr.bf16.mxu0 %v15591_v45 }
 0x1c8   : > { %v16950_v51 = vpack.c.bf16 %v4176_v49, %v4175_v48  ;;  %v15613_v48 = vld [vmem:[%s16808_s12 + $0x230] ss:$8 sps:$4 sm:$0xff]  }
 0x1c9   : > { %v3172_v52 = vpop.f32.mrb[12].mxu0 }
 0x1ca   : > { %v3173_v53 = vadd.f32 %v16931_v17, %v3172_v52  ;;  %v3174_v54 = vpop.f32.mrb[13].mxu0  ;;  %v15616_v52 = vld [vmem:[%s16808_s12 + $0x244] ss:$8 sps:$4 sm:$0xff]  }
 0x1cb   : > { %v3175_v55 = vpop.f32.mrb[14].mxu0 }
 0x1cc   : > { %v3176_v57 = vadd.f32 %v16931_v17, %v3175_v55  ;;  %v3177_v58 = vpop.f32.mrb[15].mxu0  ;;  %v4177_v59 = vmax.f32 %v3173_v53, 0.0 }
 0x1ce   : > { %v4178_v60 = vmax.f32 %v3176_v57, 0.0  ;;  %3387 = vmatmul.mubr.bf16.gmra.mrb[120].mxu0 %v15593_v50 }
 0x1cf   : > { %3394 = vmatprep.mubr.bf16.mxu0 %v15594_v56 }
 0x1d0   : > { %v16956_v62 = vpack.c.bf16 %v4178_v60, %v4177_v59 }
 0x1d1   : > { %v3180_v63 = vpop.f32.mrb[16].mxu0 }
 0x1d2   : > { %v3181_v0 = vadd.f32 %v16931_v17, %v3180_v63  ;;  %v3182_v1 = vpop.f32.mrb[17].mxu0 }
 0x1d3   : > { %v3183_v2 = vpop.f32.mrb[18].mxu0 }
 0x1d4   : > { %v3184_v4 = vadd.f32 %v16931_v17, %v3183_v2  ;;  %v3185_v5 = vpop.f32.mrb[19].mxu0  ;;  %v4179_v6 = vmax.f32 %v3181_v0, 0.0  ;;  %v15620_v0 = vld [vmem:[%s16808_s12 + $0x254] ss:$8 sps:$4 sm:$0xff]  }
 0x1d6   : > { %v4180_v7 = vmax.f32 %v3184_v4, 0.0  ;;  %3395 = vmatmul.mubr.bf16.gmra.mrb[124].mxu0 %v15596_v61  ;;  %v15618_v61 = vld [vmem:[%s16808_s12 + $0x240] ss:$8 sps:$4 sm:$0xff]  }
 0x1d7   : > { %3402 = vmatprep.mubr.bf16.mxu0 %v15597_v3 }
 0x1d8   : > { %v16962_v9 = vpack.c.bf16 %v4180_v7, %v4179_v6  ;;  %v15633_v6 = vld [vmem:[%s19967_s3 + $0x8] sm:$0xff]  }
 0x1d9   : > { %v3188_v10 = vpop.f32.mrb[20].mxu0 }
 0x1da   : > { %v3189_v12 = vadd.f32 %v16931_v17, %v3188_v10  ;;  %v3190_v13 = vpop.f32.mrb[21].mxu0 }
 0x1db   : > { %v3191_v14 = vpop.f32.mrb[22].mxu0 }
 0x1dc   : > { %v3192_v16 = vadd.f32 %v16931_v17, %v3191_v14  ;;  %v3193_v18 = vpop.f32.mrb[23].mxu0  ;;  %v4181_v19 = vmax.f32 %v3189_v12, 0.0  ;;  %v15622_v12 = vld [vmem:[%s16808_s12 + $0x250] ss:$8 sps:$4 sm:$0xff]   ;;  %v15623_v14 = vld [vmem:[%s16808_s12 + $0x264] ss:$8 sps:$4 sm:$0xff]  }
 0x1dd   : > { %v15634_v18 = vld [vmem:[%s19967_s3 + $0x10] sm:$0xff]  }
 0x1de   : > { %v4182_v20 = vmax.f32 %v3192_v16, 0.0  ;;  %3403 = vmatmul.mubr.bf16.gmra.mrb[128].mxu0 %v15599_v8 }
 0x1df   : > { %3410 = vmatprep.mubr.bf16.mxu0 %v15601_v15 }
 0x1e0   : > { %v16968_v22 = vpack.c.bf16 %v4182_v20, %v4181_v19 }
 0x1e1   : > { %v3196_v23 = vpop.f32.mrb[24].mxu0 }
 0x1e2   : > { %v3197_v24 = vadd.f32 %v16931_v17, %v3196_v23  ;;  %v3198_v25 = vpop.f32.mrb[25].mxu0 }
 0x1e3   : > { %v3199_v26 = vpop.f32.mrb[26].mxu0 }
 0x1e4   : > { %v3200_v28 = vadd.f32 %v16931_v17, %v3199_v26  ;;  %v3201_v30 = vpop.f32.mrb[27].mxu0  ;;  %v4183_v31 = vmax.f32 %v3197_v24, 0.0  ;;  %v15625_v26 = vld [vmem:[%s16808_s12 + $0x260] ss:$8 sps:$4 sm:$0xff]  }
 0x1e6   : > { %v4184_v32 = vmax.f32 %v3200_v28, 0.0  ;;  %3411 = vmatmul.mubr.bf16.gmra.mrb[132].mxu0 %v15603_v21  ;;  %v15626_v28 = vld [vmem:[%s16808_s12 + $0x274] ss:$8 sps:$4 sm:$0xff]  }
 0x1e7   : > { %3418 = vmatprep.mubr.bf16.mxu0 %v15606_v27 }
 0x1e8   : > { %v16973_v33 = vpack.c.bf16 %v4184_v32, %v4183_v31  ;;  %v15639_v32 = vld [vmem:[%s19967_s3 + $0x20] sm:$0xff]  }
 0x1e9   : > { %v3204_v34 = vpop.f32.mrb[28].mxu0 }
 0x1ea   : > { %v3205_v35 = vadd.f32 %v16931_v17, %v3204_v34  ;;  %v3206_v36 = vpop.f32.mrb[29].mxu0 }
 0x1eb   : > { %v3207_v38 = vpop.f32.mrb[30].mxu0 }
 0x1ec   : > { %v3208_v41 = vadd.f32 %v16931_v17, %v3207_v38  ;;  %v3209_v42 = vpop.f32.mrb[31].mxu0  ;;  %v4185_v43 = vmax.f32 %v3205_v35, 0.0 }
 0x1ed   : > { %v15628_v42 = vld [vmem:[%s16808_s12 + $0x270] ss:$8 sps:$4 sm:$0xff]  }
 0x1ee   : > { %v4186_v44 = vmax.f32 %v3208_v41, 0.0  ;;  %3419 = vmatmul.mubr.bf16.gmra.mrb[136].mxu0 %v15608_v37  ;;  %v15643_v37 = vld [vmem:[%s19967_s3 + $0x28] sm:$0xff]  }
 0x1ef   : > { %3426 = vmatprep.mubr.bf16.mxu0 %v15611_v40 }
 0x1f0   : > { %v16979_v45 = vpack.c.bf16 %v4186_v44, %v4185_v43  ;;  %v15630_v44 = vld [vmem:[%s16808_s12 + $0x284] ss:$8 sps:$4 sm:$0xff]  }
 0x1f1   : > { %v3212_v46 = vpop.f32.mrb[32].mxu0 }
 0x1f2   : > { %v3214_v47 = vpop.f32.mrb[33].mxu0  ;;  %v3213_v49 = vadd.f32 %v16931_v17, %v3212_v46 }
 0x1f3   : > { %v3215_v50 = vpop.f32.mrb[34].mxu0 }
 0x1f4   : > { %v3217_v53 = vpop.f32.mrb[35].mxu0  ;;  %v3216_v54 = vadd.f32 %v16931_v17, %v3215_v50  ;;  %v4187_v55 = vmax.f32 %v3213_v49, 0.0 }
 0x1f5   : > { %v15648_v53 = vld [vmem:[%s19967_s3 + $0x38] sm:$0xff]  }
 0x1f6   : > { %3427 = vmatmul.mubr.bf16.gmra.mrb[140].mxu0 %v15613_v48  ;;  %v4188_v56 = vmax.f32 %v3216_v54, 0.0  ;;  %v15644_v48 = vld [vmem:[%s19967_s3 + $0x30] sm:$0xff]  }
 0x1f7   : > { %3434 = vmatprep.mubr.bf16.mxu0 %v15616_v52 }
 0x1f8   : > { %v4435_v57 = vpack.c.bf16 %v4188_v56, %v4187_v55 }
 0x1f9   : > { %v3220_v58 = vpop.f32.mrb[36].mxu0 }
 0x1fa   : > { %v3221_v59 = vadd.f32 %v16931_v17, %v3220_v58  ;;  %v3222_v60 = vpop.f32.mrb[37].mxu0  ;;  %14486 = vmatprep.mubr.bf16.mxu1 %v4435_v57  ;;  %v15632_v57 = vld [vmem:[%s16808_s12 + $0x280] ss:$8 sps:$4 sm:$0xff]  }
 0x1fb   : > { %v3223_v63 = vpop.f32.mrb[38].mxu0 }
 0x1fc   : > { %v3224_v1 = vadd.f32 %v16931_v17, %v3223_v63  ;;  %v3225_v2 = vpop.f32.mrb[39].mxu0  ;;  %v4189_v3 = vmax.f32 %v3221_v59, 0.0  ;;  %v15635_v59 = vld [vmem:[%s16808_s12 + $0x294] ss:$8 sps:$4 sm:$0xff]   ;;  %v15649_v63 = vld [vmem:[%s19967_s3 + $0x80] sm:$0xff]  }
 0x1fe   : > { %v4190_v4 = vmax.f32 %v3224_v1, 0.0  ;;  %3435 = vmatmul.mubr.bf16.gmra.mrb[144].mxu0 %v15618_v61 }
 0x1ff   : > { %3442 = vmatprep.mubr.bf16.mxu0 %v15620_v0 }
 0x200   : > { %v4436_v5 = vpack.c.bf16 %v4190_v4, %v4189_v3 }
 0x201   : > { %v3228_v7 = vpop.f32.mrb[40].mxu0 }
 0x202   : > { %v3229_v8 = vadd.f32 %v16931_v17, %v3228_v7  ;;  %v3230_v10 = vpop.f32.mrb[41].mxu0  ;;  %14487 = vmatmul.mubr.bf16.vlgmr.msra.gmra.mrb[0].mxu1 %v4436_v5 }
 0x203   : > { %v3231_v13 = vpop.f32.mrb[42].mxu0  ;;  %14503 = vmatpush3.bf16.msra.mxu1 %v16920_v11  ;;  %v15638_v11 = vld [vmem:[%s19967_s3 + $0x18] sm:$0xff]  }
 0x204   : > { %v3232_v15 = vadd.f32 %v16931_v17, %v3231_v13  ;;  %v3233_v16 = vpop.f32.mrb[43].mxu0  ;;  %14504 = vmatprep.subr.bf16.mxu1 %v15633_v6  ;;  %v4191_v19 = vmax.f32 %v3229_v8, 0.0  ;;  %v15640_v8 = vld [vmem:[%s16808_s12 + $0x2a4] ss:$8 sps:$4 sm:$0xff]  }
 0x206   : > { %v4192_v20 = vmax.f32 %v3232_v15, 0.0  ;;  %3443 = vmatmul.mubr.bf16.gmra.mrb[148].mxu0 %v15622_v12 }
 0x207   : > { %3450 = vmatprep.mubr.bf16.mxu0 %v15623_v14  ;;  %14505 = vmatpush3.bf16.msra.mxu1 %v15633_v6  ;;  %v15637_v6 = vld [vmem:[%s16808_s12 + $0x290] ss:$8 sps:$4 sm:$0xff]  }
 0x208   : > { %v4437_v21 = vpack.c.bf16 %v4192_v20, %v4191_v19  ;;  %14506 = vmatprep.subr.bf16.mxu1 %v15634_v18  ;;  %v15642_v20 = vld [vmem:[%s16808_s12 + $0x2a0] ss:$8 sps:$4 sm:$0xff]  }
 0x209   : > { %v3236_v23 = vpop.f32.mrb[44].mxu0 }
 0x20a   : > { %v3237_v24 = vadd.f32 %v16931_v17, %v3236_v23  ;;  %v3238_v25 = vpop.f32.mrb[45].mxu0  ;;  %14490 = vmatprep.mubr.bf16.mxu1 %v4437_v21 }
 0x20b   : > { %v3239_v27 = vpop.f32.mrb[46].mxu0  ;;  %14507 = vmatpush3.bf16.msra.mxu1 %v15634_v18 }
 0x20c   : > { %v3240_v30 = vadd.f32 %v16931_v17, %v3239_v27  ;;  %v3241_v31 = vpop.f32.mrb[47].mxu0  ;;  %14508 = vmatprep.subr.bf16.mxu1 %v15638_v11  ;;  %v4193_v34 = vmax.f32 %v3237_v24, 0.0 }
 0x20e   : > { %v4194_v35 = vmax.f32 %v3240_v30, 0.0  ;;  %3451 = vmatmul.mubr.bf16.gmra.mrb[152].mxu0 %v15625_v26 }
 0x20f   : > { %3458 = vmatprep.mubr.bf16.mxu0 %v15626_v28  ;;  %14509 = vmatpush3.bf16.msra.mxu1 %v15638_v11  ;;  %v15645_v11 = vld [vmem:[%s16808_s12 + $0x2b4] ss:$8 sps:$4 sm:$0xff]  }
 0x210   : > { %v4438_v36 = vpack.c.bf16 %v4194_v35, %v4193_v34  ;;  %14510 = vmatprep.subr.bf16.mxu1 %v15639_v32  ;;  %v15650_v35 = vld [vmem:[%s16808_s12 + $0x2c4] ss:$8 sps:$4 sm:$0xff]  }
 0x211   : > { %v3244_v38 = vpop.f32.mrb[48].mxu0 }
 0x212   : > { %v3245_v40 = vadd.f32 %v16931_v17, %v3244_v38  ;;  %v3246_v41 = vpop.f32.mrb[49].mxu0  ;;  %14491 = vmatmul.mubr.bf16.gmra.mrb[4].mxu1 %v4438_v36 }
 0x213   : > { %v3247_v43 = vpop.f32.mrb[50].mxu0  ;;  %14511 = vmatpush3.bf16.msra.mxu1 %v15639_v32  ;;  %v15647_v32 = vld [vmem:[%s16808_s12 + $0x2b0] ss:$8 sps:$4 sm:$0xff]   ;;  %v15653_v41 = vld [vmem:[%s19967_s3 + $0x88] sm:$0xff]  }
 0x214   : > { %v3248_v46 = vadd.f32 %v16931_v17, %v3247_v43  ;;  %v3249_v47 = vpop.f32.mrb[51].mxu0  ;;  %14512 = vmatprep.subr.bf16.mxu1 %v15643_v37  ;;  %v4195_v49 = vmax.f32 %v3245_v40, 0.0 }
 0x216   : > { %v4196_v50 = vmax.f32 %v3248_v46, 0.0  ;;  %3459 = vmatmul.mubr.bf16.gmra.mrb[156].mxu0 %v15628_v42 }
 0x217   : > { %3466 = vmatprep.mubr.bf16.mxu0 %v15630_v44  ;;  %14513 = vmatpush3.bf16.msra.mxu1 %v15643_v37 }
 0x218   : > { %v4439_v52 = vpack.c.bf16 %v4196_v50, %v4195_v49  ;;  %14514 = vmatprep.subr.bf16.mxu1 %v15644_v48 }
 0x219   : > { %v3252_v54 = vpop.f32.mrb[52].mxu0 }
 0x21a   : > { %v3253_v55 = vadd.f32 %v16931_v17, %v3252_v54  ;;  %v3254_v56 = vpop.f32.mrb[53].mxu0  ;;  %14494 = vmatprep.mubr.bf16.mxu1 %v4439_v52  ;;  %v15654_v52 = vld [vmem:[%s19967_s3 + $0x90] sm:$0xff]  }
 0x21b   : > { %v3255_v58 = vpop.f32.mrb[54].mxu0  ;;  %14515 = vmatpush3.bf16.msra.mxu1 %v15644_v48  ;;  %v15655_v48 = vld [vmem:[%s16808_s12 + $0x2d4] ss:$8 sps:$4 sm:$0xff]  }
 0x21c   : > { %v3256_v60 = vadd.f32 %v16931_v17, %v3255_v58  ;;  %v3257_v61 = vpop.f32.mrb[55].mxu0  ;;  %14516 = vmatprep.subr.bf16.mxu1 %v15648_v53  ;;  %v4197_v0 = vmax.f32 %v3253_v55, 0.0  ;;  %v15657_v58 = vld [vmem:[%s16808_s12 + $0x2d0] ss:$8 sps:$4 sm:$0xff]  }
 0x21e   : > { %v4198_v1 = vmax.f32 %v3256_v60, 0.0  ;;  %3467 = vmatmul.mubr.bf16.gmra.mrb[160].mxu0 %v15632_v57  ;;  %v15660_v60 = vld [vmem:[%s16808_s12 + $0x2e4] ss:$8 sps:$4 sm:$0xff]  }
 0x21f   : > { %3474 = vmatprep.mubr.bf16.mxu0 %v15635_v59  ;;  %14517 = vmatpush3.bf16.msra.mxu1 %v15648_v53 }
 0x220   : > { %v4440_v2 = vpack.c.bf16 %v4198_v1, %v4197_v0  ;;  %14534 = vmatprep.subr.bf16.mxu1 %v15649_v63  ;;  %v15659_v0 = vld [vmem:[%s19967_s3 + $0xa0] sm:$0xff]  }
 0x221   : > { %v3260_v3 = vpop.f32.mrb[56].mxu0 }
 0x222   : > { %v3261_v4 = vadd.f32 %v16931_v17, %v3260_v3  ;;  %v3262_v5 = vpop.f32.mrb[57].mxu0  ;;  %14495 = vmatmul.mubr.bf16.gmra.mrb[8].mxu1 %v4440_v2 }
 0x223   : > { %v3263_v7 = vpop.f32.mrb[58].mxu0 }
 0x224   : > { %v3264_v10 = vadd.f32 %v16931_v17, %v3263_v7  ;;  %v3265_v12 = vpop.f32.mrb[59].mxu0  ;;  %v4199_v13 = vmax.f32 %v3261_v4, 0.0 }
 0x226   : > { %v4200_v14 = vmax.f32 %v3264_v10, 0.0  ;;  %3475 = vmatmul.mubr.bf16.gmra.mrb[164].mxu0 %v15637_v6  ;;  %v15662_v6 = vld [vmem:[%s16808_s12 + $0x2e0] ss:$8 sps:$4 sm:$0xff]  }
 0x227   : > { %3482 = vmatprep.mubr.bf16.mxu0 %v15640_v8  ;;  %v15665_v8 = vld [vmem:[%s16808_s12 + $0x2f4] ss:$8 sps:$4 sm:$0xff]  }
 0x228   : > { %v4441_v15 = vpack.c.bf16 %v4200_v14, %v4199_v13  ;;  %v15664_v13 = vld [vmem:[%s19967_s3 + $0xb0] sm:$0xff]  }
 0x229   : > { %v3268_v16 = vpop.f32.mrb[60].mxu0 }
 0x22a   : > { %v3269_v18 = vadd.f32 %v16931_v17, %v3268_v16  ;;  %v3270_v19 = vpop.f32.mrb[61].mxu0  ;;  %14498 = vmatprep.mubr.bf16.mxu1 %v4441_v15 }
 0x22b   : > { %v3271_v21 = vpop.f32.mrb[62].mxu0 }
 0x22c   : > { %v3272_v23 = vadd.f32 %v16931_v17, %v3271_v21  ;;  %v3273_v24 = vpop.f32.mrb[63].mxu0  ;;  %v4201_v25 = vmax.f32 %v3269_v18, 0.0 }
 0x22e   : > { %v4202_v26 = vmax.f32 %v3272_v23, 0.0  ;;  %3483 = vmatmul.mubr.bf16.gmra.mrb[168].mxu0 %v15642_v20  ;;  %v15667_v20 = vld [vmem:[%s16808_s12 + $0x2f0] ss:$8 sps:$4 sm:$0xff]  }
 0x22f   : > { %3490 = vmatprep.mubr.bf16.mxu0 %v15645_v11  ;;  %v15669_v11 = vld [vmem:[%s16808_s12 + $0x304] ss:$8 sps:$4 sm:$0xff]  }
 0x230   : > { %v4442_v27 = vpack.c.bf16 %v4202_v26, %v4201_v25  ;;  %v15672_v25 = vld [vmem:[%s19967_s3 + $0xc0] sm:$0xff]  }
 0x231   : > { %v3276_v28 = vpop.f32.mrb[64].mxu0 }
 0x232   : > { %v3277_v30 = vadd.f32 %v16931_v17, %v3276_v28  ;;  %v3278_v31 = vpop.f32.mrb[65].mxu0  ;;  %14499 = vmatmul.mubr.bf16.gmra.mrb[12].mxu1 %v4442_v27  ;;  %v15676_v28 = vld [vmem:[%s19967_s3 + $0xc8] sm:$0xff]  }
 0x233   : > { %v3279_v34 = vpop.f32.mrb[66].mxu0  ;;  %14518 = vmatprep.mubr.bf16.mxu1 %v16938_v29  ;;  %v15652_v29 = vld [vmem:[%s16808_s12 + $0x2c0] ss:$8 sps:$4 sm:$0xff]  }
 0x234   : > { %v3280_v36 = vadd.f32 %v16931_v17, %v3279_v34  ;;  %v3281_v37 = vpop.f32.mrb[67].mxu0  ;;  %v4203_v38 = vmax.f32 %v3277_v30, 0.0  ;;  %v15671_v34 = vld [vmem:[%s16808_s12 + $0x300] ss:$8 sps:$4 sm:$0xff]  }
 0x236   : > { %v4204_v40 = vmax.f32 %v3280_v36, 0.0  ;;  %3491 = vmatmul.mubr.bf16.gmra.mrb[172].mxu0 %v15647_v32  ;;  %v15673_v36 = vld [vmem:[%s16808_s12 + $0x314] ss:$8 sps:$4 sm:$0xff]  }
 0x237   : > { %3498 = vmatprep.mubr.bf16.mxu0 %v15650_v35 }
 0x238   : > { %v17046_v42 = vpack.c.bf16 %v4204_v40, %v4203_v38  ;;  %v15677_v40 = vld [vmem:[%s19967_s3 + $0xd0] sm:$0xff]  }
 0x239   : > { %v3284_v43 = vpop.f32.mrb[68].mxu0 }
 0x23a   : > { %v3285_v44 = vadd.f32 %v16931_v17, %v3284_v43  ;;  %v3286_v46 = vpop.f32.mrb[69].mxu0  ;;  %14519 = vmatmul.mubr.bf16.vlgmr.msra.gmra.mrb[0].mxu1 %v16943_v39 }
 0x23b   : > { %v3287_v47 = vpop.f32.mrb[70].mxu0  ;;  %14522 = vmatprep.mubr.bf16.mxu1 %v16950_v51  ;;  %14535 = vmatpush3.bf16.msra.mxu1 %v15649_v63  ;;  %v15658_v51 = vld [vmem:[%s19967_s3 + $0x98] sm:$0xff]  }
 0x23c   : > { %v3288_v49 = vadd.f32 %v16931_v17, %v3287_v47  ;;  %v3289_v50 = vpop.f32.mrb[71].mxu0  ;;  %14536 = vmatprep.subr.bf16.mxu1 %v15653_v41  ;;  %v4205_v53 = vmax.f32 %v3285_v44, 0.0  ;;  %v15681_v44 = vld [vmem:[%s19967_s3 + $0xd8] sm:$0xff]  }
 0x23d   : > { %v15678_v50 = vld [vmem:[%s16808_s12 + $0x324] ss:$8 sps:$4 sm:$0xff]  }
 0x23e   : > { %v4206_v54 = vmax.f32 %v3288_v49, 0.0  ;;  %3499 = vmatmul.mubr.bf16.gmra.mrb[176].mxu0 %v15652_v29 }
 0x23f   : > { %14537 = vmatpush3.bf16.msra.mxu1 %v15653_v41  ;;  %3506 = vmatprep.mubr.bf16.mxu0 %v15655_v48  ;;  %v15675_v48 = vld [vmem:[%s16808_s12 + $0x310] ss:$8 sps:$4 sm:$0xff]  }
 0x240   : > { %v17057_v39 = vpack.c.bf16 %v4206_v54, %v4205_v53  ;;  %14538 = vmatprep.subr.bf16.mxu1 %v15654_v52  ;;  %v15682_v54 = vld [vmem:[%s19967_s3 + $0xe0] sm:$0xff]  }
 0x241   : > { %v3292_v55 = vpop.f32.mrb[72].mxu0 }
 0x242   : > { %v3293_v56 = vadd.f32 %v16931_v17, %v3292_v55  ;;  %v3294_v57 = vpop.f32.mrb[73].mxu0  ;;  %14523 = vmatmul.mubr.bf16.gmra.mrb[4].mxu1 %v16956_v62  ;;  %v15663_v62 = vld [vmem:[%s19967_s3 + $0xa8] sm:$0xff]  }
 0x243   : > { %v3295_v59 = vpop.f32.mrb[74].mxu0  ;;  %14526 = vmatprep.mubr.bf16.mxu1 %v16962_v9  ;;  %14539 = vmatpush3.bf16.msra.mxu1 %v15654_v52 }
 0x244   : > { %v3296_v61 = vadd.f32 %v16931_v17, %v3295_v59  ;;  %v3297_v63 = vpop.f32.mrb[75].mxu0  ;;  %14540 = vmatprep.subr.bf16.mxu1 %v15658_v51  ;;  %v4207_v1 = vmax.f32 %v3293_v56, 0.0  ;;  %v15686_v56 = vld [vmem:[%s19967_s3 + $0xe8] sm:$0xff]  }
 0x245   : > { %v15683_v63 = vld [vmem:[%s16808_s12 + $0x334] ss:$8 sps:$4 sm:$0xff]  }
 0x246   : > { %v4208_v2 = vmax.f32 %v3296_v61, 0.0  ;;  %3507 = vmatmul.mubr.bf16.gmra.mrb[180].mxu0 %v15657_v58 }
 0x247   : > { %14541 = vmatpush3.bf16.msra.mxu1 %v15658_v51  ;;  %3514 = vmatprep.mubr.bf16.mxu0 %v15660_v60  ;;  %v15680_v60 = vld [vmem:[%s16808_s12 + $0x320] ss:$8 sps:$4 sm:$0xff]  }
 0x248   : > { %14542 = vmatprep.subr.bf16.mxu1 %v15659_v0  ;;  %v4445_v9 = vpack.c.bf16 %v4208_v2, %v4207_v1  ;;  %v15687_v2 = vld [vmem:[%s19967_s3 + $0xf0] sm:$0xff]  }
 0x249   : > { %v3300_v3 = vpop.f32.mrb[76].mxu0 }
 0x24a   : > { %v3301_v4 = vadd.f32 %v16931_v17, %v3300_v3  ;;  %v3302_v5 = vpop.f32.mrb[77].mxu0  ;;  %14527 = vmatmul.mubr.bf16.gmra.mrb[8].mxu1 %v16968_v22  ;;  %v15668_v22 = vld [vmem:[%s19967_s3 + $0xb8] sm:$0xff]  }
 0x24b   : > { %v3303_v7 = vpop.f32.mrb[78].mxu0  ;;  %14530 = vmatprep.mubr.bf16.mxu1 %v16973_v33  ;;  %14543 = vmatpush3.bf16.msra.mxu1 %v15659_v0  ;;  %v17132_v5 = vld [vmem:[%s19966_s2] ss:$0 sm:$0xff] }
 0x24c   : > { %v3304_v10 = vadd.f32 %v16931_v17, %v3303_v7  ;;  %v3305_v12 = vpop.f32.mrb[79].mxu0  ;;  %14544 = vmatprep.subr.bf16.mxu1 %v15663_v62  ;;  %v4209_v14 = vmax.f32 %v3301_v4, 0.0  ;;  %v15691_v4 = vld [vmem:[%s19967_s3 + $0xf8] sm:$0xff]  }
 0x24d   : > { %v15688_v12 = vld [vmem:[%s16808_s12 + $0x344] ss:$8 sps:$4 sm:$0xff]  }
 0x24e   : > { %v4210_v15 = vmax.f32 %v3304_v10, 0.0  ;;  %3515 = vmatmul.mubr.bf16.gmra.mrb[184].mxu0 %v15662_v6 }
 0x24f   : > { %14545 = vmatpush3.bf16.msra.mxu1 %v15663_v62  ;;  %3522 = vmatprep.mubr.bf16.mxu0 %v15665_v8  ;;  %v15685_v8 = vld [vmem:[%s16808_s12 + $0x330] ss:$8 sps:$4 sm:$0xff]  }
 0x250   : > { %14546 = vmatprep.subr.bf16.mxu1 %v15664_v13  ;;  %v4446_v33 = vpack.c.bf16 %v4210_v15, %v4209_v14  ;;  %v15704_v15 = vld [vmem:[%s19967_s3 + $0x100] sm:$0xff]  }
 0x251   : > { %v3308_v16 = vpop.f32.mrb[80].mxu0 }
 0x252   : > { %v3309_v18 = vadd.f32 %v16931_v17, %v3308_v16  ;;  %v3310_v19 = vpop.f32.mrb[81].mxu0  ;;  %14531 = vmatmul.mubr.bf16.gmra.mrb[12].mxu1 %v16979_v45 }
 0x253   : > { %v3311_v21 = vpop.f32.mrb[82].mxu0  ;;  %14547 = vmatpush3.bf16.msra.mxu1 %v15664_v13  ;;  %14550 = vmatprep.mubr.bf16.mxu1 %v17046_v42 }
 0x254   : > { %v3312_v23 = vadd.f32 %v16931_v17, %v3311_v21  ;;  %v3313_v24 = vpop.f32.mrb[83].mxu0  ;;  %14548 = vmatprep.subr.bf16.mxu1 %v15668_v22  ;;  %v4211_v26 = vmax.f32 %v3309_v18, 0.0  ;;  %v15690_v21 = vld [vmem:[%s16808_s12 + $0x340] ss:$8 sps:$4 sm:$0xff]  }
 0x256   : > { %v4212_v27 = vmax.f32 %v3312_v23, 0.0  ;;  %3523 = vmatmul.mubr.bf16.gmra.mrb[188].mxu0 %v15667_v20  ;;  %v15692_v23 = vld [vmem:[%s16808_s12 + $0x354] ss:$8 sps:$4 sm:$0xff]  }
 0x257   : > { %14549 = vmatpush3.bf16.msra.mxu1 %v15668_v22  ;;  %3530 = vmatprep.mubr.bf16.mxu0 %v15669_v11 }
 0x258   : > { %14566 = vmatprep.subr.bf16.mxu1 %v15672_v25  ;;  %v4447_v45 = vpack.c.bf16 %v4212_v27, %v4211_v26 }
 0x259   : > { %v3316_v30 = vpop.f32.mrb[84].mxu0 }
 0x25a   : > { %v3317_v31 = vadd.f32 %v16931_v17, %v3316_v30  ;;  %v3318_v32 = vpop.f32.mrb[85].mxu0  ;;  %14551 = vmatmul.mubr.bf16.vlgmr.msra.gmra.mrb[0].mxu1 %v17057_v39 }
 0x25b   : > { %v3319_v35 = vpop.f32.mrb[86].mxu0  ;;  %14554 = vmatprep.mubr.bf16.mxu1 %v4445_v9  ;;  %14567 = vmatpush3.bf16.msra.mxu1 %v15672_v25 }
 0x25c   : > { %v3320_v37 = vadd.f32 %v16931_v17, %v3319_v35  ;;  %v3321_v38 = vpop.f32.mrb[87].mxu0  ;;  %14568 = vmatprep.subr.bf16.mxu1 %v15676_v28  ;;  %v4213_v41 = vmax.f32 %v3317_v31, 0.0 }
 0x25e   : > { %v4214_v42 = vmax.f32 %v3320_v37, 0.0  ;;  %3531 = vmatmul.mubr.bf16.gmra.mrb[192].mxu0 %v15671_v34  ;;  %v15694_v34 = vld [vmem:[%s16808_s12 + $0x350] ss:$8 sps:$4 sm:$0xff]  }
 0x25f   : > { %3538 = vmatprep.mubr.bf16.mxu0 %v15673_v36  ;;  %14569 = vmatpush3.bf16.msra.mxu1 %v15676_v28  ;;  %v15708_v28 = vld [vmem:[%s19967_s3 + $0x108] sm:$0xff]  }
 0x260   : > { %v4448_v43 = vpack.c.bf16 %v4214_v42, %v4213_v41  ;;  %14570 = vmatprep.subr.bf16.mxu1 %v15677_v40  ;;  %v15695_v36 = vld [vmem:[%s16808_s12 + $0x364] ss:$8 sps:$4 sm:$0xff]  }
 0x261   : > { %v3324_v46 = vpop.f32.mrb[88].mxu0 }
 0x262   : > { %v3325_v29 = vadd.f32 %v16931_v17, %v3324_v46  ;;  %v3326_v47 = vpop.f32.mrb[89].mxu0  ;;  %14555 = vmatmul.mubr.bf16.gmra.mrb[4].mxu1 %v4446_v33 }
 0x263   : > { %v3327_v49 = vpop.f32.mrb[90].mxu0  ;;  %14558 = vmatprep.mubr.bf16.mxu1 %v4447_v45  ;;  %14571 = vmatpush3.bf16.msra.mxu1 %v15677_v40  ;;  %v15709_v40 = vld [vmem:[%s19967_s3 + $0x110] sm:$0xff]  }
 0x264   : > { %v3328_v52 = vadd.f32 %v16931_v17, %v3327_v49  ;;  %v3329_v53 = vpop.f32.mrb[91].mxu0  ;;  %14572 = vmatprep.subr.bf16.mxu1 %v15681_v44  ;;  %v4215_v39 = vmax.f32 %v3325_v29, 0.0 }
 0x266   : > { %v4216_v51 = vmax.f32 %v3328_v52, 0.0  ;;  %3539 = vmatmul.mubr.bf16.gmra.mrb[196].mxu0 %v15675_v48  ;;  %v15697_v48 = vld [vmem:[%s16808_s12 + $0x360] ss:$8 sps:$4 sm:$0xff]  }
 0x267   : > { %3546 = vmatprep.mubr.bf16.mxu0 %v15678_v50  ;;  %14573 = vmatpush3.bf16.msra.mxu1 %v15681_v44  ;;  %v15713_v44 = vld [vmem:[%s19967_s3 + $0x118] sm:$0xff]  }
 0x268   : > { %v4449_v55 = vpack.c.bf16 %v4216_v51, %v4215_v39  ;;  %14574 = vmatprep.subr.bf16.mxu1 %v15682_v54  ;;  %v15698_v50 = vld [vmem:[%s16808_s12 + $0x374] ss:$8 sps:$4 sm:$0xff]  }
 0x269   : > { %v3332_v57 = vpop.f32.mrb[92].mxu0 }
 0x26a   : > { %v3333_v58 = vadd.f32 %v16931_v17, %v3332_v57  ;;  %v3334_v59 = vpop.f32.mrb[93].mxu0  ;;  %14559 = vmatmul.mubr.bf16.gmra.mrb[8].mxu1 %v4448_v43 }
 0x26b   : > { %v3335_v61 = vpop.f32.mrb[94].mxu0  ;;  %14562 = vmatprep.mubr.bf16.mxu1 %v4449_v55  ;;  %14575 = vmatpush3.bf16.msra.mxu1 %v15682_v54  ;;  %v15714_v54 = vld [vmem:[%s19967_s3 + $0x120] sm:$0xff]  }
 0x26c   : > { %v3336_v0 = vadd.f32 %v16931_v17, %v3335_v61  ;;  %v3337_v1 = vpop.f32.mrb[95].mxu0  ;;  %14576 = vmatprep.subr.bf16.mxu1 %v15686_v56  ;;  %v4217_v62 = vmax.f32 %v3333_v58, 0.0 }
 0x26e   : > { %v4218_v9 = vmax.f32 %v3336_v0, 0.0  ;;  %3547 = vmatmul.mubr.bf16.gmra.mrb[200].mxu0 %v15680_v60  ;;  %v15700_v60 = vld [vmem:[%s16808_s12 + $0x370] ss:$8 sps:$4 sm:$0xff]  }
 0x26f   : > { %3554 = vmatprep.mubr.bf16.mxu0 %v15683_v63  ;;  %14577 = vmatpush3.bf16.msra.mxu1 %v15686_v56  ;;  %v15718_v56 = vld [vmem:[%s19967_s3 + $0x128] sm:$0xff]  }
 0x270   : > { %v4450_v3 = vpack.c.bf16 %v4218_v9, %v4217_v62  ;;  %14578 = vmatprep.subr.bf16.mxu1 %v15687_v2  ;;  %v15701_v63 = vld [vmem:[%s16808_s12 + $0x384] ss:$8 sps:$4 sm:$0xff]  }
 0x271   : > { %v3340_v17 = vpop.f32.mrb[96].mxu0 }
 0x272   : > { %v3341_v6 = vadd.f32 %v17132_v5, %v3340_v17  ;;  %v3342_v7 = vpop.f32.mrb[97].mxu0  ;;  %14563 = vmatmul.mubr.bf16.gmra.mrb[12].mxu1 %v4450_v3 }
 0x273   : > { %v3343_v10 = vpop.f32.mrb[98].mxu0  ;;  %14579 = vmatpush3.bf16.msra.mxu1 %v15687_v2  ;;  %v15719_v2 = vld [vmem:[%s19967_s3 + $0x130] sm:$0xff]  }
 0x274   : > { %v3344_v13 = vadd.f32 %v17132_v5, %v3343_v10  ;;  %v3345_v14 = vpop.f32.mrb[99].mxu0  ;;  %14580 = vmatprep.subr.bf16.mxu1 %v15691_v4  ;;  %v4219_v22 = vmax.f32 %v3341_v6, 0.0 }
 0x276   : > { %v4220_v33 = vmax.f32 %v3344_v13, 0.0  ;;  %3555 = vmatmul.mubr.bf16.gmra.mrb[204].mxu0 %v15685_v8  ;;  %v15703_v8 = vld [vmem:[%s16808_s12 + $0x380] ss:$8 sps:$4 sm:$0xff]  }
 0x277   : > { %3562 = vmatprep.mubr.bf16.mxu0 %v15688_v12  ;;  %14581 = vmatpush3.bf16.msra.mxu1 %v15691_v4  ;;  %v15723_v4 = vld [vmem:[%s19967_s3 + $0x138] sm:$0xff]  }
 0x278   : > { %v4451_v16 = vpack.c.bf16 %v4220_v33, %v4219_v22  ;;  %14598 = vmatprep.subr.bf16.mxu1 %v15704_v15  ;;  %v15705_v12 = vld [vmem:[%s16808_s12 + $0x394] ss:$8 sps:$4 sm:$0xff]  }
 0x279   : > { %v3348_v18 = vpop.f32.mrb[100].mxu0 }
 0x27a   : > { %v3349_v19 = vadd.f32 %v17132_v5, %v3348_v18  ;;  %v3350_v20 = vpop.f32.mrb[101].mxu0  ;;  %14582 = vmatprep.mubr.bf16.mxu1 %v4451_v16 }
 0x27b   : > { %v3351_v11 = vpop.f32.mrb[102].mxu0 }
 0x27c   : > { %v3352_v24 = vadd.f32 %v17132_v5, %v3351_v11  ;;  %v3353_v25 = vpop.f32.mrb[103].mxu0  ;;  %v4221_v26 = vmax.f32 %v3349_v19, 0.0 }
 0x27e   : > { %v4222_v27 = vmax.f32 %v3352_v24, 0.0  ;;  %3563 = vmatmul.mubr.bf16.gmra.mrb[208].mxu0 %v15690_v21  ;;  %v15707_v21 = vld [vmem:[%s16808_s12 + $0x390] ss:$8 sps:$4 sm:$0xff]  }
 0x27f   : > { %3570 = vmatprep.mubr.bf16.mxu0 %v15692_v23  ;;  %v15710_v23 = vld [vmem:[%s16808_s12 + $0x3a4] ss:$8 sps:$4 sm:$0xff]  }
 0x280   : > { %v4452_v45 = vpack.c.bf16 %v4222_v27, %v4221_v26 }
 0x281   : > { %v3356_v30 = vpop.f32.mrb[104].mxu0 }
 0x282   : > { %v3357_v31 = vadd.f32 %v17132_v5, %v3356_v30  ;;  %v3358_v32 = vpop.f32.mrb[105].mxu0  ;;  %14583 = vmatmul.mubr.bf16.vlgmr.msra.gmra.mrb[0].mxu1 %v4452_v45 }
 0x283   : > { %v3359_v35 = vpop.f32.mrb[106].mxu0  ;;  %14599 = vmatpush3.bf16.msra.mxu1 %v15704_v15  ;;  %v17185_v15 = vld [vmem:[%s19967_s3 + $0x140] sm:$0xff]  }
 0x284   : > { %v3360_v37 = vadd.f32 %v17132_v5, %v3359_v35  ;;  %v3361_v38 = vpop.f32.mrb[107].mxu0  ;;  %14600 = vmatprep.subr.bf16.mxu1 %v15708_v28  ;;  %v4223_v41 = vmax.f32 %v3357_v31, 0.0  ;;  %v15712_v32 = vld [vmem:[%s16808_s12 + $0x3a0] ss:$8 sps:$4 sm:$0xff]   ;;  %v15715_v35 = vld [vmem:[%s16808_s12 + $0x3b4] ss:$8 sps:$4 sm:$0xff]  }
 0x286   : > { %v4224_v42 = vmax.f32 %v3360_v37, 0.0  ;;  %3571 = vmatmul.mubr.bf16.gmra.mrb[212].mxu0 %v15694_v34 }
 0x287   : > { %3578 = vmatprep.mubr.bf16.mxu0 %v15695_v36  ;;  %14601 = vmatpush3.bf16.msra.mxu1 %v15708_v28 }
 0x288   : > { %v4453_v43 = vpack.c.bf16 %v4224_v42, %v4223_v41  ;;  %14602 = vmatprep.subr.bf16.mxu1 %v15709_v40 }
 0x289   : > { %v3364_v46 = vpop.f32.mrb[108].mxu0 }
 0x28a   : > { %v3365_v29 = vadd.f32 %v17132_v5, %v3364_v46  ;;  %v3366_v47 = vpop.f32.mrb[109].mxu0  ;;  %14586 = vmatprep.mubr.bf16.mxu1 %v4453_v43  ;;  %v15717_v46 = vld [vmem:[%s16808_s12 + $0x3b0] ss:$8 sps:$4 sm:$0xff]  }
 0x28b   : > { %v3367_v49 = vpop.f32.mrb[110].mxu0  ;;  %14603 = vmatpush3.bf16.msra.mxu1 %v15709_v40  ;;  %v15720_v47 = vld [vmem:[%s16808_s12 + $0x3c4] ss:$8 sps:$4 sm:$0xff]  }
 0x28c   : > { %v3368_v52 = vadd.f32 %v17132_v5, %v3367_v49  ;;  %v3369_v53 = vpop.f32.mrb[111].mxu0  ;;  %14604 = vmatprep.subr.bf16.mxu1 %v15713_v44  ;;  %v4225_v39 = vmax.f32 %v3365_v29, 0.0 }
 0x28e   : > { %v4226_v51 = vmax.f32 %v3368_v52, 0.0  ;;  %3579 = vmatmul.mubr.bf16.gmra.mrb[216].mxu0 %v15697_v48 }
 0x28f   : > { %3586 = vmatprep.mubr.bf16.mxu0 %v15698_v50  ;;  %14605 = vmatpush3.bf16.msra.mxu1 %v15713_v44 }
 0x290   : > { %v4454_v55 = vpack.c.bf16 %v4226_v51, %v4225_v39  ;;  %14606 = vmatprep.subr.bf16.mxu1 %v15714_v54 }
 0x291   : > { %v3372_v57 = vpop.f32.mrb[112].mxu0 }
 0x292   : > { %v3373_v58 = vadd.f32 %v17132_v5, %v3372_v57  ;;  %v3374_v59 = vpop.f32.mrb[113].mxu0  ;;  %14587 = vmatmul.mubr.bf16.gmra.mrb[4].mxu1 %v4454_v55  ;;  %v15722_v55 = vld [vmem:[%s16808_s12 + $0x3c0] ss:$8 sps:$4 sm:$0xff]   ;;  %v15724_v57 = vld [vmem:[%s16808_s12 + $0x3d4] ss:$8 sps:$4 sm:$0xff]  }
 0x293   : > { %v3375_v61 = vpop.f32.mrb[114].mxu0  ;;  %14607 = vmatpush3.bf16.msra.mxu1 %v15714_v54 }
 0x294   : > { %v3376_v0 = vadd.f32 %v17132_v5, %v3375_v61  ;;  %v3377_v1 = vpop.f32.mrb[115].mxu0  ;;  %14608 = vmatprep.subr.bf16.mxu1 %v15718_v56  ;;  %v4227_v62 = vmax.f32 %v3373_v58, 0.0 }
 0x296   : > { %v4228_v9 = vmax.f32 %v3376_v0, 0.0  ;;  %3587 = vmatmul.mubr.bf16.gmra.mrb[220].mxu0 %v15700_v60  ;;  %v15740_v0 = vld [vmem:[%s19967_s3 + $0x148] sm:$0xff]  }
 0x297   : > { %3594 = vmatprep.mubr.bf16.mxu0 %v15701_v63  ;;  %14609 = vmatpush3.bf16.msra.mxu1 %v15718_v56 }
 0x298   : > { %v4455_v3 = vpack.c.bf16 %v4228_v9, %v4227_v62  ;;  %14610 = vmatprep.subr.bf16.mxu1 %v15719_v2  ;;  %v15726_v9 = vld [vmem:[%s16808_s12 + $0x3d0] ss:$8 sps:$4 sm:$0xff]  }
 0x299   : > { %v3380_v17 = vpop.f32.mrb[116].mxu0 }
 0x29a   : > { %v3381_v6 = vadd.f32 %v17132_v5, %v3380_v17  ;;  %v3382_v7 = vpop.f32.mrb[117].mxu0  ;;  %14590 = vmatprep.mubr.bf16.mxu1 %v4455_v3 }
 0x29b   : > { %v3383_v10 = vpop.f32.mrb[118].mxu0  ;;  %14611 = vmatpush3.bf16.msra.mxu1 %v15719_v2  ;;  %v15741_v7 = vld [vmem:[%s19967_s3 + $0x150] sm:$0xff]  }
 0x29c   : > { %v3384_v13 = vadd.f32 %v17132_v5, %v3383_v10  ;;  %v3385_v14 = vpop.f32.mrb[119].mxu0  ;;  %14612 = vmatprep.subr.bf16.mxu1 %v15723_v4  ;;  %v4229_v22 = vmax.f32 %v3381_v6, 0.0 }
 0x29e   : > { %v4230_v33 = vmax.f32 %v3384_v13, 0.0  ;;  %3595 = vmatmul.mubr.bf16.gmra.mrb[224].mxu0 %v15703_v8  ;;  %v15745_v13 = vld [vmem:[%s19967_s3 + $0x158] sm:$0xff]  }
 0x29f   : > { %3602 = vmatprep.mubr.bf16.mxu0 %v15705_v12  ;;  %14613 = vmatpush3.bf16.msra.mxu1 %v15723_v4  ;;  %v15727_v4 = vld [vmem:[%s16808_s12 + $0x3e4] ss:$8 sps:$4 sm:$0xff]  }
 0x2a0   : > { %v4456_v16 = vpack.c.bf16 %v4230_v33, %v4229_v22  ;;  %14630 = vmatprep.subr.bf16.mxu1 %v17185_v15  ;;  %v15729_v33 = vld [vmem:[%s16808_s12 + $0x3e0] ss:$8 sps:$4 sm:$0xff]  }
 0x2a1   : > { %v3388_v18 = vpop.f32.mrb[120].mxu0 }
 0x2a2   : > { %v3389_v19 = vadd.f32 %v17132_v5, %v3388_v18  ;;  %v3390_v20 = vpop.f32.mrb[121].mxu0  ;;  %14591 = vmatmul.mubr.bf16.gmra.mrb[8].mxu1 %v4456_v16  ;;  %v15730_v18 = vld [vmem:[%s16808_s12 + $0x3f4] ss:$8 sps:$4 sm:$0xff]  }
 0x2a3   : > { %v3391_v11 = vpop.f32.mrb[122].mxu0 }
 0x2a4   : > { %v3392_v24 = vadd.f32 %v17132_v5, %v3391_v11  ;;  %v3393_v25 = vpop.f32.mrb[123].mxu0  ;;  %v4231_v26 = vmax.f32 %v3389_v19, 0.0 }
 0x2a5   : > { %v15750_v25 = vld [vmem:[%s19967_s3 + $0x168] sm:$0xff]  }
 0x2a6   : > { %v4232_v27 = vmax.f32 %v3392_v24, 0.0  ;;  %3603 = vmatmul.mubr.bf16.gmra.mrb[228].mxu0 %v15707_v21  ;;  %v15746_v21 = vld [vmem:[%s19967_s3 + $0x160] sm:$0xff]  }
 0x2a7   : > { %3610 = vmatprep.mubr.bf16.mxu0 %v15710_v23 }
 0x2a8   : > { %v4457_v45 = vpack.c.bf16 %v4232_v27, %v4231_v26 }
 0x2a9   : > { %v3396_v28 = vpop.f32.mrb[124].mxu0 }
 0x2aa   : > { %v3397_v30 = vadd.f32 %v17132_v5, %v3396_v28  ;;  %v3398_v31 = vpop.f32.mrb[125].mxu0  ;;  %14594 = vmatprep.mubr.bf16.mxu1 %v4457_v45  ;;  %v15732_v28 = vld [vmem:[%s16808_s12 + $0x3f0] ss:$8 sps:$4 sm:$0xff]  }
 0x2ab   : > { %v3399_v34 = vpop.f32.mrb[126].mxu0  ;;  %v15735_v31 = vld [vmem:[%s16808_s12 + $0x404] ss:$8 sps:$4 sm:$0xff]  }
 0x2ac   : > { %v3400_v36 = vadd.f32 %v17132_v5, %v3399_v34  ;;  %v3401_v37 = vpop.f32.mrb[127].mxu0  ;;  %v4233_v38 = vmax.f32 %v3397_v30, 0.0 }
 0x2ae   : > { %v4234_v40 = vmax.f32 %v3400_v36, 0.0  ;;  %3611 = vmatmul.mubr.bf16.gmra.mrb[232].mxu0 %v15712_v32 }
 0x2af   : > { %3618 = vmatprep.mubr.bf16.mxu0 %v15715_v35  ;;  %v15751_v35 = vld [vmem:[%s19967_s3 + $0x170] sm:$0xff]  }
 0x2b0   : > { %v4458_v41 = vpack.c.bf16 %v4234_v40, %v4233_v38  ;;  %v15755_v40 = vld [vmem:[%s19967_s3 + $0x178] sm:$0xff]  }
 0x2b1   : > { %v3404_v42 = vpop.f32.mrb[128].mxu0 }
 0x2b2   : > { %v3405_v43 = vadd.f32 %v17132_v5, %v3404_v42  ;;  %v3406_v44 = vpop.f32.mrb[129].mxu0  ;;  %14595 = vmatmul.mubr.bf16.gmra.mrb[12].mxu1 %v4458_v41 }
 0x2b3   : > { %v3407_v29 = vpop.f32.mrb[130].mxu0  ;;  %v15733_v44 = vld [vmem:[%s16808_s12 + $0x400] ss:$8 sps:$4 sm:$0xff]  }
 0x2b4   : > { %v3408_v48 = vadd.f32 %v17132_v5, %v3407_v29  ;;  %v3409_v49 = vpop.f32.mrb[131].mxu0  ;;  %v4235_v50 = vmax.f32 %v3405_v43, 0.0  ;;  %v15739_v29 = vld [vmem:[%s16808_s12 + $0x414] ss:$8 sps:$4 sm:$0xff]  }
 0x2b5   : > { %v17245_v49 = vld [vmem:[%s19967_s3 + $0x180] sm:$0xff]  }
 0x2b6   : > { %v4236_v52 = vmax.f32 %v3408_v48, 0.0  ;;  %3619 = vmatmul.mubr.bf16.gmra.mrb[236].mxu0 %v15717_v46 }
 0x2b7   : > { %3626 = vmatprep.mubr.bf16.mxu0 %v15720_v47 }
 0x2b8   : > { %v4459_v53 = vpack.c.bf16 %v4236_v52, %v4235_v50 }
 0x2b9   : > { %v3412_v54 = vpop.f32.mrb[132].mxu0 }
 0x2ba   : > { %v3413_v39 = vadd.f32 %v17132_v5, %v3412_v54  ;;  %v3414_v51 = vpop.f32.mrb[133].mxu0  ;;  %14614 = vmatprep.mubr.bf16.mxu1 %v4459_v53 }
 0x2bb   : > { %v3415_v56 = vpop.f32.mrb[134].mxu0 }
 0x2bc   : > { %v3416_v58 = vadd.f32 %v17132_v5, %v3415_v56  ;;  %v3417_v59 = vpop.f32.mrb[135].mxu0  ;;  %v4237_v60 = vmax.f32 %v3413_v39, 0.0 }
 0x2be   : > { %v4238_v61 = vmax.f32 %v3416_v58, 0.0  ;;  %3627 = vmatmul.mubr.bf16.gmra.mrb[240].mxu0 %v15722_v55  ;;  %v15737_v55 = vld [vmem:[%s16808_s12 + $0x410] ss:$8 sps:$4 sm:$0xff]  }
 0x2bf   : > { %3634 = vmatprep.mubr.bf16.mxu0 %v15724_v57  ;;  %v15744_v57 = vld [vmem:[%s16808_s12 + $0x424] ss:$8 sps:$4 sm:$0xff]  }
 0x2c0   : > { %v4460_v63 = vpack.c.bf16 %v4238_v61, %v4237_v60 }
 0x2c1   : > { %v3420_v1 = vpop.f32.mrb[136].mxu0 }
 0x2c2   : > { %v3421_v2 = vadd.f32 %v17132_v5, %v3420_v1  ;;  %v3422_v62 = vpop.f32.mrb[137].mxu0  ;;  %14615 = vmatmul.mubr.bf16.vlgmr.msra.gmra.mrb[0].mxu1 %v4460_v63 }
 0x2c3   : > { %v3423_v3 = vpop.f32.mrb[138].mxu0  ;;  %14631 = vmatpush3.bf16.msra.mxu1 %v17185_v15  ;;  %v15742_v62 = vld [vmem:[%s16808_s12 + $0x420] ss:$8 sps:$4 sm:$0xff]  }
 0x2c4   : > { %v3424_v17 = vadd.f32 %v17132_v5, %v3423_v3  ;;  %v3425_v6 = vpop.f32.mrb[139].mxu0  ;;  %14632 = vmatprep.subr.bf16.mxu1 %v15740_v0  ;;  %v4239_v8 = vmax.f32 %v3421_v2, 0.0  ;;  %v15749_v3 = vld [vmem:[%s16808_s12 + $0x434] ss:$8 sps:$4 sm:$0xff]  }
 0x2c6   : > { %v4240_v10 = vmax.f32 %v3424_v17, 0.0  ;;  %3635 = vmatmul.mubr.bf16.gmra.mrb[244].mxu0 %v15726_v9 }
 0x2c7   : > { %3642 = vmatprep.mubr.bf16.mxu0 %v15727_v4  ;;  %14633 = vmatpush3.bf16.msra.mxu1 %v15740_v0 }
 0x2c8   : > { %v4461_v12 = vpack.c.bf16 %v4240_v10, %v4239_v8  ;;  %14634 = vmatprep.subr.bf16.mxu1 %v15741_v7 }
 0x2c9   : > { %v3428_v14 = vpop.f32.mrb[140].mxu0 }
 0x2ca   : > { %v3429_v15 = vadd.f32 %v17132_v5, %v3428_v14  ;;  %v3430_v22 = vpop.f32.mrb[141].mxu0  ;;  %14618 = vmatprep.mubr.bf16.mxu1 %v4461_v12  ;;  %v15747_v14 = vld [vmem:[%s16808_s12 + $0x430] ss:$8 sps:$4 sm:$0xff]  }
 0x2cb   : > { %v3431_v16 = vpop.f32.mrb[142].mxu0  ;;  %14635 = vmatpush3.bf16.msra.mxu1 %v15741_v7  ;;  %v15754_v22 = vld [vmem:[%s16808_s12 + $0x444] ss:$8 sps:$4 sm:$0xff]  }
 0x2cc   : > { %v3432_v19 = vadd.f32 %v17132_v5, %v3431_v16  ;;  %v3433_v20 = vpop.f32.mrb[143].mxu0  ;;  %14636 = vmatprep.subr.bf16.mxu1 %v15745_v13  ;;  %v4241_v11 = vmax.f32 %v3429_v15, 0.0 }
 0x2ce   : > { %v4242_v23 = vmax.f32 %v3432_v19, 0.0  ;;  %3643 = vmatmul.mubr.bf16.gmra.mrb[248].mxu0 %v15729_v33 }
 0x2cf   : > { %3650 = vmatprep.mubr.bf16.mxu0 %v15730_v18  ;;  %14637 = vmatpush3.bf16.msra.mxu1 %v15745_v13 }
 0x2d0   : > { %v4462_v24 = vpack.c.bf16 %v4242_v23, %v4241_v11  ;;  %14638 = vmatprep.subr.bf16.mxu1 %v15746_v21 }
 0x2d1   : > { %v3436_v26 = vpop.f32.mrb[144].mxu0 }
 0x2d2   : > { %v3437_v27 = vadd.f32 %v17132_v5, %v3436_v26  ;;  %v3438_v45 = vpop.f32.mrb[145].mxu0  ;;  %14619 = vmatmul.mubr.bf16.gmra.mrb[4].mxu1 %v4462_v24  ;;  %v15752_v24 = vld [vmem:[%s16808_s12 + $0x440] ss:$8 sps:$4 sm:$0xff]   ;;  %v15758_v26 = vld [vmem:[%s16808_s12 + $0x454] ss:$8 sps:$4 sm:$0xff]  }
 0x2d3   : > { %v3439_v30 = vpop.f32.mrb[146].mxu0  ;;  %14639 = vmatpush3.bf16.msra.mxu1 %v15746_v21 }
 0x2d4   : > { %v3440_v32 = vadd.f32 %v17132_v5, %v3439_v30  ;;  %v3441_v34 = vpop.f32.mrb[147].mxu0  ;;  %14640 = vmatprep.subr.bf16.mxu1 %v15750_v25  ;;  %v4243_v36 = vmax.f32 %v3437_v27, 0.0 }
 0x2d6   : > { %v4244_v37 = vmax.f32 %v3440_v32, 0.0  ;;  %3651 = vmatmul.mubr.bf16.gmra.mrb[252].mxu0 %v15732_v28  ;;  %v15772_v32 = vld [vmem:[%s19967_s3 + $0x188] sm:$0xff]  }
 0x2d7   : > { %3658 = vmatprep.mubr.bf16.mxu0 %v15735_v31  ;;  %14641 = vmatpush3.bf16.msra.mxu1 %v15750_v25 }
 0x2d8   : > { %v4463_v38 = vpack.c.bf16 %v4244_v37, %v4243_v36  ;;  %14642 = vmatprep.subr.bf16.mxu1 %v15751_v35  ;;  %v15756_v37 = vld [vmem:[%s16808_s12 + $0x450] ss:$8 sps:$4 sm:$0xff]  }
 0x2d9   : > { %v3444_v41 = vpop.f32.mrb[148].mxu0 }
 0x2da   : > { %v3445_v42 = vadd.f32 %v17132_v5, %v3444_v41  ;;  %v3446_v43 = vpop.f32.mrb[149].mxu0  ;;  %14622 = vmatprep.mubr.bf16.mxu1 %v4463_v38 }
 0x2db   : > { %v3447_v46 = vpop.f32.mrb[150].mxu0  ;;  %14643 = vmatpush3.bf16.msra.mxu1 %v15751_v35  ;;  %v15773_v43 = vld [vmem:[%s19967_s3 + $0x190] sm:$0xff]  }
 0x2dc   : > { %v3448_v47 = vadd.f32 %v17132_v5, %v3447_v46  ;;  %v3449_v48 = vpop.f32.mrb[151].mxu0  ;;  %14644 = vmatprep.subr.bf16.mxu1 %v15755_v40  ;;  %v4245_v50 = vmax.f32 %v3445_v42, 0.0 }
 0x2de   : > { %v4246_v52 = vmax.f32 %v3448_v47, 0.0  ;;  %3659 = vmatmul.mubr.bf16.gmra.mrb[0].mxu0 %v15733_v44  ;;  %v15777_v47 = vld [vmem:[%s19967_s3 + $0x198] sm:$0xff]  }
 0x2df   : > { %3666 = vmatprep.mubr.bf16.mxu0 %v15739_v29  ;;  %14645 = vmatpush3.bf16.msra.mxu1 %v15755_v40  ;;  %v15761_v40 = vld [vmem:[%s16808_s12 + $0x464] ss:$8 sps:$4 sm:$0xff]  }
 0x2e0   : > { %v4464_v53 = vpack.c.bf16 %v4246_v52, %v4245_v50  ;;  %14662 = vmatprep.subr.bf16.mxu1 %v17245_v49  ;;  %v15759_v52 = vld [vmem:[%s16808_s12 + $0x460] ss:$8 sps:$4 sm:$0xff]  }
 0x2e1   : > { %v3452_v54 = vpop.f32.mrb[152].mxu0 }
 0x2e2   : > { %v3453_v39 = vadd.f32 %v17132_v5, %v3452_v54  ;;  %v3454_v51 = vpop.f32.mrb[153].mxu0  ;;  %14623 = vmatmul.mubr.bf16.gmra.mrb[8].mxu1 %v4464_v53  ;;  %v15764_v54 = vld [vmem:[%s16808_s12 + $0x474] ss:$8 sps:$4 sm:$0xff]  }
 0x2e3   : > { %v3455_v56 = vpop.f32.mrb[154].mxu0 }
 0x2e4   : > { %v3456_v58 = vadd.f32 %v17132_v5, %v3455_v56  ;;  %v3457_v59 = vpop.f32.mrb[155].mxu0  ;;  %v4247_v60 = vmax.f32 %v3453_v39, 0.0 }
 0x2e5   : > { %v15782_v59 = vld [vmem:[%s19967_s3 + $0x1a8] sm:$0xff]  }
 0x2e6   : > { %v4248_v61 = vmax.f32 %v3456_v58, 0.0  ;;  %3667 = vmatmul.mubr.bf16.gmra.mrb[4].mxu0 %v15737_v55  ;;  %v15778_v55 = vld [vmem:[%s19967_s3 + $0x1a0] sm:$0xff]  }
 0x2e7   : > { %3674 = vmatprep.mubr.bf16.mxu0 %v15744_v57 }
 0x2e8   : > { %v4465_v63 = vpack.c.bf16 %v4248_v61, %v4247_v60 }
 0x2e9   : > { %v3460_v0 = vpop.f32.mrb[156].mxu0 }
 0x2ea   : > { %v3461_v1 = vadd.f32 %v17132_v5, %v3460_v0  ;;  %v3462_v2 = vpop.f32.mrb[157].mxu0  ;;  %14626 = vmatprep.mubr.bf16.mxu1 %v4465_v63  ;;  %v15762_v0 = vld [vmem:[%s16808_s12 + $0x470] ss:$8 sps:$4 sm:$0xff]  }
 0x2eb   : > { %v3463_v9 = vpop.f32.mrb[158].mxu0  ;;  %v15767_v2 = vld [vmem:[%s16808_s12 + $0x484] ss:$8 sps:$4 sm:$0xff]  }
 0x2ec   : > { %v3464_v4 = vadd.f32 %v17132_v5, %v3463_v9  ;;  %v3465_v17 = vpop.f32.mrb[159].mxu0  ;;  %v4249_v6 = vmax.f32 %v3461_v1, 0.0 }
 0x2ee   : > { %v4250_v7 = vmax.f32 %v3464_v4, 0.0  ;;  %3675 = vmatmul.mubr.bf16.gmra.mrb[8].mxu0 %v15742_v62 }
 0x2ef   : > { %3682 = vmatprep.mubr.bf16.mxu0 %v15749_v3  ;;  %v15783_v3 = vld [vmem:[%s19967_s3 + $0x1b0] sm:$0xff]  }
 0x2f0   : > { %v4466_v8 = vpack.c.bf16 %v4250_v7, %v4249_v6  ;;  %v15787_v7 = vld [vmem:[%s19967_s3 + $0x1b8] sm:$0xff]  }
 0x2f1   : > { %v3468_v10 = vpop.f32.mrb[160].mxu0 }
 0x2f2   : > { %v3469_v12 = vadd.f32 %v17132_v5, %v3468_v10  ;;  %v3470_v13 = vpop.f32.mrb[161].mxu0  ;;  %14627 = vmatmul.mubr.bf16.gmra.mrb[12].mxu1 %v4466_v8 }
 0x2f3   : > { %v3471_v15 = vpop.f32.mrb[162].mxu0  ;;  %v15765_v13 = vld [vmem:[%s16808_s12 + $0x480] ss:$8 sps:$4 sm:$0xff]  }
 0x2f4   : > { %v3472_v33 = vadd.f32 %v17132_v5, %v3471_v15  ;;  %v3473_v16 = vpop.f32.mrb[163].mxu0  ;;  %v4251_v18 = vmax.f32 %v3469_v12, 0.0  ;;  %v15771_v15 = vld [vmem:[%s16808_s12 + $0x494] ss:$8 sps:$4 sm:$0xff]  }
 0x2f5   : > { %v17305_v16 = vld [vmem:[%s19967_s3 + $0x1c0] sm:$0xff]  }
 0x2f6   : > { %v4252_v19 = vmax.f32 %v3472_v33, 0.0  ;;  %3683 = vmatmul.mubr.bf16.gmra.mrb[12].mxu0 %v15747_v14 }
 0x2f7   : > { %3690 = vmatprep.mubr.bf16.mxu0 %v15754_v22 }
 0x2f8   : > { %v4467_v20 = vpack.c.bf16 %v4252_v19, %v4251_v18 }
 0x2f9   : > { %v3476_v21 = vpop.f32.mrb[164].mxu0 }
 0x2fa   : > { %v3477_v11 = vadd.f32 %v17132_v5, %v3476_v21  ;;  %v3478_v23 = vpop.f32.mrb[165].mxu0  ;;  %14646 = vmatprep.mubr.bf16.mxu1 %v4467_v20 }
 0x2fb   : > { %v3479_v25 = vpop.f32.mrb[166].mxu0 }
 0x2fc   : > { %v3480_v27 = vadd.f32 %v17132_v5, %v3479_v25  ;;  %v3481_v45 = vpop.f32.mrb[167].mxu0  ;;  %v4253_v28 = vmax.f32 %v3477_v11, 0.0 }
 0x2fe   : > { %v4254_v30 = vmax.f32 %v3480_v27, 0.0  ;;  %3691 = vmatmul.mubr.bf16.gmra.mrb[16].mxu0 %v15752_v24  ;;  %v15769_v24 = vld [vmem:[%s16808_s12 + $0x490] ss:$8 sps:$4 sm:$0xff]  }
 0x2ff   : > { %3698 = vmatprep.mubr.bf16.mxu0 %v15758_v26  ;;  %v15776_v26 = vld [vmem:[%s16808_s12 + $0x4a4] ss:$8 sps:$4 sm:$0xff]  }
 0x300   : > { %v4468_v31 = vpack.c.bf16 %v4254_v30, %v4253_v28 }
 0x301   : > { %v3484_v34 = vpop.f32.mrb[168].mxu0 }
 0x302   : > { %v3485_v35 = vadd.f32 %v17132_v5, %v3484_v34  ;;  %v3486_v36 = vpop.f32.mrb[169].mxu0  ;;  %14647 = vmatmul.mubr.bf16.vlgmr.msra.gmra.mrb[0].mxu1 %v4468_v31 }
 0x303   : > { %v3487_v38 = vpop.f32.mrb[170].mxu0  ;;  %14663 = vmatpush3.bf16.msra.mxu1 %v17245_v49  ;;  %v15774_v36 = vld [vmem:[%s16808_s12 + $0x4a0] ss:$8 sps:$4 sm:$0xff]  }
 0x304   : > { %v3488_v41 = vadd.f32 %v17132_v5, %v3487_v38  ;;  %v3489_v42 = vpop.f32.mrb[171].mxu0  ;;  %14664 = vmatprep.subr.bf16.mxu1 %v15772_v32  ;;  %v4255_v44 = vmax.f32 %v3485_v35, 0.0  ;;  %v15781_v38 = vld [vmem:[%s16808_s12 + $0x4b4] ss:$8 sps:$4 sm:$0xff]  }
 0x306   : > { %v4256_v46 = vmax.f32 %v3488_v41, 0.0  ;;  %3699 = vmatmul.mubr.bf16.gmra.mrb[20].mxu0 %v15756_v37 }
 0x307   : > { %3706 = vmatprep.mubr.bf16.mxu0 %v15761_v40  ;;  %14665 = vmatpush3.bf16.msra.mxu1 %v15772_v32 }
 0x308   : > { %v4469_v29 = vpack.c.bf16 %v4256_v46, %v4255_v44  ;;  %14666 = vmatprep.subr.bf16.mxu1 %v15773_v43 }
 0x309   : > { %v3492_v48 = vpop.f32.mrb[172].mxu0 }
 0x30a   : > { %v3493_v49 = vadd.f32 %v17132_v5, %v3492_v48  ;;  %v3494_v50 = vpop.f32.mrb[173].mxu0  ;;  %14650 = vmatprep.mubr.bf16.mxu1 %v4469_v29  ;;  %v15779_v48 = vld [vmem:[%s16808_s12 + $0x4b0] ss:$8 sps:$4 sm:$0xff]  }
 0x30b   : > { %v3495_v53 = vpop.f32.mrb[174].mxu0  ;;  %14667 = vmatpush3.bf16.msra.mxu1 %v15773_v43  ;;  %v15786_v50 = vld [vmem:[%s16808_s12 + $0x4c4] ss:$8 sps:$4 sm:$0xff]  }
 0x30c   : > { %v3496_v39 = vadd.f32 %v17132_v5, %v3495_v53  ;;  %v3497_v51 = vpop.f32.mrb[175].mxu0  ;;  %14668 = vmatprep.subr.bf16.mxu1 %v15777_v47  ;;  %v4257_v56 = vmax.f32 %v3493_v49, 0.0 }
 0x30e   : > { %v4258_v57 = vmax.f32 %v3496_v39, 0.0  ;;  %3707 = vmatmul.mubr.bf16.gmra.mrb[24].mxu0 %v15759_v52 }
 0x30f   : > { %3714 = vmatprep.mubr.bf16.mxu0 %v15764_v54  ;;  %14669 = vmatpush3.bf16.msra.mxu1 %v15777_v47 }
 0x310   : > { %v4470_v58 = vpack.c.bf16 %v4258_v57, %v4257_v56  ;;  %14670 = vmatprep.subr.bf16.mxu1 %v15778_v55 }
 0x311   : > { %v3500_v60 = vpop.f32.mrb[176].mxu0 }
 0x312   : > { %v3501_v61 = vadd.f32 %v17132_v5, %v3500_v60  ;;  %v3502_v63 = vpop.f32.mrb[177].mxu0  ;;  %14651 = vmatmul.mubr.bf16.gmra.mrb[4].mxu1 %v4470_v58  ;;  %v15784_v58 = vld [vmem:[%s16808_s12 + $0x4c0] ss:$8 sps:$4 sm:$0xff]   ;;  %v15790_v60 = vld [vmem:[%s16808_s12 + $0x4d4] ss:$8 sps:$4 sm:$0xff]  }
 0x313   : > { %v3503_v1 = vpop.f32.mrb[178].mxu0  ;;  %14671 = vmatpush3.bf16.msra.mxu1 %v15778_v55 }
 0x314   : > { %v3504_v62 = vadd.f32 %v17132_v5, %v3503_v1  ;;  %v3505_v9 = vpop.f32.mrb[179].mxu0  ;;  %14672 = vmatprep.subr.bf16.mxu1 %v15782_v59  ;;  %v4259_v4 = vmax.f32 %v3501_v61, 0.0 }
 0x316   : > { %v4260_v17 = vmax.f32 %v3504_v62, 0.0  ;;  %3715 = vmatmul.mubr.bf16.gmra.mrb[28].mxu0 %v15762_v0  ;;  %v15804_v62 = vld [vmem:[%s19967_s3 + $0x1c8] sm:$0xff]  }
 0x317   : > { %3722 = vmatprep.mubr.bf16.mxu0 %v15767_v2  ;;  %14673 = vmatpush3.bf16.msra.mxu1 %v15782_v59 }
 0x318   : > { %v4471_v6 = vpack.c.bf16 %v4260_v17, %v4259_v4  ;;  %14674 = vmatprep.subr.bf16.mxu1 %v15783_v3  ;;  %v15788_v17 = vld [vmem:[%s16808_s12 + $0x4d0] ss:$8 sps:$4 sm:$0xff]  }
 0x319   : > { %v3508_v8 = vpop.f32.mrb[180].mxu0 }
 0x31a   : > { %v3509_v10 = vadd.f32 %v17132_v5, %v3508_v8  ;;  %v3510_v12 = vpop.f32.mrb[181].mxu0  ;;  %14654 = vmatprep.mubr.bf16.mxu1 %v4471_v6 }
 0x31b   : > { %v3511_v14 = vpop.f32.mrb[182].mxu0  ;;  %14675 = vmatpush3.bf16.msra.mxu1 %v15783_v3  ;;  %v15805_v12 = vld [vmem:[%s19967_s3 + $0x1d0] sm:$0xff]  }
 0x31c   : > { %v3512_v22 = vadd.f32 %v17132_v5, %v3511_v14  ;;  %v3513_v33 = vpop.f32.mrb[183].mxu0  ;;  %14676 = vmatprep.subr.bf16.mxu1 %v15787_v7  ;;  %v4261_v18 = vmax.f32 %v3509_v10, 0.0 }
 0x31e   : > { %v4262_v19 = vmax.f32 %v3512_v22, 0.0  ;;  %3723 = vmatmul.mubr.bf16.gmra.mrb[32].mxu0 %v15765_v13  ;;  %v15809_v22 = vld [vmem:[%s19967_s3 + $0x1d8] sm:$0xff]  }
 0x31f   : > { %3730 = vmatprep.mubr.bf16.mxu0 %v15771_v15  ;;  %14677 = vmatpush3.bf16.msra.mxu1 %v15787_v7  ;;  %v15793_v7 = vld [vmem:[%s16808_s12 + $0x4e4] ss:$8 sps:$4 sm:$0xff]  }
 0x320   : > { %v4472_v20 = vpack.c.bf16 %v4262_v19, %v4261_v18  ;;  %14694 = vmatprep.subr.bf16.mxu1 %v17305_v16  ;;  %v15791_v19 = vld [vmem:[%s16808_s12 + $0x4e0] ss:$8 sps:$4 sm:$0xff]  }
 0x321   : > { %v3516_v21 = vpop.f32.mrb[184].mxu0 }
 0x322   : > { %v3517_v11 = vadd.f32 %v17132_v5, %v3516_v21  ;;  %v3518_v23 = vpop.f32.mrb[185].mxu0  ;;  %14655 = vmatmul.mubr.bf16.gmra.mrb[8].mxu1 %v4472_v20  ;;  %v15796_v21 = vld [vmem:[%s16808_s12 + $0x4f4] ss:$8 sps:$4 sm:$0xff]  }
 0x323   : > { %v3519_v25 = vpop.f32.mrb[186].mxu0 }
 0x324   : > { %v3520_v27 = vadd.f32 %v17132_v5, %v3519_v25  ;;  %v3521_v45 = vpop.f32.mrb[187].mxu0  ;;  %v4263_v28 = vmax.f32 %v3517_v11, 0.0 }
 0x325   : > { %v15814_v45 = vld [vmem:[%s19967_s3 + $0x1e8] sm:$0xff]  }
 0x326   : > { %v4264_v30 = vmax.f32 %v3520_v27, 0.0  ;;  %3731 = vmatmul.mubr.bf16.gmra.mrb[36].mxu0 %v15769_v24  ;;  %v15810_v24 = vld [vmem:[%s19967_s3 + $0x1e0] sm:$0xff]  }
 0x327   : > { %3738 = vmatprep.mubr.bf16.mxu0 %v15776_v26 }
 0x328   : > { %v4473_v31 = vpack.c.bf16 %v4264_v30, %v4263_v28 }
 0x329   : > { %v3524_v32 = vpop.f32.mrb[188].mxu0 }
 0x32a   : > { %v3525_v34 = vadd.f32 %v17132_v5, %v3524_v32  ;;  %v3526_v35 = vpop.f32.mrb[189].mxu0  ;;  %14658 = vmatprep.mubr.bf16.mxu1 %v4473_v31  ;;  %v15794_v32 = vld [vmem:[%s16808_s12 + $0x4f0] ss:$8 sps:$4 sm:$0xff]  }
 0x32b   : > { %v3527_v37 = vpop.f32.mrb[190].mxu0  ;;  %v15799_v35 = vld [vmem:[%s16808_s12 + $0x504] ss:$8 sps:$4 sm:$0xff]  }
 0x32c   : > { %v3528_v40 = vadd.f32 %v17132_v5, %v3527_v37  ;;  %v3529_v41 = vpop.f32.mrb[191].mxu0  ;;  %v4265_v42 = vmax.f32 %v3525_v34, 0.0 }
 0x32e   : > { %v4266_v43 = vmax.f32 %v3528_v40, 0.0  ;;  %3739 = vmatmul.mubr.bf16.gmra.mrb[40].mxu0 %v15774_v36 }
 0x32f   : > { %3746 = vmatprep.mubr.bf16.mxu0 %v15781_v38  ;;  %v15815_v38 = vld [vmem:[%s19967_s3 + $0x1f0] sm:$0xff]  }
 0x330   : > { %v4474_v44 = vpack.c.bf16 %v4266_v43, %v4265_v42  ;;  %v15819_v43 = vld [vmem:[%s19967_s3 + $0x1f8] sm:$0xff]  }
 0x331   : > { %v3532_v46 = vpop.f32.mrb[192].mxu0 }
 0x332   : > { %v3533_v29 = vadd.f32 %v17132_v5, %v3532_v46  ;;  %v3534_v47 = vpop.f32.mrb[193].mxu0  ;;  %14659 = vmatmul.mubr.bf16.gmra.mrb[12].mxu1 %v4474_v44 }
 0x333   : > { %v3535_v49 = vpop.f32.mrb[194].mxu0  ;;  %v15797_v47 = vld [vmem:[%s16808_s12 + $0x500] ss:$8 sps:$4 sm:$0xff]  }
 0x334   : > { %v3536_v52 = vadd.f32 %v17132_v5, %v3535_v49  ;;  %v3537_v53 = vpop.f32.mrb[195].mxu0  ;;  %v4267_v54 = vmax.f32 %v3533_v29, 0.0  ;;  %v15803_v49 = vld [vmem:[%s16808_s12 + $0x514] ss:$8 sps:$4 sm:$0xff]  }
 0x335   : > { %v17365_v53 = vld [vmem:[%s19967_s3 + $0x200] sm:$0xff]  }
 0x336   : > { %v4268_v39 = vmax.f32 %v3536_v52, 0.0  ;;  %3747 = vmatmul.mubr.bf16.gmra.mrb[44].mxu0 %v15779_v48 }
 0x337   : > { %3754 = vmatprep.mubr.bf16.mxu0 %v15786_v50 }
 0x338   : > { %v4475_v51 = vpack.c.bf16 %v4268_v39, %v4267_v54 }
 0x339   : > { %v3540_v55 = vpop.f32.mrb[196].mxu0 }
 0x33a   : > { %v3541_v56 = vadd.f32 %v17132_v5, %v3540_v55  ;;  %v3542_v57 = vpop.f32.mrb[197].mxu0  ;;  %14678 = vmatprep.mubr.bf16.mxu1 %v4475_v51 }
 0x33b   : > { %v3543_v59 = vpop.f32.mrb[198].mxu0 }
 0x33c   : > { %v3544_v61 = vadd.f32 %v17132_v5, %v3543_v59  ;;  %v3545_v63 = vpop.f32.mrb[199].mxu0  ;;  %v4269_v0 = vmax.f32 %v3541_v56, 0.0 }
 0x33e   : > { %v4270_v1 = vmax.f32 %v3544_v61, 0.0  ;;  %3755 = vmatmul.mubr.bf16.gmra.mrb[48].mxu0 %v15784_v58  ;;  %v15801_v58 = vld [vmem:[%s16808_s12 + $0x510] ss:$8 sps:$4 sm:$0xff]  }
 0x33f   : > { %3762 = vmatprep.mubr.bf16.mxu0 %v15790_v60  ;;  %v15808_v60 = vld [vmem:[%s16808_s12 + $0x524] ss:$8 sps:$4 sm:$0xff]  }
 0x340   : > { %v4476_v2 = vpack.c.bf16 %v4270_v1, %v4269_v0 }
 0x341   : > { %v3548_v9 = vpop.f32.mrb[200].mxu0 }
 0x342   : > { %v3549_v3 = vadd.f32 %v17132_v5, %v3548_v9  ;;  %v3550_v4 = vpop.f32.mrb[201].mxu0  ;;  %14679 = vmatmul.mubr.bf16.vlgmr.msra.gmra.mrb[0].mxu1 %v4476_v2 }
 0x343   : > { %v3551_v6 = vpop.f32.mrb[202].mxu0  ;;  %14695 = vmatpush3.bf16.msra.mxu1 %v17305_v16  ;;  %v15806_v4 = vld [vmem:[%s16808_s12 + $0x520] ss:$8 sps:$4 sm:$0xff]  }
 0x344   : > { %v3552_v8 = vadd.f32 %v17132_v5, %v3551_v6  ;;  %v3553_v10 = vpop.f32.mrb[203].mxu0  ;;  %14696 = vmatprep.subr.bf16.mxu1 %v15804_v62  ;;  %v4271_v13 = vmax.f32 %v3549_v3, 0.0  ;;  %v15813_v6 = vld [vmem:[%s16808_s12 + $0x534] ss:$8 sps:$4 sm:$0xff]  }
 0x346   : > { %v4272_v14 = vmax.f32 %v3552_v8, 0.0  ;;  %3763 = vmatmul.mubr.bf16.gmra.mrb[52].mxu0 %v15788_v17 }
 0x347   : > { %3770 = vmatprep.mubr.bf16.mxu0 %v15793_v7  ;;  %14697 = vmatpush3.bf16.msra.mxu1 %v15804_v62 }
 0x348   : > { %v4477_v15 = vpack.c.bf16 %v4272_v14, %v4271_v13  ;;  %14698 = vmatprep.subr.bf16.mxu1 %v15805_v12 }
 0x349   : > { %v3556_v33 = vpop.f32.mrb[204].mxu0 }
 0x34a   : > { %v3557_v16 = vadd.f32 %v17132_v5, %v3556_v33  ;;  %v3558_v18 = vpop.f32.mrb[205].mxu0  ;;  %14682 = vmatprep.mubr.bf16.mxu1 %v4477_v15  ;;  %v15811_v33 = vld [vmem:[%s16808_s12 + $0x530] ss:$8 sps:$4 sm:$0xff]  }
 0x34b   : > { %v3559_v20 = vpop.f32.mrb[206].mxu0  ;;  %14699 = vmatpush3.bf16.msra.mxu1 %v15805_v12  ;;  %v15818_v18 = vld [vmem:[%s16808_s12 + $0x544] ss:$8 sps:$4 sm:$0xff]  }
 0x34c   : > { %v3560_v11 = vadd.f32 %v17132_v5, %v3559_v20  ;;  %v3561_v23 = vpop.f32.mrb[207].mxu0  ;;  %14700 = vmatprep.subr.bf16.mxu1 %v15809_v22  ;;  %v4273_v25 = vmax.f32 %v3557_v16, 0.0 }
 0x34e   : > { %v4274_v26 = vmax.f32 %v3560_v11, 0.0  ;;  %3771 = vmatmul.mubr.bf16.gmra.mrb[56].mxu0 %v15791_v19 }
 0x34f   : > { %3778 = vmatprep.mubr.bf16.mxu0 %v15796_v21  ;;  %14701 = vmatpush3.bf16.msra.mxu1 %v15809_v22 }
 0x350   : > { %v4478_v27 = vpack.c.bf16 %v4274_v26, %v4273_v25  ;;  %14702 = vmatprep.subr.bf16.mxu1 %v15810_v24 }
 0x351   : > { %v3564_v28 = vpop.f32.mrb[208].mxu0 }
 0x352   : > { %v3565_v30 = vadd.f32 %v17132_v5, %v3564_v28  ;;  %v3566_v31 = vpop.f32.mrb[209].mxu0  ;;  %14683 = vmatmul.mubr.bf16.gmra.mrb[4].mxu1 %v4478_v27  ;;  %v15816_v27 = vld [vmem:[%s16808_s12 + $0x540] ss:$8 sps:$4 sm:$0xff]   ;;  %v15822_v28 = vld [vmem:[%s16808_s12 + $0x554] ss:$8 sps:$4 sm:$0xff]  }
 0x353   : > { %v3567_v34 = vpop.f32.mrb[210].mxu0  ;;  %14703 = vmatpush3.bf16.msra.mxu1 %v15810_v24 }
 0x354   : > { %v3568_v36 = vadd.f32 %v17132_v5, %v3567_v34  ;;  %v3569_v37 = vpop.f32.mrb[211].mxu0  ;;  %14704 = vmatprep.subr.bf16.mxu1 %v15814_v45  ;;  %v4275_v40 = vmax.f32 %v3565_v30, 0.0 }
 0x356   : > { %v4276_v41 = vmax.f32 %v3568_v36, 0.0  ;;  %3779 = vmatmul.mubr.bf16.gmra.mrb[60].mxu0 %v15794_v32  ;;  %v15836_v36 = vld [vmem:[%s19967_s3 + $0x208] sm:$0xff]  }
 0x357   : > { %3786 = vmatprep.mubr.bf16.mxu0 %v15799_v35  ;;  %14705 = vmatpush3.bf16.msra.mxu1 %v15814_v45 }
 0x358   : > { %v4479_v42 = vpack.c.bf16 %v4276_v41, %v4275_v40  ;;  %14706 = vmatprep.subr.bf16.mxu1 %v15815_v38  ;;  %v15820_v41 = vld [vmem:[%s16808_s12 + $0x550] ss:$8 sps:$4 sm:$0xff]  }
 0x359   : > { %v3572_v44 = vpop.f32.mrb[212].mxu0 }
 0x35a   : > { %v3573_v46 = vadd.f32 %v17132_v5, %v3572_v44  ;;  %v3574_v29 = vpop.f32.mrb[213].mxu0  ;;  %14686 = vmatprep.mubr.bf16.mxu1 %v4479_v42 }
 0x35b   : > { %v3575_v48 = vpop.f32.mrb[214].mxu0  ;;  %14707 = vmatpush3.bf16.msra.mxu1 %v15815_v38  ;;  %v15837_v29 = vld [vmem:[%s19967_s3 + $0x210] sm:$0xff]  }
 0x35c   : > { %v3576_v50 = vadd.f32 %v17132_v5, %v3575_v48  ;;  %v3577_v52 = vpop.f32.mrb[215].mxu0  ;;  %14708 = vmatprep.subr.bf16.mxu1 %v15819_v43  ;;  %v4277_v54 = vmax.f32 %v3573_v46, 0.0  ;;  %v17371_v5 = vld [vmem:[%s19966_s2] ss:$0 sm:$0xff] }
 0x35e   : > { %v4278_v39 = vmax.f32 %v3576_v50, 0.0  ;;  %3787 = vmatmul.mubr.bf16.gmra.mrb[64].mxu0 %v15797_v47  ;;  %v15841_v50 = vld [vmem:[%s19967_s3 + $0x218] sm:$0xff]  }
 0x35f   : > { %3794 = vmatprep.mubr.bf16.mxu0 %v15803_v49  ;;  %14709 = vmatpush3.bf16.msra.mxu1 %v15819_v43  ;;  %v15825_v43 = vld [vmem:[%s16808_s12 + $0x564] ss:$8 sps:$4 sm:$0xff]  }
 0x360   : > { %v4480_v51 = vpack.c.bf16 %v4278_v39, %v4277_v54  ;;  %14726 = vmatprep.subr.bf16.mxu1 %v17365_v53  ;;  %v15823_v39 = vld [vmem:[%s16808_s12 + $0x560] ss:$8 sps:$4 sm:$0xff]  }
 0x361   : > { %v3580_v55 = vpop.f32.mrb[216].mxu0 }
 0x362   : > { %v3581_v56 = vadd.f32 %v17371_v5, %v3580_v55  ;;  %v3582_v57 = vpop.f32.mrb[217].mxu0  ;;  %14687 = vmatmul.mubr.bf16.gmra.mrb[8].mxu1 %v4480_v51  ;;  %v15828_v55 = vld [vmem:[%s16808_s12 + $0x574] ss:$8 sps:$4 sm:$0xff]  }
 0x363   : > { %v3583_v59 = vpop.f32.mrb[218].mxu0 }
 0x364   : > { %v3584_v61 = vadd.f32 %v17371_v5, %v3583_v59  ;;  %v3585_v63 = vpop.f32.mrb[219].mxu0  ;;  %v4279_v0 = vmax.f32 %v3581_v56, 0.0 }
 0x365   : > { %v15846_v63 = vld [vmem:[%s19967_s3 + $0x228] sm:$0xff]  }
 0x366   : > { %v4280_v1 = vmax.f32 %v3584_v61, 0.0  ;;  %3795 = vmatmul.mubr.bf16.gmra.mrb[68].mxu0 %v15801_v58  ;;  %v15842_v58 = vld [vmem:[%s19967_s3 + $0x220] sm:$0xff]  }
 0x367   : > { %3802 = vmatprep.mubr.bf16.mxu0 %v15808_v60 }
 0x368   : > { %v4481_v2 = vpack.c.bf16 %v4280_v1, %v4279_v0 }
 0x369   : > { %v3588_v62 = vpop.f32.mrb[220].mxu0 }
 0x36a   : > { %v3589_v9 = vadd.f32 %v17371_v5, %v3588_v62  ;;  %v3590_v3 = vpop.f32.mrb[221].mxu0  ;;  %14690 = vmatprep.mubr.bf16.mxu1 %v4481_v2  ;;  %v15826_v62 = vld [vmem:[%s16808_s12 + $0x570] ss:$8 sps:$4 sm:$0xff]  }
 0x36b   : > { %v3591_v17 = vpop.f32.mrb[222].mxu0  ;;  %v15831_v3 = vld [vmem:[%s16808_s12 + $0x584] ss:$8 sps:$4 sm:$0xff]  }
 0x36c   : > { %v3592_v7 = vadd.f32 %v17371_v5, %v3591_v17  ;;  %v3593_v8 = vpop.f32.mrb[223].mxu0  ;;  %v4281_v10 = vmax.f32 %v3589_v9, 0.0 }
 0x36e   : > { %v4282_v12 = vmax.f32 %v3592_v7, 0.0  ;;  %3803 = vmatmul.mubr.bf16.gmra.mrb[72].mxu0 %v15806_v4 }
 0x36f   : > { %3810 = vmatprep.mubr.bf16.mxu0 %v15813_v6  ;;  %v15847_v6 = vld [vmem:[%s19967_s3 + $0x230] sm:$0xff]  }
 0x370   : > { %v4482_v13 = vpack.c.bf16 %v4282_v12, %v4281_v10  ;;  %v15851_v12 = vld [vmem:[%s19967_s3 + $0x238] sm:$0xff]  }
 0x371   : > { %v3596_v14 = vpop.f32.mrb[224].mxu0 }
 0x372   : > { %v3597_v15 = vadd.f32 %v17371_v5, %v3596_v14  ;;  %v3598_v22 = vpop.f32.mrb[225].mxu0  ;;  %14691 = vmatmul.mubr.bf16.gmra.mrb[12].mxu1 %v4482_v13 }
 0x373   : > { %v3599_v16 = vpop.f32.mrb[226].mxu0  ;;  %v15829_v22 = vld [vmem:[%s16808_s12 + $0x580] ss:$8 sps:$4 sm:$0xff]  }
 0x374   : > { %v3600_v19 = vadd.f32 %v17371_v5, %v3599_v16  ;;  %v3601_v20 = vpop.f32.mrb[227].mxu0  ;;  %v4283_v21 = vmax.f32 %v3597_v15, 0.0  ;;  %v15835_v16 = vld [vmem:[%s16808_s12 + $0x594] ss:$8 sps:$4 sm:$0xff]  }
 0x375   : > { %v17430_v20 = vld [vmem:[%s19967_s3 + $0x240] sm:$0xff]  }
 0x376   : > { %v4284_v11 = vmax.f32 %v3600_v19, 0.0  ;;  %3811 = vmatmul.mubr.bf16.gmra.mrb[76].mxu0 %v15811_v33 }
 0x377   : > { %3818 = vmatprep.mubr.bf16.mxu0 %v15818_v18 }
 0x378   : > { %v4483_v23 = vpack.c.bf16 %v4284_v11, %v4283_v21 }
 0x379   : > { %v3604_v24 = vpop.f32.mrb[228].mxu0 }
 0x37a   : > { %v3605_v25 = vadd.f32 %v17371_v5, %v3604_v24  ;;  %v3606_v26 = vpop.f32.mrb[229].mxu0  ;;  %14710 = vmatprep.mubr.bf16.mxu1 %v4483_v23 }
 0x37b   : > { %v3607_v45 = vpop.f32.mrb[230].mxu0 }
 0x37c   : > { %v3608_v30 = vadd.f32 %v17371_v5, %v3607_v45  ;;  %v3609_v31 = vpop.f32.mrb[231].mxu0  ;;  %v4285_v32 = vmax.f32 %v3605_v25, 0.0 }
 0x37e   : > { %v4286_v34 = vmax.f32 %v3608_v30, 0.0  ;;  %3819 = vmatmul.mubr.bf16.gmra.mrb[80].mxu0 %v15816_v27  ;;  %v15833_v27 = vld [vmem:[%s16808_s12 + $0x590] ss:$8 sps:$4 sm:$0xff]  }
 0x37f   : > { %3826 = vmatprep.mubr.bf16.mxu0 %v15822_v28  ;;  %v15840_v28 = vld [vmem:[%s16808_s12 + $0x5a4] ss:$8 sps:$4 sm:$0xff]  }
 0x380   : > { %v4484_v35 = vpack.c.bf16 %v4286_v34, %v4285_v32 }
 0x381   : > { %v3612_v37 = vpop.f32.mrb[232].mxu0 }
 0x382   : > { %v3613_v38 = vadd.f32 %v17371_v5, %v3612_v37  ;;  %v3614_v40 = vpop.f32.mrb[233].mxu0  ;;  %14711 = vmatmul.mubr.bf16.vlgmr.msra.gmra.mrb[0].mxu1 %v4484_v35 }
 0x383   : > { %v3615_v42 = vpop.f32.mrb[234].mxu0  ;;  %14727 = vmatpush3.bf16.msra.mxu1 %v17365_v53  ;;  %v15838_v40 = vld [vmem:[%s16808_s12 + $0x5a0] ss:$8 sps:$4 sm:$0xff]  }
 0x384   : > { %v3616_v44 = vadd.f32 %v17371_v5, %v3615_v42  ;;  %v3617_v46 = vpop.f32.mrb[235].mxu0  ;;  %14728 = vmatprep.subr.bf16.mxu1 %v15836_v36  ;;  %v4287_v47 = vmax.f32 %v3613_v38, 0.0  ;;  %v15845_v42 = vld [vmem:[%s16808_s12 + $0x5b4] ss:$8 sps:$4 sm:$0xff]  }
 0x386   : > { %v4288_v48 = vmax.f32 %v3616_v44, 0.0  ;;  %3827 = vmatmul.mubr.bf16.gmra.mrb[84].mxu0 %v15820_v41 }
 0x387   : > { %3834 = vmatprep.mubr.bf16.mxu0 %v15825_v43  ;;  %14729 = vmatpush3.bf16.msra.mxu1 %v15836_v36 }
 0x388   : > { %v4485_v49 = vpack.c.bf16 %v4288_v48, %v4287_v47  ;;  %14730 = vmatprep.subr.bf16.mxu1 %v15837_v29 }
 0x389   : > { %v3620_v52 = vpop.f32.mrb[236].mxu0 }
 0x38a   : > { %v3621_v53 = vadd.f32 %v17371_v5, %v3620_v52  ;;  %v3622_v54 = vpop.f32.mrb[237].mxu0  ;;  %14714 = vmatprep.mubr.bf16.mxu1 %v4485_v49  ;;  %v15843_v52 = vld [vmem:[%s16808_s12 + $0x5b0] ss:$8 sps:$4 sm:$0xff]  }
 0x38b   : > { %v3623_v51 = vpop.f32.mrb[238].mxu0  ;;  %14731 = vmatpush3.bf16.msra.mxu1 %v15837_v29  ;;  %v15850_v54 = vld [vmem:[%s16808_s12 + $0x5c4] ss:$8 sps:$4 sm:$0xff]  }
 0x38c   : > { %v3624_v56 = vadd.f32 %v17371_v5, %v3623_v51  ;;  %v3625_v57 = vpop.f32.mrb[239].mxu0  ;;  %14732 = vmatprep.subr.bf16.mxu1 %v15841_v50  ;;  %v4289_v59 = vmax.f32 %v3621_v53, 0.0 }
 0x38e   : > { %v4290_v60 = vmax.f32 %v3624_v56, 0.0  ;;  %3835 = vmatmul.mubr.bf16.gmra.mrb[88].mxu0 %v15823_v39 }
 0x38f   : > { %3842 = vmatprep.mubr.bf16.mxu0 %v15828_v55  ;;  %14733 = vmatpush3.bf16.msra.mxu1 %v15841_v50 }
 0x390   : > { %v4486_v61 = vpack.c.bf16 %v4290_v60, %v4289_v59  ;;  %14734 = vmatprep.subr.bf16.mxu1 %v15842_v58 }
 0x391   : > { %v3628_v0 = vpop.f32.mrb[240].mxu0 }
 0x392   : > { %v3629_v1 = vadd.f32 %v17371_v5, %v3628_v0  ;;  %v3630_v2 = vpop.f32.mrb[241].mxu0  ;;  %14715 = vmatmul.mubr.bf16.gmra.mrb[4].mxu1 %v4486_v61  ;;  %v15848_v61 = vld [vmem:[%s16808_s12 + $0x5c0] ss:$8 sps:$4 sm:$0xff]   ;;  %v15854_v0 = vld [vmem:[%s16808_s12 + $0x5d4] ss:$8 sps:$4 sm:$0xff]  }
 0x393   : > { %v3631_v9 = vpop.f32.mrb[242].mxu0  ;;  %14735 = vmatpush3.bf16.msra.mxu1 %v15842_v58 }
 0x394   : > { %v3632_v4 = vadd.f32 %v17371_v5, %v3631_v9  ;;  %v3633_v17 = vpop.f32.mrb[243].mxu0  ;;  %14736 = vmatprep.subr.bf16.mxu1 %v15846_v63  ;;  %v4291_v7 = vmax.f32 %v3629_v1, 0.0 }
 0x396   : > { %v4292_v8 = vmax.f32 %v3632_v4, 0.0  ;;  %3843 = vmatmul.mubr.bf16.gmra.mrb[92].mxu0 %v15826_v62  ;;  %v15868_v4 = vld [vmem:[%s19967_s3 + $0x248] sm:$0xff]  }
 0x397   : > { %3850 = vmatprep.mubr.bf16.mxu0 %v15831_v3  ;;  %14737 = vmatpush3.bf16.msra.mxu1 %v15846_v63 }
 0x398   : > { %v4487_v10 = vpack.c.bf16 %v4292_v8, %v4291_v7  ;;  %14738 = vmatprep.subr.bf16.mxu1 %v15847_v6  ;;  %v15852_v8 = vld [vmem:[%s16808_s12 + $0x5d0] ss:$8 sps:$4 sm:$0xff]  }
 0x399   : > { %v3636_v13 = vpop.f32.mrb[244].mxu0 }
 0x39a   : > { %v3637_v14 = vadd.f32 %v17371_v5, %v3636_v13  ;;  %v3638_v15 = vpop.f32.mrb[245].mxu0  ;;  %14718 = vmatprep.mubr.bf16.mxu1 %v4487_v10 }
 0x39b   : > { %v3639_v33 = vpop.f32.mrb[246].mxu0  ;;  %14739 = vmatpush3.bf16.msra.mxu1 %v15847_v6  ;;  %v15869_v15 = vld [vmem:[%s19967_s3 + $0x250] sm:$0xff]  }
 0x39c   : > { %v3640_v18 = vadd.f32 %v17371_v5, %v3639_v33  ;;  %v3641_v19 = vpop.f32.mrb[247].mxu0  ;;  %14740 = vmatprep.subr.bf16.mxu1 %v15851_v12  ;;  %v4293_v21 = vmax.f32 %v3637_v14, 0.0 }
 0x39e   : > { %v4294_v11 = vmax.f32 %v3640_v18, 0.0  ;;  %3851 = vmatmul.mubr.bf16.gmra.mrb[96].mxu0 %v15829_v22  ;;  %v15873_v18 = vld [vmem:[%s19967_s3 + $0x258] sm:$0xff]  }
 0x39f   : > { %3858 = vmatprep.mubr.bf16.mxu0 %v15835_v16  ;;  %14741 = vmatpush3.bf16.msra.mxu1 %v15851_v12  ;;  %v15857_v12 = vld [vmem:[%s16808_s12 + $0x5e4] ss:$8 sps:$4 sm:$0xff]  }
 0x3a0   : > { %v4488_v23 = vpack.c.bf16 %v4294_v11, %v4293_v21  ;;  %14758 = vmatprep.subr.bf16.mxu1 %v17430_v20  ;;  %v15855_v11 = vld [vmem:[%s16808_s12 + $0x5e0] ss:$8 sps:$4 sm:$0xff]  }
 0x3a1   : > { %v3644_v24 = vpop.f32.mrb[248].mxu0 }
 0x3a2   : > { %v3645_v25 = vadd.f32 %v17371_v5, %v3644_v24  ;;  %v3646_v26 = vpop.f32.mrb[249].mxu0  ;;  %14719 = vmatmul.mubr.bf16.gmra.mrb[8].mxu1 %v4488_v23  ;;  %v15860_v24 = vld [vmem:[%s16808_s12 + $0x5f4] ss:$8 sps:$4 sm:$0xff]  }
 0x3a3   : > { %v3647_v45 = vpop.f32.mrb[250].mxu0 }
 0x3a4   : > { %v3648_v30 = vadd.f32 %v17371_v5, %v3647_v45  ;;  %v3649_v31 = vpop.f32.mrb[251].mxu0  ;;  %v4295_v32 = vmax.f32 %v3645_v25, 0.0 }
 0x3a5   : > { %v15878_v31 = vld [vmem:[%s19967_s3 + $0x268] sm:$0xff]  }
 0x3a6   : > { %v4296_v34 = vmax.f32 %v3648_v30, 0.0  ;;  %3859 = vmatmul.mubr.bf16.gmra.mrb[100].mxu0 %v15833_v27  ;;  %v15874_v27 = vld [vmem:[%s19967_s3 + $0x260] sm:$0xff]  }
 0x3a7   : > { %3866 = vmatprep.mubr.bf16.mxu0 %v15840_v28 }
 0x3a8   : > { %v4489_v35 = vpack.c.bf16 %v4296_v34, %v4295_v32 }
 0x3a9   : > { %v3652_v36 = vpop.f32.mrb[252].mxu0 }
 0x3aa   : > { %v3653_v37 = vadd.f32 %v17371_v5, %v3652_v36  ;;  %v3654_v38 = vpop.f32.mrb[253].mxu0  ;;  %14722 = vmatprep.mubr.bf16.mxu1 %v4489_v35  ;;  %v15858_v36 = vld [vmem:[%s16808_s12 + $0x5f0] ss:$8 sps:$4 sm:$0xff]  }
 0x3ab   : > { %v3655_v41 = vpop.f32.mrb[254].mxu0  ;;  %v15863_v38 = vld [vmem:[%s16808_s12 + $0x604] ss:$8 sps:$4 sm:$0xff]  }
 0x3ac   : > { %v3656_v43 = vadd.f32 %v17371_v5, %v3655_v41  ;;  %v3657_v44 = vpop.f32.mrb[255].mxu0  ;;  %v4297_v46 = vmax.f32 %v3653_v37, 0.0 }
 0x3ae   : > { %v4298_v29 = vmax.f32 %v3656_v43, 0.0  ;;  %3867 = vmatmul.mubr.bf16.gmra.mrb[104].mxu0 %v15838_v40 }
 0x3af   : > { %3874 = vmatprep.mubr.bf16.mxu0 %v15845_v42  ;;  %v15879_v42 = vld [vmem:[%s19967_s3 + $0x270] sm:$0xff]  }
 0x3b0   : > { %v4490_v47 = vpack.c.bf16 %v4298_v29, %v4297_v46  ;;  %v15883_v29 = vld [vmem:[%s19967_s3 + $0x278] sm:$0xff]  }
 0x3b1   : > { %v3660_v48 = vpop.f32.mrb[0].mxu0 }
 0x3b2   : > { %v3661_v49 = vadd.f32 %v17371_v5, %v3660_v48  ;;  %v3662_v50 = vpop.f32.mrb[1].mxu0  ;;  %14723 = vmatmul.mubr.bf16.gmra.mrb[12].mxu1 %v4490_v47 }
 0x3b3   : > { %v3663_v53 = vpop.f32.mrb[2].mxu0  ;;  %v15861_v50 = vld [vmem:[%s16808_s12 + $0x600] ss:$8 sps:$4 sm:$0xff]  }
 0x3b4   : > { %v3664_v39 = vadd.f32 %v17371_v5, %v3663_v53  ;;  %v3665_v51 = vpop.f32.mrb[3].mxu0  ;;  %v4299_v55 = vmax.f32 %v3661_v49, 0.0  ;;  %v15867_v53 = vld [vmem:[%s16808_s12 + $0x614] ss:$8 sps:$4 sm:$0xff]  }
 0x3b5   : > { %v17490_v51 = vld [vmem:[%s19967_s3 + $0x280] sm:$0xff]  }
 0x3b6   : > { %3875 = vmatmul.mubr.bf16.gmra.mrb[108].mxu0 %v15843_v52  ;;  %v4300_v56 = vmax.f32 %v3664_v39, 0.0 }
 0x3b7   : > { %3882 = vmatprep.mubr.bf16.mxu0 %v15850_v54 }
 0x3b8   : > { %v4491_v57 = vpack.c.bf16 %v4300_v56, %v4299_v55 }
 0x3b9   : > { %v3668_v58 = vpop.f32.mrb[4].mxu0 }
 0x3ba   : > { %v3669_v59 = vadd.f32 %v17371_v5, %v3668_v58  ;;  %v3670_v60 = vpop.f32.mrb[5].mxu0  ;;  %14742 = vmatprep.mubr.bf16.mxu1 %v4491_v57 }
 0x3bb   : > { %v3671_v63 = vpop.f32.mrb[6].mxu0 }
 0x3bc   : > { %v3672_v1 = vadd.f32 %v17371_v5, %v3671_v63  ;;  %v3673_v2 = vpop.f32.mrb[7].mxu0  ;;  %v4301_v62 = vmax.f32 %v3669_v59, 0.0 }
 0x3be   : > { %v4302_v9 = vmax.f32 %v3672_v1, 0.0  ;;  %3883 = vmatmul.mubr.bf16.gmra.mrb[112].mxu0 %v15848_v61  ;;  %v15865_v61 = vld [vmem:[%s16808_s12 + $0x610] ss:$8 sps:$4 sm:$0xff]  }
 0x3bf   : > { %3890 = vmatprep.mubr.bf16.mxu0 %v15854_v0  ;;  %v15872_v0 = vld [vmem:[%s16808_s12 + $0x624] ss:$8 sps:$4 sm:$0xff]  }
 0x3c0   : > { %v4492_v3 = vpack.c.bf16 %v4302_v9, %v4301_v62 }
 0x3c1   : > { %v3676_v17 = vpop.f32.mrb[8].mxu0 }
 0x3c2   : > { %v3677_v6 = vadd.f32 %v17371_v5, %v3676_v17  ;;  %v3678_v7 = vpop.f32.mrb[9].mxu0  ;;  %14743 = vmatmul.mubr.bf16.vlgmr.msra.gmra.mrb[0].mxu1 %v4492_v3 }
 0x3c3   : > { %v3679_v10 = vpop.f32.mrb[10].mxu0  ;;  %14759 = vmatpush3.bf16.msra.mxu1 %v17430_v20  ;;  %v15870_v7 = vld [vmem:[%s16808_s12 + $0x620] ss:$8 sps:$4 sm:$0xff]  }
 0x3c4   : > { %v3680_v13 = vadd.f32 %v17371_v5, %v3679_v10  ;;  %v3681_v14 = vpop.f32.mrb[11].mxu0  ;;  %14760 = vmatprep.subr.bf16.mxu1 %v15868_v4  ;;  %v4303_v22 = vmax.f32 %v3677_v6, 0.0  ;;  %v15877_v10 = vld [vmem:[%s16808_s12 + $0x634] ss:$8 sps:$4 sm:$0xff]  }
 0x3c6   : > { %v4304_v33 = vmax.f32 %v3680_v13, 0.0  ;;  %3891 = vmatmul.mubr.bf16.gmra.mrb[116].mxu0 %v15852_v8 }
 0x3c7   : > { %3898 = vmatprep.mubr.bf16.mxu0 %v15857_v12  ;;  %14761 = vmatpush3.bf16.msra.mxu1 %v15868_v4 }
 0x3c8   : > { %v4493_v16 = vpack.c.bf16 %v4304_v33, %v4303_v22  ;;  %14762 = vmatprep.subr.bf16.mxu1 %v15869_v15 }
 0x3c9   : > { %v3684_v19 = vpop.f32.mrb[12].mxu0 }
 0x3ca   : > { %v3685_v20 = vadd.f32 %v17371_v5, %v3684_v19  ;;  %v3686_v21 = vpop.f32.mrb[13].mxu0  ;;  %14746 = vmatprep.mubr.bf16.mxu1 %v4493_v16  ;;  %v15875_v19 = vld [vmem:[%s16808_s12 + $0x630] ss:$8 sps:$4 sm:$0xff]  }
 0x3cb   : > { %v3687_v23 = vpop.f32.mrb[14].mxu0  ;;  %14763 = vmatpush3.bf16.msra.mxu1 %v15869_v15  ;;  %v15882_v21 = vld [vmem:[%s16808_s12 + $0x644] ss:$8 sps:$4 sm:$0xff]  }
 0x3cc   : > { %v3688_v25 = vadd.f32 %v17371_v5, %v3687_v23  ;;  %v3689_v26 = vpop.f32.mrb[15].mxu0  ;;  %14764 = vmatprep.subr.bf16.mxu1 %v15873_v18  ;;  %v4305_v45 = vmax.f32 %v3685_v20, 0.0 }
 0x3ce   : > { %v4306_v28 = vmax.f32 %v3688_v25, 0.0  ;;  %3899 = vmatmul.mubr.bf16.gmra.mrb[120].mxu0 %v15855_v11 }
 0x3cf   : > { %3906 = vmatprep.mubr.bf16.mxu0 %v15860_v24  ;;  %14765 = vmatpush3.bf16.msra.mxu1 %v15873_v18 }
 0x3d0   : > { %v4494_v30 = vpack.c.bf16 %v4306_v28, %v4305_v45  ;;  %14766 = vmatprep.subr.bf16.mxu1 %v15874_v27 }
 0x3d1   : > { %v3692_v32 = vpop.f32.mrb[16].mxu0 }
 0x3d2   : > { %v3693_v34 = vadd.f32 %v17371_v5, %v3692_v32  ;;  %v3694_v35 = vpop.f32.mrb[17].mxu0  ;;  %14747 = vmatmul.mubr.bf16.gmra.mrb[4].mxu1 %v4494_v30  ;;  %v15880_v30 = vld [vmem:[%s16808_s12 + $0x640] ss:$8 sps:$4 sm:$0xff]   ;;  %v15886_v32 = vld [vmem:[%s16808_s12 + $0x654] ss:$8 sps:$4 sm:$0xff]  }
 0x3d3   : > { %v3695_v37 = vpop.f32.mrb[18].mxu0  ;;  %14767 = vmatpush3.bf16.msra.mxu1 %v15874_v27 }
 0x3d4   : > { %v3696_v40 = vadd.f32 %v17371_v5, %v3695_v37  ;;  %v3697_v41 = vpop.f32.mrb[19].mxu0  ;;  %14768 = vmatprep.subr.bf16.mxu1 %v15878_v31  ;;  %v4307_v43 = vmax.f32 %v3693_v34, 0.0 }
 0x3d6   : > { %v4308_v44 = vmax.f32 %v3696_v40, 0.0  ;;  %3907 = vmatmul.mubr.bf16.gmra.mrb[124].mxu0 %v15858_v36  ;;  %v15900_v40 = vld [vmem:[%s19967_s3 + $0x288] sm:$0xff]  }
 0x3d7   : > { %3914 = vmatprep.mubr.bf16.mxu0 %v15863_v38  ;;  %14769 = vmatpush3.bf16.msra.mxu1 %v15878_v31 }
 0x3d8   : > { %v4495_v46 = vpack.c.bf16 %v4308_v44, %v4307_v43  ;;  %14770 = vmatprep.subr.bf16.mxu1 %v15879_v42  ;;  %v15884_v44 = vld [vmem:[%s16808_s12 + $0x650] ss:$8 sps:$4 sm:$0xff]  }
 0x3d9   : > { %v3700_v47 = vpop.f32.mrb[20].mxu0 }
 0x3da   : > { %v3701_v48 = vadd.f32 %v17371_v5, %v3700_v47  ;;  %v3702_v49 = vpop.f32.mrb[21].mxu0  ;;  %14750 = vmatprep.mubr.bf16.mxu1 %v4495_v46 }
 0x3db   : > { %v3703_v52 = vpop.f32.mrb[22].mxu0  ;;  %14771 = vmatpush3.bf16.msra.mxu1 %v15879_v42  ;;  %v15901_v49 = vld [vmem:[%s19967_s3 + $0x290] sm:$0xff]  }
 0x3dc   : > { %v3704_v54 = vadd.f32 %v17371_v5, %v3703_v52  ;;  %v3705_v39 = vpop.f32.mrb[23].mxu0  ;;  %14772 = vmatprep.subr.bf16.mxu1 %v15883_v29  ;;  %v4309_v55 = vmax.f32 %v3701_v48, 0.0 }
 0x3de   : > { %v4310_v56 = vmax.f32 %v3704_v54, 0.0  ;;  %3915 = vmatmul.mubr.bf16.gmra.mrb[128].mxu0 %v15861_v50  ;;  %v15905_v54 = vld [vmem:[%s19967_s3 + $0x298] sm:$0xff]  }
 0x3df   : > { %3922 = vmatprep.mubr.bf16.mxu0 %v15867_v53  ;;  %14773 = vmatpush3.bf16.msra.mxu1 %v15883_v29  ;;  %v15889_v29 = vld [vmem:[%s16808_s12 + $0x664] ss:$8 sps:$4 sm:$0xff]  }
 0x3e0   : > { %v4496_v57 = vpack.c.bf16 %v4310_v56, %v4309_v55  ;;  %14790 = vmatprep.subr.bf16.mxu1 %v17490_v51  ;;  %v15887_v56 = vld [vmem:[%s16808_s12 + $0x660] ss:$8 sps:$4 sm:$0xff]  }
 0x3e1   : > { %v3708_v58 = vpop.f32.mrb[24].mxu0 }
 0x3e2   : > { %v3709_v59 = vadd.f32 %v17371_v5, %v3708_v58  ;;  %v3710_v60 = vpop.f32.mrb[25].mxu0  ;;  %14751 = vmatmul.mubr.bf16.gmra.mrb[8].mxu1 %v4496_v57  ;;  %v15892_v58 = vld [vmem:[%s16808_s12 + $0x674] ss:$8 sps:$4 sm:$0xff]  }
 0x3e3   : > { %v3711_v63 = vpop.f32.mrb[26].mxu0 }
 0x3e4   : > { %v3712_v1 = vadd.f32 %v17371_v5, %v3711_v63  ;;  %v3713_v2 = vpop.f32.mrb[27].mxu0  ;;  %v4311_v62 = vmax.f32 %v3709_v59, 0.0 }
 0x3e5   : > { %v15910_v2 = vld [vmem:[%s19967_s3 + $0x2a8] sm:$0xff]  }
 0x3e6   : > { %v4312_v9 = vmax.f32 %v3712_v1, 0.0  ;;  %3923 = vmatmul.mubr.bf16.gmra.mrb[132].mxu0 %v15865_v61  ;;  %v15906_v61 = vld [vmem:[%s19967_s3 + $0x2a0] sm:$0xff]  }
 0x3e7   : > { %3930 = vmatprep.mubr.bf16.mxu0 %v15872_v0 }
 0x3e8   : > { %v4497_v3 = vpack.c.bf16 %v4312_v9, %v4311_v62 }
 0x3e9   : > { %v3716_v4 = vpop.f32.mrb[28].mxu0 }
 0x3ea   : > { %v3717_v17 = vadd.f32 %v17371_v5, %v3716_v4  ;;  %v3718_v6 = vpop.f32.mrb[29].mxu0  ;;  %14754 = vmatprep.mubr.bf16.mxu1 %v4497_v3  ;;  %v15890_v4 = vld [vmem:[%s16808_s12 + $0x670] ss:$8 sps:$4 sm:$0xff]  }
 0x3eb   : > { %v3719_v8 = vpop.f32.mrb[30].mxu0  ;;  %v15895_v6 = vld [vmem:[%s16808_s12 + $0x684] ss:$8 sps:$4 sm:$0xff]  }
 0x3ec   : > { %v3720_v12 = vadd.f32 %v17371_v5, %v3719_v8  ;;  %v3721_v13 = vpop.f32.mrb[31].mxu0  ;;  %v4313_v14 = vmax.f32 %v3717_v17, 0.0 }
 0x3ee   : > { %v4314_v15 = vmax.f32 %v3720_v12, 0.0  ;;  %3931 = vmatmul.mubr.bf16.gmra.mrb[136].mxu0 %v15870_v7 }
 0x3ef   : > { %3938 = vmatprep.mubr.bf16.mxu0 %v15877_v10  ;;  %v15911_v10 = vld [vmem:[%s19967_s3 + $0x2b0] sm:$0xff]  }
 0x3f0   : > { %v4498_v22 = vpack.c.bf16 %v4314_v15, %v4313_v14  ;;  %v15915_v15 = vld [vmem:[%s19967_s3 + $0x2b8] sm:$0xff]  }
 0x3f1   : > { %v3724_v33 = vpop.f32.mrb[32].mxu0 }
 0x3f2   : > { %v3725_v16 = vadd.f32 %v17371_v5, %v3724_v33  ;;  %v3726_v18 = vpop.f32.mrb[33].mxu0  ;;  %14755 = vmatmul.mubr.bf16.gmra.mrb[12].mxu1 %v4498_v22 }
 0x3f3   : > { %v3727_v20 = vpop.f32.mrb[34].mxu0  ;;  %v15893_v18 = vld [vmem:[%s16808_s12 + $0x680] ss:$8 sps:$4 sm:$0xff]  }
 0x3f4   : > { %v3728_v11 = vadd.f32 %v17371_v5, %v3727_v20  ;;  %v3729_v23 = vpop.f32.mrb[35].mxu0  ;;  %v4315_v24 = vmax.f32 %v3725_v16, 0.0  ;;  %v15899_v20 = vld [vmem:[%s16808_s12 + $0x694] ss:$8 sps:$4 sm:$0xff]  }
 0x3f5   : > { %v17550_v23 = vld [vmem:[%s19967_s3 + $0x2c0] sm:$0xff]  }
 0x3f6   : > { %v4316_v25 = vmax.f32 %v3728_v11, 0.0  ;;  %3939 = vmatmul.mubr.bf16.gmra.mrb[140].mxu0 %v15875_v19 }
 0x3f7   : > { %3946 = vmatprep.mubr.bf16.mxu0 %v15882_v21 }
 0x3f8   : > { %v4499_v26 = vpack.c.bf16 %v4316_v25, %v4315_v24 }
 0x3f9   : > { %v3732_v27 = vpop.f32.mrb[36].mxu0 }
 0x3fa   : > { %v3733_v45 = vadd.f32 %v17371_v5, %v3732_v27  ;;  %v3734_v28 = vpop.f32.mrb[37].mxu0  ;;  %14774 = vmatprep.mubr.bf16.mxu1 %v4499_v26 }
 0x3fb   : > { %v3735_v31 = vpop.f32.mrb[38].mxu0 }
 0x3fc   : > { %v3736_v34 = vadd.f32 %v17371_v5, %v3735_v31  ;;  %v3737_v35 = vpop.f32.mrb[39].mxu0  ;;  %v4317_v36 = vmax.f32 %v3733_v45, 0.0 }
 0x3fe   : > { %v4318_v37 = vmax.f32 %v3736_v34, 0.0  ;;  %3947 = vmatmul.mubr.bf16.gmra.mrb[144].mxu0 %v15880_v30  ;;  %v15897_v30 = vld [vmem:[%s16808_s12 + $0x690] ss:$8 sps:$4 sm:$0xff]  }
 0x3ff   : > { %3954 = vmatprep.mubr.bf16.mxu0 %v15886_v32  ;;  %v15904_v32 = vld [vmem:[%s16808_s12 + $0x6a4] ss:$8 sps:$4 sm:$0xff]  }
 0x400   : > { %v4500_v38 = vpack.c.bf16 %v4318_v37, %v4317_v36 }
 0x401   : > { %v3740_v41 = vpop.f32.mrb[40].mxu0 }
 0x402   : > { %v3741_v42 = vadd.f32 %v17371_v5, %v3740_v41  ;;  %v3742_v43 = vpop.f32.mrb[41].mxu0  ;;  %14775 = vmatmul.mubr.bf16.vlgmr.msra.gmra.mrb[0].mxu1 %v4500_v38 }
 0x403   : > { %v3743_v46 = vpop.f32.mrb[42].mxu0  ;;  %14791 = vmatpush3.bf16.msra.mxu1 %v17490_v51  ;;  %v15902_v43 = vld [vmem:[%s16808_s12 + $0x6a0] ss:$8 sps:$4 sm:$0xff]  }
 0x404   : > { %v3744_v47 = vadd.f32 %v17371_v5, %v3743_v46  ;;  %v3745_v48 = vpop.f32.mrb[43].mxu0  ;;  %14792 = vmatprep.subr.bf16.mxu1 %v15900_v40  ;;  %v4319_v50 = vmax.f32 %v3741_v42, 0.0  ;;  %v15909_v46 = vld [vmem:[%s16808_s12 + $0x6b4] ss:$8 sps:$4 sm:$0xff]  }
 0x406   : > { %v4320_v52 = vmax.f32 %v3744_v47, 0.0  ;;  %3955 = vmatmul.mubr.bf16.gmra.mrb[148].mxu0 %v15884_v44 }
 0x407   : > { %3962 = vmatprep.mubr.bf16.mxu0 %v15889_v29  ;;  %14793 = vmatpush3.bf16.msra.mxu1 %v15900_v40 }
 0x408   : > { %v4501_v53 = vpack.c.bf16 %v4320_v52, %v4319_v50  ;;  %14794 = vmatprep.subr.bf16.mxu1 %v15901_v49 }
 0x409   : > { %v3748_v39 = vpop.f32.mrb[44].mxu0 }
 0x40a   : > { %v3749_v51 = vadd.f32 %v17371_v5, %v3748_v39  ;;  %v3750_v55 = vpop.f32.mrb[45].mxu0  ;;  %14778 = vmatprep.mubr.bf16.mxu1 %v4501_v53  ;;  %v15907_v39 = vld [vmem:[%s16808_s12 + $0x6b0] ss:$8 sps:$4 sm:$0xff]  }
 0x40b   : > { %v3751_v57 = vpop.f32.mrb[46].mxu0  ;;  %14795 = vmatpush3.bf16.msra.mxu1 %v15901_v49  ;;  %v15914_v55 = vld [vmem:[%s16808_s12 + $0x6c4] ss:$8 sps:$4 sm:$0xff]  }
 0x40c   : > { %v3752_v59 = vadd.f32 %v17371_v5, %v3751_v57  ;;  %v3753_v60 = vpop.f32.mrb[47].mxu0  ;;  %14796 = vmatprep.subr.bf16.mxu1 %v15905_v54  ;;  %v4321_v63 = vmax.f32 %v3749_v51, 0.0 }
 0x40e   : > { %v4322_v0 = vmax.f32 %v3752_v59, 0.0  ;;  %3963 = vmatmul.mubr.bf16.gmra.mrb[152].mxu0 %v15887_v56 }
 0x40f   : > { %3970 = vmatprep.mubr.bf16.mxu0 %v15892_v58  ;;  %14797 = vmatpush3.bf16.msra.mxu1 %v15905_v54 }
 0x410   : > { %v4502_v1 = vpack.c.bf16 %v4322_v0, %v4321_v63  ;;  %14798 = vmatprep.subr.bf16.mxu1 %v15906_v61 }
 0x411   : > { %v3756_v62 = vpop.f32.mrb[48].mxu0 }
 0x412   : > { %v3757_v9 = vadd.f32 %v17371_v5, %v3756_v62  ;;  %v3758_v3 = vpop.f32.mrb[49].mxu0  ;;  %14779 = vmatmul.mubr.bf16.gmra.mrb[4].mxu1 %v4502_v1  ;;  %v15912_v1 = vld [vmem:[%s16808_s12 + $0x6c0] ss:$8 sps:$4 sm:$0xff]   ;;  %v15918_v62 = vld [vmem:[%s16808_s12 + $0x6d4] ss:$8 sps:$4 sm:$0xff]  }
 0x413   : > { %v3759_v17 = vpop.f32.mrb[50].mxu0  ;;  %14799 = vmatpush3.bf16.msra.mxu1 %v15906_v61 }
 0x414   : > { %v3760_v7 = vadd.f32 %v17371_v5, %v3759_v17  ;;  %v3761_v8 = vpop.f32.mrb[51].mxu0  ;;  %14800 = vmatprep.subr.bf16.mxu1 %v15910_v2  ;;  %v4323_v12 = vmax.f32 %v3757_v9, 0.0 }
 0x416   : > { %v4324_v13 = vmax.f32 %v3760_v7, 0.0  ;;  %3971 = vmatmul.mubr.bf16.gmra.mrb[156].mxu0 %v15890_v4  ;;  %v15932_v7 = vld [vmem:[%s19967_s3 + $0x2c8] sm:$0xff]  }
 0x417   : > { %3978 = vmatprep.mubr.bf16.mxu0 %v15895_v6  ;;  %14801 = vmatpush3.bf16.msra.mxu1 %v15910_v2 }
 0x418   : > { %v4503_v14 = vpack.c.bf16 %v4324_v13, %v4323_v12  ;;  %14802 = vmatprep.subr.bf16.mxu1 %v15911_v10  ;;  %v15916_v13 = vld [vmem:[%s16808_s12 + $0x6d0] ss:$8 sps:$4 sm:$0xff]  }
 0x419   : > { %v3764_v22 = vpop.f32.mrb[52].mxu0 }
 0x41a   : > { %v3765_v33 = vadd.f32 %v17371_v5, %v3764_v22  ;;  %v3766_v16 = vpop.f32.mrb[53].mxu0  ;;  %14782 = vmatprep.mubr.bf16.mxu1 %v4503_v14 }
 0x41b   : > { %v3767_v19 = vpop.f32.mrb[54].mxu0  ;;  %14803 = vmatpush3.bf16.msra.mxu1 %v15911_v10  ;;  %v15933_v16 = vld [vmem:[%s19967_s3 + $0x2d0] sm:$0xff]  }
 0x41c   : > { %v3768_v21 = vadd.f32 %v17371_v5, %v3767_v19  ;;  %v3769_v11 = vpop.f32.mrb[55].mxu0  ;;  %14804 = vmatprep.subr.bf16.mxu1 %v15915_v15  ;;  %v4325_v24 = vmax.f32 %v3765_v33, 0.0 }
 0x41e   : > { %v4326_v25 = vmax.f32 %v3768_v21, 0.0  ;;  %3979 = vmatmul.mubr.bf16.gmra.mrb[160].mxu0 %v15893_v18  ;;  %v15937_v21 = vld [vmem:[%s19967_s3 + $0x2d8] sm:$0xff]  }
 0x41f   : > { %3986 = vmatprep.mubr.bf16.mxu0 %v15899_v20  ;;  %14805 = vmatpush3.bf16.msra.mxu1 %v15915_v15  ;;  %v15921_v15 = vld [vmem:[%s16808_s12 + $0x6e4] ss:$8 sps:$4 sm:$0xff]  }
 0x420   : > { %v4504_v26 = vpack.c.bf16 %v4326_v25, %v4325_v24  ;;  %14822 = vmatprep.subr.bf16.mxu1 %v17550_v23  ;;  %v15919_v25 = vld [vmem:[%s16808_s12 + $0x6e0] ss:$8 sps:$4 sm:$0xff]  }
 0x421   : > { %v3772_v27 = vpop.f32.mrb[56].mxu0 }
 0x422   : > { %v3773_v45 = vadd.f32 %v17371_v5, %v3772_v27  ;;  %v3774_v28 = vpop.f32.mrb[57].mxu0  ;;  %14783 = vmatmul.mubr.bf16.gmra.mrb[8].mxu1 %v4504_v26  ;;  %v15924_v27 = vld [vmem:[%s16808_s12 + $0x6f4] ss:$8 sps:$4 sm:$0xff]  }
 0x423   : > { %v3775_v31 = vpop.f32.mrb[58].mxu0 }
 0x424   : > { %v3776_v34 = vadd.f32 %v17371_v5, %v3775_v31  ;;  %v3777_v35 = vpop.f32.mrb[59].mxu0  ;;  %v4327_v36 = vmax.f32 %v3773_v45, 0.0 }
 0x425   : > { %v15942_v35 = vld [vmem:[%s19967_s3 + $0x2e8] sm:$0xff]  }
 0x426   : > { %v4328_v37 = vmax.f32 %v3776_v34, 0.0  ;;  %3987 = vmatmul.mubr.bf16.gmra.mrb[164].mxu0 %v15897_v30  ;;  %v15938_v30 = vld [vmem:[%s19967_s3 + $0x2e0] sm:$0xff]  }
 0x427   : > { %3994 = vmatprep.mubr.bf16.mxu0 %v15904_v32 }
 0x428   : > { %v4505_v38 = vpack.c.bf16 %v4328_v37, %v4327_v36 }
 0x429   : > { %v3780_v40 = vpop.f32.mrb[60].mxu0 }
 0x42a   : > { %v3781_v41 = vadd.f32 %v17371_v5, %v3780_v40  ;;  %v3782_v42 = vpop.f32.mrb[61].mxu0  ;;  %14786 = vmatprep.mubr.bf16.mxu1 %v4505_v38  ;;  %v15922_v40 = vld [vmem:[%s16808_s12 + $0x6f0] ss:$8 sps:$4 sm:$0xff]  }
 0x42b   : > { %v3783_v44 = vpop.f32.mrb[62].mxu0  ;;  %v15927_v42 = vld [vmem:[%s16808_s12 + $0x704] ss:$8 sps:$4 sm:$0xff]  }
 0x42c   : > { %v3784_v29 = vadd.f32 %v17371_v5, %v3783_v44  ;;  %v3785_v47 = vpop.f32.mrb[63].mxu0  ;;  %v4329_v48 = vmax.f32 %v3781_v41, 0.0 }
 0x42e   : > { %v4330_v49 = vmax.f32 %v3784_v29, 0.0  ;;  %3995 = vmatmul.mubr.bf16.gmra.mrb[168].mxu0 %v15902_v43  ;;  %v17599_v43 = vld [vmem:[%s19966_s2] ss:$0 sm:$0xff] }
 0x42f   : > { %4002 = vmatprep.mubr.bf16.mxu0 %v15909_v46 }
 0x430   : > { %v4506_v50 = vpack.c.bf16 %v4330_v49, %v4329_v48  ;;  %v15947_v49 = vld [vmem:[%s19967_s3 + $0x2f8] sm:$0xff]  }
 0x431   : > { %v3788_v52 = vpop.f32.mrb[64].mxu0 }
 0x432   : > { %v3789_v53 = vadd.f32 %v17371_v5, %v3788_v52  ;;  %v3790_v54 = vpop.f32.mrb[65].mxu0  ;;  %14787 = vmatmul.mubr.bf16.gmra.mrb[12].mxu1 %v4506_v50 }
 0x433   : > { %v3791_v51 = vpop.f32.mrb[66].mxu0  ;;  %v15925_v54 = vld [vmem:[%s16808_s12 + $0x700] ss:$8 sps:$4 sm:$0xff]  }
 0x434   : > { %v3792_v56 = vadd.f32 %v17371_v5, %v3791_v51  ;;  %v3793_v57 = vpop.f32.mrb[67].mxu0  ;;  %v4331_v58 = vmax.f32 %v3789_v53, 0.0  ;;  %v15931_v51 = vld [vmem:[%s16808_s12 + $0x714] ss:$8 sps:$4 sm:$0xff]  }
 0x435   : > { %v17615_v57 = vld [vmem:[%s19967_s3 + $0x300] sm:$0xff]  }
 0x436   : > { %v4332_v59 = vmax.f32 %v3792_v56, 0.0  ;;  %4003 = vmatmul.mubr.bf16.gmra.mrb[172].mxu0 %v15907_v39 }
 0x437   : > { %4010 = vmatprep.mubr.bf16.mxu0 %v15914_v55 }
 0x438   : > { %v4507_v60 = vpack.c.bf16 %v4332_v59, %v4331_v58 }
 0x439   : > { %v3796_v61 = vpop.f32.mrb[68].mxu0 }
 0x43a   : > { %v3797_v63 = vadd.f32 %v17371_v5, %v3796_v61  ;;  %v3798_v0 = vpop.f32.mrb[69].mxu0  ;;  %14806 = vmatprep.mubr.bf16.mxu1 %v4507_v60 }
 0x43b   : > { %v3799_v2 = vpop.f32.mrb[70].mxu0 }
 0x43c   : > { %v3800_v9 = vadd.f32 %v17371_v5, %v3799_v2  ;;  %v3801_v3 = vpop.f32.mrb[71].mxu0  ;;  %v4333_v4 = vmax.f32 %v3797_v63, 0.0 }
 0x43e   : > { %v4334_v17 = vmax.f32 %v3800_v9, 0.0  ;;  %4011 = vmatmul.mubr.bf16.gmra.mrb[176].mxu0 %v15912_v1  ;;  %v15929_v1 = vld [vmem:[%s16808_s12 + $0x710] ss:$8 sps:$4 sm:$0xff]  }
 0x43f   : > { %4018 = vmatprep.mubr.bf16.mxu0 %v15918_v62  ;;  %v15936_v62 = vld [vmem:[%s16808_s12 + $0x724] ss:$8 sps:$4 sm:$0xff]  }
 0x440   : > { %v4508_v6 = vpack.c.bf16 %v4334_v17, %v4333_v4 }
 0x441   : > { %v3804_v8 = vpop.f32.mrb[72].mxu0 }
 0x442   : > { %v3805_v10 = vadd.f32 %v17371_v5, %v3804_v8  ;;  %v3806_v12 = vpop.f32.mrb[73].mxu0  ;;  %14807 = vmatmul.mubr.bf16.vlgmr.msra.gmra.mrb[0].mxu1 %v4508_v6 }
 0x443   : > { %v3807_v14 = vpop.f32.mrb[74].mxu0  ;;  %14823 = vmatpush3.bf16.msra.mxu1 %v17550_v23  ;;  %v15934_v12 = vld [vmem:[%s16808_s12 + $0x720] ss:$8 sps:$4 sm:$0xff]  }
 0x444   : > { %v3808_v22 = vadd.f32 %v17371_v5, %v3807_v14  ;;  %v3809_v33 = vpop.f32.mrb[75].mxu0  ;;  %14824 = vmatprep.subr.bf16.mxu1 %v15932_v7  ;;  %v4335_v18 = vmax.f32 %v3805_v10, 0.0  ;;  %v15941_v14 = vld [vmem:[%s16808_s12 + $0x734] ss:$8 sps:$4 sm:$0xff]  }
 0x446   : > { %v4336_v19 = vmax.f32 %v3808_v22, 0.0  ;;  %4019 = vmatmul.mubr.bf16.gmra.mrb[180].mxu0 %v15916_v13 }
 0x447   : > { %4026 = vmatprep.mubr.bf16.mxu0 %v15921_v15  ;;  %14825 = vmatpush3.bf16.msra.mxu1 %v15932_v7 }
 0x448   : > { %v4509_v20 = vpack.c.bf16 %v4336_v19, %v4335_v18  ;;  %14826 = vmatprep.subr.bf16.mxu1 %v15933_v16 }
 0x449   : > { %v3812_v11 = vpop.f32.mrb[76].mxu0 }
 0x44a   : > { %v3813_v23 = vadd.f32 %v17371_v5, %v3812_v11  ;;  %v3814_v24 = vpop.f32.mrb[77].mxu0  ;;  %14810 = vmatprep.mubr.bf16.mxu1 %v4509_v20  ;;  %v15939_v11 = vld [vmem:[%s16808_s12 + $0x730] ss:$8 sps:$4 sm:$0xff]  }
 0x44b   : > { %v3815_v26 = vpop.f32.mrb[78].mxu0  ;;  %14827 = vmatpush3.bf16.msra.mxu1 %v15933_v16  ;;  %v15946_v24 = vld [vmem:[%s16808_s12 + $0x744] ss:$8 sps:$4 sm:$0xff]  }
 0x44c   : > { %v3816_v45 = vadd.f32 %v17371_v5, %v3815_v26  ;;  %v3817_v28 = vpop.f32.mrb[79].mxu0  ;;  %14828 = vmatprep.subr.bf16.mxu1 %v15937_v21  ;;  %v4337_v31 = vmax.f32 %v3813_v23, 0.0 }
 0x44e   : > { %v4338_v32 = vmax.f32 %v3816_v45, 0.0  ;;  %4027 = vmatmul.mubr.bf16.gmra.mrb[184].mxu0 %v15919_v25 }
 0x44f   : > { %4034 = vmatprep.mubr.bf16.mxu0 %v15924_v27  ;;  %14829 = vmatpush3.bf16.msra.mxu1 %v15937_v21 }
 0x450   : > { %v4510_v34 = vpack.c.bf16 %v4338_v32, %v4337_v31  ;;  %14830 = vmatprep.subr.bf16.mxu1 %v15938_v30 }
 0x451   : > { %v3820_v36 = vpop.f32.mrb[80].mxu0 }
 0x452   : > { %v3821_v37 = vadd.f32 %v17371_v5, %v3820_v36  ;;  %v3822_v38 = vpop.f32.mrb[81].mxu0  ;;  %14811 = vmatmul.mubr.bf16.gmra.mrb[4].mxu1 %v4510_v34  ;;  %v15943_v5 = vld [vmem:[%s19967_s3 + $0x2f0] sm:$0xff]   ;;  %v15944_v34 = vld [vmem:[%s16808_s12 + $0x740] ss:$8 sps:$4 sm:$0xff]  }
 0x453   : > { %v3823_v41 = vpop.f32.mrb[82].mxu0  ;;  %14831 = vmatpush3.bf16.msra.mxu1 %v15938_v30  ;;  %v15950_v36 = vld [vmem:[%s16808_s12 + $0x754] ss:$8 sps:$4 sm:$0xff]  }
 0x454   : > { %v3824_v44 = vadd.f32 %v17599_v43, %v3823_v41  ;;  %v3825_v46 = vpop.f32.mrb[83].mxu0  ;;  %14832 = vmatprep.subr.bf16.mxu1 %v15942_v35  ;;  %v4339_v29 = vmax.f32 %v3821_v37, 0.0 }
 0x456   : > { %v4340_v47 = vmax.f32 %v3824_v44, 0.0  ;;  %4035 = vmatmul.mubr.bf16.gmra.mrb[188].mxu0 %v15922_v40  ;;  %v15964_v44 = vld [vmem:[%s19967_s3 + $0x308] sm:$0xff]  }
 0x457   : > { %4042 = vmatprep.mubr.bf16.mxu0 %v15927_v42  ;;  %14833 = vmatpush3.bf16.msra.mxu1 %v15942_v35 }
 0x458   : > { %v4511_v48 = vpack.c.bf16 %v4340_v47, %v4339_v29  ;;  %14834 = vmatprep.subr.bf16.mxu1 %v15943_v5  ;;  %v15948_v47 = vld [vmem:[%s16808_s12 + $0x750] ss:$8 sps:$4 sm:$0xff]  }
 0x459   : > { %v3828_v50 = vpop.f32.mrb[84].mxu0 }
 0x45a   : > { %v3829_v52 = vadd.f32 %v17599_v43, %v3828_v50  ;;  %v3830_v53 = vpop.f32.mrb[85].mxu0  ;;  %14814 = vmatprep.mubr.bf16.mxu1 %v4511_v48 }
 0x45b   : > { %v3831_v39 = vpop.f32.mrb[86].mxu0  ;;  %14835 = vmatpush3.bf16.msra.mxu1 %v15943_v5  ;;  %v15965_v53 = vld [vmem:[%s19967_s3 + $0x310] sm:$0xff]  }
 0x45c   : > { %v3832_v55 = vadd.f32 %v17599_v43, %v3831_v39  ;;  %v3833_v56 = vpop.f32.mrb[87].mxu0  ;;  %14836 = vmatprep.subr.bf16.mxu1 %v15947_v49  ;;  %v4341_v58 = vmax.f32 %v3829_v52, 0.0 }
 0x45e   : > { %v4342_v59 = vmax.f32 %v3832_v55, 0.0  ;;  %4043 = vmatmul.mubr.bf16.gmra.mrb[192].mxu0 %v15925_v54  ;;  %v15969_v55 = vld [vmem:[%s19967_s3 + $0x318] sm:$0xff]  }
 0x45f   : > { %4050 = vmatprep.mubr.bf16.mxu0 %v15931_v51  ;;  %14837 = vmatpush3.bf16.msra.mxu1 %v15947_v49  ;;  %v15953_v49 = vld [vmem:[%s16808_s12 + $0x764] ss:$8 sps:$4 sm:$0xff]  }
 0x460   : > { %v4512_v60 = vpack.c.bf16 %v4342_v59, %v4341_v58  ;;  %14854 = vmatprep.subr.bf16.mxu1 %v17615_v57  ;;  %v15951_v59 = vld [vmem:[%s16808_s12 + $0x760] ss:$8 sps:$4 sm:$0xff]  }
 0x461   : > { %v3836_v61 = vpop.f32.mrb[88].mxu0 }
 0x462   : > { %v3837_v63 = vadd.f32 %v17599_v43, %v3836_v61  ;;  %v3838_v0 = vpop.f32.mrb[89].mxu0  ;;  %14815 = vmatmul.mubr.bf16.gmra.mrb[8].mxu1 %v4512_v60  ;;  %v15956_v61 = vld [vmem:[%s16808_s12 + $0x774] ss:$8 sps:$4 sm:$0xff]  }
 0x463   : > { %v3839_v2 = vpop.f32.mrb[90].mxu0 }
 0x464   : > { %v3840_v9 = vadd.f32 %v17599_v43, %v3839_v2  ;;  %v3841_v3 = vpop.f32.mrb[91].mxu0  ;;  %v4343_v4 = vmax.f32 %v3837_v63, 0.0 }
 0x465   : > { %v15974_v3 = vld [vmem:[%s19967_s3 + $0x328] sm:$0xff]  }
 0x466   : > { %v4344_v17 = vmax.f32 %v3840_v9, 0.0  ;;  %4051 = vmatmul.mubr.bf16.gmra.mrb[196].mxu0 %v15929_v1  ;;  %v15970_v1 = vld [vmem:[%s19967_s3 + $0x320] sm:$0xff]  }
 0x467   : > { %4058 = vmatprep.mubr.bf16.mxu0 %v15936_v62 }
 0x468   : > { %v4513_v6 = vpack.c.bf16 %v4344_v17, %v4343_v4 }
 0x469   : > { %v3844_v7 = vpop.f32.mrb[92].mxu0 }
 0x46a   : > { %v3845_v8 = vadd.f32 %v17599_v43, %v3844_v7  ;;  %v3846_v10 = vpop.f32.mrb[93].mxu0  ;;  %14818 = vmatprep.mubr.bf16.mxu1 %v4513_v6  ;;  %v15954_v7 = vld [vmem:[%s16808_s12 + $0x770] ss:$8 sps:$4 sm:$0xff]  }
 0x46b   : > { %v3847_v13 = vpop.f32.mrb[94].mxu0  ;;  %v15959_v10 = vld [vmem:[%s16808_s12 + $0x784] ss:$8 sps:$4 sm:$0xff]  }
 0x46c   : > { %v3848_v15 = vadd.f32 %v17599_v43, %v3847_v13  ;;  %v3849_v22 = vpop.f32.mrb[95].mxu0  ;;  %v4345_v33 = vmax.f32 %v3845_v8, 0.0 }
 0x46e   : > { %v4346_v16 = vmax.f32 %v3848_v15, 0.0  ;;  %4059 = vmatmul.mubr.bf16.gmra.mrb[200].mxu0 %v15934_v12 }
 0x46f   : > { %4066 = vmatprep.mubr.bf16.mxu0 %v15941_v14  ;;  %v15975_v14 = vld [vmem:[%s19967_s3 + $0x330] sm:$0xff]  }
 0x470   : > { %v4514_v18 = vpack.c.bf16 %v4346_v16, %v4345_v33  ;;  %v15979_v16 = vld [vmem:[%s19967_s3 + $0x338] sm:$0xff]  }
 0x471   : > { %v3852_v19 = vpop.f32.mrb[96].mxu0 }
 0x472   : > { %v3853_v20 = vadd.f32 %v17599_v43, %v3852_v19  ;;  %v3854_v21 = vpop.f32.mrb[97].mxu0  ;;  %14819 = vmatmul.mubr.bf16.gmra.mrb[12].mxu1 %v4514_v18 }
 0x473   : > { %v3855_v23 = vpop.f32.mrb[98].mxu0  ;;  %v15957_v21 = vld [vmem:[%s16808_s12 + $0x780] ss:$8 sps:$4 sm:$0xff]  }
 0x474   : > { %v3856_v25 = vadd.f32 %v17599_v43, %v3855_v23  ;;  %v3857_v26 = vpop.f32.mrb[99].mxu0  ;;  %v4347_v27 = vmax.f32 %v3853_v20, 0.0  ;;  %v15963_v23 = vld [vmem:[%s16808_s12 + $0x794] ss:$8 sps:$4 sm:$0xff]  }
 0x475   : > { %v17675_v26 = vld [vmem:[%s19967_s3 + $0x340] sm:$0xff]  }
 0x476   : > { %v4348_v45 = vmax.f32 %v3856_v25, 0.0  ;;  %4067 = vmatmul.mubr.bf16.gmra.mrb[204].mxu0 %v15939_v11 }
 0x477   : > { %4074 = vmatprep.mubr.bf16.mxu0 %v15946_v24 }
 0x478   : > { %v4515_v28 = vpack.c.bf16 %v4348_v45, %v4347_v27 }
 0x479   : > { %v3860_v30 = vpop.f32.mrb[100].mxu0 }
 0x47a   : > { %v3861_v31 = vadd.f32 %v17599_v43, %v3860_v30  ;;  %v3862_v32 = vpop.f32.mrb[101].mxu0  ;;  %14838 = vmatprep.mubr.bf16.mxu1 %v4515_v28 }
 0x47b   : > { %v3863_v35 = vpop.f32.mrb[102].mxu0 }
 0x47c   : > { %v3864_v37 = vadd.f32 %v17599_v43, %v3863_v35  ;;  %v3865_v38 = vpop.f32.mrb[103].mxu0  ;;  %v4349_v40 = vmax.f32 %v3861_v31, 0.0 }
 0x47e   : > { %v4350_v41 = vmax.f32 %v3864_v37, 0.0  ;;  %4075 = vmatmul.mubr.bf16.gmra.mrb[208].mxu0 %v15944_v34  ;;  %v15961_v34 = vld [vmem:[%s16808_s12 + $0x790] ss:$8 sps:$4 sm:$0xff]  }
 0x47f   : > { %4082 = vmatprep.mubr.bf16.mxu0 %v15950_v36  ;;  %v15968_v36 = vld [vmem:[%s16808_s12 + $0x7a4] ss:$8 sps:$4 sm:$0xff]  }
 0x480   : > { %v4516_v42 = vpack.c.bf16 %v4350_v41, %v4349_v40 }
 0x481   : > { %v3868_v46 = vpop.f32.mrb[104].mxu0 }
 0x482   : > { %v3869_v5 = vadd.f32 %v17599_v43, %v3868_v46  ;;  %v3870_v29 = vpop.f32.mrb[105].mxu0  ;;  %14839 = vmatmul.mubr.bf16.vlgmr.msra.gmra.mrb[0].mxu1 %v4516_v42 }
 0x483   : > { %v3871_v48 = vpop.f32.mrb[106].mxu0  ;;  %14855 = vmatpush3.bf16.msra.mxu1 %v17615_v57  ;;  %v15966_v29 = vld [vmem:[%s16808_s12 + $0x7a0] ss:$8 sps:$4 sm:$0xff]  }
 0x484   : > { %v3872_v50 = vadd.f32 %v17599_v43, %v3871_v48  ;;  %v3873_v52 = vpop.f32.mrb[107].mxu0  ;;  %14856 = vmatprep.subr.bf16.mxu1 %v15964_v44  ;;  %v4351_v54 = vmax.f32 %v3869_v5, 0.0  ;;  %v15973_v48 = vld [vmem:[%s16808_s12 + $0x7b4] ss:$8 sps:$4 sm:$0xff]  }
 0x486   : > { %v4352_v39 = vmax.f32 %v3872_v50, 0.0  ;;  %4083 = vmatmul.mubr.bf16.gmra.mrb[212].mxu0 %v15948_v47 }
 0x487   : > { %4090 = vmatprep.mubr.bf16.mxu0 %v15953_v49  ;;  %14857 = vmatpush3.bf16.msra.mxu1 %v15964_v44 }
 0x488   : > { %v4517_v51 = vpack.c.bf16 %v4352_v39, %v4351_v54  ;;  %14858 = vmatprep.subr.bf16.mxu1 %v15965_v53 }
 0x489   : > { %v3876_v56 = vpop.f32.mrb[108].mxu0 }
 0x48a   : > { %v3877_v57 = vadd.f32 %v17599_v43, %v3876_v56  ;;  %v3878_v58 = vpop.f32.mrb[109].mxu0  ;;  %14842 = vmatprep.mubr.bf16.mxu1 %v4517_v51  ;;  %v15971_v56 = vld [vmem:[%s16808_s12 + $0x7b0] ss:$8 sps:$4 sm:$0xff]  }
 0x48b   : > { %v3879_v60 = vpop.f32.mrb[110].mxu0  ;;  %14859 = vmatpush3.bf16.msra.mxu1 %v15965_v53  ;;  %v15978_v58 = vld [vmem:[%s16808_s12 + $0x7c4] ss:$8 sps:$4 sm:$0xff]  }
 0x48c   : > { %v3880_v63 = vadd.f32 %v17599_v43, %v3879_v60  ;;  %v3881_v0 = vpop.f32.mrb[111].mxu0  ;;  %14860 = vmatprep.subr.bf16.mxu1 %v15969_v55  ;;  %v4353_v2 = vmax.f32 %v3877_v57, 0.0 }
 0x48e   : > { %v4354_v62 = vmax.f32 %v3880_v63, 0.0  ;;  %4091 = vmatmul.mubr.bf16.gmra.mrb[216].mxu0 %v15951_v59 }
 0x48f   : > { %4098 = vmatprep.mubr.bf16.mxu0 %v15956_v61  ;;  %14861 = vmatpush3.bf16.msra.mxu1 %v15969_v55 }
 0x490   : > { %v4518_v9 = vpack.c.bf16 %v4354_v62, %v4353_v2  ;;  %14862 = vmatprep.subr.bf16.mxu1 %v15970_v1 }
 0x491   : > { %v3884_v4 = vpop.f32.mrb[112].mxu0 }
 0x492   : > { %v3885_v17 = vadd.f32 %v17599_v43, %v3884_v4  ;;  %v3886_v6 = vpop.f32.mrb[113].mxu0  ;;  %14843 = vmatmul.mubr.bf16.gmra.mrb[4].mxu1 %v4518_v9  ;;  %v15976_v9 = vld [vmem:[%s16808_s12 + $0x7c0] ss:$8 sps:$4 sm:$0xff]   ;;  %v15982_v4 = vld [vmem:[%s16808_s12 + $0x7d4] ss:$8 sps:$4 sm:$0xff]  }
 0x493   : > { %v3887_v8 = vpop.f32.mrb[114].mxu0  ;;  %14863 = vmatpush3.bf16.msra.mxu1 %v15970_v1 }
 0x494   : > { %v3888_v12 = vadd.f32 %v17599_v43, %v3887_v8  ;;  %v3889_v13 = vpop.f32.mrb[115].mxu0  ;;  %14864 = vmatprep.subr.bf16.mxu1 %v15974_v3  ;;  %v4355_v15 = vmax.f32 %v3885_v17, 0.0 }
 0x496   : > { %v4356_v22 = vmax.f32 %v3888_v12, 0.0  ;;  %4099 = vmatmul.mubr.bf16.gmra.mrb[220].mxu0 %v15954_v7  ;;  %v15990_v12 = vld [vmem:[%s19967_s3 + $0x348] sm:$0xff]  }
 0x497   : > { %4106 = vmatprep.mubr.bf16.mxu0 %v15959_v10  ;;  %14865 = vmatpush3.bf16.msra.mxu1 %v15974_v3 }
 0x498   : > { %v4519_v33 = vpack.c.bf16 %v4356_v22, %v4355_v15  ;;  %14866 = vmatprep.subr.bf16.mxu1 %v15975_v14  ;;  %v15980_v22 = vld [vmem:[%s16808_s12 + $0x7d0] ss:$8 sps:$4 sm:$0xff]  }
 0x499   : > { %v3892_v18 = vpop.f32.mrb[116].mxu0 }
 0x49a   : > { %v3893_v19 = vadd.f32 %v17599_v43, %v3892_v18  ;;  %v3894_v20 = vpop.f32.mrb[117].mxu0  ;;  %14846 = vmatprep.mubr.bf16.mxu1 %v4519_v33 }
 0x49b   : > { %v3895_v11 = vpop.f32.mrb[118].mxu0  ;;  %14867 = vmatpush3.bf16.msra.mxu1 %v15975_v14  ;;  %v15991_v20 = vld [vmem:[%s19967_s3 + $0x350] sm:$0xff]  }
 0x49c   : > { %v3896_v24 = vadd.f32 %v17599_v43, %v3895_v11  ;;  %v3897_v25 = vpop.f32.mrb[119].mxu0  ;;  %14868 = vmatprep.subr.bf16.mxu1 %v15979_v16  ;;  %v4357_v27 = vmax.f32 %v3893_v19, 0.0 }
 0x49e   : > { %v4358_v45 = vmax.f32 %v3896_v24, 0.0  ;;  %4107 = vmatmul.mubr.bf16.gmra.mrb[224].mxu0 %v15957_v21  ;;  %v15992_v24 = vld [vmem:[%s19967_s3 + $0x358] sm:$0xff]  }
 0x49f   : > { %4114 = vmatprep.mubr.bf16.mxu0 %v15963_v23  ;;  %14869 = vmatpush3.bf16.msra.mxu1 %v15979_v16  ;;  %v15985_v16 = vld [vmem:[%s16808_s12 + $0x7e4] ss:$8 sps:$4 sm:$0xff]  }
 0x4a0   : > { %v4520_v28 = vpack.c.bf16 %v4358_v45, %v4357_v27  ;;  %14886 = vmatprep.subr.bf16.mxu1 %v17675_v26  ;;  %v15983_v45 = vld [vmem:[%s16808_s12 + $0x7e0] ss:$8 sps:$4 sm:$0xff]  }
 0x4a1   : > { %v3900_v30 = vpop.f32.mrb[120].mxu0 }
 0x4a2   : > { %v3901_v31 = vadd.f32 %v17599_v43, %v3900_v30  ;;  %v3902_v32 = vpop.f32.mrb[121].mxu0  ;;  %14847 = vmatmul.mubr.bf16.gmra.mrb[8].mxu1 %v4520_v28  ;;  %v15988_v30 = vld [vmem:[%s16808_s12 + $0x7f4] ss:$8 sps:$4 sm:$0xff]  }
 0x4a3   : > { %v3903_v35 = vpop.f32.mrb[122].mxu0 }
 0x4a4   : > { %v3904_v37 = vadd.f32 %v17599_v43, %v3903_v35  ;;  %v3905_v38 = vpop.f32.mrb[123].mxu0  ;;  %v4359_v40 = vmax.f32 %v3901_v31, 0.0 }
 0x4a5   : > { %v15994_v38 = vld [vmem:[%s19967_s3 + $0x368] sm:$0xff]  }
 0x4a6   : > { %v4360_v41 = vmax.f32 %v3904_v37, 0.0  ;;  %4115 = vmatmul.mubr.bf16.gmra.mrb[228].mxu0 %v15961_v34  ;;  %v15993_v34 = vld [vmem:[%s19967_s3 + $0x360] sm:$0xff]  }
 0x4a7   : > { %4122 = vmatprep.mubr.bf16.mxu0 %v15968_v36 }
 0x4a8   : > { %v4521_v42 = vpack.c.bf16 %v4360_v41, %v4359_v40 }
 0x4a9   : > { %v3908_v44 = vpop.f32.mrb[124].mxu0 }
 0x4aa   : > { %v3909_v46 = vadd.f32 %v17599_v43, %v3908_v44  ;;  %v3910_v5 = vpop.f32.mrb[125].mxu0  ;;  %14850 = vmatprep.mubr.bf16.mxu1 %v4521_v42  ;;  %v15986_v44 = vld [vmem:[%s16808_s12 + $0x7f0] ss:$8 sps:$4 sm:$0xff]   ;;  %s12797_s12 = sshll.u32 %s20073_s20, 3 }
 0x4ab   : > { %v3911_v47 = vpop.f32.mrb[126].mxu0  ;;  %s1441_s27 = scalar_lea.vmem %s19975_s11, %s12797_s12 }
 0x4ac   : > { %v3912_v49 = vadd.f32 %v17599_v43, %v3911_v47  ;;  %v3913_v50 = vpop.f32.mrb[127].mxu0  ;;  %v4361_v52 = vmax.f32 %v3909_v46, 0.0  ;;  %v15995_v47 = vld [vmem:[%s19967_s3 + $0x370] sm:$0xff]  }
 0x4ae   : > { %v4362_v53 = vmax.f32 %v3912_v49, 0.0  ;;  %4123 = vmatmul.mubr.bf16.gmra.mrb[232].mxu0 %v15966_v29 }
 0x4af   : > { %4130 = vmatprep.mubr.bf16.mxu0 %v15973_v48 }
 0x4b0   : > { %v4522_v54 = vpack.c.bf16 %v4362_v53, %v4361_v52  ;;  %v15996_v52 = vld [vmem:[%s19967_s3 + $0x378] sm:$0xff]  }
 0x4b1   : > { %v3916_v39 = vpop.f32.mrb[128].mxu0 }
 0x4b2   : > { %v3917_v51 = vadd.f32 %v17599_v43, %v3916_v39  ;;  %v3918_v55 = vpop.f32.mrb[129].mxu0  ;;  %14851 = vmatmul.mubr.bf16.gmra.mrb[12].mxu1 %v4522_v54 }
 0x4b3   : > { %v3919_v57 = vpop.f32.mrb[130].mxu0 }
 0x4b4   : > { %v3920_v59 = vadd.f32 %v17599_v43, %v3919_v57  ;;  %v3921_v60 = vpop.f32.mrb[131].mxu0  ;;  %v4363_v61 = vmax.f32 %v3917_v51, 0.0  ;;  %v15997_v57 = vld [vmem:[%s19967_s3 + $0x380] sm:$0xff]  }
 0x4b6   : > { %v4364_v63 = vmax.f32 %v3920_v59, 0.0  ;;  %4131 = vmatmul.mubr.bf16.gmra.mrb[236].mxu0 %v15971_v56 }
 0x4b7   : > { %4138 = vmatprep.mubr.bf16.mxu0 %v15978_v58 }
 0x4b8   : > { %v4523_v0 = vpack.c.bf16 %v4364_v63, %v4363_v61 }
 0x4b9   : > { %v3924_v1 = vpop.f32.mrb[132].mxu0 }
 0x4ba   : > { %v3925_v2 = vadd.f32 %v17599_v43, %v3924_v1  ;;  %v3926_v62 = vpop.f32.mrb[133].mxu0  ;;  %14870 = vmatprep.mubr.bf16.mxu1 %v4523_v0 }
 0x4bb   : > { %v3927_v3 = vpop.f32.mrb[134].mxu0 }
 0x4bc   : > { %v3928_v17 = vadd.f32 %v17599_v43, %v3927_v3  ;;  %v3929_v6 = vpop.f32.mrb[135].mxu0  ;;  %v4365_v7 = vmax.f32 %v3925_v2, 0.0 }
 0x4be   : > { %v4366_v8 = vmax.f32 %v3928_v17, 0.0  ;;  %4139 = vmatmul.mubr.bf16.gmra.mrb[240].mxu0 %v15976_v9 }
 0x4bf   : > { %4146 = vmatprep.mubr.bf16.mxu0 %v15982_v4 }
 0x4c0   : > { %v4524_v10 = vpack.c.bf16 %v4366_v8, %v4365_v7 }
 0x4c1   : > { %v3932_v13 = vpop.f32.mrb[136].mxu0 }
 0x4c2   : > { %v3933_v14 = vadd.f32 %v17599_v43, %v3932_v13  ;;  %v3934_v15 = vpop.f32.mrb[137].mxu0  ;;  %14871 = vmatmul.mubr.bf16.vlgmr.msra.gmra.mrb[0].mxu1 %v4524_v10 }
 0x4c3   : > { %v3935_v33 = vpop.f32.mrb[138].mxu0  ;;  %14887 = vmatpush3.bf16.msra.mxu1 %v17675_v26 }
 0x4c4   : > { %v3936_v18 = vadd.f32 %v17599_v43, %v3935_v33  ;;  %v3937_v19 = vpop.f32.mrb[139].mxu0  ;;  %14888 = vmatprep.subr.bf16.mxu1 %v15990_v12  ;;  %v4367_v21 = vmax.f32 %v3933_v14, 0.0 }
 0x4c6   : > { %v4368_v11 = vmax.f32 %v3936_v18, 0.0  ;;  %4147 = vmatmul.mubr.bf16.gmra.mrb[244].mxu0 %v15980_v22 }
 0x4c7   : > { %4154 = vmatprep.mubr.bf16.mxu0 %v15985_v16  ;;  %14889 = vmatpush3.bf16.msra.mxu1 %v15990_v12 }
 0x4c8   : > { %v4525_v23 = vpack.c.bf16 %v4368_v11, %v4367_v21  ;;  %14890 = vmatprep.subr.bf16.mxu1 %v15991_v20 }
 0x4c9   : > { %v3940_v25 = vpop.f32.mrb[140].mxu0 }
 0x4ca   : > { %v3941_v26 = vadd.f32 %v17599_v43, %v3940_v25  ;;  %v3942_v27 = vpop.f32.mrb[141].mxu0  ;;  %14874 = vmatprep.mubr.bf16.mxu1 %v4525_v23 }
 0x4cb   : > { %v3943_v28 = vpop.f32.mrb[142].mxu0  ;;  %14891 = vmatpush3.bf16.msra.mxu1 %v15991_v20 }
 0x4cc   : > { %v3944_v31 = vadd.f32 %v17599_v43, %v3943_v28  ;;  %v3945_v32 = vpop.f32.mrb[143].mxu0  ;;  %14892 = vmatprep.subr.bf16.mxu1 %v15992_v24  ;;  %v4369_v35 = vmax.f32 %v3941_v26, 0.0 }
 0x4ce   : > { %v4370_v36 = vmax.f32 %v3944_v31, 0.0  ;;  %4155 = vmatmul.mubr.bf16.gmra.mrb[248].mxu0 %v15983_v45 }
 0x4cf   : > { %4162 = vmatprep.mubr.bf16.mxu0 %v15988_v30  ;;  %14893 = vmatpush3.bf16.msra.mxu1 %v15992_v24 }
 0x4d0   : > { %v4526_v37 = vpack.c.bf16 %v4370_v36, %v4369_v35  ;;  %14894 = vmatprep.subr.bf16.mxu1 %v15993_v34 }
 0x4d1   : > { %v3948_v40 = vpop.f32.mrb[144].mxu0 }
 0x4d2   : > { %v3949_v41 = vadd.f32 %v17599_v43, %v3948_v40  ;;  %v3950_v42 = vpop.f32.mrb[145].mxu0  ;;  %14875 = vmatmul.mubr.bf16.gmra.mrb[4].mxu1 %v4526_v37 }
 0x4d3   : > { %v3951_v46 = vpop.f32.mrb[146].mxu0  ;;  %14895 = vmatpush3.bf16.msra.mxu1 %v15993_v34  ;;  %v15998_v34 = vld [vmem:[%s19967_s3 + $0x388] sm:$0xff]   ;;  %v15999_v42 = vld [vmem:[%s19967_s3 + $0x390] sm:$0xff]  }
 0x4d4   : > { %v3952_v5 = vadd.f32 %v17599_v43, %v3951_v46  ;;  %v3953_v29 = vpop.f32.mrb[147].mxu0  ;;  %14896 = vmatprep.subr.bf16.mxu1 %v15994_v38  ;;  %v4371_v48 = vmax.f32 %v3949_v41, 0.0 }
 0x4d5   : > { %v16000_v29 = vld [vmem:[%s19967_s3 + $0x398] sm:$0xff]  }
 0x4d6   : > { %v4372_v49 = vmax.f32 %v3952_v5, 0.0  ;;  %4163 = vmatmul.mubr.bf16.gmra.mrb[252].mxu0 %v15986_v44 }
 0x4d7   : > { %14897 = vmatpush3.bf16.msra.mxu1 %v15994_v38 }
 0x4d8   : > { %v4527_v50 = vpack.c.bf16 %v4372_v49, %v4371_v48  ;;  %14898 = vmatprep.subr.bf16.mxu1 %v15995_v47  ;;  %v10110_v48 = vld [vmem:[%s19971_s7 + $0x30] sm:$0xff] }
 0x4d9   : > { %v3956_v53 = vpop.f32.mrb[148].mxu0 }
 0x4da   : > { %v3957_v54 = vadd.f32 %v17599_v43, %v3956_v53  ;;  %v3958_v39 = vpop.f32.mrb[149].mxu0  ;;  %14878 = vmatprep.mubr.bf16.mxu1 %v4527_v50 }
 0x4db   : > { %v3959_v51 = vpop.f32.mrb[150].mxu0  ;;  %14899 = vmatpush3.bf16.msra.mxu1 %v15995_v47  ;;  %v10106_v47 = vld [vmem:[%s19971_s7 + $0x10] sm:$0xff] }
 0x4dc   : > { %v3960_v55 = vadd.f32 %v17599_v43, %v3959_v51  ;;  %v3961_v56 = vpop.f32.mrb[151].mxu0  ;;  %14900 = vmatprep.subr.bf16.mxu1 %v15996_v52  ;;  %v4373_v58 = vmax.f32 %v3957_v54, 0.0  ;;  %v13715_v50 = vcombine.low %v10106_v47, %v10110_v48 }
 0x4dd   : > { %v16001_v56 = vld [vmem:[%s19967_s3 + $0x3a0] sm:$0xff]  }
 0x4de   : > { %v4374_v59 = vmax.f32 %v3960_v55, 0.0 }
 0x4df   : > { %14901 = vmatpush3.bf16.msra.mxu1 %v15996_v52  ;;  %v13716_v52 = vcombine.high %v10106_v47, %v10110_v48  ;;  %v10126_v47 = vld [vmem:[%s19971_s7 + $0xb0] sm:$0xff] }
 0x4e0   : > { %v4528_v60 = vpack.c.bf16 %v4374_v59, %v4373_v58  ;;  %14918 = vmatprep.subr.bf16.mxu1 %v15997_v57 }
 0x4e1   : > { %v3964_v61 = vpop.f32.mrb[152].mxu0  ;;  %11868 = vmatprep.subr.bf16.mxu0 %v13716_v52  ;;  %v10130_v52 = vld [vmem:[%s19971_s7 + $0xd0] sm:$0xff] }
 0x4e2   : > { %v3965_v63 = vadd.f32 %v17599_v43, %v3964_v61  ;;  %v3966_v0 = vpop.f32.mrb[153].mxu0  ;;  %14879 = vmatmul.mubr.bf16.gmra.mrb[8].mxu1 %v4528_v60  ;;  %11869 = vmatpush1.bf16.msra.mxu0 %v13715_v50  ;;  %v16002_v60 = vld [vmem:[%s19967_s3 + $0x3a8] sm:$0xff]  }
 0x4e3   : > { %v3967_v1 = vpop.f32.mrb[154].mxu0 }
 0x4e4   : > { %v3968_v2 = vadd.f32 %v17599_v43, %v3967_v1  ;;  %v3969_v62 = vpop.f32.mrb[155].mxu0  ;;  %v4375_v9 = vmax.f32 %v3965_v63, 0.0 }
 0x4e6   : > { %v4376_v3 = vmax.f32 %v3968_v2, 0.0 }
 0x4e8   : > { %v4529_v4 = vpack.c.bf16 %v4376_v3, %v4375_v9  ;;  %v16003_v9 = vld [vmem:[%s19967_s3 + $0x3b0] sm:$0xff]  }
 0x4e9   : > { %v3972_v17 = vpop.f32.mrb[156].mxu0 }
 0x4ea   : > { %v3973_v6 = vadd.f32 %v17599_v43, %v3972_v17  ;;  %v3974_v7 = vpop.f32.mrb[157].mxu0  ;;  %14882 = vmatprep.mubr.bf16.mxu1 %v4529_v4 }
 0x4eb   : > { %v3975_v8 = vpop.f32.mrb[158].mxu0 }
 0x4ec   : > { %v3976_v10 = vadd.f32 %v17599_v43, %v3975_v8  ;;  %v3977_v12 = vpop.f32.mrb[159].mxu0  ;;  %v4377_v13 = vmax.f32 %v3973_v6, 0.0  ;;  %v16004_v6 = vld [vmem:[%s19967_s3 + $0x3b8] sm:$0xff]  }
 0x4ee   : > { %v4378_v14 = vmax.f32 %v3976_v10, 0.0 }
 0x4f0   : > { %v4530_v15 = vpack.c.bf16 %v4378_v14, %v4377_v13 }
 0x4f1   : > { %v3980_v22 = vpop.f32.mrb[160].mxu0 }
 0x4f2   : > { %v3981_v33 = vadd.f32 %v17599_v43, %v3980_v22  ;;  %v3982_v16 = vpop.f32.mrb[161].mxu0  ;;  %14883 = vmatmul.mubr.bf16.gmra.mrb[12].mxu1 %v4530_v15  ;;  %v17778_v15 = vld [vmem:[%s19967_s3 + $0x3c0] sm:$0xff]  }
 0x4f3   : > { %v3983_v18 = vpop.f32.mrb[162].mxu0 }
 0x4f4   : > { %v3984_v19 = vadd.f32 %v17599_v43, %v3983_v18  ;;  %v3985_v20 = vpop.f32.mrb[163].mxu0  ;;  %v4379_v21 = vmax.f32 %v3981_v33, 0.0 }
 0x4f6   : > { %v4380_v11 = vmax.f32 %v3984_v19, 0.0 }
 0x4f8   : > { %v4531_v23 = vpack.c.bf16 %v4380_v11, %v4379_v21 }
 0x4f9   : > { %v3988_v24 = vpop.f32.mrb[164].mxu0 }
 0x4fa   : > { %v3989_v25 = vadd.f32 %v17599_v43, %v3988_v24  ;;  %v3990_v26 = vpop.f32.mrb[165].mxu0  ;;  %14902 = vmatprep.mubr.bf16.mxu1 %v4531_v23 }
 0x4fb   : > { %v3991_v27 = vpop.f32.mrb[166].mxu0 }
 0x4fc   : > { %v3992_v45 = vadd.f32 %v17599_v43, %v3991_v27  ;;  %v3993_v28 = vpop.f32.mrb[167].mxu0  ;;  %v4381_v30 = vmax.f32 %v3989_v25, 0.0 }
 0x4fe   : > { %v4382_v31 = vmax.f32 %v3992_v45, 0.0 }
 0x500   : > { %v4532_v32 = vpack.c.bf16 %v4382_v31, %v4381_v30 }
 0x501   : > { %v3996_v35 = vpop.f32.mrb[168].mxu0 }
 0x502   : > { %v3997_v36 = vadd.f32 %v17599_v43, %v3996_v35  ;;  %v3998_v37 = vpop.f32.mrb[169].mxu0  ;;  %14903 = vmatmul.mubr.bf16.vlgmr.msra.gmra.mrb[0].mxu1 %v4532_v32 }
 0x503   : > { %v3999_v38 = vpop.f32.mrb[170].mxu0  ;;  %14919 = vmatpush3.bf16.msra.mxu1 %v15997_v57 }
 0x504   : > { %v4000_v40 = vadd.f32 %v17599_v43, %v3999_v38  ;;  %v4001_v41 = vpop.f32.mrb[171].mxu0  ;;  %14920 = vmatprep.subr.bf16.mxu1 %v15998_v34  ;;  %v4383_v44 = vmax.f32 %v3997_v36, 0.0 }
 0x505   : > { %v10114_v41 = vld [vmem:[%s19971_s7 + $0x50] sm:$0xff] }
 0x506   : > { %v4384_v46 = vmax.f32 %v4000_v40, 0.0 }
 0x507   : > { %14921 = vmatpush3.bf16.msra.mxu1 %v15998_v34 }
 0x508   : > { %v4533_v5 = vpack.c.bf16 %v4384_v46, %v4383_v44  ;;  %14922 = vmatprep.subr.bf16.mxu1 %v15999_v42  ;;  %v10122_v44 = vld [vmem:[%s19971_s7 + $0x90] sm:$0xff] }
 0x509   : > { %v4004_v49 = vpop.f32.mrb[172].mxu0  ;;  %v13732_v50 = vcombine.high %v10122_v44, %v10126_v47 }
 0x50a   : > { %v4005_v53 = vadd.f32 %v17599_v43, %v4004_v49  ;;  %v4006_v54 = vpop.f32.mrb[173].mxu0  ;;  %14906 = vmatprep.mubr.bf16.mxu1 %v4533_v5 }
 0x50b   : > { %v4007_v39 = vpop.f32.mrb[174].mxu0  ;;  %14923 = vmatpush3.bf16.msra.mxu1 %v15999_v42  ;;  %v10118_v42 = vld [vmem:[%s19971_s7 + $0x70] sm:$0xff] }
 0x50c   : > { %v4008_v51 = vadd.f32 %v17599_v43, %v4007_v39  ;;  %v4009_v55 = vpop.f32.mrb[175].mxu0  ;;  %14924 = vmatprep.subr.bf16.mxu1 %v16000_v29  ;;  %v4385_v57 = vmax.f32 %v4005_v53, 0.0  ;;  %v13723_v5 = vcombine.low %v10114_v41, %v10118_v42  ;;  %v10134_v53 = vld [vmem:[%s19971_s7 + $0xf0] sm:$0xff] }
 0x50d   : > { %v13740_v55 = vcombine.high %v10130_v52, %v10134_v53 }
 0x50e   : > { %v4386_v58 = vmax.f32 %v4008_v51, 0.0  ;;  %v13731_v51 = vcombine.low %v10122_v44, %v10126_v47 }
 0x50f   : > { %14925 = vmatpush3.bf16.msra.mxu1 %v16000_v29  ;;  %v13724_v29 = vcombine.high %v10114_v41, %v10118_v42 }
 0x510   : > { %v4534_v59 = vpack.c.bf16 %v4386_v58, %v4385_v57  ;;  %14926 = vmatprep.subr.bf16.mxu1 %v16001_v56 }
 0x511   : > { %v4012_v61 = vpop.f32.mrb[176].mxu0  ;;  %11870 = vmatprep.subr.bf16.mxu0 %v13724_v29 }
 0x512   : > { %v4013_v63 = vadd.f32 %v17599_v43, %v4012_v61  ;;  %v4014_v0 = vpop.f32.mrb[177].mxu0  ;;  %14907 = vmatmul.mubr.bf16.gmra.mrb[4].mxu1 %v4534_v59  ;;  %11871 = vmatpush1.bf16.msra.mxu0 %v13723_v5 }
 0x513   : > { %v4015_v1 = vpop.f32.mrb[178].mxu0  ;;  %14927 = vmatpush3.bf16.msra.mxu1 %v16001_v56  ;;  %11872 = vmatprep.subr.bf16.mxu0 %v13732_v50 }
 0x514   : > { %v4016_v2 = vadd.f32 %v17599_v43, %v4015_v1  ;;  %v4017_v62 = vpop.f32.mrb[179].mxu0  ;;  %14928 = vmatprep.subr.bf16.mxu1 %v16002_v60  ;;  %v4387_v3 = vmax.f32 %v4013_v63, 0.0 }
 0x516   : > { %v4388_v4 = vmax.f32 %v4016_v2, 0.0  ;;  %11873 = vmatpush1.bf16.msra.mxu0 %v13731_v51 }
 0x517   : > { %14929 = vmatpush3.bf16.msra.mxu1 %v16002_v60  ;;  %v13739_v60 = vcombine.low %v10130_v52, %v10134_v53  ;;  %11874 = vmatprep.subr.bf16.mxu0 %v13740_v55 }
 0x518   : > { %v4535_v17 = vpack.c.bf16 %v4388_v4, %v4387_v3  ;;  %14930 = vmatprep.subr.bf16.mxu1 %v16003_v9 }
 0x519   : > { %v4020_v7 = vpop.f32.mrb[180].mxu0 }
 0x51a   : > { %v4021_v8 = vadd.f32 %v17599_v43, %v4020_v7  ;;  %v4022_v10 = vpop.f32.mrb[181].mxu0  ;;  %14910 = vmatprep.mubr.bf16.mxu1 %v4535_v17  ;;  %11875 = vmatpush1.bf16.msra.mxu0 %v13739_v60 }
 0x51b   : > { %v4023_v12 = vpop.f32.mrb[182].mxu0  ;;  %14931 = vmatpush3.bf16.msra.mxu1 %v16003_v9  ;;  %v16006_v9 = vld [vmem:[%s19967_s3 + $0x3c8] sm:$0xff]   ;;  %v16007_v10 = vld [vmem:[%s19967_s3 + $0x3d0] sm:$0xff]  }
 0x51c   : > { %v4024_v13 = vadd.f32 %v17599_v43, %v4023_v12  ;;  %v4025_v14 = vpop.f32.mrb[183].mxu0  ;;  %14932 = vmatprep.subr.bf16.mxu1 %v16004_v6  ;;  %v4389_v22 = vmax.f32 %v4021_v8, 0.0 }
 0x51e   : > { %v4390_v33 = vmax.f32 %v4024_v13, 0.0 }
 0x51f   : > { %14933 = vmatpush3.bf16.msra.mxu1 %v16004_v6 }
 0x520   : > { %v4536_v16 = vpack.c.bf16 %v4390_v33, %v4389_v22  ;;  %14950 = vmatprep.subr.bf16.mxu1 %v17778_v15  ;;  %v16008_v22 = vld [vmem:[%s19967_s3 + $0x3d8] sm:$0xff]  }
 0x521   : > { %v4028_v18 = vpop.f32.mrb[184].mxu0 }
 0x522   : > { %v4029_v19 = vadd.f32 %v17599_v43, %v4028_v18  ;;  %v4030_v20 = vpop.f32.mrb[185].mxu0  ;;  %14911 = vmatmul.mubr.bf16.gmra.mrb[8].mxu1 %v4536_v16 }
 0x523   : > { %v4031_v21 = vpop.f32.mrb[186].mxu0 }
 0x524   : > { %v4032_v11 = vadd.f32 %v17599_v43, %v4031_v21  ;;  %v4033_v23 = vpop.f32.mrb[187].mxu0  ;;  %v4391_v24 = vmax.f32 %v4029_v19, 0.0  ;;  %v16009_v21 = vld [vmem:[%s19967_s3 + $0x3e0] sm:$0xff]  }
 0x526   : > { %v4392_v25 = vmax.f32 %v4032_v11, 0.0 }
 0x528   : > { %v4537_v26 = vpack.c.bf16 %v4392_v25, %v4391_v24  ;;  %v16010_v25 = vld [vmem:[%s19967_s3 + $0x3e8] sm:$0xff]  }
 0x529   : > { %v4036_v27 = vpop.f32.mrb[188].mxu0 }
 0x52a   : > { %v4037_v45 = vadd.f32 %v17599_v43, %v4036_v27  ;;  %v4038_v28 = vpop.f32.mrb[189].mxu0  ;;  %14914 = vmatprep.mubr.bf16.mxu1 %v4537_v26 }
 0x52b   : > { %v4039_v30 = vpop.f32.mrb[190].mxu0 }
 0x52c   : > { %v4040_v31 = vadd.f32 %v17599_v43, %v4039_v30  ;;  %v4041_v32 = vpop.f32.mrb[191].mxu0  ;;  %v4393_v34 = vmax.f32 %v4037_v45, 0.0 }
 0x52d   : > { %v16011_v32 = vld [vmem:[%s19967_s3 + $0x3f0] sm:$0xff]  }
 0x52e   : > { %v4394_v35 = vmax.f32 %v4040_v31, 0.0 }
 0x530   : > { %v4538_v36 = vpack.c.bf16 %v4394_v35, %v4393_v34 }
 0x531   : > { %v4044_v37 = vpop.f32.mrb[192].mxu0 }
 0x532   : > { %v4045_v38 = vadd.f32 %v17599_v43, %v4044_v37  ;;  %v4046_v40 = vpop.f32.mrb[193].mxu0  ;;  %14915 = vmatmul.mubr.bf16.gmra.mrb[12].mxu1 %v4538_v36  ;;  %v16012_v37 = vld [vmem:[%s19967_s3 + $0x3f8] sm:$0xff]  }
 0x533   : > { %v4047_v46 = vpop.f32.mrb[194].mxu0 }
 0x534   : > { %v4048_v48 = vadd.f32 %v17599_v43, %v4047_v46  ;;  %v4049_v49 = vpop.f32.mrb[195].mxu0  ;;  %v4395_v54 = vmax.f32 %v4045_v38, 0.0 }
 0x536   : > { %v4396_v39 = vmax.f32 %v4048_v48, 0.0 }
 0x538   : > { %v4539_v56 = vpack.c.bf16 %v4396_v39, %v4395_v54 }
 0x539   : > { %v4052_v57 = vpop.f32.mrb[196].mxu0 }
 0x53a   : > { %v4053_v58 = vadd.f32 %v17599_v43, %v4052_v57  ;;  %v4054_v59 = vpop.f32.mrb[197].mxu0  ;;  %14934 = vmatprep.mubr.bf16.mxu1 %v4539_v56 }
 0x53b   : > { %v4055_v61 = vpop.f32.mrb[198].mxu0 }
 0x53c   : > { %v4056_v63 = vadd.f32 %v17599_v43, %v4055_v61  ;;  %v4057_v0 = vpop.f32.mrb[199].mxu0  ;;  %v4397_v1 = vmax.f32 %v4053_v58, 0.0 }
 0x53e   : > { %v4398_v2 = vmax.f32 %v4056_v63, 0.0 }
 0x540   : > { %v4540_v62 = vpack.c.bf16 %v4398_v2, %v4397_v1 }
 0x541   : > { %v4060_v3 = vpop.f32.mrb[200].mxu0 }
 0x542   : > { %v4061_v4 = vadd.f32 %v17599_v43, %v4060_v3  ;;  %v4062_v17 = vpop.f32.mrb[201].mxu0  ;;  %14935 = vmatmul.mubr.bf16.vlgmr.msra.gmra.mrb[0].mxu1 %v4540_v62 }
 0x543   : > { %v4063_v6 = vpop.f32.mrb[202].mxu0  ;;  %14951 = vmatpush3.bf16.msra.mxu1 %v17778_v15 }
 0x544   : > { %v4064_v7 = vadd.f32 %v17599_v43, %v4063_v6  ;;  %v4065_v8 = vpop.f32.mrb[203].mxu0  ;;  %14952 = vmatprep.subr.bf16.mxu1 %v16006_v9  ;;  %v4399_v12 = vmax.f32 %v4061_v4, 0.0 }
 0x546   : > { %v4400_v13 = vmax.f32 %v4064_v7, 0.0 }
 0x547   : > { %14953 = vmatpush3.bf16.msra.mxu1 %v16006_v9 }
 0x548   : > { %v4541_v14 = vpack.c.bf16 %v4400_v13, %v4399_v12  ;;  %14954 = vmatprep.subr.bf16.mxu1 %v16007_v10 }
 0x549   : > { %v4068_v33 = vpop.f32.mrb[204].mxu0 }
 0x54a   : > { %v4069_v15 = vadd.f32 %v17599_v43, %v4068_v33  ;;  %v4070_v16 = vpop.f32.mrb[205].mxu0  ;;  %14938 = vmatprep.mubr.bf16.mxu1 %v4541_v14 }
 0x54b   : > { %v4071_v18 = vpop.f32.mrb[206].mxu0  ;;  %14955 = vmatpush3.bf16.msra.mxu1 %v16007_v10 }
 0x54c   : > { %v4072_v19 = vadd.f32 %v17599_v43, %v4071_v18  ;;  %v4073_v20 = vpop.f32.mrb[207].mxu0  ;;  %14956 = vmatprep.subr.bf16.mxu1 %v16008_v22  ;;  %v4401_v11 = vmax.f32 %v4069_v15, 0.0 }
 0x54e   : > { %v4402_v23 = vmax.f32 %v4072_v19, 0.0 }
 0x54f   : > { %14957 = vmatpush3.bf16.msra.mxu1 %v16008_v22 }
 0x550   : > { %v4542_v24 = vpack.c.bf16 %v4402_v23, %v4401_v11  ;;  %14958 = vmatprep.subr.bf16.mxu1 %v16009_v21 }
 0x551   : > { %v4076_v26 = vpop.f32.mrb[208].mxu0 }
 0x552   : > { %v4077_v27 = vadd.f32 %v17599_v43, %v4076_v26  ;;  %v4078_v45 = vpop.f32.mrb[209].mxu0  ;;  %14939 = vmatmul.mubr.bf16.gmra.mrb[4].mxu1 %v4542_v24 }
 0x553   : > { %v4079_v28 = vpop.f32.mrb[210].mxu0  ;;  %14959 = vmatpush3.bf16.msra.mxu1 %v16009_v21 }
 0x554   : > { %v4080_v30 = vadd.f32 %v17599_v43, %v4079_v28  ;;  %v4081_v31 = vpop.f32.mrb[211].mxu0  ;;  %14960 = vmatprep.subr.bf16.mxu1 %v16010_v25  ;;  %v4403_v34 = vmax.f32 %v4077_v27, 0.0  ;;  %v17838_v43 = vld [vmem:[%s19966_s2] ss:$0 sm:$0xff] }
 0x556   : > { %v4404_v35 = vmax.f32 %v4080_v30, 0.0 }
 0x557   : > { %14961 = vmatpush3.bf16.msra.mxu1 %v16010_v25 }
 0x558   : > { %v4543_v36 = vpack.c.bf16 %v4404_v35, %v4403_v34  ;;  %14962 = vmatprep.subr.bf16.mxu1 %v16011_v32 }
 0x559   : > { %v4084_v38 = vpop.f32.mrb[212].mxu0 }
 0x55a   : > { %v4085_v40 = vadd.f32 %v17838_v43, %v4084_v38  ;;  %v4086_v41 = vpop.f32.mrb[213].mxu0  ;;  %14942 = vmatprep.mubr.bf16.mxu1 %v4543_v36 }
 0x55b   : > { %v4087_v42 = vpop.f32.mrb[214].mxu0  ;;  %14963 = vmatpush3.bf16.msra.mxu1 %v16011_v32 }
 0x55c   : > { %v4088_v44 = vadd.f32 %v17838_v43, %v4087_v42  ;;  %v4089_v46 = vpop.f32.mrb[215].mxu0  ;;  %14964 = vmatprep.subr.bf16.mxu1 %v16012_v37  ;;  %v4405_v5 = vmax.f32 %v4085_v40, 0.0 }
 0x55e   : > { %v4406_v29 = vmax.f32 %v4088_v44, 0.0 }
 0x55f   : > { %14965 = vmatpush3.bf16.msra.mxu1 %v16012_v37 }
 0x560   : > { %v4544_v47 = vpack.c.bf16 %v4406_v29, %v4405_v5 }
 0x561   : > { %v4092_v48 = vpop.f32.mrb[216].mxu0 }
 0x562   : > { %v4093_v49 = vadd.f32 %v17838_v43, %v4092_v48  ;;  %v4094_v50 = vpop.f32.mrb[217].mxu0  ;;  %14943 = vmatmul.mubr.bf16.gmra.mrb[8].mxu1 %v4544_v47 }
 0x563   : > { %v4095_v52 = vpop.f32.mrb[218].mxu0 }
 0x564   : > { %v4096_v53 = vadd.f32 %v17838_v43, %v4095_v52  ;;  %v4097_v54 = vpop.f32.mrb[219].mxu0  ;;  %v4407_v39 = vmax.f32 %v4093_v49, 0.0 }
 0x566   : > { %v4408_v51 = vmax.f32 %v4096_v53, 0.0 }
 0x568   : > { %v4545_v55 = vpack.c.bf16 %v4408_v51, %v4407_v39 }
 0x569   : > { %v4100_v56 = vpop.f32.mrb[220].mxu0 }
 0x56a   : > { %v4101_v57 = vadd.f32 %v17838_v43, %v4100_v56  ;;  %v4102_v58 = vpop.f32.mrb[221].mxu0  ;;  %14946 = vmatprep.mubr.bf16.mxu1 %v4545_v55 }
 0x56b   : > { %v4103_v59 = vpop.f32.mrb[222].mxu0 }
 0x56c   : > { %v4104_v60 = vadd.f32 %v17838_v43, %v4103_v59  ;;  %v4105_v61 = vpop.f32.mrb[223].mxu0  ;;  %v4409_v63 = vmax.f32 %v4101_v57, 0.0 }
 0x56e   : > { %v4410_v0 = vmax.f32 %v4104_v60, 0.0 }
 0x570   : > { %v4546_v1 = vpack.c.bf16 %v4410_v0, %v4409_v63 }
 0x571   : > { %v4108_v2 = vpop.f32.mrb[224].mxu0 }
 0x572   : > { %v4109_v62 = vadd.f32 %v17838_v43, %v4108_v2  ;;  %v4110_v9 = vpop.f32.mrb[225].mxu0  ;;  %14947 = vmatmul.mubr.bf16.gmra.mrb[12].mxu1 %v4546_v1 }
 0x573   : > { %v4111_v3 = vpop.f32.mrb[226].mxu0 }
 0x574   : > { %v4112_v4 = vadd.f32 %v17838_v43, %v4111_v3  ;;  %v4113_v17 = vpop.f32.mrb[227].mxu0  ;;  %v4411_v6 = vmax.f32 %v4109_v62, 0.0 }
 0x576   : > { %v4412_v7 = vmax.f32 %v4112_v4, 0.0 }
 0x578   : > { %v4547_v8 = vpack.c.bf16 %v4412_v7, %v4411_v6 }
 0x579   : > { %v4116_v10 = vpop.f32.mrb[228].mxu0 }
 0x57a   : > { %v4117_v12 = vadd.f32 %v17838_v43, %v4116_v10  ;;  %v4118_v13 = vpop.f32.mrb[229].mxu0  ;;  %14966 = vmatprep.mubr.bf16.mxu1 %v4547_v8  ;;  %v16013_v10 = vld [vmem:[%s19969_s5 + $0x40] sm:$0xff]  }
 0x57b   : > { %v4119_v14 = vpop.f32.mrb[230].mxu0  ;;  %14982 = vmatprep.subr.bf16.mxu1 %v16013_v10  ;;  %v16016_v13 = vld [vmem:[%s19969_s5 + $0x58] sm:$0xff]  }
 0x57c   : > { %v4120_v22 = vadd.f32 %v17838_v43, %v4119_v14  ;;  %v4121_v33 = vpop.f32.mrb[231].mxu0  ;;  %v4413_v15 = vmax.f32 %v4117_v12, 0.0  ;;  %v16014_v12 = vld [vmem:[%s19969_s5 + $0x48] sm:$0xff]   ;;  %v16017_v14 = vld [vmem:[%s19969_s5 + $0x60] sm:$0xff]  }
 0x57d   : > { %v10138_v33 = vld [vmem:[%s19971_s7 + $0x110] sm:$0xff] }
 0x57e   : > { %v4414_v16 = vmax.f32 %v4120_v22, 0.0  ;;  %v16018_v22 = vld [vmem:[%s19969_s5 + $0x68] sm:$0xff]  }
 0x580   : > { %v4548_v18 = vpack.c.bf16 %v4414_v16, %v4413_v15  ;;  %v10142_v15 = vld [vmem:[%s19971_s7 + $0x130] sm:$0xff] }
 0x581   : > { %v4124_v19 = vpop.f32.mrb[232].mxu0  ;;  %v16019_v16 = vld [vmem:[%s19969_s5 + $0x70] sm:$0xff]  }
 0x582   : > { %v4125_v20 = vadd.f32 %v17838_v43, %v4124_v19  ;;  %v4126_v21 = vpop.f32.mrb[233].mxu0  ;;  %14967 = vmatmul.mubr.bf16.vlgmr.msra.gmra.mrb[0].mxu1 %v4548_v18  ;;  %v13747_v18 = vcombine.low %v10138_v33, %v10142_v15  ;;  %v13748_v19 = vcombine.high %v10138_v33, %v10142_v15 }
 0x583   : > { %v4127_v11 = vpop.f32.mrb[234].mxu0  ;;  %14983 = vmatpush3.bf16.msra.mxu1 %v16013_v10  ;;  %v17895_v21 = vld [vmem:[%s19969_s5] sm:$0xff]  }
 0x584   : > { %v4128_v23 = vadd.f32 %v17838_v43, %v4127_v11  ;;  %v4129_v24 = vpop.f32.mrb[235].mxu0  ;;  %v4415_v25 = vmax.f32 %v4125_v20, 0.0  ;;  %14984 = vmatprep.subr.bf16.mxu1 %v16014_v12  ;;  %v16020_v20 = vld [vmem:[%s19969_s5 + $0x78] sm:$0xff]   ;;  %11876 = vmatprep.subr.bf16.mxu0 %v13748_v19  ;;  %v10146_v11 = vld [vmem:[%s19971_s7 + $0x150] sm:$0xff] }
 0x585   : > { %11877 = vmatpush1.bf16.msra.mxu0 %v13747_v18 }
 0x586   : > { %v4416_v26 = vmax.f32 %v4128_v23, 0.0  ;;  %v10150_v23 = vld [vmem:[%s19971_s7 + $0x170] sm:$0xff] }
 0x587   : > { %14985 = vmatpush3.bf16.msra.mxu1 %v16014_v12  ;;  %v13755_v24 = vcombine.low %v10146_v11, %v10150_v23 }
 0x588   : > { %v4549_v27 = vpack.c.bf16 %v4416_v26, %v4415_v25  ;;  %v13756_v25 = vcombine.high %v10146_v11, %v10150_v23  ;;  %v16178_v26 = vmov 1983009808  }
 0x589   : > { %v4132_v45 = vpop.f32.mrb[236].mxu0 }
 0x58a   : > { %v4133_v28 = vadd.f32 %v17838_v43, %v4132_v45  ;;  %v4134_v30 = vpop.f32.mrb[237].mxu0  ;;  %14970 = vmatprep.mubr.bf16.mxu1 %v4549_v27  ;;  %v7427_v27 = vunpack.c.l.s4 %v16178_v26  ;;  %v7429_v45 = vlaneseq  ;;  %11878 = vmatprep.subr.bf16.mxu0 %v13756_v25 }
 0x58b   : > { %v4135_v31 = vpop.f32.mrb[238].mxu0  ;;  %11879 = vmatpush1.bf16.msra.mxu0 %v13755_v24  ;;  %v16179_v30 = vmov 1966171168  }
 0x58c   : > { %v4136_v32 = vadd.f32 %v17838_v43, %v4135_v31  ;;  %v4137_v34 = vpop.f32.mrb[239].mxu0  ;;  %v4417_v35 = vmax.f32 %v4133_v28, 0.0  ;;  %v17907_v28 = vld [vmem:[%s19968_s4] ss:$0 sm:$0xff]  ;;  %v7578_v31 = vunpack.c.l.s4 %v16179_v30 }
 0x58e   : > { %v4418_v36 = vmax.f32 %v4136_v32, 0.0 }
 0x590   : > { %v4550_v37 = vpack.c.bf16 %v4418_v36, %v4417_v35  ;;  %v7428_v36 = vunpack.c.0.s8 %v7427_v27 }
 0x591   : > { %v4140_v38 = vpop.f32.mrb[240].mxu0 }
 0x592   : > { %v4141_v40 = vadd.f32 %v17838_v43, %v4140_v38  ;;  %v4142_v41 = vpop.f32.mrb[241].mxu0  ;;  %14971 = vmatmul.mubr.bf16.gmra.mrb[4].mxu1 %v4550_v37  ;;  %v17910_v37 = vshrl.u32 %v7429_v45, 7 }
 0x593   : > { %v4143_v42 = vpop.f32.mrb[242].mxu0 }
 0x594   : > { %v4144_v44 = vadd.f32 %v17838_v43, %v4143_v42  ;;  %v4145_v46 = vpop.f32.mrb[243].mxu0  ;;  %v4419_v5 = vmax.f32 %v4141_v40, 0.0  ;;  %20001 = vst [vmem:[#allocation3_spill] sm:$0xff] %v17910_v37  ;;  %v7579_v42 = vunpack.c.0.s8 %v7578_v31 }
 0x596   : > { %v4420_v29 = vmax.f32 %v4144_v44, 0.0 }
 0x598   : > { %v4551_v47 = vpack.c.bf16 %v4420_v29, %v4419_v5 }
 0x599   : > { %v4148_v48 = vpop.f32.mrb[244].mxu0 }
 0x59a   : > { %v4149_v49 = vadd.f32 %v17838_v43, %v4148_v48  ;;  %v4150_v50 = vpop.f32.mrb[245].mxu0  ;;  %14974 = vmatprep.mubr.bf16.mxu1 %v4551_v47  ;;  %v17918_v47 = vsub.s32 %v7428_v36, %v17910_v37 }
 0x59b   : > { %v4151_v52 = vpop.f32.mrb[246].mxu0 }
 0x59c   : > { %v4152_v53 = vadd.f32 %v17838_v43, %v4151_v52  ;;  %v4153_v54 = vpop.f32.mrb[247].mxu0  ;;  %v4421_v39 = vmax.f32 %v4149_v49, 0.0  ;;  %20002 = vst [vmem:[#allocation4_spill] sm:$0xff] %v17918_v47  ;;  %v17924_v52 = vsub.s32 %v7579_v42, %v17910_v37 }
 0x59e   : > { %v4422_v51 = vmax.f32 %v4152_v53, 0.0 }
 0x5a0   : > { %v4552_v55 = vpack.c.bf16 %v4422_v51, %v4421_v39 }
 0x5a1   : > { %v4156_v56 = vpop.f32.mrb[248].mxu0 }
 0x5a2   : > { %v4157_v57 = vadd.f32 %v17838_v43, %v4156_v56  ;;  %v4158_v58 = vpop.f32.mrb[249].mxu0  ;;  %14975 = vmatmul.mubr.bf16.gmra.mrb[8].mxu1 %v4552_v55 }
 0x5a3   : > { %v4159_v59 = vpop.f32.mrb[250].mxu0 }
 0x5a4   : > { %v4160_v60 = vadd.f32 %v17838_v43, %v4159_v59  ;;  %v4161_v61 = vpop.f32.mrb[251].mxu0  ;;  %v4423_v63 = vmax.f32 %v4157_v57, 0.0 }
 0x5a6   : > { %v4424_v0 = vmax.f32 %v4160_v60, 0.0 }
 0x5a8   : > { %v4553_v1 = vpack.c.bf16 %v4424_v0, %v4423_v63 }
 0x5a9   : > { %v4164_v2 = vpop.f32.mrb[252].mxu0 }
 0x5aa   : > { %v4165_v62 = vadd.f32 %v17838_v43, %v4164_v2  ;;  %v4166_v9 = vpop.f32.mrb[253].mxu0  ;;  %14978 = vmatprep.mubr.bf16.mxu1 %v4553_v1 }
 0x5ab   : > { %v4167_v3 = vpop.f32.mrb[254].mxu0 }
 0x5ac   : > { %v4168_v4 = vadd.f32 %v17838_v43, %v4167_v3  ;;  %v4169_v17 = vpop.f32.mrb[255].mxu0  ;;  %v4425_v6 = vmax.f32 %v4165_v62, 0.0  ;;  %v16015_v43 = vld [vmem:[%s19969_s5 + $0x50] sm:$0xff]  }
 0x5ad   : > { %14986 = vmatprep.subr.bf16.mxu1 %v16015_v43 }
 0x5ae   : > { %v4426_v7 = vmax.f32 %v4168_v4, 0.0  ;;  %14987 = vmatpush3.bf16.msra.mxu1 %v16015_v43 }
 0x5af   : > { %14988 = vmatprep.subr.bf16.mxu1 %v16016_v13 }
 0x5b0   : > { %v4554_v8 = vpack.c.bf16 %v4426_v7, %v4425_v6 }
 0x5b2   : > { %14979 = vmatmul.mubr.bf16.gmra.mrb[12].mxu1 %v4554_v8 }
 0x5b3   : > { %14989 = vmatpush3.bf16.msra.mxu1 %v16016_v13 }
 0x5b4   : > { %14990 = vmatprep.subr.bf16.mxu1 %v16017_v14 }
 0x5b7   : > { %14991 = vmatpush3.bf16.msra.mxu1 %v16017_v14 }
 0x5b8   : > { %14992 = vmatprep.subr.bf16.mxu1 %v16018_v22 }
 0x5bb   : > { %14993 = vmatpush3.bf16.msra.mxu1 %v16018_v22 }
 0x5bc   : > { %14994 = vmatprep.subr.bf16.mxu1 %v16019_v16 }
 0x5bf   : > { %14995 = vmatpush3.bf16.msra.mxu1 %v16019_v16 }
 0x5c0   : > { %14996 = vmatprep.subr.bf16.mxu1 %v16020_v20 }
 0x5c3   : > { %14997 = vmatpush3.bf16.msra.mxu1 %v16020_v20 }
 0x5c4   : > { %15002 = vmatprep.subr.bf16.mxu1 %v17895_v21 }
 0x655   : > { %v14968_v32 = vpop.f32.mrb[0].mxu1 }
 0x656   : > { %v7379_v34 = vadd.f32 %v14968_v32, %v17907_v28  ;;  %v7291_v35 = vpop.f32.mrb[1].mxu1 }
 0x657   : > { %v7377_v38 = vadd.f32 %v17907_v28, %v7291_v35  ;;  %v14969_v40 = vpop.f32.mrb[2].mxu1 }
 0x658   : > { %v7380_v41 = vadd.f32 %v14969_v40, %v17907_v28  ;;  %v7294_v44 = vpop.f32.mrb[3].mxu1  ;;  %v7395_v5 = vmax.f32 %v7379_v34, 0.0 }
 0x659   : > { %v7378_v46 = vadd.f32 %v17907_v28, %v7294_v44  ;;  %v7393_v48 = vmax.f32 %v7377_v38, 0.0 }
 0x65a   : > { %v17915_v29 = vmax.f32 %v7380_v41, 0.0 }
 0x65b   : > { %v17920_v49 = vmax.f32 %v7378_v46, 0.0 }
 0x65c   : > { %v7410_v50 = vpack.c.bf16 %v17915_v29, %v7395_v5  ;;  %v13441_v58 = vpack.c.bf16 %v17915_v29, %v17915_v29 }
 0x65d   : > { %v7409_v53 = vpack.c.bf16 %v17920_v49, %v7393_v48  ;;  %v13440_v63 = vpack.c.bf16 %v17920_v49, %v17920_v49 }
 0x65e   : > { %v7449_v54 = vrot.slane %v7410_v50, %v17918_v47  ;;  %v18009_v49 = vrot.slane %v13441_v58, %v17918_v47 }
 0x65f   : > { %v7432_v39 = vrot.slane %v7409_v53, %v17918_v47  ;;  %v18012_v50 = vrot.slane %v13440_v63, %v17918_v47 }
 0x660   : > { %v17929_v51 = vcombine.high %v7449_v54, %v7449_v54  ;;  %v7599_v55 = vrot.slane %v7449_v54, %v17924_v52  ;;  %20007 = vst [vmem:[#allocation7_spill] sm:$0xff] %v18009_v49  ;;  %v18029_v63 = vcombine.high %v18009_v49, %v18009_v49 }
 0x661   : > { %v17932_v56 = vcombine.high %v7432_v39, %v7432_v39  ;;  %v7583_v57 = vrot.slane %v7432_v39, %v17924_v52  ;;  %20008 = vst [vmem:[#allocation8_spill] sm:$0xff] %v18012_v50 }
 0x662   : > { %v7600_v59 = vcombine.high %v7599_v55, %v7599_v55  ;;  %v17939_v60 = vrot.slane %v17929_v51, %v17924_v52  ;;  %v8079_v61 = vcombine.low %v7449_v54, %v17929_v51  ;;  %v7739_v2 = vshrl.u32 %v7599_v55, 16  ;;  %20009 = vst [vmem:[#allocation9_spill] sm:$0xff] %v18029_v63 }
 0x663   : > { %v7584_v0 = vcombine.high %v7583_v57, %v7583_v57  ;;  %v17946_v1 = vrot.slane %v17932_v56, %v17924_v52  ;;  %v8078_v9 = vcombine.low %v7432_v39, %v17932_v56  ;;  %v7721_v17 = vshrl.u32 %v7583_v57, 16 }
 0x664   : > { %20003 = vst [vmem:[#allocation5_spill] sm:$0xff] %v17939_v60  ;;  %v7744_v62 = vshll.u32 %v7600_v59, 16  ;;  %v7608_v4 = vcombine.high %v17939_v60, %v17939_v60  ;;  %v7748_v13 = vshrl.u32 %v17939_v60, 16  ;;  %v17967_v19 = vrot.slane %v8079_v61, %v17924_v52 }
 0x665   : > { %20004 = vst [vmem:[#allocation6_spill] sm:$0xff] %v17946_v1  ;;  %v7726_v6 = vshll.u32 %v7584_v0, 16  ;;  %v14972_v7 = vpop.f32.mrb[4].mxu1  ;;  %v7592_v8 = vcombine.high %v17946_v1, %v17946_v1  ;;  %v7730_v10 = vshrl.u32 %v17946_v1, 16  ;;  %v17961_v22 = vrot.slane %v8078_v9, %v17924_v52 }
 0x666   : > { %v7383_v12 = vadd.f32 %v14972_v7, %v17907_v28  ;;  %v7307_v43 = vpop.f32.mrb[5].mxu1  ;;  %v7753_v14 = vshll.u32 %v7608_v4, 16  ;;  %v7746_v18 = vsel %vm17949_vm14, %v7739_v2, %v7744_v62  ;;  %v13512_v25 = vcombine.high %v7583_v57, %v17946_v1 }
 0x667   : > { %v7381_v33 = vadd.f32 %v17907_v28, %v7307_v43  ;;  %v14973_v15 = vpop.f32.mrb[6].mxu1  ;;  %v7735_v16 = vshll.u32 %v7592_v8, 16  ;;  %v7728_v23 = vsel %vm17949_vm14, %v7721_v17, %v7726_v6  ;;  %v8110_v34 = vcombine.low %v17961_v22, %v17967_v19 }
 0x668   : > { %v7384_v20 = vadd.f32 %v14973_v15, %v17907_v28  ;;  %v7310_v11 = vpop.f32.mrb[7].mxu1  ;;  %v17974_v24 = vsel %vm17949_vm14, %v7748_v13, %v7753_v14  ;;  %v7399_v26 = vmax.f32 %v7383_v12, 0.0  ;;  %v13513_v35 = vcombine.high %v7599_v55, %v17939_v60 }
 0x669   : > { %v7382_v27 = vadd.f32 %v17907_v28, %v7310_v11  ;;  %v17980_v45 = vsel %vm17949_vm14, %v7730_v10, %v7735_v16  ;;  %v7882_v30 = vcombine.low %v7746_v18, %v17974_v24  ;;  %v7397_v36 = vmax.f32 %v7381_v33, 0.0 }
 0x66a   : > { %v17983_v31 = vmax.f32 %v7384_v20, 0.0  ;;  %v7881_v32 = vcombine.low %v7728_v23, %v17980_v45  ;;  %v17995_v41 = vrot.slane %v13512_v25, %v17924_v52  ;;  %v18003_v5 = vrot.slane %v13513_v35, %v17924_v52 }
 0x66b   : > { %v17989_v38 = vmax.f32 %v7382_v27, 0.0  ;;  %v17992_v40 = vrot.slane %v7882_v30, %v17924_v52  ;;  %v18033_v0 = vcombine.high %v18012_v50, %v18012_v50 }
 0x66c   : > { %v7412_v42 = vpack.c.bf16 %v17983_v31, %v7399_v26  ;;  %v17999_v44 = vrot.slane %v7881_v32, %v17924_v52 }
 0x66d   : > { %v7411_v46 = vpack.c.bf16 %v17989_v38, %v7397_v36  ;;  %20010 = vst [vmem:[#allocation10_spill] sm:$0xff] %v18033_v0 }
 0x66e   : > { %v7483_v29 = vrot.slane %v7412_v42, %v17918_v47  ;;  %v7913_v48 = vcombine.low %v17999_v44, %v17992_v40 }
 0x66f   : > { %v7466_v53 = vrot.slane %v7411_v46, %v17918_v47 }
 0x670   : > { %v18017_v39 = vcombine.high %v7483_v29, %v7483_v29  ;;  %v7631_v55 = vrot.slane %v7483_v29, %v17924_v52  ;;  %v7921_v19 = vrot.slane %v7913_v48, %v17924_v52 }
 0x671   : > { %v18020_v57 = vcombine.high %v7466_v53, %v7466_v53  ;;  %v7615_v59 = vrot.slane %v7466_v53, %v17924_v52 }
 0x672   : > { %v7632_v61 = vcombine.high %v7631_v55, %v7631_v55  ;;  %v18025_v58 = vrot.slane %v18017_v39, %v17924_v52  ;;  %v8081_v4 = vcombine.low %v7483_v29, %v18017_v39  ;;  %v7775_v7 = vshrl.u32 %v7631_v55, 16 }
 0x673   : > { %v7616_v2 = vcombine.high %v7615_v59, %v7615_v59  ;;  %v18037_v62 = vrot.slane %v18020_v57, %v17924_v52  ;;  %v8080_v17 = vcombine.low %v7466_v53, %v18020_v57  ;;  %v7757_v8 = vshrl.u32 %v7615_v59, 16 }
 0x674   : > { %v7780_v9 = vshll.u32 %v7632_v61, 16  ;;  %v7640_v6 = vcombine.high %v18025_v58, %v18025_v58  ;;  %v7784_v15 = vshrl.u32 %v18025_v58, 16  ;;  %v8109_v35 = vrot.slane %v8081_v4, %v17924_v52 }
 0x675   : > { %v7762_v10 = vshll.u32 %v7616_v2, 16  ;;  %v14976_v12 = vpop.f32.mrb[8].mxu1  ;;  %v7624_v43 = vcombine.high %v18037_v62, %v18037_v62  ;;  %v7766_v33 = vshrl.u32 %v18037_v62, 16  ;;  %v8102_v25 = vrot.slane %v8080_v17, %v17924_v52 }
 0x676   : > { %v7387_v13 = vadd.f32 %v14976_v12, %v17907_v28  ;;  %v7323_v14 = vpop.f32.mrb[9].mxu1  ;;  %v7789_v16 = vshll.u32 %v7640_v6, 16  ;;  %v7782_v23 = vsel %vm17949_vm14, %v7775_v7, %v7780_v9  ;;  %v13514_v9 = vcombine.high %v7615_v59, %v18037_v62 }
 0x677   : > { %v7385_v18 = vadd.f32 %v17907_v28, %v7323_v14  ;;  %v14977_v20 = vpop.f32.mrb[10].mxu1  ;;  %v7771_v11 = vshll.u32 %v7624_v43, 16  ;;  %v7764_v30 = vsel %vm17949_vm14, %v7757_v8, %v7762_v10  ;;  %v8111_v2 = vcombine.low %v8102_v25, %v8109_v35 }
 0x678   : > { %v7388_v26 = vadd.f32 %v14977_v20, %v17907_v28  ;;  %v7326_v27 = vpop.f32.mrb[11].mxu1  ;;  %v18057_v32 = vsel %vm17949_vm14, %v7784_v15, %v7789_v16  ;;  %v7403_v36 = vmax.f32 %v7387_v13, 0.0  ;;  %v13515_v4 = vcombine.high %v7631_v55, %v18025_v58 }
 0x679   : > { %v7386_v42 = vadd.f32 %v17907_v28, %v7326_v27  ;;  %v18063_v46 = vsel %vm17949_vm14, %v7766_v33, %v7771_v11  ;;  %v7884_v29 = vcombine.low %v7782_v23, %v18057_v32  ;;  %v7401_v17 = vmax.f32 %v7385_v18, 0.0 }
 0x67a   : > { %v7404_v53 = vmax.f32 %v7388_v26, 0.0  ;;  %v7883_v61 = vcombine.low %v7764_v30, %v18063_v46  ;;  %v18079_v12 = vrot.slane %v8110_v34, %v17924_v52  ;;  %v18082_v43 = vrot.slane %v8111_v2, %v17924_v52 }
 0x67b   : > { %v7402_v6 = vmax.f32 %v7386_v42, 0.0  ;;  %v18069_v7 = vrot.slane %v7884_v29, %v17924_v52  ;;  %v18085_v14 = vrot.slane %v13514_v9, %v17924_v52  ;;  %v18088_v55 = vrot.slane %v13515_v4, %v17924_v52 }
 0x67c   : > { %v7414_v8 = vpack.c.bf16 %v7404_v53, %v7403_v36  ;;  %v18073_v10 = vrot.slane %v7883_v61, %v17924_v52  ;;  %v13445_v59 = vpack.c.bf16 %v7404_v53, %v7404_v53  ;;  %v13443_v33 = vpack.c.bf16 %v17983_v31, %v17983_v31 }
 0x67d   : > { %v7413_v13 = vpack.c.bf16 %v7402_v6, %v7401_v17  ;;  %v13442_v34 = vpack.c.bf16 %v17989_v38, %v17989_v38  ;;  %v8510_v20 = vcombine.low %v17932_v56, %v18012_v50  ;;  %v13444_v23 = vpack.c.bf16 %v7402_v6, %v7402_v6 }
 0x67e   : > { %v7517_v15 = vrot.slane %v7414_v8, %v17918_v47  ;;  %v7914_v22 = vcombine.low %v18073_v10, %v18069_v7  ;;  %v8511_v25 = vcombine.low %v17929_v51, %v18009_v49  ;;  %v18113_v38 = vrot.slane %v18009_v49, %v17924_v52 }
 0x67f   : > { %v7500_v16 = vrot.slane %v7413_v13, %v17918_v47  ;;  %v18117_v26 = vrot.slane %v18012_v50, %v17924_v52  ;;  %v18120_v27 = vrot.slane %v13445_v59, %v17918_v47  ;;  %v18126_v30 = vrot.slane %v13443_v33, %v17918_v47 }
 0x680   : > { %v18104_v31 = vcombine.high %v7517_v15, %v7517_v15  ;;  %v18107_v11 = vrot.slane %v7517_v15, %v17924_v52  ;;  %v18138_v42 = vrot.slane %v18029_v63, %v17924_v52  ;;  %v18142_v29 = vrot.slane %v18033_v0, %v17924_v52 }
 0x681   : > { %v18123_v56 = vrot.slane %v7500_v16, %v17924_v52  ;;  %20011 = vst [vmem:[#allocation11_spill] sm:$0xff] %v18126_v30  ;;  %v18134_v36 = vcombine.high %v7500_v16, %v7500_v16  ;;  %v18147_v61 = vrot.slane %v8510_v20, %v17924_v52  ;;  %v18150_v2 = vrot.slane %v13442_v34, %v17918_v47 }
 0x682   : > { %v7664_v51 = vcombine.high %v18107_v11, %v18107_v11  ;;  %v18132_v35 = vrot.slane %v18104_v31, %v17924_v52  ;;  %20012 = vst [vmem:[#allocation12_spill] sm:$0xff] %v18138_v42  ;;  %20013 = vst [vmem:[#allocation13_spill] sm:$0xff] %v18142_v29  ;;  %v18155_v17 = vrot.slane %v13444_v23, %v17918_v47 }
 0x683   : > { %20014 = vst [vmem:[#allocation14_spill] sm:$0xff] %v18150_v2  ;;  %v18158_v6 = vrot.slane %v8511_v25, %v17924_v52  ;;  %v8128_v4 = vcombine.low %v7517_v15, %v18104_v31  ;;  %v7648_v10 = vcombine.high %v18123_v56, %v18123_v56  ;;  %v18167_v13 = vcombine.high %v18126_v30, %v18126_v30 }
 0x684   : > { %v7672_v9 = vcombine.high %v18132_v35, %v18132_v35  ;;  %v7816_v7 = vshll.u32 %v7664_v51, 16  ;;  %v7820_v33 = vshrl.u32 %v18132_v35, 16  ;;  %v18172_v20 = vrot.slane %v18134_v36, %v17924_v52 }
 0x685   : > { %v14980_v59 = vpop.f32.mrb[12].mxu1  ;;  %20015 = vst [vmem:[#allocation15_spill] sm:$0xff] %v18167_v13  ;;  %v7811_v15 = vshrl.u32 %v18107_v11, 16  ;;  %v8127_v25 = vcombine.low %v7500_v16, %v18134_v36  ;;  %v7798_v18 = vshll.u32 %v7648_v10, 16  ;;  %v18193_v37 = vrot.slane %v8128_v4, %v17924_v52 }
 0x686   : > { %v7825_v34 = vshll.u32 %v7672_v9, 16  ;;  %v7339_v23 = vpop.f32.mrb[13].mxu1  ;;  %v7656_v8 = vcombine.high %v18172_v20, %v18172_v20  ;;  %v13516_v16 = vcombine.high %v18123_v56, %v18172_v20  ;;  %v7793_v40 = vshrl.u32 %v18123_v56, 16 }
 0x687   : > { %v14981_v53 = vpop.f32.mrb[14].mxu1  ;;  %v7818_v51 = vsel %vm17949_vm14, %v7811_v15, %v7816_v7  ;;  %v7802_v44 = vshrl.u32 %v18172_v20, 16  ;;  %v7928_v10 = vrot.slane %v7914_v22, %v17924_v52  ;;  %v7391_v49 = vadd.f32 %v14980_v59, %v17907_v28 }
 0x688   : > { %v18184_v9 = vsel %vm17949_vm14, %v7820_v33, %v7825_v34  ;;  %v7342_v54 = vpop.f32.mrb[15].mxu1  ;;  %v7807_v33 = vshll.u32 %v7656_v8, 16  ;;  %v18199_v34 = vrot.slane %v8127_v25, %v17924_v52  ;;  %v7389_v63 = vadd.f32 %v17907_v28, %v7339_v23 }
 0x689   : > { %v7931_v48 = vcombine.low %v7818_v51, %v18184_v9  ;;  %v7392_v7 = vadd.f32 %v14981_v53, %v17907_v28  ;;  %v7390_v4 = vadd.f32 %v17907_v28, %v7342_v54  ;;  %v18208_v56 = vrot.slane %v18126_v30, %v17924_v52 }
 0x68a   : > { %v7800_v8 = vsel %vm17949_vm14, %v7793_v40, %v7798_v18  ;;  %v18214_v15 = vsel %vm17949_vm14, %v7802_v44, %v7807_v33  ;;  %v7929_v22 = vcombine.low %v7921_v19, %v7928_v10  ;;  %v18218_v59 = vcombine.high %v18150_v2, %v18150_v2 }
 0x68b   : > { %v7930_v53 = vcombine.low %v7800_v8, %v18214_v15  ;;  %v7407_v23 = vmax.f32 %v7391_v49, 0.0  ;;  %v7408_v28 = vmax.f32 %v7392_v7, 0.0  ;;  %v7405_v54 = vmax.f32 %v7389_v63, 0.0 }
 0x68c   : > { %20016 = vst [vmem:[#allocation16_spill] sm:$0xff] %v18218_v59  ;;  %14998 = vmatprep.mubr.bf16.mxu1 %v7929_v22  ;;  %v7406_v25 = vmax.f32 %v7390_v4, 0.0  ;;  %v18222_v51 = vrot.slane %v7931_v48, %v17924_v52  ;;  %v8159_v18 = vcombine.low %v18199_v34, %v18193_v37  ;;  %v20017_v44 = vcombine.low %v17995_v41, %v18003_v5 }
 0x68d   : > { %v7416_v40 = vpack.c.bf16 %v7408_v28, %v7407_v23  ;;  %v18227_v19 = vrot.slane %v7930_v53, %v17924_v52  ;;  %v20019_v49 = vcombine.low %v18085_v14, %v18088_v55  ;;  %v18243_v48 = vrot.slane %v18120_v27, %v17924_v52 }
 0x68e   : > { %v18233_v33 = vrot.slane %v20017_v44, %v17924_v52  ;;  %v13447_v37 = vpack.c.bf16 %v7408_v28, %v7408_v28  ;;  %v7415_v34 = vpack.c.bf16 %v7406_v25, %v7405_v54  ;;  %v13446_v10 = vpack.c.bf16 %v7406_v25, %v7406_v25 }
 0x68f   : > { %v18239_v63 = vrot.slane %v20019_v49, %v17924_v52  ;;  %v18247_v7 = vcombine.high %v18120_v27, %v18120_v27  ;;  %v7551_v41 = vrot.slane %v7416_v40, %v17918_v47  ;;  %v7962_v5 = vcombine.low %v18227_v19, %v18222_v51 }
 0x690   : > { %20018 = vst [vmem:[#allocation17_spill] sm:$0xff] %v18233_v33  ;;  %v18256_v55 = vrot.slane %v18167_v13, %v17924_v52  ;;  %v18260_v4 = vrot.slane %v18150_v2, %v17924_v52  ;;  %v18264_v8 = vrot.slane %v18155_v17, %v17924_v52  ;;  %v7534_v22 = vrot.slane %v7415_v34, %v17918_v47 }
 0x691   : > { %20020 = vst [vmem:[#allocation18_spill] sm:$0xff] %v18239_v63  ;;  %20021 = vst [vmem:[#allocation19_spill] sm:$0xff] %v18247_v7  ;;  %v18269_v53 = vcombine.high %v18155_v17, %v18155_v17  ;;  %v18271_v23 = vcombine.high %v7551_v41, %v7551_v41  ;;  %v7695_v28 = vrot.slane %v7551_v41, %v17924_v52 }
 0x692   : > { %20022 = vst [vmem:[#allocation20_spill] sm:$0xff] %v18256_v55  ;;  %v8512_v54 = vcombine.low %v18020_v57, %v18150_v2  ;;  %v18279_v51 = vrot.slane %v13447_v37, %v17918_v47  ;;  %v18282_v40 = vrot.slane %v13446_v10, %v17918_v47  ;;  %v7679_v19 = vrot.slane %v7534_v22, %v17924_v52 }
 0x693   : > { %v7696_v49 = vcombine.high %v7695_v28, %v7695_v28  ;;  %v18289_v34 = vrot.slane %v18271_v23, %v17924_v52  ;;  %v7542_v57 = vcombine.high %v7534_v22, %v7534_v22  ;;  %v18293_v14 = vrot.slane %v18247_v7, %v17924_v52 }
 0x694   : > { %v8130_v10 = vcombine.low %v7551_v41, %v18271_v23  ;;  %v8562_v25 = vcombine.low %v18271_v23, %v18279_v51  ;;  %v8351_v50 = vrot.slane %v13516_v16, %v17924_v52  ;;  %v20023_v0 = vcombine.high %v18107_v11, %v18132_v35 }
 0x695   : > { %v7704_v44 = vcombine.high %v18289_v34, %v18289_v34  ;;  %v7852_v47 = vshll.u32 %v7696_v49, 16  ;;  %v13519_v2 = vcombine.high %v7695_v28, %v18289_v34  ;;  %v18310_v37 = vrot.slane %v18279_v51, %v17924_v52 }
 0x696   : > { %v8358_v13 = vrot.slane %v20023_v0, %v17924_v52  ;;  %v7680_v41 = vcombine.high %v7679_v19, %v7679_v19  ;;  %v18314_v23 = vrot.slane %v18282_v40, %v17924_v52  ;;  %v7847_v60 = vshrl.u32 %v7695_v28, 16 }
 0x697   : > { %v7856_v49 = vshrl.u32 %v18289_v34, 16  ;;  %v7861_v16 = vshll.u32 %v7704_v44, 16  ;;  %v18318_v1 = vrot.slane %v7542_v57, %v17924_v52  ;;  %v8158_v0 = vrot.slane %v8130_v10, %v17924_v52 }
 0x698   : > { %v7834_v11 = vshll.u32 %v7680_v41, 16  ;;  %v8129_v63 = vcombine.low %v7534_v22, %v7542_v57  ;;  %v8561_v33 = vcombine.low %v7542_v57, %v18282_v40  ;;  %v7854_v55 = vsel %vm17949_vm14, %v7847_v60, %v7852_v47 }
 0x699   : > { %v18326_v42 = vsel %vm17949_vm14, %v7856_v49, %v7861_v16  ;;  %v7688_v28 = vcombine.high %v18318_v1, %v18318_v1  ;;  %v13518_v44 = vcombine.high %v7679_v19, %v18318_v1  ;;  %v7829_v7 = vshrl.u32 %v7679_v19, 16 }
 0x69a   : > { %v7933_v29 = vcombine.low %v7854_v55, %v18326_v42  ;;  %v8151_v10 = vrot.slane %v8129_v63, %v17924_v52  ;;  %v18334_v22 = vrot.slane %v8159_v18, %v17924_v52  ;;  %v7838_v60 = vshrl.u32 %v18318_v1, 16 }
 0x69b   : > { %v7843_v57 = vshll.u32 %v7688_v28, 16  ;;  %v8513_v41 = vcombine.low %v18017_v39, %v18126_v30  ;;  %v7836_v49 = vsel %vm17949_vm14, %v7829_v7, %v7834_v11  ;;  %v8365_v55 = vrot.slane %v13518_v44, %v17924_v52 }
 0x69c   : > { %v8160_v16 = vcombine.low %v8151_v10, %v8158_v0  ;;  %v8372_v63 = vrot.slane %v13519_v2, %v17924_v52  ;;  %v8766_v19 = vcombine.high %v18314_v23, %v18314_v23  ;;  %v7961_v28 = vrot.slane %v7933_v29, %v17924_v52  ;;  %v20038_v29 = vld [vmem:[#allocation12_spill] sm:$0xff] }
 0x69d   : > { %v18347_v18 = vsel %vm17949_vm14, %v7838_v60, %v7843_v57  ;;  %v8373_v47 = vcombine.low %v8351_v50, %v8358_v13  ;;  %v8534_v0 = vrot.slane %v8512_v54, %v17924_v52  ;;  %v7970_v2 = vrot.slane %v7962_v5, %v17924_v52 }
 0x69e   : > { %v7932_v39 = vcombine.low %v7836_v49, %v18347_v18  ;;  %v18354_v30 = vrot.slane %v8160_v16, %v17924_v52  ;;  %v8374_v7 = vcombine.low %v8365_v55, %v8372_v63  ;;  %v8541_v44 = vrot.slane %v8513_v41, %v17924_v52 }
 0x69f   : > { %v18359_v11 = vrot.slane %v8373_v47, %v17924_v52  ;;  %v8542_v10 = vcombine.low %v18147_v61, %v18158_v6  ;;  %v20024_v5 = vcombine.low %v18134_v36, %v18155_v17  ;;  %v20025_v61 = vcombine.low %v18104_v31, %v18120_v27 }
 0x6a0   : > { %v7954_v50 = vrot.slane %v7932_v39, %v17924_v52  ;;  %v18368_v13 = vrot.slane %v8374_v7, %v17924_v52  ;;  %v8543_v47 = vcombine.low %v8534_v0, %v8541_v44  ;;  %v8583_v57 = vrot.slane %v8561_v33, %v17924_v52 }
 0x6a1   : > { %v8569_v54 = vrot.slane %v20024_v5, %v17924_v52  ;;  %v18375_v60 = vrot.slane %v8542_v10, %v17924_v52  ;;  %v8576_v6 = vrot.slane %v20025_v61, %v17924_v52  ;;  %v8590_v16 = vrot.slane %v8562_v25, %v17924_v52  ;;  %v10154_v5 = vld [vmem:[%s19971_s7 + $0x190] sm:$0xff]  ;;  %v16022_v61 = vld [vmem:[%s19969_s5 + $0x8] sm:$0xff]  }
 0x6a2   : > { %v7963_v41 = vcombine.low %v7954_v50, %v7961_v28  ;;  %v8718_v36 = vcombine.high %v18117_v26, %v18117_v26  ;;  %v18388_v55 = vrot.slane %v8543_v47, %v17924_v52  ;;  %v8726_v39 = vcombine.high %v18113_v38, %v18113_v38 }
 0x6a3   : > { %v8591_v63 = vcombine.low %v8569_v54, %v8576_v6  ;;  %v8734_v31 = vcombine.high %v18260_v4, %v18260_v4  ;;  %v8592_v28 = vcombine.low %v8583_v57, %v8590_v16  ;;  %v8742_v7 = vcombine.high %v18208_v56, %v18208_v56  ;;  %v10158_v54 = vld [vmem:[%s19971_s7 + $0x1b0] sm:$0xff] }
 0x6a4   : > { %v7977_v33 = vrot.slane %v7963_v41, %v17924_v52  ;;  %v8776_v25 = vshrl.u32 %v18117_v26, 16  ;;  %v8781_v10 = vshll.u32 %v8718_v36, 16  ;;  %v8785_v50 = vshrl.u32 %v18113_v38, 16 }
 0x6a5   : > { %v18401_v44 = vrot.slane %v8591_v63, %v17924_v52  ;;  %v18414_v6 = vrot.slane %v8592_v28, %v17924_v52  ;;  %v8790_v57 = vshll.u32 %v8726_v39, 16  ;;  %v8794_v41 = vshrl.u32 %v18260_v4, 16 }
 0x6a6   : > { %v7978_v47 = vcombine.low %v7970_v2, %v7977_v33  ;;  %v18419_v16 = vsel %vm17949_vm14, %v8776_v25, %v8781_v10  ;;  %v8799_v36 = vshll.u32 %v8734_v31, 16  ;;  %v8803_v63 = vshrl.u32 %v18208_v56, 16 }
 0x6a7   : > { %v8808_v0 = vshll.u32 %v8742_v7, 16  ;;  %v18426_v33 = vsel %vm17949_vm14, %v8785_v50, %v8790_v57  ;;  %v8864_v39 = vcombine.low %v17980_v45, %v18419_v16  ;;  %v13763_v28 = vcombine.low %v10154_v5, %v10158_v54 }
 0x6a8   : > { %14999 = vmatmul.mubr.bf16.vlgmr.msra.gmra.mrb[16].mxu1 %v7978_v47  ;;  %v20026_v31 = vcombine.low %v18079_v12, %v18082_v43  ;;  %v18436_v7 = vsel %vm17949_vm14, %v8794_v41, %v8799_v36  ;;  %v8865_v10 = vcombine.low %v17974_v24, %v18426_v33  ;;  %v8812_v45 = vshrl.u32 %v18264_v8, 16 }
 0x6a9   : > { %15003 = vmatpush3.bf16.msra.mxu1 %v17895_v21  ;;  %v18440_v25 = vsel %vm17949_vm14, %v8803_v63, %v8808_v0  ;;  %v16023_v21 = vld [vmem:[%s19969_s5 + $0x10] sm:$0xff]   ;;  %v8866_v12 = vcombine.low %v18063_v46, %v18436_v7  ;;  %v8874_v50 = vrot.slane %v8864_v39, %v17924_v52  ;;  %v13764_v0 = vcombine.high %v10154_v5, %v10158_v54 }
 0x6aa   : > { %15018 = vmatprep.mubr.bf16.mxu1 %v20026_v31  ;;  %15004 = vmatprep.subr.bf16.mxu1 %v16022_v61  ;;  %v8867_v43 = vcombine.low %v18057_v32, %v18440_v25  ;;  %v8881_v47 = vrot.slane %v8865_v10, %v17924_v52  ;;  %v20027_v24 = vcombine.high %v18264_v8, %v18264_v8  ;;  %v8821_v41 = vshrl.u32 %v18243_v48, 16 }
 0x6ab   : > { %v20028_v36 = vcombine.high %v18243_v48, %v18243_v48  ;;  %v8888_v46 = vrot.slane %v8866_v12, %v17924_v52  ;;  %11880 = vmatprep.subr.bf16.mxu0 %v13764_v0  ;;  %v8830_v32 = vshrl.u32 %v18314_v23, 16  ;;  %v8835_v5 = vshll.u32 %v8766_v19, 16 }
 0x6ac   : > { %v8817_v57 = vshll.u32 %v20027_v24, 16  ;;  %v8895_v31 = vrot.slane %v8867_v43, %v17924_v52  ;;  %v8896_v54 = vcombine.low %v8874_v50, %v8881_v47  ;;  %11881 = vmatpush1.bf16.msra.mxu0 %v13763_v28  ;;  %v8839_v12 = vshrl.u32 %v18310_v37, 16  ;;  %v16024_v43 = vld [vmem:[%s19969_s5 + $0x18] sm:$0xff]  }
 0x6ad   : > { %v8826_v63 = vshll.u32 %v20028_v36, 16  ;;  %15005 = vmatpush3.bf16.msra.mxu1 %v16022_v61  ;;  %v18481_v19 = vsel %vm17949_vm14, %v8830_v32, %v8835_v5  ;;  %v20029_v61 = vcombine.high %v18310_v37, %v18310_v37  ;;  %v18490_v50 = vrot.slane %v18269_v53, %v17924_v52 }
 0x6ae   : > { %v18469_v39 = vsel %vm17949_vm14, %v8812_v45, %v8817_v57  ;;  %15006 = vmatprep.subr.bf16.mxu1 %v16023_v21  ;;  %v8897_v0 = vcombine.low %v8888_v46, %v8895_v31  ;;  %v18494_v47 = vcombine.high %v18279_v51, %v18279_v51  ;;  %v8915_v57 = vcombine.low %v18347_v18, %v18481_v19 }
 0x6af   : > { %v18473_v10 = vsel %vm17949_vm14, %v8821_v41, %v8826_v63  ;;  %v8844_v28 = vshll.u32 %v20029_v61, 16  ;;  %v8913_v45 = vcombine.low %v18214_v15, %v18469_v39  ;;  %v18501_v41 = vrot.slane %v8896_v54, %v17924_v52 }
 0x6b0   : > { %v8914_v24 = vcombine.low %v18184_v9, %v18473_v10  ;;  %v18504_v36 = vrot.slane %v8897_v0, %v17924_v52  ;;  %v8937_v18 = vrot.slane %v8915_v57, %v17924_v52  ;;  %v13602_v31 = vcombine.high %v18037_v62, %v18260_v4 }
 0x6b1   : > { %v18508_v15 = vsel %vm17949_vm14, %v8839_v12, %v8844_v28  ;;  %v8923_v63 = vrot.slane %v8913_v45, %v17924_v52  ;;  %15007 = vmatpush3.bf16.msra.mxu1 %v16023_v21  ;;  %v9548_v32 = vcombine.high %v18293_v14, %v18293_v14  ;;  %v7543_v5 = vcombine.high %v18282_v40, %v18282_v40  ;;  %v16025_v21 = vld [vmem:[%s19969_s5 + $0x20] sm:$0xff]  }
 0x6b2   : > { %v8916_v46 = vcombine.low %v18326_v42, %v18508_v15  ;;  %v8930_v9 = vrot.slane %v8914_v24, %v17924_v52  ;;  %15008 = vmatprep.subr.bf16.mxu1 %v16024_v43  ;;  %v13603_v54 = vcombine.high %v18025_v58, %v18208_v56  ;;  %v18530_v0 = vrot.slane %v13602_v31, %v17924_v52 }
 0x6b3   : > { %v13604_v61 = vcombine.high %v18172_v20, %v18264_v8  ;;  %v9540_v28 = vcombine.high %v18490_v50, %v18490_v50  ;;  %v13605_v24 = vcombine.high %v18132_v35, %v18243_v48  ;;  %v13606_v58 = vcombine.high %v18318_v1, %v18314_v23  ;;  %v16026_v35 = vld [vmem:[%s19969_s5 + $0x28] sm:$0xff]  }
 0x6b4   : > { %v8944_v12 = vrot.slane %v8916_v46, %v17924_v52  ;;  %v8945_v62 = vcombine.low %v8923_v63, %v8930_v9  ;;  %v18537_v45 = vrot.slane %v13603_v54, %v17924_v52  ;;  %v18545_v57 = vrot.slane %v18494_v47, %v17924_v52 }
 0x6b5   : > { %15009 = vmatpush3.bf16.msra.mxu1 %v16024_v43  ;;  %v13607_v20 = vcombine.high %v18289_v34, %v18310_v37  ;;  %v9141_v46 = vrot.slane %v13604_v61, %v17924_v52  ;;  %v18551_v9 = vrot.slane %v7543_v5, %v17924_v52  ;;  %v9148_v31 = vrot.slane %v13605_v24, %v17924_v52 }
 0x6b6   : > { %20030 = vst [vmem:[#allocation21_spill] sm:$0xff] %v18537_v45  ;;  %v8946_v63 = vcombine.low %v8937_v18, %v8944_v12  ;;  %15010 = vmatprep.subr.bf16.mxu1 %v16025_v21  ;;  %v9155_v43 = vrot.slane %v13606_v58, %v17924_v52  ;;  %v9349_v34 = vcombine.low %v18155_v17, %v18269_v53  ;;  %v9611_v17 = vshrl.u32 %v18293_v14, 16 }
 0x6b7   : > { %v18563_v18 = vrot.slane %v8945_v62, %v17924_v52  ;;  %v9162_v12 = vrot.slane %v13607_v20, %v17924_v52  ;;  %v18571_v61 = vrot.slane %v18218_v59, %v17924_v52  ;;  %v9352_v24 = vcombine.low %v18279_v51, %v18494_v47  ;;  %v20037_v62 = vld [vmem:[#allocation13_spill] sm:$0xff] }
 0x6b8   : > { %v18566_v54 = vrot.slane %v8946_v63, %v17924_v52  ;;  %v9351_v58 = vcombine.low %v18282_v40, %v7543_v5  ;;  %v9163_v1 = vcombine.low %v9141_v46, %v9148_v31  ;;  %v9564_v53 = vcombine.high %v18545_v57, %v18545_v57  ;;  %v16027_v40 = vld [vmem:[%s19969_s5 + $0x30] sm:$0xff]  }
 0x6b9   : > { %20031 = vst [vmem:[#allocation22_spill] sm:$0xff] %v18563_v18  ;;  %15011 = vmatpush3.bf16.msra.mxu1 %v16025_v21  ;;  %v9164_v63 = vcombine.low %v9155_v43, %v9162_v12  ;;  %v9616_v20 = vshll.u32 %v9548_v32, 16  ;;  %v9602_v42 = vshrl.u32 %v18490_v50, 16  ;;  %v9607_v2 = vshll.u32 %v9540_v28, 16  ;;  %v20035_v32 = vld [vmem:[#allocation19_spill] sm:$0xff] }
 0x6ba   : > { %20032 = vst [vmem:[#allocation23_spill] sm:$0xff] %v18566_v54  ;;  %v9556_v51 = vcombine.high %v18551_v9, %v18551_v9  ;;  %15012 = vmatprep.subr.bf16.mxu1 %v16026_v35  ;;  %v18588_v47 = vrot.slane %v9163_v1, %v17924_v52  ;;  %v9359_v21 = vrot.slane %v9349_v34, %v17924_v52  ;;  %v9629_v31 = vshrl.u32 %v18545_v57, 16 }
 0x6bb   : > { %v18591_v5 = vrot.slane %v9164_v63, %v17924_v52  ;;  %v20036_v28 = vcombine.low %v18120_v27, %v20035_v32  ;;  %v9373_v43 = vrot.slane %v9351_v58, %v17924_v52  ;;  %v9380_v12 = vrot.slane %v9352_v24, %v17924_v52  ;;  %v16028_v58 = vld [vmem:[%s19969_s5 + $0x38] sm:$0xff]  }
 0x6bc   : > { %20033 = vst [vmem:[#allocation24_spill] sm:$0xff] %v18588_v47  ;;  %v9508_v1 = vcombine.high %v20037_v62, %v20037_v62  ;;  %v9634_v49 = vshll.u32 %v9564_v53, 16  ;;  %v9516_v59 = vcombine.high %v20038_v29, %v20038_v29  ;;  %v9620_v27 = vshrl.u32 %v18551_v9, 16  ;;  %v20039_v53 = vld [vmem:[#allocation20_spill] sm:$0xff] }
 0x6bd   : > { %20034 = vst [vmem:[#allocation25_spill] sm:$0xff] %v18591_v5  ;;  %v9366_v46 = vrot.slane %v20036_v28, %v17924_v52  ;;  %15013 = vmatpush3.bf16.msra.mxu1 %v16026_v35  ;;  %v9382_v24 = vcombine.low %v9373_v43, %v9380_v12  ;;  %v9524_v32 = vcombine.high %v18571_v61, %v18571_v61  ;;  %v9625_v28 = vshll.u32 %v9556_v51, 16 }
 0x6be   : > { %15014 = vmatprep.subr.bf16.mxu1 %v16027_v40  ;;  %v9532_v35 = vcombine.high %v20039_v53, %v20039_v53  ;;  %v9571_v63 = vshll.u32 %v9508_v1, 16  ;;  %v9575_v47 = vshrl.u32 %v20038_v29, 16  ;;  %v9580_v54 = vshll.u32 %v9516_v59, 16  ;;  %v16029_v1 = vld [vmem:[%s19969_s5 + $0x80] sm:$0xff]  }
 0x6bf   : > { %v9381_v34 = vcombine.low %v9359_v21, %v9366_v46  ;;  %v9566_v46 = vshrl.u32 %v20037_v62, 16  ;;  %v18620_v5 = vrot.slane %v9382_v24, %v17924_v52  ;;  %v9584_v43 = vshrl.u32 %v18571_v61, 16 }
 0x6c0   : > { %v9589_v18 = vshll.u32 %v9524_v32, 16  ;;  %v9593_v51 = vshrl.u32 %v20039_v53, 16  ;;  %v9582_v59 = vsel %vm17949_vm14, %v9575_v47, %v9580_v54  ;;  %v9618_v45 = vsel %vm17949_vm14, %v9611_v17, %v9616_v20 }
 0x6c1   : > { %v18616_v21 = vrot.slane %v9381_v34, %v17924_v52  ;;  %15015 = vmatpush3.bf16.msra.mxu1 %v16027_v40  ;;  %v9573_v12 = vsel %vm17949_vm14, %v9566_v46, %v9571_v63  ;;  %v9598_v34 = vshll.u32 %v9532_v35, 16  ;;  %v9609_v63 = vsel %vm17949_vm14, %v9602_v42, %v9607_v2 }
 0x6c2   : > { %15016 = vmatprep.subr.bf16.mxu1 %v16028_v58  ;;  %v9654_v40 = vcombine.low %v18419_v16, %v9573_v12  ;;  %v9591_v32 = vsel %vm17949_vm14, %v9584_v43, %v9589_v18  ;;  %v9655_v46 = vcombine.low %v18426_v33, %v9582_v59  ;;  %v9627_v2 = vsel %vm17949_vm14, %v9620_v27, %v9625_v28  ;;  %v20042_v43 = vld [vmem:[#allocation18_spill] sm:$0xff] }
 0x6c3   : > { %v9600_v35 = vsel %vm17949_vm14, %v9593_v51, %v9598_v34  ;;  %v9656_v24 = vcombine.low %v18436_v7, %v9591_v32  ;;  %v9636_v18 = vsel %vm17949_vm14, %v9629_v31, %v9634_v49  ;;  %v9703_v33 = vcombine.low %v18469_v39, %v9609_v63  ;;  %v16030_v7 = vld [vmem:[%s19969_s5 + $0x88] sm:$0xff]  }
 0x6c4   : > { %v9657_v54 = vcombine.low %v18440_v25, %v9600_v35  ;;  %v9664_v16 = vrot.slane %v9654_v40, %v17924_v52  ;;  %v9671_v42 = vrot.slane %v9655_v46, %v17924_v52  ;;  %v9704_v47 = vcombine.low %v18473_v10, %v9618_v45  ;;  %v10162_v35 = vld [vmem:[%s19971_s7 + $0x1d0] sm:$0xff] }
 0x6c5   : > { %15017 = vmatpush3.bf16.msra.mxu1 %v16028_v58  ;;  %v9678_v25 = vrot.slane %v9656_v24, %v17924_v52  ;;  %v9705_v20 = vcombine.low %v18481_v19, %v9627_v2  ;;  %v9706_v27 = vcombine.low %v18508_v15, %v9636_v18  ;;  %v9713_v3 = vrot.slane %v9703_v33, %v17924_v52  ;;  %v20041_v15 = vld [vmem:[#allocation17_spill] sm:$0xff] }
 0x6c6   : > { %15022 = vmatprep.subr.bf16.mxu1 %v16029_v1  ;;  %v9685_v17 = vrot.slane %v9657_v54, %v17924_v52  ;;  %v9686_v58 = vcombine.low %v9664_v16, %v9671_v42  ;;  %v9720_v49 = vrot.slane %v9704_v47, %v17924_v52  ;;  %v13688_v39 = vcombine.high %v18117_v26, %v20037_v62 }
 0x6c7   : > { %v20040_v10 = vcombine.low %v18334_v22, %v18354_v30  ;;  %v9727_v31 = vrot.slane %v9705_v20, %v17924_v52  ;;  %v9734_v28 = vrot.slane %v9706_v27, %v17924_v52  ;;  %v13689_v19 = vcombine.high %v18113_v38, %v20038_v29  ;;  %v16031_v22 = vld [vmem:[%s19969_s5 + $0x90] sm:$0xff]  }
 0x6c8   : > { %v9687_v45 = vcombine.low %v9678_v25, %v9685_v17  ;;  %v20043_v12 = vcombine.low %v20041_v15, %v20042_v43  ;;  %v18676_v51 = vrot.slane %v9686_v58, %v17924_v52  ;;  %v9735_v62 = vcombine.low %v9713_v3, %v9720_v49  ;;  %v16033_v25 = vld [vmem:[%s19969_s5 + $0xa0] sm:$0xff]   ;;  %v16034_v3 = vld [vmem:[%s19969_s5 + $0xa8] sm:$0xff]   ;;  %v16035_v49 = vld [vmem:[%s19969_s5 + $0xb0] sm:$0xff]  }
 0x6c9   : > { %15019 = vmatmul.mubr.bf16.vlgmr.msra.gmra.mrb[16].mxu1 %v20040_v10  ;;  %v13690_v30 = vcombine.high %v18260_v4, %v18571_v61  ;;  %v9736_v29 = vcombine.low %v9727_v31, %v9734_v28  ;;  %v9882_v24 = vrot.slane %v13688_v39, %v17924_v52  ;;  %v9889_v40 = vrot.slane %v13689_v19, %v17924_v52  ;;  %v16036_v39 = vld [vmem:[%s19969_s5 + $0xb8] sm:$0xff]   ;;  %v16037_v10 = vld [vmem:[%s19969_s5 + $0xc0] sm:$0xff]   ;;  %v16039_v19 = vld [vmem:[%s19969_s5 + $0xd0] sm:$0xff]  }
 0x6ca   : > { %15023 = vmatpush3.bf16.msra.mxu1 %v16029_v1  ;;  %15038 = vmatprep.mubr.bf16.mxu1 %v20043_v12  ;;  %v18684_v34 = vrot.slane %v9687_v45, %v17924_v52  ;;  %v13691_v1 = vcombine.high %v18208_v56, %v20039_v53  ;;  %v18690_v59 = vrot.slane %v9735_v62, %v17924_v52  ;;  %v16038_v45 = vld [vmem:[%s19969_s5 + $0xc8] sm:$0xff]   ;;  %v16040_v15 = vld [vmem:[%s19969_s5 + $0xd8] sm:$0xff]   ;;  %v16045_v43 = vld [vmem:[%s19969_s5 + $0x100] sm:$0xff]  }
 0x6cb   : > { %15024 = vmatprep.subr.bf16.mxu1 %v16030_v7  ;;  %v9896_v4 = vrot.slane %v13690_v30, %v17924_v52  ;;  %v13692_v61 = vcombine.high %v18264_v8, %v18490_v50  ;;  %v18699_v32 = vrot.slane %v9736_v29, %v17924_v52  ;;  %v13693_v53 = vcombine.high %v18243_v48, %v18293_v14  ;;  %v10166_v8 = vld [vmem:[%s19971_s7 + $0x1f0] sm:$0xff]  ;;  %v16032_v48 = vld [vmem:[%s19969_s5 + $0x98] sm:$0xff]   ;;  %v16046_v12 = vld [vmem:[%s19969_s5 + $0x108] sm:$0xff]  }
 0x6cc   : > { %v9702_v63 = vcombine.low %v18676_v51, %v18684_v34  ;;  %v9903_v56 = vrot.slane %v13691_v1, %v17924_v52  ;;  %v9904_v50 = vcombine.low %v9882_v24, %v9889_v40  ;;  %v13694_v46 = vcombine.high %v18314_v23, %v18551_v9  ;;  %v10170_v29 = vld [vmem:[%s19971_s7 + $0x210] sm:$0xff]  ;;  %v16049_v1 = vld [vmem:[%s19969_s5 + $0x120] sm:$0xff]   ;;  %v16050_v24 = vld [vmem:[%s19969_s5 + $0x128] sm:$0xff]  }
 0x6cd   : > { %v13695_v54 = vcombine.high %v18310_v37, %v18545_v57  ;;  %v9931_v16 = vrot.slane %v13692_v61, %v17924_v52  ;;  %v13771_v14 = vcombine.low %v10162_v35, %v10166_v8  ;;  %v13772_v2 = vcombine.high %v10162_v35, %v10166_v8  ;;  %v20048_v40 = vld [vmem:[#allocation6_spill] sm:$0xff]  ;;  %v20049_v61 = vld [vmem:[#allocation5_spill] sm:$0xff] }
 0x6ce   : > { %15025 = vmatpush3.bf16.msra.mxu1 %v16030_v7  ;;  %v9751_v42 = vcombine.low %v18690_v59, %v18699_v32  ;;  %v9905_v18 = vcombine.low %v9896_v4, %v9903_v56  ;;  %v9938_v33 = vrot.slane %v13693_v53, %v17924_v52  ;;  %v9945_v23 = vrot.slane %v13694_v46, %v17924_v52  ;;  %v16051_v53 = vld [vmem:[%s19969_s5 + $0x130] sm:$0xff]   ;;  %v16076_v34 = vld [vmem:[%s19969_s5 + $0x1f8] sm:$0xff]   ;;  %v16081_v59 = vld [vmem:[%s19969_s5 + $0x220] sm:$0xff]  }
 0x6cf   : > { %15026 = vmatprep.subr.bf16.mxu1 %v16031_v22  ;;  %v9952_v9 = vrot.slane %v13695_v54, %v17924_v52  ;;  %11882 = vmatprep.subr.bf16.mxu0 %v13772_v2  ;;  %v18724_v37 = vrot.slane %v9904_v50, %v17924_v52  ;;  %v20044_v31 = vcombine.low %v18359_v11, %v18368_v13  ;;  %v16041_v11 = vld [vmem:[%s19969_s5 + $0xe0] sm:$0xff]   ;;  %v16042_v13 = vld [vmem:[%s19969_s5 + $0xe8] sm:$0xff]   ;;  %v16052_v50 = vld [vmem:[%s19969_s5 + $0x138] sm:$0xff]  }
 0x6d0   : > { %v18727_v57 = vrot.slane %v9905_v18, %v17924_v52  ;;  %11883 = vmatpush1.bf16.msra.mxu0 %v13771_v14  ;;  %v9953_v47 = vcombine.low %v9931_v16, %v9938_v33  ;;  %v20045_v28 = vcombine.low %v18375_v60, %v18388_v55  ;;  %v16043_v60 = vld [vmem:[%s19969_s5 + $0xf0] sm:$0xff]   ;;  %v16044_v55 = vld [vmem:[%s19969_s5 + $0xf8] sm:$0xff]   ;;  %v20046_v62 = vcombine.low %v18401_v44, %v18414_v6  ;;  %v16054_v14 = vld [vmem:[%s19969_s5 + $0x148] sm:$0xff]  }
 0x6d1   : > { %v9954_v7 = vcombine.low %v9945_v23, %v9952_v9  ;;  %v20047_v30 = vcombine.low %v18501_v41, %v18504_v36  ;;  %v10174_v44 = vld [vmem:[%s19971_s7 + $0x230] sm:$0xff]  ;;  %v16048_v6 = vld [vmem:[%s19969_s5 + $0x118] sm:$0xff]   ;;  %v13600_v4 = vcombine.high %v20048_v40, %v18117_v26  ;;  %v13601_v56 = vcombine.high %v20049_v61, %v18113_v38  ;;  %v16053_v38 = vld [vmem:[%s19969_s5 + $0x140] sm:$0xff]  }
 0x6d2   : > { %15027 = vmatpush3.bf16.msra.mxu1 %v16031_v22  ;;  %v9920_v17 = vcombine.low %v18724_v37, %v18727_v57  ;;  %v18735_v20 = vrot.slane %v9953_v47, %v17924_v52  ;;  %v16047_v22 = vld [vmem:[%s19969_s5 + $0x110] sm:$0xff]   ;;  %v13779_v41 = vcombine.low %v10170_v29, %v10174_v44  ;;  %v13780_v36 = vcombine.high %v10170_v29, %v10174_v44  ;;  %v20052_v18 = vld [vmem:[#allocation22_spill] sm:$0xff]  ;;  %v20053_v33 = vld [vmem:[#allocation23_spill] sm:$0xff] }
 0x6d3   : > { %15028 = vmatprep.subr.bf16.mxu1 %v16032_v48  ;;  %v18738_v27 = vrot.slane %v9954_v7, %v17924_v52  ;;  %v9092_v35 = vrot.slane %v13600_v4, %v17924_v52  ;;  %v9099_v8 = vrot.slane %v13601_v56, %v17924_v52  ;;  %v20050_v46 = vld [vmem:[#allocation21_spill] sm:$0xff]  ;;  %v20054_v23 = vcombine.low %v20052_v18, %v20053_v33  ;;  %v20060_v29 = vld [vmem:[#allocation8_spill] sm:$0xff]  ;;  %v16060_v56 = vld [vmem:[%s19969_s5 + $0x178] sm:$0xff]  }
 0x6d4   : > { %11884 = vmatprep.subr.bf16.mxu0 %v13780_v36  ;;  %v20051_v54 = vcombine.low %v18530_v0, %v20050_v46  ;;  %v10178_v9 = vld [vmem:[%s19971_s7 + $0x250] sm:$0xff]  ;;  %v16066_v18 = vld [vmem:[%s19969_s5 + $0x1a8] sm:$0xff]   ;;  %v16084_v37 = vld [vmem:[%s19969_s5 + $0x238] sm:$0xff]  }
 0x6d5   : > { %v9969_v58 = vcombine.low %v18735_v20, %v18738_v27  ;;  %11885 = vmatpush1.bf16.msra.mxu0 %v13779_v41  ;;  %v9114_v26 = vcombine.low %v9092_v35, %v9099_v8  ;;  %v10182_v0 = vld [vmem:[%s19971_s7 + $0x270] sm:$0xff]  ;;  %v20062_v41 = vld [vmem:[#allocation7_spill] sm:$0xff]  ;;  %v16082_v32 = vld [vmem:[%s19969_s5 + $0x228] sm:$0xff]  }
 0x6d6   : > { %15029 = vmatpush3.bf16.msra.mxu1 %v16032_v48  ;;  %v9129_v16 = vrot.slane %v20051_v54, %v17924_v52  ;;  %v10186_v47 = vld [vmem:[%s19971_s7 + $0x290] sm:$0xff]  ;;  %v13787_v7 = vcombine.low %v10178_v9, %v10182_v0  ;;  %v16061_v8 = vld [vmem:[%s19969_s5 + $0x180] sm:$0xff]   ;;  %v20063_v54 = vld [vmem:[#allocation24_spill] sm:$0xff] }
 0x6d7   : > { %15030 = vmatprep.subr.bf16.mxu1 %v16033_v25  ;;  %v9122_v48 = vrot.slane %v9114_v26, %v17924_v52  ;;  %v16067_v33 = vld [vmem:[%s19969_s5 + $0x1b0] sm:$0xff]   ;;  %v10104_v57 = vld [vmem:[%s19971_s7] sm:$0xff] }
 0x6d8   : > { %v16075_v51 = vld [vmem:[%s19969_s5 + $0x1f0] sm:$0xff]   ;;  %v10136_v20 = vld [vmem:[%s19971_s7 + $0x100] sm:$0xff] }
 0x6d9   : > { %v9130_v2 = vcombine.low %v9122_v48, %v9129_v16  ;;  %v20064_v16 = vld [vmem:[#allocation25_spill] sm:$0xff]  ;;  %v10140_v27 = vld [vmem:[%s19971_s7 + $0x120] sm:$0xff] }
 0x6da   : > { %15031 = vmatpush3.bf16.msra.mxu1 %v16033_v25  ;;  %v13788_v25 = vcombine.high %v10178_v9, %v10182_v0  ;;  %v20065_v48 = vcombine.low %v20063_v54, %v20064_v16  ;;  %v16069_v9 = vld [vmem:[%s19969_s5 + $0x1c0] sm:$0xff]   ;;  %v16070_v0 = vld [vmem:[%s19969_s5 + $0x1c8] sm:$0xff]  }
 0x6db   : > { %15032 = vmatprep.subr.bf16.mxu1 %v16034_v3  ;;  %v10184_v16 = vld [vmem:[%s19971_s7 + $0x280] sm:$0xff] }
 0x6dc   : > { %11886 = vmatprep.subr.bf16.mxu0 %v13788_v25  ;;  %v16072_v25 = vld [vmem:[%s19969_s5 + $0x1d8] sm:$0xff]  }
 0x6dd   : > { %11887 = vmatpush1.bf16.msra.mxu0 %v13787_v7  ;;  %v16071_v7 = vld [vmem:[%s19969_s5 + $0x1d0] sm:$0xff]  }
 0x6de   : > { %15033 = vmatpush3.bf16.msra.mxu1 %v16034_v3  ;;  %v10190_v3 = vld [vmem:[%s19971_s7 + $0x2b0] sm:$0xff] }
 0x6df   : > { %15034 = vmatprep.subr.bf16.mxu1 %v16035_v49 }
 0x6e2   : > { %15035 = vmatpush3.bf16.msra.mxu1 %v16035_v49  ;;  %v16055_v49 = vld [vmem:[%s19969_s5 + $0x150] sm:$0xff]  }
 0x6e3   : > { %15036 = vmatprep.subr.bf16.mxu1 %v16036_v39 }
 0x6e6   : > { %15037 = vmatpush3.bf16.msra.mxu1 %v16036_v39  ;;  %v13796_v39 = vcombine.high %v10186_v47, %v10190_v3 }
 0x6e7   : > { %15042 = vmatprep.subr.bf16.mxu1 %v16037_v10 }
 0x6e8   : > { %11888 = vmatprep.subr.bf16.mxu0 %v13796_v39  ;;  %v16080_v39 = vld [vmem:[%s19969_s5 + $0x218] sm:$0xff]  }
 0x6e9   : > { %15039 = vmatmul.mubr.bf16.vlgmr.msra.gmra.mrb[16].mxu1 %v20044_v31  ;;  %v13795_v31 = vcombine.low %v10186_v47, %v10190_v3  ;;  %v20066_v47 = vcombine.low %v18616_v21, %v18620_v5  ;;  %v16073_v5 = vld [vmem:[%s19969_s5 + $0x1e0] sm:$0xff]   ;;  %v16074_v21 = vld [vmem:[%s19969_s5 + $0x1e8] sm:$0xff]  }
 0x6ea   : > { %15043 = vmatpush3.bf16.msra.mxu1 %v16037_v10  ;;  %15058 = vmatprep.mubr.bf16.mxu1 %v20045_v28  ;;  %v10194_v10 = vld [vmem:[%s19971_s7 + $0x2d0] sm:$0xff]  ;;  %v16078_v3 = vld [vmem:[%s19969_s5 + $0x208] sm:$0xff]  }
 0x6eb   : > { %15044 = vmatprep.subr.bf16.mxu1 %v16038_v45  ;;  %11889 = vmatpush1.bf16.msra.mxu0 %v13795_v31  ;;  %v10116_v31 = vld [vmem:[%s19971_s7 + $0x60] sm:$0xff] }
 0x6ee   : > { %15045 = vmatpush3.bf16.msra.mxu1 %v16038_v45  ;;  %v10198_v45 = vld [vmem:[%s19971_s7 + $0x2f0] sm:$0xff] }
 0x6ef   : > { %15046 = vmatprep.subr.bf16.mxu1 %v16039_v19  ;;  %v13804_v28 = vcombine.high %v10194_v10, %v10198_v45 }
 0x6f1   : > { %11890 = vmatprep.subr.bf16.mxu0 %v13804_v28 }
 0x6f2   : > { %15047 = vmatpush3.bf16.msra.mxu1 %v16039_v19  ;;  %v16056_v19 = vld [vmem:[%s19969_s5 + $0x158] sm:$0xff]  }
 0x6f3   : > { %15048 = vmatprep.subr.bf16.mxu1 %v16040_v15 }
 0x6f6   : > { %15049 = vmatpush3.bf16.msra.mxu1 %v16040_v15  ;;  %v13803_v15 = vcombine.low %v10194_v10, %v10198_v45  ;;  %v10112_v45 = vld [vmem:[%s19971_s7 + $0x40] sm:$0xff] }
 0x6f7   : > { %15050 = vmatprep.subr.bf16.mxu1 %v16041_v11 }
 0x6f8   : > { %11891 = vmatpush1.bf16.msra.mxu0 %v13803_v15  ;;  %v10120_v15 = vld [vmem:[%s19971_s7 + $0x80] sm:$0xff] }
 0x6fa   : > { %15051 = vmatpush3.bf16.msra.mxu1 %v16041_v11  ;;  %v16057_v11 = vld [vmem:[%s19969_s5 + $0x160] sm:$0xff]  }
 0x6fb   : > { %15052 = vmatprep.subr.bf16.mxu1 %v16042_v13 }
 0x6fe   : > { %15053 = vmatpush3.bf16.msra.mxu1 %v16042_v13  ;;  %v16058_v13 = vld [vmem:[%s19969_s5 + $0x168] sm:$0xff]  }
 0x6ff   : > { %15054 = vmatprep.subr.bf16.mxu1 %v16043_v60 }
 0x702   : > { %15055 = vmatpush3.bf16.msra.mxu1 %v16043_v60  ;;  %v20055_v60 = vld [vmem:[#allocation16_spill] sm:$0xff] }
 0x703   : > { %15056 = vmatprep.subr.bf16.mxu1 %v16044_v55 }
 0x706   : > { %15057 = vmatpush3.bf16.msra.mxu1 %v16044_v55  ;;  %v20056_v55 = vld [vmem:[#allocation14_spill] sm:$0xff] }
 0x707   : > { %15062 = vmatprep.subr.bf16.mxu1 %v16045_v43 }
 0x709   : > { %15059 = vmatmul.mubr.bf16.vlgmr.msra.gmra.mrb[16].mxu1 %v20046_v62  ;;  %v20058_v62 = vld [vmem:[#allocation11_spill] sm:$0xff] }
 0x70a   : > { %15063 = vmatpush3.bf16.msra.mxu1 %v16045_v43  ;;  %15078 = vmatprep.mubr.bf16.mxu1 %v20047_v30  ;;  %v9302_v43 = vcombine.low %v20056_v55, %v20055_v60  ;;  %v10128_v55 = vld [vmem:[%s19971_s7 + $0xc0] sm:$0xff] }
 0x70b   : > { %15064 = vmatprep.subr.bf16.mxu1 %v16046_v12 }
 0x70e   : > { %15065 = vmatpush3.bf16.msra.mxu1 %v16046_v12  ;;  %v20057_v12 = vld [vmem:[#allocation15_spill] sm:$0xff] }
 0x70f   : > { %15066 = vmatprep.subr.bf16.mxu1 %v16047_v22  ;;  %v9303_v30 = vcombine.low %v20058_v62, %v20057_v12 }
 0x711   : > { %v9331_v40 = vrot.slane %v9303_v30, %v17924_v52  ;;  %v13744_v30 = vcombine.high %v10136_v20, %v10140_v27 }
 0x712   : > { %15067 = vmatpush3.bf16.msra.mxu1 %v16047_v22  ;;  %v20059_v22 = vld [vmem:[#allocation10_spill] sm:$0xff] }
 0x713   : > { %15068 = vmatprep.subr.bf16.mxu1 %v16048_v6  ;;  %v9300_v44 = vcombine.low %v20060_v29, %v20059_v22  ;;  %v10144_v22 = vld [vmem:[%s19971_s7 + $0x140] sm:$0xff] }
 0x714   : > { %v10148_v29 = vld [vmem:[%s19971_s7 + $0x160] sm:$0xff] }
 0x715   : > { %v9310_v4 = vrot.slane %v9300_v44, %v17924_v52  ;;  %v13743_v44 = vcombine.low %v10136_v20, %v10140_v27 }
 0x716   : > { %15069 = vmatpush3.bf16.msra.mxu1 %v16048_v6  ;;  %v20061_v6 = vld [vmem:[#allocation9_spill] sm:$0xff] }
 0x717   : > { %15070 = vmatprep.subr.bf16.mxu1 %v16049_v1  ;;  %v9301_v36 = vcombine.low %v20062_v41, %v20061_v6  ;;  %v13752_v6 = vcombine.high %v10144_v22, %v10148_v29  ;;  %v10152_v41 = vld [vmem:[%s19971_s7 + $0x180] sm:$0xff] }
 0x719   : > { %v9317_v61 = vrot.slane %v9301_v36, %v17924_v52  ;;  %v10156_v36 = vld [vmem:[%s19971_s7 + $0x1a0] sm:$0xff] }
 0x71a   : > { %15071 = vmatpush3.bf16.msra.mxu1 %v16049_v1  ;;  %v16059_v1 = vld [vmem:[%s19969_s5 + $0x170] sm:$0xff]  }
 0x71b   : > { %15072 = vmatprep.subr.bf16.mxu1 %v16050_v24  ;;  %v9332_v35 = vcombine.low %v9310_v4, %v9317_v61  ;;  %v10164_v4 = vld [vmem:[%s19971_s7 + $0x1e0] sm:$0xff]  ;;  %v13759_v61 = vcombine.low %v10152_v41, %v10156_v36 }
 0x71d   : > { %v9340_v26 = vrot.slane %v9332_v35, %v17924_v52  ;;  %v10172_v35 = vld [vmem:[%s19971_s7 + $0x220] sm:$0xff] }
 0x71e   : > { %15073 = vmatpush3.bf16.msra.mxu1 %v16050_v24  ;;  %v9324_v24 = vrot.slane %v9302_v43, %v17924_v52  ;;  %v10132_v43 = vld [vmem:[%s19971_s7 + $0xe0] sm:$0xff] }
 0x71f   : > { %15074 = vmatprep.subr.bf16.mxu1 %v16051_v53  ;;  %v13736_v62 = vcombine.high %v10128_v55, %v10132_v43 }
 0x722   : > { %15075 = vmatpush3.bf16.msra.mxu1 %v16051_v53  ;;  %v9333_v53 = vcombine.low %v9324_v24, %v9331_v40  ;;  %v13760_v24 = vcombine.high %v10152_v41, %v10156_v36  ;;  %v10160_v40 = vld [vmem:[%s19971_s7 + $0x1c0] sm:$0xff] }
 0x723   : > { %15076 = vmatprep.subr.bf16.mxu1 %v16052_v50  ;;  %v13704_v36 = vld [vmem:[%s19970_s6] ss:$0 sm:$0xff] }
 0x726   : > { %15077 = vmatpush3.bf16.msra.mxu1 %v16052_v50  ;;  %v9347_v50 = vrot.slane %v9333_v53, %v17924_v52  ;;  %v16064_v52 = vld [vmem:[%s19969_s5 + $0x198] sm:$0xff]   ;;  %v10168_v53 = vld [vmem:[%s19971_s7 + $0x200] sm:$0xff] }
 0x727   : > { %15082 = vmatprep.subr.bf16.mxu1 %v16053_v38 }
 0x728   : > { %v9348_v46 = vcombine.low %v9340_v26, %v9347_v50  ;;  %v13776_v50 = vcombine.high %v10168_v53, %v10172_v35  ;;  %v10176_v26 = vld [vmem:[%s19971_s7 + $0x240] sm:$0xff] }
 0x729   : > { %15079 = vmatmul.mubr.bf16.vlgmr.msra.gmra.mrb[16].mxu1 %v20054_v23  ;;  %v16068_v23 = vld [vmem:[%s19969_s5 + $0x1b8] sm:$0xff]  }
 0x72a   : > { %15083 = vmatpush3.bf16.msra.mxu1 %v16053_v38  ;;  %15098 = vmatprep.mubr.bf16.mxu1 %v9130_v2  ;;  %v16062_v38 = vld [vmem:[%s19969_s5 + $0x188] sm:$0xff]   ;;  %v16065_v2 = vld [vmem:[%s19969_s5 + $0x1a0] sm:$0xff]  }
 0x72b   : > { %15084 = vmatprep.subr.bf16.mxu1 %v16054_v14 }
 0x72e   : > { %15085 = vmatpush3.bf16.msra.mxu1 %v16054_v14  ;;  %v16063_v14 = vld [vmem:[%s19969_s5 + $0x190] sm:$0xff]  }
 0x72f   : > { %15086 = vmatprep.subr.bf16.mxu1 %v16055_v49 }
 0x732   : > { %15087 = vmatpush3.bf16.msra.mxu1 %v16055_v49  ;;  %v16079_v49 = vld [vmem:[%s19969_s5 + $0x210] sm:$0xff]  }
 0x733   : > { %15088 = vmatprep.subr.bf16.mxu1 %v16056_v19 }
 0x736   : > { %15089 = vmatpush3.bf16.msra.mxu1 %v16056_v19  ;;  %v13720_v19 = vcombine.high %v10112_v45, %v10116_v31 }
 0x737   : > { %15090 = vmatprep.subr.bf16.mxu1 %v16057_v11 }
 0x73a   : > { %15091 = vmatpush3.bf16.msra.mxu1 %v16057_v11  ;;  %v10124_v11 = vld [vmem:[%s19971_s7 + $0xa0] sm:$0xff] }
 0x73b   : > { %15092 = vmatprep.subr.bf16.mxu1 %v16058_v13  ;;  %v13728_v60 = vcombine.high %v10120_v15, %v10124_v11  ;;  %v13727_v12 = vcombine.low %v10120_v15, %v10124_v11  ;;  %v19096_v15 = vld [vmem:[%s19971_s7 + $0x420] sm:$0xff] }
 0x73e   : > { %15093 = vmatpush3.bf16.msra.mxu1 %v16058_v13  ;;  %v13719_v13 = vcombine.low %v10112_v45, %v10116_v31 }
 0x73f   : > { %15094 = vmatprep.subr.bf16.mxu1 %v16059_v1 }
 0x742   : > { %15095 = vmatpush3.bf16.msra.mxu1 %v16059_v1  ;;  %v13751_v1 = vcombine.low %v10144_v22, %v10148_v29 }
 0x743   : > { %15096 = vmatprep.subr.bf16.mxu1 %v16060_v56 }
 0x746   : > { %15097 = vmatpush3.bf16.msra.mxu1 %v16060_v56  ;;  %v13768_v56 = vcombine.high %v10160_v40, %v10164_v4 }
 0x747   : > { %15102 = vmatprep.subr.bf16.mxu1 %v16061_v8 }
 0x749   : > { %15099 = vmatmul.mubr.bf16.vlgmr.msra.gmra.mrb[16].mxu1 %v20065_v48  ;;  %v10188_v48 = vld [vmem:[%s19971_s7 + $0x2a0] sm:$0xff] }
 0x74a   : > { %15103 = vmatpush3.bf16.msra.mxu1 %v16061_v8  ;;  %15118 = vmatprep.mubr.bf16.mxu1 %v9348_v46  ;;  %v13767_v8 = vcombine.low %v10160_v40, %v10164_v4  ;;  %v13775_v46 = vcombine.low %v10168_v53, %v10172_v35 }
 0x74b   : > { %15104 = vmatprep.subr.bf16.mxu1 %v16062_v38 }
 0x74e   : > { %15105 = vmatpush3.bf16.msra.mxu1 %v16062_v38  ;;  %v10180_v38 = vld [vmem:[%s19971_s7 + $0x260] sm:$0xff] }
 0x74f   : > { %15106 = vmatprep.subr.bf16.mxu1 %v16063_v14  ;;  %v13784_v54 = vcombine.high %v10176_v26, %v10180_v38 }
 0x752   : > { %15107 = vmatpush3.bf16.msra.mxu1 %v16063_v14  ;;  %v13783_v14 = vcombine.low %v10176_v26, %v10180_v38 }
 0x753   : > { %15108 = vmatprep.subr.bf16.mxu1 %v16064_v52 }
 0x756   : > { %15109 = vmatpush3.bf16.msra.mxu1 %v16064_v52  ;;  %v13792_v52 = vcombine.high %v10184_v16, %v10188_v48 }
 0x757   : > { %15110 = vmatprep.subr.bf16.mxu1 %v16065_v2 }
 0x75a   : > { %15111 = vmatpush3.bf16.msra.mxu1 %v16065_v2  ;;  %v13791_v2 = vcombine.low %v10184_v16, %v10188_v48 }
 0x75b   : > { %15112 = vmatprep.subr.bf16.mxu1 %v16066_v18 }
 0x75e   : > { %15113 = vmatpush3.bf16.msra.mxu1 %v16066_v18  ;;  %v10192_v18 = vld [vmem:[%s19971_s7 + $0x2c0] sm:$0xff] }
 0x75f   : > { %15114 = vmatprep.subr.bf16.mxu1 %v16067_v33 }
 0x762   : > { %15115 = vmatpush3.bf16.msra.mxu1 %v16067_v33  ;;  %v10196_v33 = vld [vmem:[%s19971_s7 + $0x2e0] sm:$0xff] }
 0x763   : > { %15116 = vmatprep.subr.bf16.mxu1 %v16068_v23 }
 0x766   : > { %15117 = vmatpush3.bf16.msra.mxu1 %v16068_v23  ;;  %v13799_v23 = vcombine.low %v10192_v18, %v10196_v33 }
 0x767   : > { %15122 = vmatprep.subr.bf16.mxu1 %v16069_v9 }
 0x769   : > { %15119 = vmatmul.mubr.bf16.vlgmr.msra.gmra.mrb[16].mxu1 %v20066_v47  ;;  %v10204_v47 = vld [vmem:[%s19971_s7 + $0x320] sm:$0xff] }
 0x76a   : > { %15123 = vmatpush3.bf16.msra.mxu1 %v16069_v9  ;;  %15138 = vmatprep.mubr.bf16.mxu1 %v9702_v63  ;;  %v16077_v63 = vld [vmem:[%s19969_s5 + $0x200] sm:$0xff]   ;;  %v13800_v9 = vcombine.high %v10192_v18, %v10196_v33 }
 0x76b   : > { %15124 = vmatprep.subr.bf16.mxu1 %v16070_v0 }
 0x76e   : > { %15125 = vmatpush3.bf16.msra.mxu1 %v16070_v0  ;;  %v10200_v0 = vld [vmem:[%s19971_s7 + $0x300] sm:$0xff] }
 0x76f   : > { %15126 = vmatprep.subr.bf16.mxu1 %v16071_v7 }
 0x772   : > { %15127 = vmatpush3.bf16.msra.mxu1 %v16071_v7  ;;  %v10202_v7 = vld [vmem:[%s19971_s7 + $0x310] sm:$0xff] }
 0x773   : > { %15128 = vmatprep.subr.bf16.mxu1 %v16072_v25 }
 0x776   : > { %15129 = vmatpush3.bf16.msra.mxu1 %v16072_v25  ;;  %v13807_v25 = vcombine.low %v10200_v0, %v10204_v47 }
 0x777   : > { %15130 = vmatprep.subr.bf16.mxu1 %v16073_v5 }
 0x77a   : > { %15131 = vmatpush3.bf16.msra.mxu1 %v16073_v5  ;;  %v13808_v5 = vcombine.high %v10200_v0, %v10204_v47  ;;  %v10240_v47 = vld [vmem:[%s19971_s7 + $0x440] sm:$0xff] }
 0x77b   : > { %15132 = vmatprep.subr.bf16.mxu1 %v16074_v21 }
 0x77e   : > { %15133 = vmatpush3.bf16.msra.mxu1 %v16074_v21  ;;  %v10206_v21 = vld [vmem:[%s19971_s7 + $0x330] sm:$0xff] }
 0x77f   : > { %15134 = vmatprep.subr.bf16.mxu1 %v16075_v51 }
 0x782   : > { %15135 = vmatpush3.bf16.msra.mxu1 %v16075_v51  ;;  %v10208_v51 = vld [vmem:[%s19971_s7 + $0x340] sm:$0xff] }
 0x783   : > { %15136 = vmatprep.subr.bf16.mxu1 %v16076_v34 }
 0x786   : > { %15137 = vmatpush3.bf16.msra.mxu1 %v16076_v34  ;;  %v10212_v34 = vld [vmem:[%s19971_s7 + $0x360] sm:$0xff] }
 0x787   : > { %15142 = vmatprep.subr.bf16.mxu1 %v16077_v63 }
 0x789   : > { %15139 = vmatmul.mubr.bf16.vlgmr.msra.gmra.mrb[16].mxu1 %v9751_v42  ;;  %v16083_v42 = vld [vmem:[%s19969_s5 + $0x230] sm:$0xff]  }
 0x78a   : > { %15143 = vmatpush3.bf16.msra.mxu1 %v16077_v63  ;;  %15158 = vmatprep.mubr.bf16.mxu1 %v9920_v17  ;;  %v10108_v17 = vld [vmem:[%s19971_s7 + $0x20] sm:$0xff]  ;;  %v13811_v63 = vcombine.low %v10202_v7, %v10206_v21 }
 0x78b   : > { %15144 = vmatprep.subr.bf16.mxu1 %v16078_v3  ;;  %v13712_v10 = vcombine.high %v10104_v57, %v10108_v17  ;;  %v13711_v28 = vcombine.low %v10104_v57, %v10108_v17  ;;  %v10218_v57 = vld [vmem:[%s19971_s7 + $0x390] sm:$0xff] }
 0x78c   : > { %v10222_v17 = vld [vmem:[%s19971_s7 + $0x3b0] sm:$0xff] }
 0x78d   : > { %v13828_v11 = vcombine.high %v10218_v57, %v10222_v17 }
 0x78e   : > { %15145 = vmatpush3.bf16.msra.mxu1 %v16078_v3  ;;  %v13812_v3 = vcombine.high %v10202_v7, %v10206_v21  ;;  %v10244_v7 = vld [vmem:[%s19971_s7 + $0x460] sm:$0xff] }
 0x78f   : > { %15146 = vmatprep.subr.bf16.mxu1 %v16079_v49 }
 0x790   : > { %11892 = vmatprep.subr.bf16.mxu0 %v13812_v3  ;;  %v13848_v3 = vcombine.high %v10240_v47, %v10244_v7 }
 0x791   : > { %11893 = vmatpush1.bf16.msra.mxu0 %v13811_v63 }
 0x792   : > { %15147 = vmatpush3.bf16.msra.mxu1 %v16079_v49  ;;  %v13816_v49 = vcombine.high %v10208_v51, %v10212_v34 }
 0x793   : > { %15148 = vmatprep.subr.bf16.mxu1 %v16080_v39 }
 0x796   : > { %15149 = vmatpush3.bf16.msra.mxu1 %v16080_v39  ;;  %v10210_v39 = vld [vmem:[%s19971_s7 + $0x350] sm:$0xff] }
 0x797   : > { %15150 = vmatprep.subr.bf16.mxu1 %v16081_v59 }
 0x79a   : > { %15151 = vmatpush3.bf16.msra.mxu1 %v16081_v59  ;;  %v10214_v59 = vld [vmem:[%s19971_s7 + $0x370] sm:$0xff] }
 0x79b   : > { %15152 = vmatprep.subr.bf16.mxu1 %v16082_v32  ;;  %v13819_v45 = vcombine.low %v10210_v39, %v10214_v59 }
 0x79e   : > { %15153 = vmatpush3.bf16.msra.mxu1 %v16082_v32  ;;  %v10216_v32 = vld [vmem:[%s19971_s7 + $0x380] sm:$0xff] }
 0x79f   : > { %15154 = vmatprep.subr.bf16.mxu1 %v16083_v42 }
 0x7a2   : > { %15155 = vmatpush3.bf16.msra.mxu1 %v16083_v42  ;;  %v13820_v42 = vcombine.high %v10210_v39, %v10214_v59  ;;  %v10252_v39 = vld [vmem:[%s19971_s7 + $0x4a0] sm:$0xff]  ;;  %v10250_v59 = vld [vmem:[%s19971_s7 + $0x490] sm:$0xff] }
 0x7a3   : > { %15156 = vmatprep.subr.bf16.mxu1 %v16084_v37 }
 0x7a4   : > { %11894 = vmatprep.subr.bf16.mxu0 %v13820_v42  ;;  %v13847_v42 = vcombine.low %v10240_v47, %v10244_v7 }
 0x7a5   : > { %11895 = vmatpush1.bf16.msra.mxu0 %v13819_v45  ;;  %v10260_v45 = vld [vmem:[%s19971_s7 + $0x4e0] sm:$0xff] }
 0x7a6   : > { %15157 = vmatpush3.bf16.msra.mxu1 %v16084_v37  ;;  %v10220_v37 = vld [vmem:[%s19971_s7 + $0x3a0] sm:$0xff]  ;;  %11896 = vmatprep.subr.bf16.mxu0 %v13828_v11 }
 0x7a7   : > { %11704 = vmatprep.subr.bf16.mxu1 %v13712_v10  ;;  %v13815_v10 = vcombine.low %v10208_v51, %v10212_v34  ;;  %v13824_v31 = vcombine.high %v10216_v32, %v10220_v37  ;;  %v13823_v27 = vcombine.low %v10216_v32, %v10220_v37  ;;  %v10248_v34 = vld [vmem:[%s19971_s7 + $0x480] sm:$0xff]  ;;  %v10254_v32 = vld [vmem:[%s19971_s7 + $0x4b0] sm:$0xff] }
 0x7a9   : > { %15159 = vmatmul.mubr.bf16.vlgmr.msra.gmra.mrb[16].mxu1 %v9969_v58  ;;  %v13735_v58 = vcombine.low %v10128_v55, %v10132_v43  ;;  %v19106_v55 = vld [vmem:[%s19971_s7 + $0x410] sm:$0xff] }
 0x7aa   : > { %11705 = vmatpush1.bf16.msra.mxu1 %v13711_v28  ;;  %v10224_v28 = vld [vmem:[%s19971_s7 + $0x3c0] sm:$0xff]  ;;  %v19111_v43 = vld [vmem:[%s19971_s7 + $0x430] sm:$0xff] }
 0x7ab   : > { %11706 = vmatprep.subr.bf16.mxu1 %v13720_v19  ;;  %v19091_v19 = vld [vmem:[%s19971_s7 + $0x400] sm:$0xff]  ;;  %v13843_v20 = vcombine.low %v19106_v55, %v19111_v43  ;;  %v13844_v41 = vcombine.high %v19106_v55, %v19111_v43  ;;  %v10266_v43 = vld [vmem:[%s19971_s7 + $0x510] sm:$0xff] }
 0x7ac   : > { %v10268_v55 = vld [vmem:[%s19971_s7 + $0x520] sm:$0xff] }
 0x7ae   : > { %11707 = vmatpush1.bf16.msra.mxu1 %v13719_v13  ;;  %v10228_v13 = vld [vmem:[%s19971_s7 + $0x3e0] sm:$0xff] }
 0x7af   : > { %11708 = vmatprep.subr.bf16.mxu1 %v13728_v60  ;;  %v13839_v60 = vcombine.low %v19091_v19, %v19096_v15  ;;  %v13831_v29 = vcombine.low %v10224_v28, %v10228_v13 }
 0x7b2   : > { %11709 = vmatpush1.bf16.msra.mxu1 %v13727_v12  ;;  %v10226_v12 = vld [vmem:[%s19971_s7 + $0x3d0] sm:$0xff] }
 0x7b3   : > { %11710 = vmatprep.subr.bf16.mxu1 %v13736_v62  ;;  %v10230_v62 = vld [vmem:[%s19971_s7 + $0x3f0] sm:$0xff] }
 0x7b4   : > { %v13836_v22 = vcombine.high %v10226_v12, %v10230_v62 }
 0x7b6   : > { %11711 = vmatpush1.bf16.msra.mxu1 %v13735_v58  ;;  %v13827_v58 = vcombine.low %v10218_v57, %v10222_v17  ;;  %v13856_v57 = vcombine.high %v10248_v34, %v10252_v39  ;;  %v13860_v17 = vcombine.high %v10250_v59, %v10254_v32 }
 0x7b7   : > { %11712 = vmatprep.subr.bf16.mxu1 %v13744_v30  ;;  %v13832_v30 = vcombine.high %v10224_v28, %v10228_v13  ;;  %v10262_v28 = vld [vmem:[%s19971_s7 + $0x4f0] sm:$0xff] }
 0x7b8   : > { %11897 = vmatpush1.bf16.msra.mxu0 %v13827_v58 }
 0x7b9   : > { %11898 = vmatprep.subr.bf16.mxu0 %v13836_v22  ;;  %v10276_v22 = vld [vmem:[%s19971_s7 + $0x560] sm:$0xff] }
 0x7ba   : > { %11713 = vmatpush1.bf16.msra.mxu1 %v13743_v44  ;;  %v13835_v44 = vcombine.low %v10226_v12, %v10230_v62  ;;  %v10270_v12 = vld [vmem:[%s19971_s7 + $0x530] sm:$0xff] }
 0x7bb   : > { %11714 = vmatprep.subr.bf16.mxu1 %v13752_v6  ;;  %v13840_v6 = vcombine.high %v19091_v19, %v19096_v15  ;;  %v13855_v19 = vcombine.low %v10248_v34, %v10252_v39  ;;  %v13859_v15 = vcombine.low %v10250_v59, %v10254_v32  ;;  %v13876_v58 = vcombine.high %v10266_v43, %v10270_v12  ;;  %v10306_v34 = vld [vmem:[%s19971_s7 + $0x650] sm:$0xff] }
 0x7bc   : > { %11899 = vmatpush1.bf16.msra.mxu0 %v13835_v44  ;;  %v10278_v44 = vld [vmem:[%s19971_s7 + $0x570] sm:$0xff] }
 0x7bd   : > { %11909 = vmatprep.subr.bf16.mxu0 %v13844_v41  ;;  %v13875_v41 = vcombine.low %v10266_v43, %v10270_v12 }
 0x7be   : > { %11715 = vmatpush1.bf16.msra.mxu1 %v13751_v1 }
 0x7bf   : > { %11716 = vmatprep.subr.bf16.mxu1 %v13760_v24 }
 0x7c2   : > { %11717 = vmatpush1.bf16.msra.mxu1 %v13759_v61 }
 0x7c3   : > { %11718 = vmatprep.subr.bf16.mxu1 %v13768_v56 }
 0x7c6   : > { %11719 = vmatpush1.bf16.msra.mxu1 %v13767_v8 }
 0x7c7   : > { %11720 = vmatprep.subr.bf16.mxu1 %v13776_v50 }
 0x7ca   : > { %11721 = vmatpush1.bf16.msra.mxu1 %v13775_v46 }
 0x7cb   : > { %11722 = vmatprep.subr.bf16.mxu1 %v13784_v54 }
 0x7ce   : > { %11723 = vmatpush1.bf16.msra.mxu1 %v13783_v14 }
 0x7cf   : > { %11724 = vmatprep.subr.bf16.mxu1 %v13792_v52 }
 0x7d2   : > { %11725 = vmatpush1.bf16.msra.mxu1 %v13791_v2 }
 0x7d3   : > { %11726 = vmatprep.subr.bf16.mxu1 %v13800_v9  ;;  %v20067_v9 = vld [vmem:[#allocation4_spill] sm:$0xff] }
 0x7d6   : > { %11727 = vmatpush1.bf16.msra.mxu1 %v13799_v23 }
 0x7d7   : > { %11728 = vmatprep.subr.bf16.mxu1 %v13808_v5  ;;  %v10246_v5 = vld [vmem:[%s19971_s7 + $0x470] sm:$0xff] }
 0x7da   : > { %11729 = vmatpush1.bf16.msra.mxu1 %v13807_v25  ;;  %v10242_v25 = vld [vmem:[%s19971_s7 + $0x450] sm:$0xff] }
 0x7db   : > { %11730 = vmatprep.subr.bf16.mxu1 %v13816_v49  ;;  %v13852_v49 = vcombine.high %v10242_v25, %v10246_v5  ;;  %v13851_v37 = vcombine.low %v10242_v25, %v10246_v5  ;;  %v10304_v25 = vld [vmem:[%s19971_s7 + $0x640] sm:$0xff] }
 0x7dc   : > { %v10308_v5 = vld [vmem:[%s19971_s7 + $0x660] sm:$0xff] }
 0x7dd   : > { %v13912_v59 = vcombine.high %v10304_v25, %v10308_v5 }
 0x7de   : > { %11731 = vmatpush1.bf16.msra.mxu1 %v13815_v10  ;;  %v10256_v10 = vld [vmem:[%s19971_s7 + $0x4c0] sm:$0xff] }
 0x7df   : > { %11732 = vmatprep.subr.bf16.mxu1 %v13824_v31  ;;  %v10258_v31 = vld [vmem:[%s19971_s7 + $0x4d0] sm:$0xff]  ;;  %v13864_v11 = vcombine.high %v10256_v10, %v10260_v45  ;;  %v13863_v62 = vcombine.low %v10256_v10, %v10260_v45  ;;  %v13911_v10 = vcombine.low %v10304_v25, %v10308_v5  ;;  %v10113_v5 = vld [vmem:[%s19971_s7 + $0x48] sm:$0xff] }
 0x7e0   : > { %v13868_v13 = vcombine.high %v10258_v31, %v10262_v28 }
 0x7e2   : > { %11733 = vmatpush1.bf16.msra.mxu1 %v13823_v27 }
 0x7e3   : > { %11734 = vmatprep.subr.bf16.mxu1 %v13832_v30  ;;  %v10272_v30 = vld [vmem:[%s19971_s7 + $0x540] sm:$0xff] }
 0x7e6   : > { %11735 = vmatpush1.bf16.msra.mxu1 %v13831_v29  ;;  %v10274_v29 = vld [vmem:[%s19971_s7 + $0x550] sm:$0xff] }
 0x7e7   : > { %11745 = vmatprep.subr.bf16.mxu1 %v13840_v6 }
 0x87c   : > { %v15160_v1 = vpop.f32.mrb[16].mxu1 }
 0x87d   : > { %v10082_v24 = vadd.f32 %v15160_v1, %v13704_v36  ;;  %v10054_v40 = vpop.f32.mrb[17].mxu1  ;;  %v13884_v1 = vcombine.high %v10274_v29, %v10278_v44 }
 0x87e   : > { %v10080_v4 = vadd.f32 %v13704_v36, %v10054_v40  ;;  %v15161_v61 = vpop.f32.mrb[18].mxu1  ;;  %v10284_v40 = vld [vmem:[%s19971_s7 + $0x5a0] sm:$0xff] }
 0x87f   : > { %v10083_v56 = vadd.f32 %v15161_v61, %v13704_v36  ;;  %v10057_v53 = vpop.f32.mrb[19].mxu1  ;;  %v10086_v8 = vmax.f32 %v10082_v24, 0.0  ;;  %v10280_v24 = vld [vmem:[%s19971_s7 + $0x580] sm:$0xff]  ;;  %v10286_v61 = vld [vmem:[%s19971_s7 + $0x5b0] sm:$0xff] }
 0x880   : > { %v10081_v35 = vadd.f32 %v13704_v36, %v10057_v53  ;;  %v10084_v26 = vmax.f32 %v10080_v4, 0.0  ;;  %v13880_v36 = vcombine.high %v10272_v30, %v10276_v22  ;;  %v10282_v4 = vld [vmem:[%s19971_s7 + $0x590] sm:$0xff]  ;;  %v13883_v53 = vcombine.low %v10274_v29, %v10278_v44 }
 0x881   : > { %v10087_v50 = vmax.f32 %v10083_v56, 0.0  ;;  %v13879_v56 = vcombine.low %v10272_v30, %v10276_v22 }
 0x882   : > { %v10085_v38 = vmax.f32 %v10081_v35, 0.0  ;;  %v13888_v35 = vcombine.high %v10280_v24, %v10284_v40 }
 0x883   : > { %v10089_v46 = vpack.c.bf16 %v10087_v50, %v10086_v8  ;;  %v13892_v8 = vcombine.high %v10282_v4, %v10286_v61  ;;  %v10288_v50 = vld [vmem:[%s19971_s7 + $0x5c0] sm:$0xff] }
 0x884   : > { %v10088_v54 = vpack.c.bf16 %v10085_v38, %v10084_v26  ;;  %v10292_v26 = vld [vmem:[%s19971_s7 + $0x5e0] sm:$0xff]  ;;  %v10290_v38 = vld [vmem:[%s19971_s7 + $0x5d0] sm:$0xff] }
 0x885   : > { %v10099_v16 = vunpack.i.h.s16 %v10089_v46 }
 0x886   : > { %v10092_v48 = vunpack.i.h.s16 %v10088_v54 }
 0x887   : > { %v13707_v14 = vpack.c.b16 %v10099_v16, %v10089_v46  ;;  %v10294_v46 = vld [vmem:[%s19971_s7 + $0x5f0] sm:$0xff]  ;;  %v13891_v16 = vcombine.low %v10282_v4, %v10286_v61 }
 0x888   : > { %v13705_v52 = vpack.c.b16 %v10092_v48, %v10088_v54  ;;  %v13887_v54 = vcombine.low %v10280_v24, %v10284_v40  ;;  %v13896_v48 = vcombine.high %v10288_v50, %v10292_v26 }
 0x889   : > { %v10102_v2 = vunpack.i.h.s16 %v13707_v14 }
 0x88a   : > { %v10095_v18 = vunpack.i.h.s16 %v13705_v52  ;;  %v13709_v33 = vpack.c.b16 %v13707_v14, %v13705_v52  ;;  %v13900_v14 = vcombine.high %v10290_v38, %v10294_v46  ;;  %v10296_v52 = vld [vmem:[%s19971_s7 + $0x600] sm:$0xff] }
 0x88c   : > { %v13710_v23 = vpack.c.b16 %v10102_v2, %v10095_v18  ;;  %v19129_v0 = vrot.slane %v13709_v33, %v20067_v9  ;;  %v10300_v2 = vld [vmem:[%s19971_s7 + $0x620] sm:$0xff]  ;;  %v10298_v18 = vld [vmem:[%s19971_s7 + $0x610] sm:$0xff] }
 0x88d   : > { %v10302_v33 = vld [vmem:[%s19971_s7 + $0x630] sm:$0xff]  ;;  %v13904_v47 = vcombine.high %v10296_v52, %v10300_v2 }
 0x88e   : > { %v19144_v21 = vrot.slane %v13710_v23, %v20067_v9  ;;  %v19148_v51 = vcombine.high %v19129_v0, %v19129_v0  ;;  %v13895_v23 = vcombine.low %v10288_v50, %v10292_v26  ;;  %v13899_v9 = vcombine.low %v10290_v38, %v10294_v46 }
 0x88f   : > { %v13908_v7 = vcombine.high %v10298_v18, %v10302_v33  ;;  %v13907_v39 = vcombine.low %v10298_v18, %v10302_v33 }
 0x890   : > { %11736 = vmatprep.mubr.bf16.mxu1 %v19148_v51  ;;  %11900 = vmatprep.mubr.bf16.mxu0 %v19148_v51  ;;  %v19157_v63 = vcombine.high %v19144_v21, %v19144_v21 }
 0x891   : > { %11737 = vmatmul.mubr.bf16.vlgmr.msra.gmra.mrb[20].mxu1 %v19129_v0  ;;  %11901 = vmatmul.mubr.bf16.vlgmr.msra.gmra.mrb[0].mxu0 %v19129_v0 }
 0x892   : > { %11746 = vmatpush1.bf16.msra.mxu1 %v13839_v60  ;;  %11910 = vmatpush1.bf16.msra.mxu0 %v13843_v20  ;;  %v10264_v60 = vld [vmem:[%s19971_s7 + $0x500] sm:$0xff]  ;;  %v13867_v20 = vcombine.low %v10258_v31, %v10262_v28 }
 0x893   : > { %11777 = vmatprep.mubr.bf16.mxu1 %v19157_v63  ;;  %11941 = vmatprep.mubr.bf16.mxu0 %v19157_v63  ;;  %v13872_v27 = vcombine.high %v10264_v60, %v10268_v55  ;;  %v13871_v6 = vcombine.low %v10264_v60, %v10268_v55 }
 0x894   : > { %11747 = vmatprep.subr.bf16.mxu1 %v13848_v3  ;;  %11911 = vmatprep.subr.bf16.mxu0 %v13852_v49  ;;  %v10310_v3 = vld [vmem:[%s19971_s7 + $0x670] sm:$0xff]  ;;  %v13903_v49 = vcombine.low %v10296_v52, %v10300_v2 }
 0x895   : > { %v13916_v32 = vcombine.high %v10306_v34, %v10310_v3  ;;  %v13915_v45 = vcombine.low %v10306_v34, %v10310_v3  ;;  %v10117_v34 = vld [vmem:[%s19971_s7 + $0x68] sm:$0xff] }
 0x896   : > { %11748 = vmatpush1.bf16.msra.mxu1 %v13847_v42  ;;  %11912 = vmatpush1.bf16.msra.mxu0 %v13851_v37  ;;  %v10312_v42 = vld [vmem:[%s19971_s7 + $0x680] sm:$0xff] }
 0x897   : > { %11749 = vmatprep.subr.bf16.mxu1 %v13856_v57  ;;  %11913 = vmatprep.subr.bf16.mxu0 %v13860_v17  ;;  %v10316_v37 = vld [vmem:[%s19971_s7 + $0x6a0] sm:$0xff]  ;;  %v10314_v57 = vld [vmem:[%s19971_s7 + $0x690] sm:$0xff] }
 0x898   : > { %v10318_v17 = vld [vmem:[%s19971_s7 + $0x6b0] sm:$0xff]  ;;  %v13920_v31 = vcombine.high %v10312_v42, %v10316_v37  ;;  %v13919_v60 = vcombine.low %v10312_v42, %v10316_v37  ;;  %v10129_v37 = vld [vmem:[%s19971_s7 + $0xc8] sm:$0xff] }
 0x899   : > { %v13924_v28 = vcombine.high %v10314_v57, %v10318_v17  ;;  %v13923_v55 = vcombine.low %v10314_v57, %v10318_v17  ;;  %v10133_v57 = vld [vmem:[%s19971_s7 + $0xe8] sm:$0xff] }
 0x89a   : > { %11750 = vmatpush1.bf16.msra.mxu1 %v13855_v19  ;;  %11914 = vmatpush1.bf16.msra.mxu0 %v13859_v15  ;;  %v10320_v19 = vld [vmem:[%s19971_s7 + $0x6c0] sm:$0xff] }
 0x89b   : > { %11751 = vmatprep.subr.bf16.mxu1 %v13864_v11  ;;  %11915 = vmatprep.subr.bf16.mxu0 %v13868_v13  ;;  %v10324_v15 = vld [vmem:[%s19971_s7 + $0x6e0] sm:$0xff]  ;;  %v10322_v11 = vld [vmem:[%s19971_s7 + $0x6d0] sm:$0xff] }
 0x89c   : > { %v10326_v13 = vld [vmem:[%s19971_s7 + $0x6f0] sm:$0xff]  ;;  %v13928_v43 = vcombine.high %v10320_v19, %v10324_v15  ;;  %v13927_v30 = vcombine.low %v10320_v19, %v10324_v15  ;;  %v10145_v15 = vld [vmem:[%s19971_s7 + $0x148] sm:$0xff] }
 0x89d   : > { %v13932_v12 = vcombine.high %v10322_v11, %v10326_v13  ;;  %v13931_v22 = vcombine.low %v10322_v11, %v10326_v13  ;;  %v10149_v11 = vld [vmem:[%s19971_s7 + $0x168] sm:$0xff] }
 0x89e   : > { %11752 = vmatpush1.bf16.msra.mxu1 %v13863_v62  ;;  %11916 = vmatpush1.bf16.msra.mxu0 %v13867_v20  ;;  %v10328_v62 = vld [vmem:[%s19971_s7 + $0x700] sm:$0xff] }
 0x89f   : > { %11753 = vmatprep.subr.bf16.mxu1 %v13872_v27  ;;  %11917 = vmatprep.subr.bf16.mxu0 %v13876_v58  ;;  %v10332_v20 = vld [vmem:[%s19971_s7 + $0x720] sm:$0xff]  ;;  %v10330_v27 = vld [vmem:[%s19971_s7 + $0x710] sm:$0xff] }
 0x8a0   : > { %v10334_v58 = vld [vmem:[%s19971_s7 + $0x730] sm:$0xff]  ;;  %v13936_v29 = vcombine.high %v10328_v62, %v10332_v20  ;;  %v13935_v24 = vcombine.low %v10328_v62, %v10332_v20  ;;  %v10161_v20 = vld [vmem:[%s19971_s7 + $0x1c8] sm:$0xff] }
 0x8a1   : > { %v13940_v44 = vcombine.high %v10330_v27, %v10334_v58  ;;  %v13939_v40 = vcombine.low %v10330_v27, %v10334_v58  ;;  %v10165_v27 = vld [vmem:[%s19971_s7 + $0x1e8] sm:$0xff] }
 0x8a2   : > { %11754 = vmatpush1.bf16.msra.mxu1 %v13871_v6  ;;  %11918 = vmatpush1.bf16.msra.mxu0 %v13875_v41  ;;  %v10336_v6 = vld [vmem:[%s19971_s7 + $0x740] sm:$0xff] }
 0x8a3   : > { %11755 = vmatprep.subr.bf16.mxu1 %v13880_v36  ;;  %11919 = vmatprep.subr.bf16.mxu0 %v13884_v1  ;;  %v10340_v41 = vld [vmem:[%s19971_s7 + $0x760] sm:$0xff]  ;;  %v10338_v36 = vld [vmem:[%s19971_s7 + $0x750] sm:$0xff] }
 0x8a4   : > { %v10342_v1 = vld [vmem:[%s19971_s7 + $0x770] sm:$0xff]  ;;  %v13944_v4 = vcombine.high %v10336_v6, %v10340_v41  ;;  %v13943_v50 = vcombine.low %v10336_v6, %v10340_v41  ;;  %v10177_v41 = vld [vmem:[%s19971_s7 + $0x248] sm:$0xff] }
 0x8a5   : > { %v13948_v61 = vcombine.high %v10338_v36, %v10342_v1  ;;  %v13947_v26 = vcombine.low %v10338_v36, %v10342_v1  ;;  %v10181_v36 = vld [vmem:[%s19971_s7 + $0x268] sm:$0xff] }
 0x8a6   : > { %11756 = vmatpush1.bf16.msra.mxu1 %v13879_v56  ;;  %11920 = vmatpush1.bf16.msra.mxu0 %v13883_v53  ;;  %v10344_v56 = vld [vmem:[%s19971_s7 + $0x780] sm:$0xff] }
 0x8a7   : > { %11757 = vmatprep.subr.bf16.mxu1 %v13888_v35  ;;  %11921 = vmatprep.subr.bf16.mxu0 %v13892_v8  ;;  %v10348_v53 = vld [vmem:[%s19971_s7 + $0x7a0] sm:$0xff]  ;;  %v10346_v35 = vld [vmem:[%s19971_s7 + $0x790] sm:$0xff] }
 0x8a8   : > { %v10350_v8 = vld [vmem:[%s19971_s7 + $0x7b0] sm:$0xff]  ;;  %v13952_v38 = vcombine.high %v10344_v56, %v10348_v53  ;;  %v13951_v52 = vcombine.low %v10344_v56, %v10348_v53  ;;  %v10193_v53 = vld [vmem:[%s19971_s7 + $0x2c8] sm:$0xff] }
 0x8a9   : > { %v13956_v46 = vcombine.high %v10346_v35, %v10350_v8  ;;  %v13955_v2 = vcombine.low %v10346_v35, %v10350_v8  ;;  %v10197_v35 = vld [vmem:[%s19971_s7 + $0x2e8] sm:$0xff] }
 0x8aa   : > { %11758 = vmatpush1.bf16.msra.mxu1 %v13887_v54  ;;  %11922 = vmatpush1.bf16.msra.mxu0 %v13891_v16  ;;  %v10352_v54 = vld [vmem:[%s19971_s7 + $0x7c0] sm:$0xff] }
 0x8ab   : > { %11759 = vmatprep.subr.bf16.mxu1 %v13896_v48  ;;  %11923 = vmatprep.subr.bf16.mxu0 %v13900_v14  ;;  %v10356_v16 = vld [vmem:[%s19971_s7 + $0x7e0] sm:$0xff]  ;;  %v10354_v48 = vld [vmem:[%s19971_s7 + $0x7d0] sm:$0xff] }
 0x8ac   : > { %v10358_v14 = vld [vmem:[%s19971_s7 + $0x7f0] sm:$0xff]  ;;  %v13960_v18 = vcombine.high %v10352_v54, %v10356_v16 }
 0x8ad   : > { %v13964_v33 = vcombine.high %v10354_v48, %v10358_v14 }
 0x8ae   : > { %11760 = vmatpush1.bf16.msra.mxu1 %v13895_v23  ;;  %11924 = vmatpush1.bf16.msra.mxu0 %v13899_v9  ;;  %v10105_v23 = vld [vmem:[%s19971_s7 + $0x8] sm:$0xff] }
 0x8af   : > { %11761 = vmatprep.subr.bf16.mxu1 %v13904_v47  ;;  %11925 = vmatprep.subr.bf16.mxu0 %v13908_v7  ;;  %v10109_v9 = vld [vmem:[%s19971_s7 + $0x28] sm:$0xff]  ;;  %v13959_v47 = vcombine.low %v10352_v54, %v10356_v16  ;;  %v13963_v7 = vcombine.low %v10354_v48, %v10358_v14 }
 0x8b0   : > { %v13714_v25 = vcombine.high %v10105_v23, %v10109_v9  ;;  %v13713_v3 = vcombine.low %v10105_v23, %v10109_v9  ;;  %v10209_v16 = vld [vmem:[%s19971_s7 + $0x348] sm:$0xff] }
 0x8b1   : > { %v10213_v48 = vld [vmem:[%s19971_s7 + $0x368] sm:$0xff] }
 0x8b2   : > { %11762 = vmatpush1.bf16.msra.mxu1 %v13903_v49  ;;  %11926 = vmatpush1.bf16.msra.mxu0 %v13907_v39  ;;  %v13722_v49 = vcombine.high %v10113_v5, %v10117_v34  ;;  %v10121_v39 = vld [vmem:[%s19971_s7 + $0x88] sm:$0xff] }
 0x8b3   : > { %11763 = vmatprep.subr.bf16.mxu1 %v13912_v59  ;;  %11927 = vmatprep.subr.bf16.mxu0 %v13916_v32  ;;  %v10125_v59 = vld [vmem:[%s19971_s7 + $0xa8] sm:$0xff]  ;;  %v13721_v32 = vcombine.low %v10113_v5, %v10117_v34 }
 0x8b4   : > { %v13730_v42 = vcombine.high %v10121_v39, %v10125_v59  ;;  %v13729_v17 = vcombine.low %v10121_v39, %v10125_v59  ;;  %v10225_v9 = vld [vmem:[%s19971_s7 + $0x3c8] sm:$0xff]  ;;  %v16085_v39 = vld [vmem:[%s19973_s9 + $0x40] sm:$0xff]  }
 0x8b5   : > { %v10233_v5 = vld [vmem:[%s19971_s7 + $0x408] sm:$0xff] }
 0x8b6   : > { %11764 = vmatpush1.bf16.msra.mxu1 %v13911_v10  ;;  %11928 = vmatpush1.bf16.msra.mxu0 %v13915_v45  ;;  %v13738_v10 = vcombine.high %v10129_v37, %v10133_v57  ;;  %v10137_v45 = vld [vmem:[%s19971_s7 + $0x108] sm:$0xff] }
 0x8b7   : > { %11765 = vmatprep.subr.bf16.mxu1 %v13920_v31  ;;  %11929 = vmatprep.subr.bf16.mxu0 %v13924_v28  ;;  %v10141_v31 = vld [vmem:[%s19971_s7 + $0x128] sm:$0xff]  ;;  %v13737_v28 = vcombine.low %v10129_v37, %v10133_v57  ;;  %v16086_v37 = vld [vmem:[%s19973_s9] sm:$0xff]  }
 0x8b8   : > { %v13746_v19 = vcombine.high %v10137_v45, %v10141_v31  ;;  %v13745_v13 = vcombine.low %v10137_v45, %v10141_v31  ;;  %v10237_v34 = vld [vmem:[%s19971_s7 + $0x428] sm:$0xff] }
 0x8b9   : > { %v10241_v59 = vld [vmem:[%s19971_s7 + $0x448] sm:$0xff] }
 0x8ba   : > { %11766 = vmatpush1.bf16.msra.mxu1 %v13919_v60  ;;  %11930 = vmatpush1.bf16.msra.mxu0 %v13923_v55  ;;  %v13754_v60 = vcombine.high %v10145_v15, %v10149_v11  ;;  %v10153_v55 = vld [vmem:[%s19971_s7 + $0x188] sm:$0xff] }
 0x8bb   : > { %11767 = vmatprep.subr.bf16.mxu1 %v13928_v43  ;;  %11931 = vmatprep.subr.bf16.mxu0 %v13932_v12  ;;  %v10157_v43 = vld [vmem:[%s19971_s7 + $0x1a8] sm:$0xff]  ;;  %v13753_v12 = vcombine.low %v10145_v15, %v10149_v11  ;;  %v16089_v15 = vld [vmem:[%s19973_s9 + $0x50] sm:$0xff]  }
 0x8bc   : > { %v13762_v62 = vcombine.high %v10153_v55, %v10157_v43  ;;  %v13761_v58 = vcombine.low %v10153_v55, %v10157_v43  ;;  %v16087_v45 = vld [vmem:[%s19973_s9 + $0x48] sm:$0xff]   ;;  %v16090_v55 = vld [vmem:[%s19973_s9 + $0x10] sm:$0xff]  }
 0x8bd   : > { %v10257_v11 = vld [vmem:[%s19971_s7 + $0x4c8] sm:$0xff] }
 0x8be   : > { %11768 = vmatpush1.bf16.msra.mxu1 %v13927_v30  ;;  %11932 = vmatpush1.bf16.msra.mxu0 %v13931_v22  ;;  %v13770_v30 = vcombine.high %v10161_v20, %v10165_v27  ;;  %v10169_v22 = vld [vmem:[%s19971_s7 + $0x208] sm:$0xff] }
 0x8bf   : > { %11769 = vmatprep.subr.bf16.mxu1 %v13936_v29  ;;  %11933 = vmatprep.subr.bf16.mxu0 %v13940_v44  ;;  %v10173_v29 = vld [vmem:[%s19971_s7 + $0x228] sm:$0xff]  ;;  %v13769_v44 = vcombine.low %v10161_v20, %v10165_v27 }
 0x8c0   : > { %v13778_v6 = vcombine.high %v10169_v22, %v10173_v29  ;;  %v13777_v1 = vcombine.low %v10169_v22, %v10173_v29  ;;  %v10269_v20 = vld [vmem:[%s19971_s7 + $0x528] sm:$0xff]  ;;  %v16093_v22 = vld [vmem:[%s19973_s9 + $0x60] sm:$0xff]  }
 0x8c1   : > { %v10273_v29 = vld [vmem:[%s19971_s7 + $0x548] sm:$0xff] }
 0x8c2   : > { %11770 = vmatpush1.bf16.msra.mxu1 %v13935_v24  ;;  %11934 = vmatpush1.bf16.msra.mxu0 %v13939_v40  ;;  %v13786_v24 = vcombine.high %v10177_v41, %v10181_v36  ;;  %v10185_v40 = vld [vmem:[%s19971_s7 + $0x288] sm:$0xff] }
 0x8c3   : > { %11771 = vmatprep.subr.bf16.mxu1 %v13944_v4  ;;  %11935 = vmatprep.subr.bf16.mxu0 %v13948_v61  ;;  %v10189_v4 = vld [vmem:[%s19971_s7 + $0x2a8] sm:$0xff]  ;;  %v13785_v61 = vcombine.low %v10177_v41, %v10181_v36  ;;  %v16094_v41 = vld [vmem:[%s19973_s9 + $0x20] sm:$0xff]  }
 0x8c4   : > { %v13794_v56 = vcombine.high %v10185_v40, %v10189_v4  ;;  %v13793_v8 = vcombine.low %v10185_v40, %v10189_v4  ;;  %v10285_v40 = vld [vmem:[%s19971_s7 + $0x5a8] sm:$0xff] }
 0x8c6   : > { %11772 = vmatpush1.bf16.msra.mxu1 %v13943_v50  ;;  %11936 = vmatpush1.bf16.msra.mxu0 %v13947_v26  ;;  %v13802_v50 = vcombine.high %v10193_v53, %v10197_v35  ;;  %v10201_v26 = vld [vmem:[%s19971_s7 + $0x308] sm:$0xff] }
 0x8c7   : > { %11773 = vmatprep.subr.bf16.mxu1 %v13952_v38  ;;  %11937 = vmatprep.subr.bf16.mxu0 %v13956_v46  ;;  %v10205_v38 = vld [vmem:[%s19971_s7 + $0x328] sm:$0xff]  ;;  %v13801_v46 = vcombine.low %v10193_v53, %v10197_v35 }
 0x8c8   : > { %v13810_v54 = vcombine.high %v10201_v26, %v10205_v38  ;;  %v13809_v14 = vcombine.low %v10201_v26, %v10205_v38  ;;  %v10289_v53 = vld [vmem:[%s19971_s7 + $0x5c8] sm:$0xff] }
 0x8c9   : > { %v10293_v35 = vld [vmem:[%s19971_s7 + $0x5e8] sm:$0xff] }
 0x8ca   : > { %11774 = vmatpush1.bf16.msra.mxu1 %v13951_v52  ;;  %11938 = vmatpush1.bf16.msra.mxu0 %v13955_v2  ;;  %v13818_v52 = vcombine.high %v10209_v16, %v10213_v48  ;;  %v10217_v2 = vld [vmem:[%s19971_s7 + $0x388] sm:$0xff] }
 0x8cb   : > { %11775 = vmatprep.subr.bf16.mxu1 %v13960_v18  ;;  %11939 = vmatprep.subr.bf16.mxu0 %v13964_v33  ;;  %v10221_v18 = vld [vmem:[%s19971_s7 + $0x3a8] sm:$0xff]  ;;  %v13817_v33 = vcombine.low %v10209_v16, %v10213_v48  ;;  %v16098_v48 = vld [vmem:[%s19973_s9 + $0x30] sm:$0xff]  }
 0x8cc   : > { %v13826_v23 = vcombine.high %v10217_v2, %v10221_v18  ;;  %v10297_v26 = vld [vmem:[%s19971_s7 + $0x608] sm:$0xff] }
 0x8cd   : > { %v10301_v38 = vld [vmem:[%s19971_s7 + $0x628] sm:$0xff] }
 0x8ce   : > { %11776 = vmatpush1.bf16.msra.mxu1 %v13959_v47  ;;  %11940 = vmatpush1.bf16.msra.mxu0 %v13963_v7  ;;  %v10229_v47 = vld [vmem:[%s19971_s7 + $0x3e8] sm:$0xff]  ;;  %v13825_v7 = vcombine.low %v10217_v2, %v10221_v18  ;;  %v13906_v16 = vcombine.high %v10297_v26, %v10301_v38  ;;  %v16099_v2 = vld [vmem:[%s19973_s9 + $0x78] sm:$0xff]  }
 0x8cf   : > { %11786 = vmatprep.subr.bf16.mxu1 %v13714_v25  ;;  %v13834_v25 = vcombine.high %v10225_v9, %v10229_v47  ;;  %14382 = vmatprep.subr.bf16.mxu0 %v16085_v39  ;;  %v16100_v18 = vld [vmem:[%s19973_s9 + $0x38] sm:$0xff]   ;;  %v10329_v39 = vld [vmem:[%s19971_s7 + $0x708] sm:$0xff] }
 0x8d1   : > { %11778 = vmatmul.mubr.bf16.vlgmr.msra.gmra.mrb[20].mxu1 %v19144_v21  ;;  %11942 = vmatmul.mubr.bf16.vlgmr.msra.gmra.mrb[0].mxu0 %v19144_v21 }
 0x8d2   : > { %11787 = vmatpush1.bf16.msra.mxu1 %v13713_v3  ;;  %11818 = vmatprep.mubr.bf16.mxu1 %v19148_v51  ;;  %v13833_v3 = vcombine.low %v10225_v9, %v10229_v47  ;;  %v10313_v9 = vld [vmem:[%s19971_s7 + $0x688] sm:$0xff] }
 0x8d3   : > { %11788 = vmatprep.subr.bf16.mxu1 %v13722_v49  ;;  %v13842_v49 = vcombine.high %v10233_v5, %v10237_v34  ;;  %14383 = vmatpush3.bf16.msra.mxu0 %v16086_v37  ;;  %v10317_v47 = vld [vmem:[%s19971_s7 + $0x6a8] sm:$0xff] }
 0x8d4   : > { %14384 = vmatprep.subr.bf16.mxu0 %v16087_v45  ;;  %v10337_v37 = vld [vmem:[%s19971_s7 + $0x748] sm:$0xff] }
 0x8d5   : > { %v10345_v45 = vld [vmem:[%s19971_s7 + $0x788] sm:$0xff] }
 0x8d6   : > { %11789 = vmatpush1.bf16.msra.mxu1 %v13721_v32  ;;  %v10245_v32 = vld [vmem:[%s19971_s7 + $0x468] sm:$0xff] }
 0x8d7   : > { %11790 = vmatprep.subr.bf16.mxu1 %v13730_v42  ;;  %v13841_v42 = vcombine.low %v10233_v5, %v10237_v34  ;;  %v13850_v57 = vcombine.high %v10241_v59, %v10245_v32  ;;  %v13849_v31 = vcombine.low %v10241_v59, %v10245_v32  ;;  %v10321_v5 = vld [vmem:[%s19971_s7 + $0x6c8] sm:$0xff] }
 0x8d8   : > { %v10325_v34 = vld [vmem:[%s19971_s7 + $0x6e8] sm:$0xff] }
 0x8d9   : > { %v10333_v59 = vld [vmem:[%s19971_s7 + $0x728] sm:$0xff]  ;;  %v13929_v32 = vcombine.low %v10321_v5, %v10325_v34 }
 0x8da   : > { %11791 = vmatpush1.bf16.msra.mxu1 %v13729_v17  ;;  %v10249_v17 = vld [vmem:[%s19971_s7 + $0x488] sm:$0xff] }
 0x8db   : > { %11792 = vmatprep.subr.bf16.mxu1 %v13738_v10  ;;  %v10253_v10 = vld [vmem:[%s19971_s7 + $0x4a8] sm:$0xff] }
 0x8de   : > { %11793 = vmatpush1.bf16.msra.mxu1 %v13737_v28  ;;  %v16088_v28 = vld [vmem:[%s19973_s9 + $0x8] sm:$0xff]  }
 0x8df   : > { %11794 = vmatprep.subr.bf16.mxu1 %v13746_v19  ;;  %v13858_v19 = vcombine.high %v10249_v17, %v10253_v10  ;;  %14385 = vmatpush3.bf16.msra.mxu0 %v16088_v28 }
 0x8e0   : > { %14386 = vmatprep.subr.bf16.mxu0 %v16089_v15  ;;  %v10353_v15 = vld [vmem:[%s19971_s7 + $0x7c8] sm:$0xff] }
 0x8e2   : > { %11795 = vmatpush1.bf16.msra.mxu1 %v13745_v13  ;;  %v10261_v13 = vld [vmem:[%s19971_s7 + $0x4e8] sm:$0xff] }
 0x8e3   : > { %11796 = vmatprep.subr.bf16.mxu1 %v13754_v60  ;;  %v13857_v60 = vcombine.low %v10249_v17, %v10253_v10  ;;  %v13866_v43 = vcombine.high %v10257_v11, %v10261_v13  ;;  %14387 = vmatpush3.bf16.msra.mxu0 %v16090_v55  ;;  %v13865_v27 = vcombine.low %v10257_v11, %v10261_v13  ;;  %v10357_v11 = vld [vmem:[%s19971_s7 + $0x7e8] sm:$0xff]  ;;  %v10107_v55 = vld [vmem:[%s19971_s7 + $0x18] sm:$0xff] }
 0x8e4   : > { %v13937_v17 = vcombine.low %v10329_v39, %v10333_v59 }
 0x8e6   : > { %11797 = vmatpush1.bf16.msra.mxu1 %v13753_v12  ;;  %v16091_v12 = vld [vmem:[%s19973_s9 + $0x58] sm:$0xff]  }
 0x8e7   : > { %11798 = vmatprep.subr.bf16.mxu1 %v13762_v62  ;;  %v10265_v62 = vld [vmem:[%s19971_s7 + $0x508] sm:$0xff]  ;;  %14388 = vmatprep.subr.bf16.mxu0 %v16091_v12  ;;  %v13961_v12 = vcombine.low %v10353_v15, %v10357_v11 }
 0x8ea   : > { %11799 = vmatpush1.bf16.msra.mxu1 %v13761_v58  ;;  %v16092_v58 = vld [vmem:[%s19973_s9 + $0x18] sm:$0xff]  }
 0x8eb   : > { %11800 = vmatprep.subr.bf16.mxu1 %v13770_v30  ;;  %v13874_v30 = vcombine.high %v10265_v62, %v10269_v20  ;;  %14389 = vmatpush3.bf16.msra.mxu0 %v16092_v58 }
 0x8ec   : > { %14390 = vmatprep.subr.bf16.mxu0 %v16093_v22  ;;  %v10123_v22 = vld [vmem:[%s19971_s7 + $0x98] sm:$0xff] }
 0x8ee   : > { %11801 = vmatpush1.bf16.msra.mxu1 %v13769_v44  ;;  %v10277_v44 = vld [vmem:[%s19971_s7 + $0x568] sm:$0xff] }
 0x8ef   : > { %11802 = vmatprep.subr.bf16.mxu1 %v13778_v6  ;;  %v13873_v6 = vcombine.low %v10265_v62, %v10269_v20  ;;  %v13882_v36 = vcombine.high %v10273_v29, %v10277_v44  ;;  %14391 = vmatpush3.bf16.msra.mxu0 %v16094_v41  ;;  %v13881_v4 = vcombine.low %v10273_v29, %v10277_v44  ;;  %v10115_v20 = vld [vmem:[%s19971_s7 + $0x58] sm:$0xff] }
 0x8f0   : > { %v10127_v29 = vld [vmem:[%s19971_s7 + $0xb8] sm:$0xff] }
 0x8f1   : > { %v10131_v41 = vld [vmem:[%s19971_s7 + $0xd8] sm:$0xff] }
 0x8f2   : > { %11803 = vmatpush1.bf16.msra.mxu1 %v13777_v1  ;;  %v16095_v1 = vld [vmem:[%s19973_s9 + $0x68] sm:$0xff]  }
 0x8f3   : > { %11804 = vmatprep.subr.bf16.mxu1 %v13786_v24  ;;  %v10281_v24 = vld [vmem:[%s19971_s7 + $0x588] sm:$0xff]  ;;  %14392 = vmatprep.subr.bf16.mxu0 %v16095_v1  ;;  %v13733_v1 = vcombine.low %v10123_v22, %v10127_v29 }
 0x8f6   : > { %11805 = vmatpush1.bf16.msra.mxu1 %v13785_v61  ;;  %v16096_v61 = vld [vmem:[%s19973_s9 + $0x28] sm:$0xff]  }
 0x8f7   : > { %11806 = vmatprep.subr.bf16.mxu1 %v13794_v56  ;;  %v13890_v56 = vcombine.high %v10281_v24, %v10285_v40  ;;  %14393 = vmatpush3.bf16.msra.mxu0 %v16096_v61 }
 0x8fa   : > { %11807 = vmatpush1.bf16.msra.mxu1 %v13793_v8  ;;  %v13889_v8 = vcombine.low %v10281_v24, %v10285_v40  ;;  %v10139_v40 = vld [vmem:[%s19971_s7 + $0x118] sm:$0xff] }
 0x8fb   : > { %11808 = vmatprep.subr.bf16.mxu1 %v13802_v50  ;;  %v13898_v50 = vcombine.high %v10289_v53, %v10293_v35 }
 0x8fe   : > { %11809 = vmatpush1.bf16.msra.mxu1 %v13801_v46  ;;  %v13897_v46 = vcombine.low %v10289_v53, %v10293_v35  ;;  %v10151_v53 = vld [vmem:[%s19971_s7 + $0x178] sm:$0xff] }
 0x8ff   : > { %11810 = vmatprep.subr.bf16.mxu1 %v13810_v54  ;;  %v16097_v54 = vld [vmem:[%s19973_s9 + $0x70] sm:$0xff]  }
 0x900   : > { %14394 = vmatprep.subr.bf16.mxu0 %v16097_v54  ;;  %v10163_v54 = vld [vmem:[%s19971_s7 + $0x1d8] sm:$0xff] }
 0x901   : > { %14395 = vmatpush3.bf16.msra.mxu0 %v16098_v48 }
 0x902   : > { %11811 = vmatpush1.bf16.msra.mxu1 %v13809_v14  ;;  %v10305_v14 = vld [vmem:[%s19971_s7 + $0x648] sm:$0xff]  ;;  %14396 = vmatprep.subr.bf16.mxu0 %v16099_v2  ;;  %v10175_v2 = vld [vmem:[%s19971_s7 + $0x238] sm:$0xff] }
 0x903   : > { %11812 = vmatprep.subr.bf16.mxu1 %v13818_v52  ;;  %v10309_v52 = vld [vmem:[%s19971_s7 + $0x668] sm:$0xff] }
 0x905   : > { %14397 = vmatpush3.bf16.msra.mxu0 %v16100_v18 }
 0x906   : > { %11813 = vmatpush1.bf16.msra.mxu1 %v13817_v33  ;;  %v13905_v33 = vcombine.low %v10297_v26, %v10301_v38  ;;  %v10159_v26 = vld [vmem:[%s19971_s7 + $0x1b8] sm:$0xff] }
 0x907   : > { %11814 = vmatprep.subr.bf16.mxu1 %v13826_v23  ;;  %v13914_v23 = vcombine.high %v10305_v14, %v10309_v52 }
 0x90a   : > { %11815 = vmatpush1.bf16.msra.mxu1 %v13825_v7  ;;  %v13913_v7 = vcombine.low %v10305_v14, %v10309_v52  ;;  %v10171_v52 = vld [vmem:[%s19971_s7 + $0x218] sm:$0xff] }
 0x90b   : > { %11816 = vmatprep.subr.bf16.mxu1 %v13834_v25  ;;  %v13922_v25 = vcombine.high %v10313_v9, %v10317_v47 }
 0x90e   : > { %11817 = vmatpush1.bf16.msra.mxu1 %v13833_v3  ;;  %v13921_v3 = vcombine.low %v10313_v9, %v10317_v47  ;;  %v10183_v9 = vld [vmem:[%s19971_s7 + $0x278] sm:$0xff]  ;;  %v13781_v47 = vcombine.low %v10171_v52, %v10175_v2 }
 0x90f   : > { %11827 = vmatprep.subr.bf16.mxu1 %v13842_v49  ;;  %v13930_v49 = vcombine.high %v10321_v5, %v10325_v34  ;;  %v10191_v5 = vld [vmem:[%s19971_s7 + $0x2b8] sm:$0xff]  ;;  %v16117_v34 = vld [vmem:[%s19973_s9 + $0xc0] sm:$0xff]  }
 0x910   : > { %14404 = vmatprep.subr.bf16.mxu0 %v16117_v34 }
 0x911   : > { %11819 = vmatmul.mubr.bf16.vlgmr.msra.gmra.mrb[24].mxu1 %v19129_v0 }
 0x912   : > { %11828 = vmatpush1.bf16.msra.mxu1 %v13841_v42  ;;  %11859 = vmatprep.mubr.bf16.mxu1 %v19157_v63  ;;  %v13938_v42 = vcombine.high %v10329_v39, %v10333_v59  ;;  %v10195_v39 = vld [vmem:[%s19971_s7 + $0x2d8] sm:$0xff] }
 0x913   : > { %11829 = vmatprep.subr.bf16.mxu1 %v13850_v57  ;;  %v10341_v57 = vld [vmem:[%s19971_s7 + $0x768] sm:$0xff]  ;;  %v10199_v59 = vld [vmem:[%s19971_s7 + $0x2f8] sm:$0xff] }
 0x914   : > { %v13946_v10 = vcombine.high %v10337_v37, %v10341_v57  ;;  %v13945_v28 = vcombine.low %v10337_v37, %v10341_v57  ;;  %v10203_v37 = vld [vmem:[%s19971_s7 + $0x318] sm:$0xff] }
 0x915   : > { %v10207_v57 = vld [vmem:[%s19971_s7 + $0x338] sm:$0xff] }
 0x916   : > { %11830 = vmatpush1.bf16.msra.mxu1 %v13849_v31  ;;  %v10349_v31 = vld [vmem:[%s19971_s7 + $0x7a8] sm:$0xff] }
 0x917   : > { %11831 = vmatprep.subr.bf16.mxu1 %v13858_v19  ;;  %v13954_v19 = vcombine.high %v10345_v45, %v10349_v31  ;;  %v13953_v13 = vcombine.low %v10345_v45, %v10349_v31  ;;  %v10211_v45 = vld [vmem:[%s19971_s7 + $0x358] sm:$0xff] }
 0x918   : > { %v10215_v31 = vld [vmem:[%s19971_s7 + $0x378] sm:$0xff] }
 0x91a   : > { %11832 = vmatpush1.bf16.msra.mxu1 %v13857_v60  ;;  %v13962_v60 = vcombine.high %v10353_v15, %v10357_v11  ;;  %v10219_v15 = vld [vmem:[%s19971_s7 + $0x398] sm:$0xff] }
 0x91b   : > { %11833 = vmatprep.subr.bf16.mxu1 %v13866_v43  ;;  %v10111_v43 = vld [vmem:[%s19971_s7 + $0x38] sm:$0xff] }
 0x91c   : > { %v13718_v62 = vcombine.high %v10107_v55, %v10111_v43  ;;  %v13717_v58 = vcombine.low %v10107_v55, %v10111_v43  ;;  %v10223_v11 = vld [vmem:[%s19971_s7 + $0x3b8] sm:$0xff] }
 0x91d   : > { %v10227_v55 = vld [vmem:[%s19971_s7 + $0x3d8] sm:$0xff] }
 0x91e   : > { %11834 = vmatpush1.bf16.msra.mxu1 %v13865_v27  ;;  %v10119_v27 = vld [vmem:[%s19971_s7 + $0x78] sm:$0xff] }
 0x91f   : > { %11835 = vmatprep.subr.bf16.mxu1 %v13874_v30  ;;  %v13726_v30 = vcombine.high %v10115_v20, %v10119_v27  ;;  %v13725_v44 = vcombine.low %v10115_v20, %v10119_v27  ;;  %v10231_v43 = vld [vmem:[%s19971_s7 + $0x3f8] sm:$0xff] }
 0x920   : > { %v10235_v20 = vld [vmem:[%s19971_s7 + $0x418] sm:$0xff] }
 0x921   : > { %v10239_v27 = vld [vmem:[%s19971_s7 + $0x438] sm:$0xff] }
 0x922   : > { %11836 = vmatpush1.bf16.msra.mxu1 %v13873_v6  ;;  %v13734_v6 = vcombine.high %v10123_v22, %v10127_v29  ;;  %v10243_v22 = vld [vmem:[%s19971_s7 + $0x458] sm:$0xff] }
 0x923   : > { %11837 = vmatprep.subr.bf16.mxu1 %v13882_v36  ;;  %v10135_v36 = vld [vmem:[%s19971_s7 + $0xf8] sm:$0xff] }
 0x924   : > { %v13742_v24 = vcombine.high %v10131_v41, %v10135_v36  ;;  %v10247_v29 = vld [vmem:[%s19971_s7 + $0x478] sm:$0xff] }
 0x926   : > { %11838 = vmatpush1.bf16.msra.mxu1 %v13881_v4  ;;  %v13741_v4 = vcombine.low %v10131_v41, %v10135_v36  ;;  %v10251_v41 = vld [vmem:[%s19971_s7 + $0x498] sm:$0xff] }
 0x927   : > { %11839 = vmatprep.subr.bf16.mxu1 %v13890_v56  ;;  %v10147_v56 = vld [vmem:[%s19971_s7 + $0x158] sm:$0xff] }
 0x928   : > { %v13757_v38 = vcombine.low %v10147_v56, %v10151_v53  ;;  %v10255_v36 = vld [vmem:[%s19971_s7 + $0x4b8] sm:$0xff] }
 0x92a   : > { %11840 = vmatpush1.bf16.msra.mxu1 %v13889_v8  ;;  %v13758_v8 = vcombine.high %v10147_v56, %v10151_v53 }
 0x92b   : > { %11841 = vmatprep.subr.bf16.mxu1 %v13898_v50  ;;  %v10155_v50 = vld [vmem:[%s19971_s7 + $0x198] sm:$0xff] }
 0x92c   : > { %v13765_v48 = vcombine.low %v10155_v50, %v10159_v26 }
 0x92e   : > { %11842 = vmatpush1.bf16.msra.mxu1 %v13897_v46  ;;  %v13766_v46 = vcombine.high %v10155_v50, %v10159_v26  ;;  %v20068_v50 = vld [vmem:[#allocation3_spill] sm:$0xff] }
 0x92f   : > { %11843 = vmatprep.subr.bf16.mxu1 %v13906_v16  ;;  %v10167_v16 = vld [vmem:[%s19971_s7 + $0x1f8] sm:$0xff]  ;;  %v10364_v26 = vsub.s32 0, %v20068_v50 }
 0x930   : > { %v13774_v14 = vcombine.high %v10163_v54, %v10167_v16  ;;  %v13773_v18 = vcombine.low %v10163_v54, %v10167_v16  ;;  %v10368_v54 = vsub.s32 1, %v20068_v50 }
 0x932   : > { %11844 = vmatpush1.bf16.msra.mxu1 %v13905_v33  ;;  %v13782_v33 = vcombine.high %v10171_v52, %v10175_v2 }
 0x933   : > { %11845 = vmatprep.subr.bf16.mxu1 %v13914_v23  ;;  %v10179_v23 = vld [vmem:[%s19971_s7 + $0x258] sm:$0xff] }
 0x936   : > { %11846 = vmatpush1.bf16.msra.mxu1 %v13913_v7  ;;  %v13790_v7 = vcombine.high %v10179_v23, %v10183_v9 }
 0x937   : > { %11847 = vmatprep.subr.bf16.mxu1 %v13922_v25  ;;  %v10187_v25 = vld [vmem:[%s19971_s7 + $0x298] sm:$0xff] }
 0x93a   : > { %11848 = vmatpush1.bf16.msra.mxu1 %v13921_v3  ;;  %v13789_v3 = vcombine.low %v10179_v23, %v10183_v9 }
 0x93b   : > { %11849 = vmatprep.subr.bf16.mxu1 %v13930_v49  ;;  %v13798_v49 = vcombine.high %v10187_v25, %v10191_v5 }
 0x93e   : > { %11850 = vmatpush1.bf16.msra.mxu1 %v13929_v32  ;;  %v13797_v32 = vcombine.low %v10187_v25, %v10191_v5 }
 0x93f   : > { %11851 = vmatprep.subr.bf16.mxu1 %v13938_v42  ;;  %v13806_v42 = vcombine.high %v10195_v39, %v10199_v59 }
 0x942   : > { %11852 = vmatpush1.bf16.msra.mxu1 %v13937_v17  ;;  %v13805_v17 = vcombine.low %v10195_v39, %v10199_v59 }
 0x943   : > { %11853 = vmatprep.subr.bf16.mxu1 %v13946_v10  ;;  %v13814_v10 = vcombine.high %v10203_v37, %v10207_v57 }
 0x946   : > { %11854 = vmatpush1.bf16.msra.mxu1 %v13945_v28  ;;  %v13813_v28 = vcombine.low %v10203_v37, %v10207_v57 }
 0x947   : > { %11855 = vmatprep.subr.bf16.mxu1 %v13954_v19  ;;  %v13822_v19 = vcombine.high %v10211_v45, %v10215_v31 }
 0x94a   : > { %11856 = vmatpush1.bf16.msra.mxu1 %v13953_v13  ;;  %v13821_v13 = vcombine.low %v10211_v45, %v10215_v31  ;;  %v10303_v45 = vld [vmem:[%s19971_s7 + $0x638] sm:$0xff] }
 0x94b   : > { %11857 = vmatprep.subr.bf16.mxu1 %v13962_v60  ;;  %v13830_v60 = vcombine.high %v10219_v15, %v10223_v11 }
 0x94e   : > { %11858 = vmatpush1.bf16.msra.mxu1 %v13961_v12  ;;  %v13829_v12 = vcombine.low %v10219_v15, %v10223_v11 }
 0x94f   : > { %11950 = vmatprep.subr.bf16.mxu1 %v13718_v62  ;;  %v13838_v62 = vcombine.high %v10227_v55, %v10231_v43 }
 0x951   : > { %11860 = vmatmul.mubr.bf16.vlgmr.msra.gmra.mrb[24].mxu1 %v19144_v21 }
 0x952   : > { %11951 = vmatpush1.bf16.msra.mxu1 %v13717_v58  ;;  %11982 = vmatprep.mubr.bf16.mxu1 %v19148_v51  ;;  %v10143_v51 = vld [vmem:[%s19971_s7 + $0x138] sm:$0xff]  ;;  %v13837_v58 = vcombine.low %v10227_v55, %v10231_v43 }
 0x953   : > { %11952 = vmatprep.subr.bf16.mxu1 %v13726_v30  ;;  %v13750_v61 = vcombine.high %v10139_v40, %v10143_v51  ;;  %v13749_v35 = vcombine.low %v10139_v40, %v10143_v51  ;;  %v13846_v30 = vcombine.high %v10235_v20, %v10239_v27  ;;  %v10259_v40 = vld [vmem:[%s19971_s7 + $0x4d8] sm:$0xff] }
 0x954   : > { %v10263_v51 = vld [vmem:[%s19971_s7 + $0x4f8] sm:$0xff] }
 0x955   : > { %v13869_v56 = vcombine.low %v10259_v40, %v10263_v51  ;;  %v10311_v55 = vld [vmem:[%s19971_s7 + $0x678] sm:$0xff] }
 0x956   : > { %11953 = vmatpush1.bf16.msra.mxu1 %v13725_v44  ;;  %v13845_v44 = vcombine.low %v10235_v20, %v10239_v27  ;;  %v16121_v20 = vld [vmem:[%s19973_s9 + $0xd0] sm:$0xff]   ;;  %v10315_v27 = vld [vmem:[%s19971_s7 + $0x698] sm:$0xff] }
 0x957   : > { %11954 = vmatprep.subr.bf16.mxu1 %v13734_v6  ;;  %v13854_v6 = vcombine.high %v10243_v22, %v10247_v29 }
 0x95a   : > { %11955 = vmatpush1.bf16.msra.mxu1 %v13733_v1  ;;  %v13853_v1 = vcombine.low %v10243_v22, %v10247_v29  ;;  %v16122_v22 = vld [vmem:[%s19973_s9 + $0x90] sm:$0xff]  }
 0x95b   : > { %11956 = vmatprep.subr.bf16.mxu1 %v13742_v24  ;;  %v13862_v24 = vcombine.high %v10251_v41, %v10255_v36 }
 0x95e   : > { %11957 = vmatpush1.bf16.msra.mxu1 %v13741_v4  ;;  %v13861_v4 = vcombine.low %v10251_v41, %v10255_v36  ;;  %v10327_v41 = vld [vmem:[%s19971_s7 + $0x6f8] sm:$0xff] }
 0x95f   : > { %11958 = vmatprep.subr.bf16.mxu1 %v13750_v61  ;;  %v13870_v61 = vcombine.high %v10259_v40, %v10263_v51  ;;  %v16125_v40 = vld [vmem:[%s19973_s9 + $0xe0] sm:$0xff]   ;;  %v10331_v51 = vld [vmem:[%s19971_s7 + $0x718] sm:$0xff] }
 0x962   : > { %11959 = vmatpush1.bf16.msra.mxu1 %v13749_v35  ;;  %v10275_v35 = vld [vmem:[%s19971_s7 + $0x558] sm:$0xff] }
 0x963   : > { %11960 = vmatprep.subr.bf16.mxu1 %v13758_v8  ;;  %v10279_v8 = vld [vmem:[%s19971_s7 + $0x578] sm:$0xff] }
 0x964   : > { %v13886_v16 = vcombine.high %v10275_v35, %v10279_v8 }
 0x966   : > { %11961 = vmatpush1.bf16.msra.mxu1 %v13757_v38 }
 0x967   : > { %11962 = vmatprep.subr.bf16.mxu1 %v13766_v46  ;;  %v19719_v46 = vld [vmem:[%s19972_s8] sm:$0xff] }
 0x968   : > { %v10365_v52 = vrot.slane %v19719_v46, %v10364_v26  ;;  %v10369_v2 = vrot.slane %v19719_v46, %v10368_v54  ;;  %v16128_v26 = vld [vmem:[%s19973_s9 + $0xa8] sm:$0xff]   ;;  %v16129_v54 = vld [vmem:[%s19973_s9 + $0xf0] sm:$0xff]  }
 0x96a   : > { %11963 = vmatpush1.bf16.msra.mxu1 %v13765_v48  ;;  %v10283_v48 = vld [vmem:[%s19971_s7 + $0x598] sm:$0xff] }
 0x96b   : > { %11964 = vmatprep.subr.bf16.mxu1 %v13774_v14  ;;  %v10287_v14 = vld [vmem:[%s19971_s7 + $0x5b8] sm:$0xff] }
 0x96c   : > { %v13893_v59 = vcombine.low %v10283_v48, %v10287_v14 }
 0x96e   : > { %11965 = vmatpush1.bf16.msra.mxu1 %v13773_v18  ;;  %v13885_v18 = vcombine.low %v10275_v35, %v10279_v8  ;;  %v10343_v35 = vld [vmem:[%s19971_s7 + $0x778] sm:$0xff] }
 0x96f   : > { %11966 = vmatprep.subr.bf16.mxu1 %v13782_v33  ;;  %v13894_v33 = vcombine.high %v10283_v48, %v10287_v14  ;;  %v10347_v48 = vld [vmem:[%s19971_s7 + $0x798] sm:$0xff] }
 0x970   : > { %v10351_v14 = vld [vmem:[%s19971_s7 + $0x7b8] sm:$0xff] }
 0x972   : > { %11967 = vmatpush1.bf16.msra.mxu1 %v13781_v47  ;;  %v10291_v47 = vld [vmem:[%s19971_s7 + $0x5d8] sm:$0xff] }
 0x973   : > { %11968 = vmatprep.subr.bf16.mxu1 %v13790_v7  ;;  %v10295_v7 = vld [vmem:[%s19971_s7 + $0x5f8] sm:$0xff] }
 0x974   : > { %v13902_v57 = vcombine.high %v10291_v47, %v10295_v7 }
 0x976   : > { %11969 = vmatpush1.bf16.msra.mxu1 %v13789_v3 }
 0x977   : > { %11970 = vmatprep.subr.bf16.mxu1 %v13798_v49 }
 0x97a   : > { %11971 = vmatpush1.bf16.msra.mxu1 %v13797_v32 }
 0x97b   : > { %11972 = vmatprep.subr.bf16.mxu1 %v13806_v42 }
 0x97e   : > { %11973 = vmatpush1.bf16.msra.mxu1 %v13805_v17 }
 0x97f   : > { %11974 = vmatprep.subr.bf16.mxu1 %v13814_v10  ;;  %v10299_v10 = vld [vmem:[%s19971_s7 + $0x618] sm:$0xff] }
 0x980   : > { %v13910_v11 = vcombine.high %v10299_v10, %v10303_v45  ;;  %v13909_v43 = vcombine.low %v10299_v10, %v10303_v45  ;;  %v16106_v10 = vld [vmem:[%s19973_s9 + $0x110] sm:$0xff]   ;;  %v16108_v45 = vld [vmem:[%s19973_s9 + $0x118] sm:$0xff]  }
 0x982   : > { %11975 = vmatpush1.bf16.msra.mxu1 %v13813_v28  ;;  %v13901_v28 = vcombine.low %v10291_v47, %v10295_v7  ;;  %v10355_v47 = vld [vmem:[%s19971_s7 + $0x7d8] sm:$0xff] }
 0x983   : > { %11976 = vmatprep.subr.bf16.mxu1 %v13822_v19  ;;  %v16118_v19 = vld [vmem:[%s19973_s9 + $0x80] sm:$0xff]   ;;  %v10359_v7 = vld [vmem:[%s19971_s7 + $0x7f8] sm:$0xff] }
 0x986   : > { %11977 = vmatpush1.bf16.msra.mxu1 %v13821_v13  ;;  %v16119_v13 = vld [vmem:[%s19973_s9 + $0xc8] sm:$0xff]  }
 0x987   : > { %11978 = vmatprep.subr.bf16.mxu1 %v13830_v60  ;;  %v10307_v60 = vld [vmem:[%s19971_s7 + $0x658] sm:$0xff] }
 0x98a   : > { %11979 = vmatpush1.bf16.msra.mxu1 %v13829_v12  ;;  %v16120_v12 = vld [vmem:[%s19973_s9 + $0x88] sm:$0xff]  }
 0x98b   : > { %11980 = vmatprep.subr.bf16.mxu1 %v13838_v62  ;;  %v13918_v62 = vcombine.high %v10307_v60, %v10311_v55 }
 0x98e   : > { %11981 = vmatpush1.bf16.msra.mxu1 %v13837_v58  ;;  %v10319_v58 = vld [vmem:[%s19971_s7 + $0x6b8] sm:$0xff] }
 0x98f   : > { %11991 = vmatprep.subr.bf16.mxu1 %v13846_v30  ;;  %v13917_v30 = vcombine.low %v10307_v60, %v10311_v55  ;;  %v13926_v29 = vcombine.high %v10315_v27, %v10319_v58  ;;  %v13925_v36 = vcombine.low %v10315_v27, %v10319_v58  ;;  %v16113_v60 = vld [vmem:[%s19973_s9 + $0x170] sm:$0xff]   ;;  %v16133_v58 = vld [vmem:[%s19973_s9 + $0x1c0] sm:$0xff]  }
 0x990   : > { %v16114_v55 = vld [vmem:[%s19973_s9 + $0x130] sm:$0xff]  }
 0x991   : > { %11983 = vmatmul.mubr.bf16.vlgmr.msra.gmra.mrb[28].mxu1 %v19129_v0  ;;  %v10267_v0 = vld [vmem:[%s19971_s7 + $0x518] sm:$0xff] }
 0x992   : > { %11992 = vmatpush1.bf16.msra.mxu1 %v13845_v44  ;;  %12023 = vmatprep.mubr.bf16.mxu1 %v19157_v63  ;;  %v10271_v63 = vld [vmem:[%s19971_s7 + $0x538] sm:$0xff] }
 0x993   : > { %11993 = vmatprep.subr.bf16.mxu1 %v13854_v6  ;;  %v13878_v53 = vcombine.high %v10267_v0, %v10271_v63  ;;  %v13877_v38 = vcombine.low %v10267_v0, %v10271_v63  ;;  %v16123_v44 = vld [vmem:[%s19973_s9 + $0xd8] sm:$0xff]   ;;  %v16126_v0 = vld [vmem:[%s19973_s9 + $0xa0] sm:$0xff]  }
 0x994   : > { %v10323_v6 = vld [vmem:[%s19971_s7 + $0x6d8] sm:$0xff] }
 0x996   : > { %11994 = vmatpush1.bf16.msra.mxu1 %v13853_v1  ;;  %v16124_v1 = vld [vmem:[%s19973_s9 + $0x98] sm:$0xff]  }
 0x997   : > { %11995 = vmatprep.subr.bf16.mxu1 %v13862_v24  ;;  %v13934_v24 = vcombine.high %v10323_v6, %v10327_v41 }
 0x99a   : > { %11996 = vmatpush1.bf16.msra.mxu1 %v13861_v4  ;;  %v10335_v4 = vld [vmem:[%s19971_s7 + $0x738] sm:$0xff] }
 0x99b   : > { %11997 = vmatprep.subr.bf16.mxu1 %v13870_v61  ;;  %v13933_v61 = vcombine.low %v10323_v6, %v10327_v41  ;;  %v13942_v63 = vcombine.high %v10331_v51, %v10335_v4  ;;  %v13941_v8 = vcombine.low %v10331_v51, %v10335_v4 }
 0x99e   : > { %11998 = vmatpush1.bf16.msra.mxu1 %v13869_v56  ;;  %v16127_v56 = vld [vmem:[%s19973_s9 + $0xe8] sm:$0xff]  }
 0x99f   : > { %11999 = vmatprep.subr.bf16.mxu1 %v13878_v53  ;;  %v10339_v53 = vld [vmem:[%s19971_s7 + $0x758] sm:$0xff] }
 0x9a2   : > { %12000 = vmatpush1.bf16.msra.mxu1 %v13877_v38  ;;  %v13950_v38 = vcombine.high %v10339_v53, %v10343_v35 }
 0x9a3   : > { %12001 = vmatprep.subr.bf16.mxu1 %v13886_v16  ;;  %v10384_v16 = vsub.s32 5, %v20068_v50 }
 0x9a4   : > { %v11779_v23 = vpop.f32.mrb[20].mxu1  ;;  %v19730_v9 = vpop.f32.mrb[0].mxu0 }
 0x9a5   : > { %v15162_v25 = vadd.f32 %v11779_v23, %v10365_v52  ;;  %v11781_v5 = vpop.f32.mrb[21].mxu1  ;;  %v19738_v34 = vpop.f32.mrb[1].mxu0  ;;  %v13949_v52 = vcombine.low %v10339_v53, %v10343_v35  ;;  %v10385_v23 = vrot.slane %v19719_v46, %v10384_v16  ;;  %v16137_v53 = vld [vmem:[%s19973_s9 + $0x1d0] sm:$0xff]   ;;  %v16143_v16 = vld [vmem:[%s19973_s9 + $0x1e8] sm:$0xff]  }
 0x9a6   : > { %v15163_v3 = vadd.f32 %v11781_v5, %v10369_v2  ;;  %v11783_v49 = vpop.f32.mrb[22].mxu1  ;;  %v11947_v39 = vpop.f32.mrb[2].mxu0  ;;  %12002 = vmatpush1.bf16.msra.mxu1 %v13885_v18  ;;  %v16130_v2 = vld [vmem:[%s19973_s9 + $0xb0] sm:$0xff]   ;;  %v13958_v18 = vcombine.high %v10347_v48, %v10351_v14  ;;  %v16132_v5 = vld [vmem:[%s19973_s9 + $0xb8] sm:$0xff]  }
 0x9a7   : > { %v12032_v32 = vmax.f32 %v15162_v25, 0.0  ;;  %v11784_v42 = vpop.f32.mrb[23].mxu1  ;;  %v11948_v37 = vpop.f32.mrb[3].mxu0  ;;  %12003 = vmatprep.subr.bf16.mxu1 %v13894_v33  ;;  %v16131_v33 = vld [vmem:[%s19973_s9 + $0xf8] sm:$0xff]   ;;  %v13957_v25 = vcombine.low %v10347_v48, %v10351_v14  ;;  %v15167_v49 = vadd.f32 %v19738_v34, %v10385_v23  ;;  %v13965_v39 = vcombine.low %v10355_v47, %v10359_v7  ;;  %v16138_v35 = vld [vmem:[%s19973_s9 + $0x190] sm:$0xff]   ;;  %v16144_v48 = vld [vmem:[%s19973_s9 + $0x1a8] sm:$0xff]  }
 0x9a8   : > { %v12033_v17 = vmax.f32 %v15163_v3, 0.0  ;;  %v13966_v3 = vcombine.high %v10355_v47, %v10359_v7  ;;  %v16102_v42 = vld [vmem:[%s19973_s9 + $0x100] sm:$0xff]   ;;  %v16103_v37 = vld [vmem:[%s19973_s9 + $0x148] sm:$0xff]   ;;  %v16145_v14 = vld [vmem:[%s19973_s9 + $0x1f0] sm:$0xff]  }
 0x9a9   : > { %v12040_v15 = vpack.c.bf16 %v12032_v32, %v12032_v32  ;;  %v12037_v32 = vmax.f32 %v15167_v49, 0.0 }
 0x9aa   : > { %v12041_v31 = vpack.c.bf16 %v12033_v17, %v12033_v17  ;;  %12004 = vmatpush1.bf16.msra.mxu1 %v13893_v59  ;;  %v16101_v59 = vld [vmem:[%s19973_s9 + $0x140] sm:$0xff]   ;;  %v16105_v17 = vld [vmem:[%s19973_s9 + $0x150] sm:$0xff]  }
 0x9ab   : > { %12005 = vmatprep.subr.bf16.mxu1 %v13902_v57  ;;  %v12045_v34 = vpack.c.bf16 %v12037_v32, %v12037_v32  ;;  %v16104_v57 = vld [vmem:[%s19973_s9 + $0x108] sm:$0xff]  }
 0x9ac   : > { %12599 = vmatprep.mubr.bf16.mxu0 %v12041_v31  ;;  %v16109_v31 = vld [vmem:[%s19973_s9 + $0x160] sm:$0xff]  }
 0x9ad   : > { %12600 = vmatmul.mubr.bf16.vlgmr.msra.gmra.mrb[4].mxu0 %v12040_v15  ;;  %v16111_v15 = vld [vmem:[%s19973_s9 + $0x168] sm:$0xff]  }
 0x9ae   : > { %12006 = vmatpush1.bf16.msra.mxu1 %v13901_v28  ;;  %14405 = vmatpush3.bf16.msra.mxu0 %v16118_v19  ;;  %v16110_v28 = vld [vmem:[%s19973_s9 + $0x120] sm:$0xff]   ;;  %v10380_v19 = vsub.s32 4, %v20068_v50 }
 0x9af   : > { %12007 = vmatprep.subr.bf16.mxu1 %v13910_v11  ;;  %14406 = vmatprep.subr.bf16.mxu0 %v16119_v13  ;;  %v16112_v11 = vld [vmem:[%s19973_s9 + $0x128] sm:$0xff]  }
 0x9b0   : > { %v10381_v13 = vrot.slane %v19719_v46, %v10380_v19 }
 0x9b2   : > { %12008 = vmatpush1.bf16.msra.mxu1 %v13909_v43  ;;  %14407 = vmatpush3.bf16.msra.mxu0 %v16120_v12  ;;  %v15166_v43 = vadd.f32 %v19730_v9, %v10381_v13  ;;  %v16115_v12 = vld [vmem:[%s19973_s9 + $0x178] sm:$0xff]   ;;  %v10372_v9 = vsub.s32 2, %v20068_v50 }
 0x9b3   : > { %12009 = vmatprep.subr.bf16.mxu1 %v13918_v62  ;;  %14408 = vmatprep.subr.bf16.mxu0 %v16121_v20  ;;  %v16116_v62 = vld [vmem:[%s19973_s9 + $0x138] sm:$0xff]  }
 0x9b4   : > { %v12036_v20 = vmax.f32 %v15166_v43, 0.0 }
 0x9b6   : > { %12010 = vmatpush1.bf16.msra.mxu1 %v13917_v30  ;;  %14409 = vmatpush3.bf16.msra.mxu0 %v16122_v22  ;;  %v12044_v27 = vpack.c.bf16 %v12036_v20, %v12036_v20  ;;  %v10376_v30 = vsub.s32 3, %v20068_v50  ;;  %v10373_v22 = vrot.slane %v19719_v46, %v10372_v9 }
 0x9b7   : > { %12011 = vmatprep.subr.bf16.mxu1 %v13926_v29  ;;  %14410 = vmatprep.subr.bf16.mxu0 %v16123_v44 }
 0x9b8   : > { %v10377_v29 = vrot.slane %v19719_v46, %v10376_v30 }
 0x9ba   : > { %12012 = vmatpush1.bf16.msra.mxu1 %v13925_v36  ;;  %14411 = vmatpush3.bf16.msra.mxu0 %v16124_v1 }
 0x9bb   : > { %12013 = vmatprep.subr.bf16.mxu1 %v13934_v24  ;;  %14412 = vmatprep.subr.bf16.mxu0 %v16125_v40 }
 0x9be   : > { %12014 = vmatpush1.bf16.msra.mxu1 %v13933_v61  ;;  %14413 = vmatpush3.bf16.msra.mxu0 %v16126_v0  ;;  %v16134_v61 = vld [vmem:[%s19973_s9 + $0x180] sm:$0xff]  }
 0x9bf   : > { %12015 = vmatprep.subr.bf16.mxu1 %v13942_v63  ;;  %14414 = vmatprep.subr.bf16.mxu0 %v16127_v56  ;;  %v16135_v63 = vld [vmem:[%s19973_s9 + $0x1c8] sm:$0xff]  }
 0x9c0   : > { %v16136_v56 = vld [vmem:[%s19973_s9 + $0x188] sm:$0xff]  }
 0x9c2   : > { %12016 = vmatpush1.bf16.msra.mxu1 %v13941_v8  ;;  %14415 = vmatpush3.bf16.msra.mxu0 %v16128_v26  ;;  %v16139_v8 = vld [vmem:[%s19973_s9 + $0x1d8] sm:$0xff]  }
 0x9c3   : > { %12017 = vmatprep.subr.bf16.mxu1 %v13950_v38  ;;  %14416 = vmatprep.subr.bf16.mxu0 %v16129_v54  ;;  %v16140_v26 = vld [vmem:[%s19973_s9 + $0x198] sm:$0xff]   ;;  %v16141_v38 = vld [vmem:[%s19973_s9 + $0x1e0] sm:$0xff]  }
 0x9c4   : > { %v16142_v54 = vld [vmem:[%s19973_s9 + $0x1a0] sm:$0xff]  }
 0x9c6   : > { %12018 = vmatpush1.bf16.msra.mxu1 %v13949_v52  ;;  %14417 = vmatpush3.bf16.msra.mxu0 %v16130_v2  ;;  %v16146_v52 = vld [vmem:[%s19973_s9 + $0x1b0] sm:$0xff]   ;;  %v16147_v2 = vld [vmem:[%s19973_s9 + $0x1f8] sm:$0xff]  }
 0x9c7   : > { %12019 = vmatprep.subr.bf16.mxu1 %v13958_v18  ;;  %14418 = vmatprep.subr.bf16.mxu0 %v16131_v33  ;;  %v16148_v18 = vld [vmem:[%s19973_s9 + $0x1b8] sm:$0xff]  }
 0x9ca   : > { %12020 = vmatpush1.bf16.msra.mxu1 %v13957_v25  ;;  %14419 = vmatpush3.bf16.msra.mxu0 %v16132_v5  ;;  %v10388_v5 = vsub.s32 6, %v20068_v50 }
 0x9cb   : > { %12021 = vmatprep.subr.bf16.mxu1 %v13966_v3  ;;  %14448 = vmatprep.subr.bf16.mxu0 %v16133_v58  ;;  %v10392_v3 = vsub.s32 7, %v20068_v50 }
 0x9cc   : > { %v10389_v49 = vrot.slane %v19719_v46, %v10388_v5 }
 0x9ce   : > { %12022 = vmatpush1.bf16.msra.mxu1 %v13965_v39  ;;  %v10393_v39 = vrot.slane %v19719_v46, %v10392_v3  ;;  %v13967_v46 = vld [vmem:[%s19974_s10] ss:$0 sm:$0xff] }
 0x9cf   : > { %14426 = vmatprep.subr.bf16.mxu1 %v16101_v59 }
 0x9d1   : > { %12024 = vmatmul.mubr.bf16.vlgmr.msra.gmra.mrb[28].mxu1 %v19144_v21  ;;  %v16107_v21 = vld [vmem:[%s19973_s9 + $0x158] sm:$0xff]  }
 0x9d2   : > { %14427 = vmatpush3.bf16.msra.mxu1 %v16102_v42  ;;  %12679 = vmatprep.mubr.bf16.mxu1 %v12045_v34 }
 0x9d3   : > { %14428 = vmatprep.subr.bf16.mxu1 %v16103_v37 }
 0x9d6   : > { %14429 = vmatpush3.bf16.msra.mxu1 %v16104_v57 }
 0x9d7   : > { %14430 = vmatprep.subr.bf16.mxu1 %v16105_v17 }
 0x9da   : > { %14431 = vmatpush3.bf16.msra.mxu1 %v16106_v10 }
 0x9db   : > { %14432 = vmatprep.subr.bf16.mxu1 %v16107_v21 }
 0x9de   : > { %14433 = vmatpush3.bf16.msra.mxu1 %v16108_v45 }
 0x9df   : > { %14434 = vmatprep.subr.bf16.mxu1 %v16109_v31 }
 0x9e2   : > { %14435 = vmatpush3.bf16.msra.mxu1 %v16110_v28 }
 0x9e3   : > { %14436 = vmatprep.subr.bf16.mxu1 %v16111_v15 }
 0x9e6   : > { %14437 = vmatpush3.bf16.msra.mxu1 %v16112_v11 }
 0x9e7   : > { %14438 = vmatprep.subr.bf16.mxu1 %v16113_v60 }
 0x9ea   : > { %14439 = vmatpush3.bf16.msra.mxu1 %v16114_v55 }
 0x9eb   : > { %14440 = vmatprep.subr.bf16.mxu1 %v16115_v12 }
 0x9ee   : > { %14441 = vmatpush3.bf16.msra.mxu1 %v16116_v62 }
 0x9f1   : > { %12680 = vmatmul.mubr.bf16.vlgmr.msra.gmra.mrb[32].mxu1 %v12044_v27 }
 0xa24   : > { %v11861_v44 = vpop.f32.mrb[24].mxu1 }
 0xa25   : > { %v15164_v6 = vadd.f32 %v11861_v44, %v10373_v22  ;;  %v11863_v41 = vpop.f32.mrb[25].mxu1 }
 0xa26   : > { %v15165_v36 = vadd.f32 %v11863_v41, %v10377_v29  ;;  %v11865_v1 = vpop.f32.mrb[26].mxu1 }
 0xa27   : > { %v12034_v24 = vmax.f32 %v15164_v6, 0.0  ;;  %v11866_v40 = vpop.f32.mrb[27].mxu1 }
 0xa28   : > { %v12035_v51 = vmax.f32 %v15165_v36, 0.0 }
 0xa29   : > { %v12042_v0 = vpack.c.bf16 %v12034_v24, %v12034_v24 }
 0xa2a   : > { %v12043_v4 = vpack.c.bf16 %v12035_v51, %v12035_v51 }
 0xa2c   : > { %12639 = vmatprep.mubr.bf16.mxu0 %v12043_v4 }
 0xa2d   : > { %12640 = vmatmul.mubr.bf16.vlgmr.msra.gmra.mrb[8].mxu0 %v12042_v0 }
 0xa2e   : > { %14449 = vmatpush3.bf16.msra.mxu0 %v16134_v61 }
 0xa2f   : > { %14450 = vmatprep.subr.bf16.mxu0 %v16135_v63 }
 0xa32   : > { %14451 = vmatpush3.bf16.msra.mxu0 %v16136_v56 }
 0xa33   : > { %14452 = vmatprep.subr.bf16.mxu0 %v16137_v53 }
 0xa36   : > { %14453 = vmatpush3.bf16.msra.mxu0 %v16138_v35 }
 0xa37   : > { %14454 = vmatprep.subr.bf16.mxu0 %v16139_v8 }
 0xa3a   : > { %14455 = vmatpush3.bf16.msra.mxu0 %v16140_v26 }
 0xa3b   : > { %14456 = vmatprep.subr.bf16.mxu0 %v16141_v38 }
 0xa3e   : > { %14457 = vmatpush3.bf16.msra.mxu0 %v16142_v54 }
 0xa3f   : > { %14458 = vmatprep.subr.bf16.mxu0 %v16143_v16 }
 0xa42   : > { %14459 = vmatpush3.bf16.msra.mxu0 %v16144_v48 }
 0xa43   : > { %14460 = vmatprep.subr.bf16.mxu0 %v16145_v14 }
 0xa46   : > { %14461 = vmatpush3.bf16.msra.mxu0 %v16146_v52 }
 0xa47   : > { %14462 = vmatprep.subr.bf16.mxu0 %v16147_v2 }
 0xa4a   : > { %14463 = vmatpush3.bf16.msra.mxu0 %v16148_v18 }
 0xa80   : > { %v14398_v33 = vpop.f32.mrb[4].mxu0 }
 0xa81   : > { %v14399_v23 = vpop.f32.mrb[5].mxu0 }
 0xa82   : > { %v14400_v47 = vadd.f32 %v14399_v23, %v14398_v33  ;;  %v14401_v7 = vpop.f32.mrb[6].mxu0 }
 0xa83   : > { %v14402_v25 = vpop.f32.mrb[7].mxu0 }
 0xa84   : > { %v12602_v60 = vadd.f32 %v14400_v47, %v13967_v46 }
 0xaa4   : > { %v12025_v59 = vpop.f32.mrb[28].mxu1 }
 0xaa5   : > { %v15168_v32 = vadd.f32 %v12025_v59, %v10389_v49  ;;  %v12027_v42 = vpop.f32.mrb[29].mxu1 }
 0xaa6   : > { %v15169_v37 = vadd.f32 %v12027_v42, %v10393_v39  ;;  %v12029_v34 = vpop.f32.mrb[30].mxu1 }
 0xaa7   : > { %v12038_v57 = vmax.f32 %v15168_v32, 0.0  ;;  %v12030_v17 = vpop.f32.mrb[31].mxu1 }
 0xaa8   : > { %v12039_v10 = vmax.f32 %v15169_v37, 0.0 }
 0xaa9   : > { %v12046_v45 = vpack.c.bf16 %v12038_v57, %v12038_v57 }
 0xaaa   : > { %v12047_v21 = vpack.c.bf16 %v12039_v10, %v12039_v10 }
 0xaac   : > { %12719 = vmatprep.mubr.bf16.mxu0 %v12047_v21 }
 0xaad   : > { %12720 = vmatmul.mubr.bf16.vlgmr.msra.gmra.mrb[12].mxu0 %v12046_v45 }
 0xac4   : > { %v14442_v31 = vpop.f32.mrb[32].mxu1 }
 0xac5   : > { %v14443_v50 = vpop.f32.mrb[33].mxu1 }
 0xac6   : > { %v14444_v28 = vadd.f32 %v14443_v50, %v14442_v31  ;;  %v14445_v19 = vpop.f32.mrb[34].mxu1 }
 0xac7   : > { %v14446_v15 = vpop.f32.mrb[35].mxu1 }
 0xb00   : > { %v14420_v11 = vpop.f32.mrb[8].mxu0 }
 0xb01   : > { %v14421_v13 = vpop.f32.mrb[9].mxu0 }
 0xb02   : > { %v14422_v55 = vadd.f32 %v14421_v13, %v14420_v11  ;;  %v14423_v43 = vpop.f32.mrb[10].mxu0 }
 0xb03   : > { %v14424_v12 = vpop.f32.mrb[11].mxu0 }
 0xb04   : > { %v12642_v62 = vadd.f32 %v14422_v55, %v12602_v60 }
 0xb06   : > { %v12682_v20 = vadd.f32 %v14444_v28, %v12642_v62 }
 0xb80   : > { %v14464_v27 = vpop.f32.mrb[12].mxu0 }
 0xb81   : > { %v14465_v58 = vpop.f32.mrb[13].mxu0 }
 0xb82   : > { %v14466_v9 = vadd.f32 %v14465_v58, %v14464_v27  ;;  %v14467_v30 = vpop.f32.mrb[14].mxu0 }
 0xb83   : > { %v14468_v22 = vpop.f32.mrb[15].mxu0 }
 0xb84   : > { %v12722_v29 = vadd.f32 %v14466_v9, %v12682_v20 }
 0xb86   : > { %12727 = vst [vmem:[%s1441_s27] sm:$0xff] %v12722_v29 }
 0xb87 PF: > { %p18_p9 = scmp.ge.s32.totalorder %s16257_s21, 4   ;;  %s20069_s17 = smov %s16171_s18 }
 0xb88   : > { %s20070_s18 = smov %s16266_s24  ;;  %s20071_s19 = smov %s16257_s21 }
 0xb89   :  { %20 = sbr.rel (!%p18_p9) target bundleno = 2 (0x2), region = 160 }

</bundles_post_ra>
